<compile_context>
chip_gen: v7x
topology: tpu7x:2x2x1
jax: 0.10.0
libtpu: 0.0.40
codegen_flags: <defaults>
</compile_context>

<pallas_src>
import jax
import jax.numpy as jnp
from jax import lax
from jax.experimental import pallas as pl
from jax.experimental.pallas import tpu as pltpu


# ---------------------------------------------------------------------------
# Fused decoder kernel (one grid step == one batch element)
# ---------------------------------------------------------------------------
def _decoder_kernel(x8_ref, x16_ref, a_ref, s_ref,
                    w8_ref, b8_ref, w16_ref, b16_ref,
                    wsc8_ref, wsc16_ref, bsc_ref,
                    w1a_ref, w1b_ref, b1_ref,
                    w2_ref, b2_ref,
                    wse1_ref, bse1_ref, wse2_ref, bse2_ref,
                    w3_ref, b3_ref,
                    wcls_ref, bcls_ref,
                    o_ref):
    f32 = jnp.float32
    bf16 = jnp.bfloat16

    # head16: 1x1 conv (+folded BN) + ReLU on the 1/16 map -> (M16, 128)
    h16 = jnp.dot(x16_ref[0], w16_ref[...], preferred_element_type=f32)
    h16 = jnp.maximum(h16 + b16_ref[...], 0.0)

    # bilinear upsample (align_corners=False) as a single Kronecker matmul
    h16u = jnp.dot(a_ref[...], h16, preferred_element_type=f32)      # (M8, 128)

    # head8: 1x1 conv (+folded BN) + ReLU on the 1/8 map -> (M8, 32)
    h8 = jnp.dot(x8_ref[0], w8_ref[...], preferred_element_type=f32)
    h8 = jnp.maximum(h8 + b8_ref[...], 0.0)

    # implicit concat([h8, h16u]) : 160-channel 1x1 convs via split weights
    sc = (jnp.dot(h8, wsc8_ref[...], preferred_element_type=f32)
          + jnp.dot(h16u, wsc16_ref[...], preferred_element_type=f32)
          + bsc_ref[...])                                            # shortcut (no act)
    t = (jnp.dot(h8, w1a_ref[...], preferred_element_type=f32)
         + jnp.dot(h16u, w1b_ref[...], preferred_element_type=f32)
         + b1_ref[...])
    t = jnp.maximum(t, 0.0)                                          # conv1+bn1+relu

    # conv2: grouped 3x3 (groups=8, pad=1) as 9 x (shift-matmul, channel-matmul)
    # S_k is exact 0/1 (bf16-exact); both matmuls run single-pass on bf16 MXU.
    t_b = t.astype(bf16)
    acc = jnp.zeros(t.shape, f32)
    for k in range(9):
        shifted = jnp.dot(s_ref[k], t_b, preferred_element_type=f32).astype(bf16)
        acc = acc + jnp.dot(shifted, w2_ref[k], preferred_element_type=f32)
    t = jnp.maximum(acc + b2_ref[...], 0.0)                          # bn2+relu

    # SE: global avg pool -> FC(128->40)+ReLU -> FC(40->128)+sigmoid -> scale
    pooled = jnp.mean(t, axis=0, keepdims=True)                      # (1, 128)
    pooled8 = jnp.broadcast_to(pooled, (8, t.shape[1]))              # sublane aligned
    se = jnp.dot(pooled8, wse1_ref[...], preferred_element_type=f32) + bse1_ref[...]
    se = jnp.maximum(se, 0.0)
    se = jnp.dot(se, wse2_ref[...], preferred_element_type=f32) + bse2_ref[...]
    se = jax.nn.sigmoid(se)
    t = t * se[0:1, :]

    # conv3 + bn3, residual add with shortcut, ReLU
    t = jnp.dot(t, w3_ref[...], preferred_element_type=f32) + b3_ref[...]
    y = jnp.maximum(t + sc, 0.0)

    # classifier 1x1 conv (real bias)
    logits = jnp.dot(y, wcls_ref[...], preferred_element_type=f32) + bcls_ref[...]
    o_ref[0] = logits.astype(o_ref.dtype)


# ---------------------------------------------------------------------------
# Host-side constant builders
# ---------------------------------------------------------------------------
def bilinear_matrix(out_size, in_size):
    """Row-interpolation matrix matching PyTorch bilinear, align_corners=False."""
    i = jnp.arange(out_size, dtype=jnp.float32)
    src = (i + 0.5) * (in_size / out_size) - 0.5
    src = jnp.maximum(src, 0.0)
    i0 = jnp.minimum(jnp.floor(src).astype(jnp.int32), in_size - 1)
    i1 = jnp.minimum(i0 + 1, in_size - 1)
    w1 = src - i0.astype(jnp.float32)
    w0 = 1.0 - w1
    rows = jnp.arange(out_size)
    m = jnp.zeros((out_size, in_size), jnp.float32)
    m = m.at[rows, i0].add(w0)
    m = m.at[rows, i1].add(w1)
    return m


def shift_matrices(H, W):
    """(9, H*W, H*W) 0/1 matrices: S_k @ x_flat == 3x3-tap spatial shift w/ zero pad."""
    hh, ww = jnp.meshgrid(jnp.arange(H), jnp.arange(W), indexing="ij")
    mats = []
    for ky in range(3):
        for kx in range(3):
            sh = hh + ky - 1
            sw = ww + kx - 1
            valid = ((sh >= 0) & (sh < H) & (sw >= 0) & (sw < W)).reshape(-1)
            src = (jnp.clip(sh, 0, H - 1) * W + jnp.clip(sw, 0, W - 1)).reshape(-1)
            m = jnp.zeros((H * W, H * W), jnp.float32)
            m = m.at[jnp.arange(H * W), src].set(valid.astype(jnp.float32))
            mats.append(m)
    return jnp.stack(mats)


def densify_grouped(w_g, groups):
    """(3,3,cg,Cout) grouped HWIO weight -> (3,3,Cin,Cout) block-diagonal dense."""
    kh, kw, cg, cout = w_g.shape
    cin = cg * groups
    cpg_out = cout // groups
    ci = jnp.arange(cin)
    co = jnp.arange(cout)
    mask = (ci[:, None] // cg) == (co[None, :] // cpg_out)
    dense = w_g[:, :, ci[:, None] % cg, co[None, :]] * mask[None, None].astype(w_g.dtype)
    return dense


# ---------------------------------------------------------------------------
# Parameter setup (deterministic, synthetic) + inference-mode BN folding
# ---------------------------------------------------------------------------
def fold_bn(w, gamma, beta, mean, var, eps=1e-5):
    scale = gamma / jnp.sqrt(var + eps)
    return w * scale, beta - mean * scale


def make_bn(key, c):
    k1, k2, k3, k4 = jax.random.split(key, 4)
    gamma = jax.random.uniform(k1, (c,), minval=0.5, maxval=1.5)
    beta = 0.1 * jax.random.normal(k2, (c,))
    mean = 0.1 * jax.random.normal(k3, (c,))
    var = jax.random.uniform(k4, (c,), minval=0.5, maxval=1.5)
    return gamma, beta, mean, var


def init_params(key, channels8, channels16, num_classes):
    ks = jax.random.split(key, 18)
    p = {}
    # head8: 1x1 conv channels8 -> 32 (+BN, ReLU)
    w = 0.3 * jax.random.normal(ks[0], (channels8, 32))
    p["head8_w"], p["head8_b"] = fold_bn(w, *make_bn(ks[1], 32))
    # head16: 1x1 conv channels16 -> 128 (+BN, ReLU)
    w = 0.3 * jax.random.normal(ks[2], (channels16, 128))
    p["head16_w"], p["head16_b"] = fold_bn(w, *make_bn(ks[3], 128))
    # DBlock(160 -> 128, dilations=[1], group_width=16, stride=1, attention='se')
    w = (1.0 / jnp.sqrt(160.0)) * jax.random.normal(ks[4], (160, 128))
    p["conv1_w"], p["conv1_b"] = fold_bn(w, *make_bn(ks[5], 128))
    # conv2: grouped 3x3, groups=8 -> HWIO grouped weight (3,3,16,128)
    w = (1.0 / 12.0) * jax.random.normal(ks[6], (3, 3, 16, 128))
    p["conv2_w"], p["conv2_b"] = fold_bn(w, *make_bn(ks[7], 128))
    # SE: w_se = in_channels // 4 = 160 // 4 = 40, convs have real bias, no BN
    p["se1_w"] = 0.1 * jax.random.normal(ks[8], (128, 40))
    p["se1_b"] = 0.1 * jax.random.normal(ks[9], (40,))
    p["se2_w"] = 0.1 * jax.random.normal(ks[10], (40, 128))
    p["se2_b"] = 0.1 * jax.random.normal(ks[11], (128,))
    # conv3: 1x1, 128 -> 128 (+BN, no act before residual)
    w = (1.0 / jnp.sqrt(128.0)) * jax.random.normal(ks[12], (128, 128))
    p["conv3_w"], p["conv3_b"] = fold_bn(w, *make_bn(ks[13], 128))
    # shortcut: 1x1, 160 -> 128 (+BN)
    w = (1.0 / jnp.sqrt(160.0)) * jax.random.normal(ks[14], (160, 128))
    p["sc_w"], p["sc_b"] = fold_bn(w, *make_bn(ks[15], 128))
    # classifier: 1x1, 128 -> num_classes, with bias
    p["cls_w"] = 0.1 * jax.random.normal(ks[16], (128, num_classes))
    p["cls_b"] = 0.1 * jax.random.normal(ks[17], (num_classes,))
    return p


def make_operands(p, H8, W8, H16, W16):
    """Precompute ALL kernel constants once (outside jit): kron upsample matrix,
    shift matrices (bf16, exact 0/1), densified grouped weights, split 1x1s."""
    f32 = jnp.float32
    A = jnp.kron(bilinear_matrix(H8, H16), bilinear_matrix(W8, W16)).astype(f32)
    S = shift_matrices(H8, W8).astype(jnp.bfloat16)
    dense = densify_grouped(p["conv2_w"], groups=8)
    W2 = dense.reshape(9, dense.shape[2], dense.shape[3]).astype(jnp.bfloat16)

    def b(v):
        return v.reshape(1, -1).astype(f32)

    return (
        A, S,
        p["head8_w"].astype(f32), b(p["head8_b"]),
        p["head16_w"].astype(f32), b(p["head16_b"]),
        p["sc_w"][:32].astype(f32), p["sc_w"][32:].astype(f32), b(p["sc_b"]),
        p["conv1_w"][:32].astype(f32), p["conv1_w"][32:].astype(f32), b(p["conv1_b"]),
        W2, b(p["conv2_b"]),
        p["se1_w"].astype(f32), b(p["se1_b"]),
        p["se2_w"].astype(f32), b(p["se2_b"]),
        p["conv3_w"].astype(f32), b(p["conv3_b"]),
        p["cls_w"].astype(f32), b(p["cls_b"]),
    )


# ---------------------------------------------------------------------------
# Fused forward (Pallas) and pure-JAX reference
# ---------------------------------------------------------------------------
def decoder_forward(x8_nchw, x16_nchw, consts):
    N, C8, H8, W8 = x8_nchw.shape
    _, C16, H16, W16 = x16_nchw.shape
    M8, M16 = H8 * W8, H16 * W16
    NC = consts[-2].shape[1]                     # cls_w is second-to-last const

    x8f = jnp.transpose(x8_nchw, (0, 2, 3, 1)).reshape(N, M8, C8).astype(jnp.float32)
    x16f = jnp.transpose(x16_nchw, (0, 2, 3, 1)).reshape(N, M16, C16).astype(jnp.float32)

    operands = (x8f, x16f) + tuple(consts)

    def const_spec(shape):
        zeros = (0,) * len(shape)
        return pl.BlockSpec(shape, lambda n: zeros)

    in_specs = [
        pl.BlockSpec((1, M8, C8), lambda n: (n, 0, 0)),
        pl.BlockSpec((1, M16, C16), lambda n: (n, 0, 0)),
    ] + [const_spec(op.shape) for op in operands[2:]]

    out = pl.pallas_call(
        _decoder_kernel,
        out_shape=jax.ShapeDtypeStruct((N, M8, NC), jnp.float32),
        grid=(N,),
        in_specs=in_specs,
        out_specs=pl.BlockSpec((1, M8, NC), lambda n: (n, 0, 0)),
        compiler_params=pltpu.CompilerParams(
            dimension_semantics=("parallel",)),
    )(*operands)
    return jnp.transpose(out.reshape(N, H8, W8, NC), (0, 3, 1, 2))   # back to NCHW


def decoder_forward_ref(x8_nchw, x16_nchw, p):
    PREC = lax.Precision.HIGHEST
    x8 = jnp.transpose(x8_nchw, (0, 2, 3, 1)).astype(jnp.float32)
    x16 = jnp.transpose(x16_nchw, (0, 2, 3, 1)).astype(jnp.float32)
    H8, W8 = x8.shape[1], x8.shape[2]
    H16, W16 = x16.shape[1], x16.shape[2]

    def ein(eq, a, b):
        return jnp.einsum(eq, a, b, precision=PREC)

    h16 = jax.nn.relu(ein("nhwc,co->nhwo", x16, p["head16_w"]) + p["head16_b"])
    ah = bilinear_matrix(H8, H16)
    aw = bilinear_matrix(W8, W16)
    t = ein("ip,npqc->niqc", ah, h16)
    h16u = ein("jq,niqc->nijc", aw, t)

    h8 = jax.nn.relu(ein("nhwc,co->nhwo", x8, p["head8_w"]) + p["head8_b"])
    cat = jnp.concatenate([h8, h16u], axis=-1)                        # (N,H8,W8,160)

    # DBlock
    sc = ein("nhwc,co->nhwo", cat, p["sc_w"]) + p["sc_b"]
    t = jax.nn.relu(ein("nhwc,co->nhwo", cat, p["conv1_w"]) + p["conv1_b"])
    t = lax.conv_general_dilated(
        t, p["conv2_w"], window_strides=(1, 1), padding=((1, 1), (1, 1)),
        dimension_numbers=("NHWC", "HWIO", "NHWC"), feature_group_count=8,
        precision=PREC)
    t = jax.nn.relu(t + p["conv2_b"])
    pooled = jnp.mean(t, axis=(1, 2), keepdims=True)
    s = jax.nn.relu(ein("nhwc,co->nhwo", pooled, p["se1_w"]) + p["se1_b"])
    s = jax.nn.sigmoid(ein("nhwc,co->nhwo", s, p["se2_w"]) + p["se2_b"])
    t = t * s
    t = ein("nhwc,co->nhwo", t, p["conv3_w"]) + p["conv3_b"]
    y = jax.nn.relu(t + sc)

    logits = ein("nhwc,co->nhwo", y, p["cls_w"]) + p["cls_b"]
    return jnp.transpose(logits, (0, 3, 1, 2))


if __name__ == "__main__":
    key = jax.random.PRNGKey(0)
    k_x8, k_x16, k_p = jax.random.split(key, 3)

    N = 2
    channels = {"8": 4, "16": 8}
    num_classes = 5
    # NCHW inputs, matching the PyTorch module's expectations.
    x8 = jax.random.normal(k_x8, (N, channels["8"], 16, 16), dtype=jnp.float32)
    x16 = jax.random.normal(k_x16, (N, channels["16"], 8, 8), dtype=jnp.float32)

    params = init_params(k_p, channels["8"], channels["16"], num_classes)
    consts = make_operands(params, 16, 16, 8, 8)     # built once, outside jit

    fwd = jax.jit(decoder_forward)
    out = fwd(x8, x16, consts)
    out = jax.block_until_ready(out)

    ref = decoder_forward_ref(x8, x16, params)
    assert out.shape == (N, num_classes, 16, 16), out.shape
    max_err = float(jnp.max(jnp.abs(out - ref)))
    # conv2 stage runs in bf16 on the MXU; 3e-2 comfortably covers that while
    # still catching any structural bug (which would be O(1) off).
    assert jnp.allclose(out, ref, atol=3e-2, rtol=3e-2), max_err

    print("KERNEL_OK")
</pallas_src>

<mosaic_0001>
module attributes {stable_mosaic.version = 11 : i64} {
  func.func @_decoder_kernel(%arg0: i32, %arg1: memref<1x256x4xf32, #tpu.memory_space<vmem>>, %arg2: memref<1x64x8xf32, #tpu.memory_space<vmem>>, %arg3: memref<256x64xf32, #tpu.memory_space<vmem>>, %arg4: memref<9x256x256xbf16, #tpu.memory_space<vmem>>, %arg5: memref<4x32xf32, #tpu.memory_space<vmem>>, %arg6: memref<1x32xf32, #tpu.memory_space<vmem>>, %arg7: memref<8x128xf32, #tpu.memory_space<vmem>>, %arg8: memref<1x128xf32, #tpu.memory_space<vmem>>, %arg9: memref<32x128xf32, #tpu.memory_space<vmem>>, %arg10: memref<128x128xf32, #tpu.memory_space<vmem>>, %arg11: memref<1x128xf32, #tpu.memory_space<vmem>>, %arg12: memref<32x128xf32, #tpu.memory_space<vmem>>, %arg13: memref<128x128xf32, #tpu.memory_space<vmem>>, %arg14: memref<1x128xf32, #tpu.memory_space<vmem>>, %arg15: memref<9x128x128xbf16, #tpu.memory_space<vmem>>, %arg16: memref<1x128xf32, #tpu.memory_space<vmem>>, %arg17: memref<128x40xf32, #tpu.memory_space<vmem>>, %arg18: memref<1x40xf32, #tpu.memory_space<vmem>>, %arg19: memref<40x128xf32, #tpu.memory_space<vmem>>, %arg20: memref<1x128xf32, #tpu.memory_space<vmem>>, %arg21: memref<128x128xf32, #tpu.memory_space<vmem>>, %arg22: memref<1x128xf32, #tpu.memory_space<vmem>>, %arg23: memref<128x5xf32, #tpu.memory_space<vmem>>, %arg24: memref<1x5xf32, #tpu.memory_space<vmem>>, %arg25: memref<1x256x5xf32, #tpu.memory_space<vmem>>) attributes {dimension_semantics = [#tpu.dimension_semantics<parallel>], iteration_bounds = array<i64: 2>, scalar_prefetch = 0 : i64, scratch_operands = 0 : i64, tpu.core_type = #tpu.core_type<tc>, window_params = [{transform_indices = @transform_0, window_bounds = array<i64: 1, 256, 4>}, {transform_indices = @transform_1, window_bounds = array<i64: 1, 64, 8>}, {pipeline_mode = #tpu.pipeline_mode<synchronous>, transform_indices = @transform_2, window_bounds = array<i64: 256, 64>}, {pipeline_mode = #tpu.pipeline_mode<synchronous>, transform_indices = @transform_3, window_bounds = array<i64: 9, 256, 256>}, {pipeline_mode = #tpu.pipeline_mode<synchronous>, transform_indices = @transform_4, window_bounds = array<i64: 4, 32>}, {pipeline_mode = #tpu.pipeline_mode<synchronous>, transform_indices = @transform_5, window_bounds = array<i64: 1, 32>}, {pipeline_mode = #tpu.pipeline_mode<synchronous>, transform_indices = @transform_6, window_bounds = array<i64: 8, 128>}, {pipeline_mode = #tpu.pipeline_mode<synchronous>, transform_indices = @transform_7, window_bounds = array<i64: 1, 128>}, {pipeline_mode = #tpu.pipeline_mode<synchronous>, transform_indices = @transform_8, window_bounds = array<i64: 32, 128>}, {pipeline_mode = #tpu.pipeline_mode<synchronous>, transform_indices = @transform_9, window_bounds = array<i64: 128, 128>}, {pipeline_mode = #tpu.pipeline_mode<synchronous>, transform_indices = @transform_10, window_bounds = array<i64: 1, 128>}, {pipeline_mode = #tpu.pipeline_mode<synchronous>, transform_indices = @transform_11, window_bounds = array<i64: 32, 128>}, {pipeline_mode = #tpu.pipeline_mode<synchronous>, transform_indices = @transform_12, window_bounds = array<i64: 128, 128>}, {pipeline_mode = #tpu.pipeline_mode<synchronous>, transform_indices = @transform_13, window_bounds = array<i64: 1, 128>}, {pipeline_mode = #tpu.pipeline_mode<synchronous>, transform_indices = @transform_14, window_bounds = array<i64: 9, 128, 128>}, {pipeline_mode = #tpu.pipeline_mode<synchronous>, transform_indices = @transform_15, window_bounds = array<i64: 1, 128>}, {pipeline_mode = #tpu.pipeline_mode<synchronous>, transform_indices = @transform_16, window_bounds = array<i64: 128, 40>}, {pipeline_mode = #tpu.pipeline_mode<synchronous>, transform_indices = @transform_17, window_bounds = array<i64: 1, 40>}, {pipeline_mode = #tpu.pipeline_mode<synchronous>, transform_indices = @transform_18, window_bounds = array<i64: 40, 128>}, {pipeline_mode = #tpu.pipeline_mode<synchronous>, transform_indices = @transform_19, window_bounds = array<i64: 1, 128>}, {pipeline_mode = #tpu.pipeline_mode<synchronous>, transform_indices = @transform_20, window_bounds = array<i64: 128, 128>}, {pipeline_mode = #tpu.pipeline_mode<synchronous>, transform_indices = @transform_21, window_bounds = array<i64: 1, 128>}, {pipeline_mode = #tpu.pipeline_mode<synchronous>, transform_indices = @transform_22, window_bounds = array<i64: 128, 5>}, {pipeline_mode = #tpu.pipeline_mode<synchronous>, transform_indices = @transform_23, window_bounds = array<i64: 1, 5>}, {transform_indices = @transform_24, window_bounds = array<i64: 1, 256, 5>}]} {
    %c0 = arith.constant 0 : index
    %c0_0 = arith.constant 0 : index
    %c0_1 = arith.constant 0 : index
    %0 = vector.load %arg2[%c0, %c0_0, %c0_1] : memref<1x64x8xf32, #tpu.memory_space<vmem>>, vector<1x64x8xf32>
    %1 = vector.shape_cast %0 : vector<1x64x8xf32> to vector<64x8xf32>
    %c0_2 = arith.constant 0 : index
    %c0_3 = arith.constant 0 : index
    %2 = vector.load %arg7[%c0_2, %c0_3] : memref<8x128xf32, #tpu.memory_space<vmem>>, vector<8x128xf32>
    %cst = arith.constant dense<0.000000e+00> : vector<64x128xf32>
    %3 = tpu.matmul %1, %2, %cst {dimension_numbers = #tpu.dot_dimension_numbers<[1], [0], [0], [1], [0, 0, 1, 1], [], []>} : vector<64x8xf32>, vector<8x128xf32>, vector<64x128xf32> -> vector<64x128xf32>
    %c0_4 = arith.constant 0 : index
    %c0_5 = arith.constant 0 : index
    %4 = vector.load %arg8[%c0_4, %c0_5] : memref<1x128xf32, #tpu.memory_space<vmem>>, vector<1x128xf32>
    %5 = vector.broadcast %4 : vector<1x128xf32> to vector<64x128xf32>
    %6 = arith.addf %3, %5 : vector<64x128xf32>
    %cst_6 = arith.constant 0.000000e+00 : f32
    %7 = vector.broadcast %cst_6 : f32 to vector<64x128xf32>
    %8 = arith.maximumf %6, %7 : vector<64x128xf32>
    %c0_7 = arith.constant 0 : index
    %c0_8 = arith.constant 0 : index
    %9 = vector.load %arg3[%c0_7, %c0_8] : memref<256x64xf32, #tpu.memory_space<vmem>>, vector<256x64xf32>
    %cst_9 = arith.constant dense<0.000000e+00> : vector<256x128xf32>
    %10 = tpu.matmul %9, %8, %cst_9 {dimension_numbers = #tpu.dot_dimension_numbers<[1], [0], [0], [1], [0, 0, 1, 1], [], []>} : vector<256x64xf32>, vector<64x128xf32>, vector<256x128xf32> -> vector<256x128xf32>
    %c0_10 = arith.constant 0 : index
    %c0_11 = arith.constant 0 : index
    %c0_12 = arith.constant 0 : index
    %11 = vector.load %arg1[%c0_10, %c0_11, %c0_12] : memref<1x256x4xf32, #tpu.memory_space<vmem>>, vector<1x256x4xf32>
    %12 = vector.shape_cast %11 : vector<1x256x4xf32> to vector<256x4xf32>
    %c0_13 = arith.constant 0 : index
    %c0_14 = arith.constant 0 : index
    %13 = vector.load %arg5[%c0_13, %c0_14] : memref<4x32xf32, #tpu.memory_space<vmem>>, vector<4x32xf32>
    %cst_15 = arith.constant dense<0.000000e+00> : vector<256x32xf32>
    %14 = tpu.matmul %12, %13, %cst_15 {dimension_numbers = #tpu.dot_dimension_numbers<[1], [0], [0], [1], [0, 0, 1, 1], [], []>} : vector<256x4xf32>, vector<4x32xf32>, vector<256x32xf32> -> vector<256x32xf32>
    %c0_16 = arith.constant 0 : index
    %c0_17 = arith.constant 0 : index
    %15 = vector.load %arg6[%c0_16, %c0_17] : memref<1x32xf32, #tpu.memory_space<vmem>>, vector<1x32xf32>
    %16 = vector.broadcast %15 : vector<1x32xf32> to vector<256x32xf32>
    %17 = arith.addf %14, %16 : vector<256x32xf32>
    %cst_18 = arith.constant 0.000000e+00 : f32
    %18 = vector.broadcast %cst_18 : f32 to vector<256x32xf32>
    %19 = arith.maximumf %17, %18 : vector<256x32xf32>
    %c0_19 = arith.constant 0 : index
    %c0_20 = arith.constant 0 : index
    %20 = vector.load %arg9[%c0_19, %c0_20] : memref<32x128xf32, #tpu.memory_space<vmem>>, vector<32x128xf32>
    %cst_21 = arith.constant dense<0.000000e+00> : vector<256x128xf32>
    %21 = tpu.matmul %19, %20, %cst_21 {dimension_numbers = #tpu.dot_dimension_numbers<[1], [0], [0], [1], [0, 0, 1, 1], [], []>} : vector<256x32xf32>, vector<32x128xf32>, vector<256x128xf32> -> vector<256x128xf32>
    %c0_22 = arith.constant 0 : index
    %c0_23 = arith.constant 0 : index
    %22 = vector.load %arg10[%c0_22, %c0_23] : memref<128x128xf32, #tpu.memory_space<vmem>>, vector<128x128xf32>
    %cst_24 = arith.constant dense<0.000000e+00> : vector<256x128xf32>
    %23 = tpu.matmul %10, %22, %cst_24 {dimension_numbers = #tpu.dot_dimension_numbers<[1], [0], [0], [1], [0, 0, 1, 1], [], []>} : vector<256x128xf32>, vector<128x128xf32>, vector<256x128xf32> -> vector<256x128xf32>
    %24 = arith.addf %21, %23 : vector<256x128xf32>
    %c0_25 = arith.constant 0 : index
    %c0_26 = arith.constant 0 : index
    %25 = vector.load %arg11[%c0_25, %c0_26] : memref<1x128xf32, #tpu.memory_space<vmem>>, vector<1x128xf32>
    %26 = vector.broadcast %25 : vector<1x128xf32> to vector<256x128xf32>
    %27 = arith.addf %24, %26 : vector<256x128xf32>
    %c0_27 = arith.constant 0 : index
    %c0_28 = arith.constant 0 : index
    %28 = vector.load %arg12[%c0_27, %c0_28] : memref<32x128xf32, #tpu.memory_space<vmem>>, vector<32x128xf32>
    %cst_29 = arith.constant dense<0.000000e+00> : vector<256x128xf32>
    %29 = tpu.matmul %19, %28, %cst_29 {dimension_numbers = #tpu.dot_dimension_numbers<[1], [0], [0], [1], [0, 0, 1, 1], [], []>} : vector<256x32xf32>, vector<32x128xf32>, vector<256x128xf32> -> vector<256x128xf32>
    %c0_30 = arith.constant 0 : index
    %c0_31 = arith.constant 0 : index
    %30 = vector.load %arg13[%c0_30, %c0_31] : memref<128x128xf32, #tpu.memory_space<vmem>>, vector<128x128xf32>
    %cst_32 = arith.constant dense<0.000000e+00> : vector<256x128xf32>
    %31 = tpu.matmul %10, %30, %cst_32 {dimension_numbers = #tpu.dot_dimension_numbers<[1], [0], [0], [1], [0, 0, 1, 1], [], []>} : vector<256x128xf32>, vector<128x128xf32>, vector<256x128xf32> -> vector<256x128xf32>
    %32 = arith.addf %29, %31 : vector<256x128xf32>
    %c0_33 = arith.constant 0 : index
    %c0_34 = arith.constant 0 : index
    %33 = vector.load %arg14[%c0_33, %c0_34] : memref<1x128xf32, #tpu.memory_space<vmem>>, vector<1x128xf32>
    %34 = vector.broadcast %33 : vector<1x128xf32> to vector<256x128xf32>
    %35 = arith.addf %32, %34 : vector<256x128xf32>
    %cst_35 = arith.constant 0.000000e+00 : f32
    %36 = vector.broadcast %cst_35 : f32 to vector<256x128xf32>
    %37 = arith.maximumf %35, %36 : vector<256x128xf32>
    %38 = arith.truncf %37 : vector<256x128xf32> to vector<256x128xbf16>
    %cst_36 = arith.constant 0.000000e+00 : f32
    %39 = vector.broadcast %cst_36 : f32 to vector<256x128xf32>
    %c0_37 = arith.constant 0 : index
    %c0_38 = arith.constant 0 : index
    %c0_39 = arith.constant 0 : index
    %40 = vector.load %arg4[%c0_37, %c0_38, %c0_39] : memref<9x256x256xbf16, #tpu.memory_space<vmem>>, vector<1x256x256xbf16>
    %41 = vector.shape_cast %40 : vector<1x256x256xbf16> to vector<256x256xbf16>
    %cst_40 = arith.constant dense<0.000000e+00> : vector<256x128xf32>
    %42 = tpu.matmul %41, %38, %cst_40 {dimension_numbers = #tpu.dot_dimension_numbers<[1], [0], [0], [1], [0, 0, 1, 1], [], []>} : vector<256x256xbf16>, vector<256x128xbf16>, vector<256x128xf32> -> vector<256x128xf32>
    %43 = arith.truncf %42 : vector<256x128xf32> to vector<256x128xbf16>
    %c0_41 = arith.constant 0 : index
    %c0_42 = arith.constant 0 : index
    %c0_43 = arith.constant 0 : index
    %44 = vector.load %arg15[%c0_41, %c0_42, %c0_43] : memref<9x128x128xbf16, #tpu.memory_space<vmem>>, vector<1x128x128xbf16>
    %45 = vector.shape_cast %44 : vector<1x128x128xbf16> to vector<128x128xbf16>
    %cst_44 = arith.constant dense<0.000000e+00> : vector<256x128xf32>
    %46 = tpu.matmul %43, %45, %cst_44 {dimension_numbers = #tpu.dot_dimension_numbers<[1], [0], [0], [1], [0, 0, 1, 1], [], []>} : vector<256x128xbf16>, vector<128x128xbf16>, vector<256x128xf32> -> vector<256x128xf32>
    %47 = arith.addf %39, %46 : vector<256x128xf32>
    %c1 = arith.constant 1 : index
    %c0_45 = arith.constant 0 : index
    %c0_46 = arith.constant 0 : index
    %48 = vector.load %arg4[%c1, %c0_45, %c0_46] : memref<9x256x256xbf16, #tpu.memory_space<vmem>>, vector<1x256x256xbf16>
    %49 = vector.shape_cast %48 : vector<1x256x256xbf16> to vector<256x256xbf16>
    %cst_47 = arith.constant dense<0.000000e+00> : vector<256x128xf32>
    %50 = tpu.matmul %49, %38, %cst_47 {dimension_numbers = #tpu.dot_dimension_numbers<[1], [0], [0], [1], [0, 0, 1, 1], [], []>} : vector<256x256xbf16>, vector<256x128xbf16>, vector<256x128xf32> -> vector<256x128xf32>
    %51 = arith.truncf %50 : vector<256x128xf32> to vector<256x128xbf16>
    %c1_48 = arith.constant 1 : index
    %c0_49 = arith.constant 0 : index
    %c0_50 = arith.constant 0 : index
    %52 = vector.load %arg15[%c1_48, %c0_49, %c0_50] : memref<9x128x128xbf16, #tpu.memory_space<vmem>>, vector<1x128x128xbf16>
    %53 = vector.shape_cast %52 : vector<1x128x128xbf16> to vector<128x128xbf16>
    %cst_51 = arith.constant dense<0.000000e+00> : vector<256x128xf32>
    %54 = tpu.matmul %51, %53, %cst_51 {dimension_numbers = #tpu.dot_dimension_numbers<[1], [0], [0], [1], [0, 0, 1, 1], [], []>} : vector<256x128xbf16>, vector<128x128xbf16>, vector<256x128xf32> -> vector<256x128xf32>
    %55 = arith.addf %47, %54 : vector<256x128xf32>
    %c2 = arith.constant 2 : index
    %c0_52 = arith.constant 0 : index
    %c0_53 = arith.constant 0 : index
    %56 = vector.load %arg4[%c2, %c0_52, %c0_53] : memref<9x256x256xbf16, #tpu.memory_space<vmem>>, vector<1x256x256xbf16>
    %57 = vector.shape_cast %56 : vector<1x256x256xbf16> to vector<256x256xbf16>
    %cst_54 = arith.constant dense<0.000000e+00> : vector<256x128xf32>
    %58 = tpu.matmul %57, %38, %cst_54 {dimension_numbers = #tpu.dot_dimension_numbers<[1], [0], [0], [1], [0, 0, 1, 1], [], []>} : vector<256x256xbf16>, vector<256x128xbf16>, vector<256x128xf32> -> vector<256x128xf32>
    %59 = arith.truncf %58 : vector<256x128xf32> to vector<256x128xbf16>
    %c2_55 = arith.constant 2 : index
    %c0_56 = arith.constant 0 : index
    %c0_57 = arith.constant 0 : index
    %60 = vector.load %arg15[%c2_55, %c0_56, %c0_57] : memref<9x128x128xbf16, #tpu.memory_space<vmem>>, vector<1x128x128xbf16>
    %61 = vector.shape_cast %60 : vector<1x128x128xbf16> to vector<128x128xbf16>
    %cst_58 = arith.constant dense<0.000000e+00> : vector<256x128xf32>
    %62 = tpu.matmul %59, %61, %cst_58 {dimension_numbers = #tpu.dot_dimension_numbers<[1], [0], [0], [1], [0, 0, 1, 1], [], []>} : vector<256x128xbf16>, vector<128x128xbf16>, vector<256x128xf32> -> vector<256x128xf32>
    %63 = arith.addf %55, %62 : vector<256x128xf32>
    %c3 = arith.constant 3 : index
    %c0_59 = arith.constant 0 : index
    %c0_60 = arith.constant 0 : index
    %64 = vector.load %arg4[%c3, %c0_59, %c0_60] : memref<9x256x256xbf16, #tpu.memory_space<vmem>>, vector<1x256x256xbf16>
    %65 = vector.shape_cast %64 : vector<1x256x256xbf16> to vector<256x256xbf16>
    %cst_61 = arith.constant dense<0.000000e+00> : vector<256x128xf32>
    %66 = tpu.matmul %65, %38, %cst_61 {dimension_numbers = #tpu.dot_dimension_numbers<[1], [0], [0], [1], [0, 0, 1, 1], [], []>} : vector<256x256xbf16>, vector<256x128xbf16>, vector<256x128xf32> -> vector<256x128xf32>
    %67 = arith.truncf %66 : vector<256x128xf32> to vector<256x128xbf16>
    %c3_62 = arith.constant 3 : index
    %c0_63 = arith.constant 0 : index
    %c0_64 = arith.constant 0 : index
    %68 = vector.load %arg15[%c3_62, %c0_63, %c0_64] : memref<9x128x128xbf16, #tpu.memory_space<vmem>>, vector<1x128x128xbf16>
    %69 = vector.shape_cast %68 : vector<1x128x128xbf16> to vector<128x128xbf16>
    %cst_65 = arith.constant dense<0.000000e+00> : vector<256x128xf32>
    %70 = tpu.matmul %67, %69, %cst_65 {dimension_numbers = #tpu.dot_dimension_numbers<[1], [0], [0], [1], [0, 0, 1, 1], [], []>} : vector<256x128xbf16>, vector<128x128xbf16>, vector<256x128xf32> -> vector<256x128xf32>
    %71 = arith.addf %63, %70 : vector<256x128xf32>
    %c4 = arith.constant 4 : index
    %c0_66 = arith.constant 0 : index
    %c0_67 = arith.constant 0 : index
    %72 = vector.load %arg4[%c4, %c0_66, %c0_67] : memref<9x256x256xbf16, #tpu.memory_space<vmem>>, vector<1x256x256xbf16>
    %73 = vector.shape_cast %72 : vector<1x256x256xbf16> to vector<256x256xbf16>
    %cst_68 = arith.constant dense<0.000000e+00> : vector<256x128xf32>
    %74 = tpu.matmul %73, %38, %cst_68 {dimension_numbers = #tpu.dot_dimension_numbers<[1], [0], [0], [1], [0, 0, 1, 1], [], []>} : vector<256x256xbf16>, vector<256x128xbf16>, vector<256x128xf32> -> vector<256x128xf32>
    %75 = arith.truncf %74 : vector<256x128xf32> to vector<256x128xbf16>
    %c4_69 = arith.constant 4 : index
    %c0_70 = arith.constant 0 : index
    %c0_71 = arith.constant 0 : index
    %76 = vector.load %arg15[%c4_69, %c0_70, %c0_71] : memref<9x128x128xbf16, #tpu.memory_space<vmem>>, vector<1x128x128xbf16>
    %77 = vector.shape_cast %76 : vector<1x128x128xbf16> to vector<128x128xbf16>
    %cst_72 = arith.constant dense<0.000000e+00> : vector<256x128xf32>
    %78 = tpu.matmul %75, %77, %cst_72 {dimension_numbers = #tpu.dot_dimension_numbers<[1], [0], [0], [1], [0, 0, 1, 1], [], []>} : vector<256x128xbf16>, vector<128x128xbf16>, vector<256x128xf32> -> vector<256x128xf32>
    %79 = arith.addf %71, %78 : vector<256x128xf32>
    %c5 = arith.constant 5 : index
    %c0_73 = arith.constant 0 : index
    %c0_74 = arith.constant 0 : index
    %80 = vector.load %arg4[%c5, %c0_73, %c0_74] : memref<9x256x256xbf16, #tpu.memory_space<vmem>>, vector<1x256x256xbf16>
    %81 = vector.shape_cast %80 : vector<1x256x256xbf16> to vector<256x256xbf16>
    %cst_75 = arith.constant dense<0.000000e+00> : vector<256x128xf32>
    %82 = tpu.matmul %81, %38, %cst_75 {dimension_numbers = #tpu.dot_dimension_numbers<[1], [0], [0], [1], [0, 0, 1, 1], [], []>} : vector<256x256xbf16>, vector<256x128xbf16>, vector<256x128xf32> -> vector<256x128xf32>
    %83 = arith.truncf %82 : vector<256x128xf32> to vector<256x128xbf16>
    %c5_76 = arith.constant 5 : index
    %c0_77 = arith.constant 0 : index
    %c0_78 = arith.constant 0 : index
    %84 = vector.load %arg15[%c5_76, %c0_77, %c0_78] : memref<9x128x128xbf16, #tpu.memory_space<vmem>>, vector<1x128x128xbf16>
    %85 = vector.shape_cast %84 : vector<1x128x128xbf16> to vector<128x128xbf16>
    %cst_79 = arith.constant dense<0.000000e+00> : vector<256x128xf32>
    %86 = tpu.matmul %83, %85, %cst_79 {dimension_numbers = #tpu.dot_dimension_numbers<[1], [0], [0], [1], [0, 0, 1, 1], [], []>} : vector<256x128xbf16>, vector<128x128xbf16>, vector<256x128xf32> -> vector<256x128xf32>
    %87 = arith.addf %79, %86 : vector<256x128xf32>
    %c6 = arith.constant 6 : index
    %c0_80 = arith.constant 0 : index
    %c0_81 = arith.constant 0 : index
    %88 = vector.load %arg4[%c6, %c0_80, %c0_81] : memref<9x256x256xbf16, #tpu.memory_space<vmem>>, vector<1x256x256xbf16>
    %89 = vector.shape_cast %88 : vector<1x256x256xbf16> to vector<256x256xbf16>
    %cst_82 = arith.constant dense<0.000000e+00> : vector<256x128xf32>
    %90 = tpu.matmul %89, %38, %cst_82 {dimension_numbers = #tpu.dot_dimension_numbers<[1], [0], [0], [1], [0, 0, 1, 1], [], []>} : vector<256x256xbf16>, vector<256x128xbf16>, vector<256x128xf32> -> vector<256x128xf32>
    %91 = arith.truncf %90 : vector<256x128xf32> to vector<256x128xbf16>
    %c6_83 = arith.constant 6 : index
    %c0_84 = arith.constant 0 : index
    %c0_85 = arith.constant 0 : index
    %92 = vector.load %arg15[%c6_83, %c0_84, %c0_85] : memref<9x128x128xbf16, #tpu.memory_space<vmem>>, vector<1x128x128xbf16>
    %93 = vector.shape_cast %92 : vector<1x128x128xbf16> to vector<128x128xbf16>
    %cst_86 = arith.constant dense<0.000000e+00> : vector<256x128xf32>
    %94 = tpu.matmul %91, %93, %cst_86 {dimension_numbers = #tpu.dot_dimension_numbers<[1], [0], [0], [1], [0, 0, 1, 1], [], []>} : vector<256x128xbf16>, vector<128x128xbf16>, vector<256x128xf32> -> vector<256x128xf32>
    %95 = arith.addf %87, %94 : vector<256x128xf32>
    %c7 = arith.constant 7 : index
    %c0_87 = arith.constant 0 : index
    %c0_88 = arith.constant 0 : index
    %96 = vector.load %arg4[%c7, %c0_87, %c0_88] : memref<9x256x256xbf16, #tpu.memory_space<vmem>>, vector<1x256x256xbf16>
    %97 = vector.shape_cast %96 : vector<1x256x256xbf16> to vector<256x256xbf16>
    %cst_89 = arith.constant dense<0.000000e+00> : vector<256x128xf32>
    %98 = tpu.matmul %97, %38, %cst_89 {dimension_numbers = #tpu.dot_dimension_numbers<[1], [0], [0], [1], [0, 0, 1, 1], [], []>} : vector<256x256xbf16>, vector<256x128xbf16>, vector<256x128xf32> -> vector<256x128xf32>
    %99 = arith.truncf %98 : vector<256x128xf32> to vector<256x128xbf16>
    %c7_90 = arith.constant 7 : index
    %c0_91 = arith.constant 0 : index
    %c0_92 = arith.constant 0 : index
    %100 = vector.load %arg15[%c7_90, %c0_91, %c0_92] : memref<9x128x128xbf16, #tpu.memory_space<vmem>>, vector<1x128x128xbf16>
    %101 = vector.shape_cast %100 : vector<1x128x128xbf16> to vector<128x128xbf16>
    %cst_93 = arith.constant dense<0.000000e+00> : vector<256x128xf32>
    %102 = tpu.matmul %99, %101, %cst_93 {dimension_numbers = #tpu.dot_dimension_numbers<[1], [0], [0], [1], [0, 0, 1, 1], [], []>} : vector<256x128xbf16>, vector<128x128xbf16>, vector<256x128xf32> -> vector<256x128xf32>
    %103 = arith.addf %95, %102 : vector<256x128xf32>
    %c8 = arith.constant 8 : index
    %c0_94 = arith.constant 0 : index
    %c0_95 = arith.constant 0 : index
    %104 = vector.load %arg4[%c8, %c0_94, %c0_95] : memref<9x256x256xbf16, #tpu.memory_space<vmem>>, vector<1x256x256xbf16>
    %105 = vector.shape_cast %104 : vector<1x256x256xbf16> to vector<256x256xbf16>
    %cst_96 = arith.constant dense<0.000000e+00> : vector<256x128xf32>
    %106 = tpu.matmul %105, %38, %cst_96 {dimension_numbers = #tpu.dot_dimension_numbers<[1], [0], [0], [1], [0, 0, 1, 1], [], []>} : vector<256x256xbf16>, vector<256x128xbf16>, vector<256x128xf32> -> vector<256x128xf32>
    %107 = arith.truncf %106 : vector<256x128xf32> to vector<256x128xbf16>
    %c8_97 = arith.constant 8 : index
    %c0_98 = arith.constant 0 : index
    %c0_99 = arith.constant 0 : index
    %108 = vector.load %arg15[%c8_97, %c0_98, %c0_99] : memref<9x128x128xbf16, #tpu.memory_space<vmem>>, vector<1x128x128xbf16>
    %109 = vector.shape_cast %108 : vector<1x128x128xbf16> to vector<128x128xbf16>
    %cst_100 = arith.constant dense<0.000000e+00> : vector<256x128xf32>
    %110 = tpu.matmul %107, %109, %cst_100 {dimension_numbers = #tpu.dot_dimension_numbers<[1], [0], [0], [1], [0, 0, 1, 1], [], []>} : vector<256x128xbf16>, vector<128x128xbf16>, vector<256x128xf32> -> vector<256x128xf32>
    %111 = arith.addf %103, %110 : vector<256x128xf32>
    %c0_101 = arith.constant 0 : index
    %c0_102 = arith.constant 0 : index
    %112 = vector.load %arg16[%c0_101, %c0_102] : memref<1x128xf32, #tpu.memory_space<vmem>>, vector<1x128xf32>
    %113 = vector.broadcast %112 : vector<1x128xf32> to vector<256x128xf32>
    %114 = arith.addf %111, %113 : vector<256x128xf32>
    %cst_103 = arith.constant 0.000000e+00 : f32
    %115 = vector.broadcast %cst_103 : f32 to vector<256x128xf32>
    %116 = arith.maximumf %114, %115 : vector<256x128xf32>
    %cst_104 = arith.constant dense<0.000000e+00> : vector<128xf32>
    %117 = vector.multi_reduction <add>, %116, %cst_104 [0] : vector<256x128xf32> to vector<128xf32>
    %118 = vector.shape_cast %117 : vector<128xf32> to vector<1x128xf32>
    %cst_105 = arith.constant 2.560000e+02 : f32
    %119 = vector.broadcast %cst_105 : f32 to vector<1x128xf32>
    %120 = arith.divf %118, %119 : vector<1x128xf32>
    %121 = vector.shape_cast %120 : vector<1x128xf32> to vector<1x128xf32>
    %122 = vector.broadcast %121 : vector<1x128xf32> to vector<8x128xf32>
    %c0_106 = arith.constant 0 : index
    %c0_107 = arith.constant 0 : index
    %123 = vector.load %arg17[%c0_106, %c0_107] : memref<128x40xf32, #tpu.memory_space<vmem>>, vector<128x40xf32>
    %cst_108 = arith.constant dense<0.000000e+00> : vector<8x40xf32>
    %124 = tpu.matmul %122, %123, %cst_108 {dimension_numbers = #tpu.dot_dimension_numbers<[1], [0], [0], [1], [0, 0, 1, 1], [], []>} : vector<8x128xf32>, vector<128x40xf32>, vector<8x40xf32> -> vector<8x40xf32>
    %c0_109 = arith.constant 0 : index
    %c0_110 = arith.constant 0 : index
    %125 = vector.load %arg18[%c0_109, %c0_110] : memref<1x40xf32, #tpu.memory_space<vmem>>, vector<1x40xf32>
    %126 = vector.broadcast %125 : vector<1x40xf32> to vector<8x40xf32>
    %127 = arith.addf %124, %126 : vector<8x40xf32>
    %cst_111 = arith.constant 0.000000e+00 : f32
    %128 = vector.broadcast %cst_111 : f32 to vector<8x40xf32>
    %129 = arith.maximumf %127, %128 : vector<8x40xf32>
    %c0_112 = arith.constant 0 : index
    %c0_113 = arith.constant 0 : index
    %130 = vector.load %arg19[%c0_112, %c0_113] : memref<40x128xf32, #tpu.memory_space<vmem>>, vector<40x128xf32>
    %cst_114 = arith.constant dense<0.000000e+00> : vector<8x128xf32>
    %131 = tpu.matmul %129, %130, %cst_114 {dimension_numbers = #tpu.dot_dimension_numbers<[1], [0], [0], [1], [0, 0, 1, 1], [], []>} : vector<8x40xf32>, vector<40x128xf32>, vector<8x128xf32> -> vector<8x128xf32>
    %c0_115 = arith.constant 0 : index
    %c0_116 = arith.constant 0 : index
    %132 = vector.load %arg20[%c0_115, %c0_116] : memref<1x128xf32, #tpu.memory_space<vmem>>, vector<1x128xf32>
    %133 = vector.broadcast %132 : vector<1x128xf32> to vector<8x128xf32>
    %134 = arith.addf %131, %133 : vector<8x128xf32>
    %135 = arith.negf %134 : vector<8x128xf32>
    %136 = math.exp %135 : vector<8x128xf32>
    %cst_117 = arith.constant 1.000000e+00 : f32
    %137 = vector.broadcast %cst_117 : f32 to vector<8x128xf32>
    %138 = arith.addf %137, %136 : vector<8x128xf32>
    %139 = arith.divf %137, %138 : vector<8x128xf32>
    %140 = vector.extract_strided_slice %139 {offsets = [0, 0], sizes = [1, 128], strides = [1, 1]} : vector<8x128xf32> to vector<1x128xf32>
    %141 = vector.broadcast %140 : vector<1x128xf32> to vector<256x128xf32>
    %142 = arith.mulf %116, %141 : vector<256x128xf32>
    %c0_118 = arith.constant 0 : index
    %c0_119 = arith.constant 0 : index
    %143 = vector.load %arg21[%c0_118, %c0_119] : memref<128x128xf32, #tpu.memory_space<vmem>>, vector<128x128xf32>
    %cst_120 = arith.constant dense<0.000000e+00> : vector<256x128xf32>
    %144 = tpu.matmul %142, %143, %cst_120 {dimension_numbers = #tpu.dot_dimension_numbers<[1], [0], [0], [1], [0, 0, 1, 1], [], []>} : vector<256x128xf32>, vector<128x128xf32>, vector<256x128xf32> -> vector<256x128xf32>
    %c0_121 = arith.constant 0 : index
    %c0_122 = arith.constant 0 : index
    %145 = vector.load %arg22[%c0_121, %c0_122] : memref<1x128xf32, #tpu.memory_space<vmem>>, vector<1x128xf32>
    %146 = vector.broadcast %145 : vector<1x128xf32> to vector<256x128xf32>
    %147 = arith.addf %144, %146 : vector<256x128xf32>
    %148 = arith.addf %147, %27 : vector<256x128xf32>
    %cst_123 = arith.constant 0.000000e+00 : f32
    %149 = vector.broadcast %cst_123 : f32 to vector<256x128xf32>
    %150 = arith.maximumf %148, %149 : vector<256x128xf32>
    %c0_124 = arith.constant 0 : index
    %c0_125 = arith.constant 0 : index
    %151 = vector.load %arg23[%c0_124, %c0_125] : memref<128x5xf32, #tpu.memory_space<vmem>>, vector<128x5xf32>
    %cst_126 = arith.constant dense<0.000000e+00> : vector<256x5xf32>
    %152 = tpu.matmul %150, %151, %cst_126 {dimension_numbers = #tpu.dot_dimension_numbers<[1], [0], [0], [1], [0, 0, 1, 1], [], []>} : vector<256x128xf32>, vector<128x5xf32>, vector<256x5xf32> -> vector<256x5xf32>
    %c0_127 = arith.constant 0 : index
    %c0_128 = arith.constant 0 : index
    %153 = vector.load %arg24[%c0_127, %c0_128] : memref<1x5xf32, #tpu.memory_space<vmem>>, vector<1x5xf32>
    %154 = vector.broadcast %153 : vector<1x5xf32> to vector<256x5xf32>
    %155 = arith.addf %152, %154 : vector<256x5xf32>
    %c0_129 = arith.constant 0 : index
    %c0_130 = arith.constant 0 : index
    %c0_131 = arith.constant 0 : index
    %156 = vector.load %arg25[%c0_129, %c0_130, %c0_131] : memref<1x256x5xf32, #tpu.memory_space<vmem>>, vector<1x256x5xf32>
    %157 = vector.shape_cast %156 : vector<1x256x5xf32> to vector<256x5xf32>
    %158 = vector.shape_cast %155 : vector<256x5xf32> to vector<1x256x5xf32>
    tpu.vector_store %arg25[%c0_129, %c0_130, %c0_131], %158 {strides = array<i32>} : memref<1x256x5xf32, #tpu.memory_space<vmem>>, vector<1x256x5xf32>,
    return
  }
  func.func @transform_0(%arg0: i32) -> (i32, i32, i32) {
    %c0_i32 = arith.constant 0 : i32
    %c0_i32_0 = arith.constant 0 : i32
    %c0_i32_1 = arith.constant 0 : i32
    return %arg0, %c0_i32, %c0_i32_0 : i32, i32, i32
  }
  func.func @transform_1(%arg0: i32) -> (i32, i32, i32) {
    %c0_i32 = arith.constant 0 : i32
    %c0_i32_0 = arith.constant 0 : i32
    %c0_i32_1 = arith.constant 0 : i32
    return %arg0, %c0_i32, %c0_i32_0 : i32, i32, i32
  }
  func.func @transform_2(%arg0: i32) -> (i32, i32) {
    %c0_i32 = arith.constant 0 : i32
    %c0_i32_0 = arith.constant 0 : i32
    %c0_i32_1 = arith.constant 0 : i32
    return %c0_i32, %c0_i32_0 : i32, i32
  }
  func.func @transform_3(%arg0: i32) -> (i32, i32, i32) {
    %c0_i32 = arith.constant 0 : i32
    %c0_i32_0 = arith.constant 0 : i32
    %c0_i32_1 = arith.constant 0 : i32
    %c0_i32_2 = arith.constant 0 : i32
    return %c0_i32, %c0_i32_0, %c0_i32_1 : i32, i32, i32
  }
  func.func @transform_4(%arg0: i32) -> (i32, i32) {
    %c0_i32 = arith.constant 0 : i32
    %c0_i32_0 = arith.constant 0 : i32
    %c0_i32_1 = arith.constant 0 : i32
    return %c0_i32, %c0_i32_0 : i32, i32
  }
  func.func @transform_5(%arg0: i32) -> (i32, i32) {
    %c0_i32 = arith.constant 0 : i32
    %c0_i32_0 = arith.constant 0 : i32
    %c0_i32_1 = arith.constant 0 : i32
    return %c0_i32, %c0_i32_0 : i32, i32
  }
  func.func @transform_6(%arg0: i32) -> (i32, i32) {
    %c0_i32 = arith.constant 0 : i32
    %c0_i32_0 = arith.constant 0 : i32
    %c0_i32_1 = arith.constant 0 : i32
    return %c0_i32, %c0_i32_0 : i32, i32
  }
  func.func @transform_7(%arg0: i32) -> (i32, i32) {
    %c0_i32 = arith.constant 0 : i32
    %c0_i32_0 = arith.constant 0 : i32
    %c0_i32_1 = arith.constant 0 : i32
    return %c0_i32, %c0_i32_0 : i32, i32
  }
  func.func @transform_8(%arg0: i32) -> (i32, i32) {
    %c0_i32 = arith.constant 0 : i32
    %c0_i32_0 = arith.constant 0 : i32
    %c0_i32_1 = arith.constant 0 : i32
    return %c0_i32, %c0_i32_0 : i32, i32
  }
  func.func @transform_9(%arg0: i32) -> (i32, i32) {
    %c0_i32 = arith.constant 0 : i32
    %c0_i32_0 = arith.constant 0 : i32
    %c0_i32_1 = arith.constant 0 : i32
    return %c0_i32, %c0_i32_0 : i32, i32
  }
  func.func @transform_10(%arg0: i32) -> (i32, i32) {
    %c0_i32 = arith.constant 0 : i32
    %c0_i32_0 = arith.constant 0 : i32
    %c0_i32_1 = arith.constant 0 : i32
    return %c0_i32, %c0_i32_0 : i32, i32
  }
  func.func @transform_11(%arg0: i32) -> (i32, i32) {
    %c0_i32 = arith.constant 0 : i32
    %c0_i32_0 = arith.constant 0 : i32
    %c0_i32_1 = arith.constant 0 : i32
    return %c0_i32, %c0_i32_0 : i32, i32
  }
  func.func @transform_12(%arg0: i32) -> (i32, i32) {
    %c0_i32 = arith.constant 0 : i32
    %c0_i32_0 = arith.constant 0 : i32
    %c0_i32_1 = arith.constant 0 : i32
    return %c0_i32, %c0_i32_0 : i32, i32
  }
  func.func @transform_13(%arg0: i32) -> (i32, i32) {
    %c0_i32 = arith.constant 0 : i32
    %c0_i32_0 = arith.constant 0 : i32
    %c0_i32_1 = arith.constant 0 : i32
    return %c0_i32, %c0_i32_0 : i32, i32
  }
  func.func @transform_14(%arg0: i32) -> (i32, i32, i32) {
    %c0_i32 = arith.constant 0 : i32
    %c0_i32_0 = arith.constant 0 : i32
    %c0_i32_1 = arith.constant 0 : i32
    %c0_i32_2 = arith.constant 0 : i32
    return %c0_i32, %c0_i32_0, %c0_i32_1 : i32, i32, i32
  }
  func.func @transform_15(%arg0: i32) -> (i32, i32) {
    %c0_i32 = arith.constant 0 : i32
    %c0_i32_0 = arith.constant 0 : i32
    %c0_i32_1 = arith.constant 0 : i32
    return %c0_i32, %c0_i32_0 : i32, i32
  }
  func.func @transform_16(%arg0: i32) -> (i32, i32) {
    %c0_i32 = arith.constant 0 : i32
    %c0_i32_0 = arith.constant 0 : i32
    %c0_i32_1 = arith.constant 0 : i32
    return %c0_i32, %c0_i32_0 : i32, i32
  }
  func.func @transform_17(%arg0: i32) -> (i32, i32) {
    %c0_i32 = arith.constant 0 : i32
    %c0_i32_0 = arith.constant 0 : i32
    %c0_i32_1 = arith.constant 0 : i32
    return %c0_i32, %c0_i32_0 : i32, i32
  }
  func.func @transform_18(%arg0: i32) -> (i32, i32) {
    %c0_i32 = arith.constant 0 : i32
    %c0_i32_0 = arith.constant 0 : i32
    %c0_i32_1 = arith.constant 0 : i32
    return %c0_i32, %c0_i32_0 : i32, i32
  }
  func.func @transform_19(%arg0: i32) -> (i32, i32) {
    %c0_i32 = arith.constant 0 : i32
    %c0_i32_0 = arith.constant 0 : i32
    %c0_i32_1 = arith.constant 0 : i32
    return %c0_i32, %c0_i32_0 : i32, i32
  }
  func.func @transform_20(%arg0: i32) -> (i32, i32) {
    %c0_i32 = arith.constant 0 : i32
    %c0_i32_0 = arith.constant 0 : i32
    %c0_i32_1 = arith.constant 0 : i32
    return %c0_i32, %c0_i32_0 : i32, i32
  }
  func.func @transform_21(%arg0: i32) -> (i32, i32) {
    %c0_i32 = arith.constant 0 : i32
    %c0_i32_0 = arith.constant 0 : i32
    %c0_i32_1 = arith.constant 0 : i32
    return %c0_i32, %c0_i32_0 : i32, i32
  }
  func.func @transform_22(%arg0: i32) -> (i32, i32) {
    %c0_i32 = arith.constant 0 : i32
    %c0_i32_0 = arith.constant 0 : i32
    %c0_i32_1 = arith.constant 0 : i32
    return %c0_i32, %c0_i32_0 : i32, i32
  }
  func.func @transform_23(%arg0: i32) -> (i32, i32) {
    %c0_i32 = arith.constant 0 : i32
    %c0_i32_0 = arith.constant 0 : i32
    %c0_i32_1 = arith.constant 0 : i32
    return %c0_i32, %c0_i32_0 : i32, i32
  }
  func.func @transform_24(%arg0: i32) -> (i32, i32, i32) {
    %c0_i32 = arith.constant 0 : i32
    %c0_i32_0 = arith.constant 0 : i32
    %c0_i32_1 = arith.constant 0 : i32
    return %arg0, %c0_i32, %c0_i32_0 : i32, i32, i32
  }
}

</mosaic_0001>

<bundles_post_ra>
// kernel: decoder_forward.1
= control target key start
LH: loop header
LB: loop body
LE: loop exit
PB: predicated region body
PF: predicated region fallthrough
CT: control target
= control target key end

     0   :  { %s17422_s0 = inlined_call_operand.vmem [shape: f32[2,256,4], index: 0, kind: input, shape index: {}]   ;;  %s17423_s1 = inlined_call_operand.vmem [shape: f32[2,64,8], index: 1, kind: input, shape index: {}]   ;;  %s17424_s2 = inlined_call_operand.vmem [shape: f32[256,64], index: 2, kind: input, shape index: {}]   ;;  %s17425_s3 = inlined_call_operand.hbm [shape: bf16[9,256,256], index: 3, kind: input, shape index: {}]   ;;  %s17426_s4 = inlined_call_operand.hbm [shape: f32[4,32], index: 4, kind: input, shape index: {}]   ;;  %s17427_s5 = inlined_call_operand.hbm [shape: f32[1,32], index: 5, kind: input, shape index: {}]   ;;  %s17428_s6 = inlined_call_operand.hbm [shape: f32[8,128], index: 6, kind: input, shape index: {}]   ;;  %s17429_s7 = inlined_call_operand.hbm [shape: f32[1,128], index: 7, kind: input, shape index: {}]   ;;  %s17430_s8 = inlined_call_operand.hbm [shape: f32[32,128], index: 8, kind: input, shape index: {}]   ;;  %s17431_s9 = inlined_call_operand.hbm [shape: f32[128,128], index: 9, kind: input, shape index: {}]   ;;  %s17432_s10 = inlined_call_operand.hbm [shape: f32[1,128], index: 10, kind: input, shape index: {}]   ;;  %s17433_s11 = inlined_call_operand.hbm [shape: f32[32,128], index: 11, kind: input, shape index: {}]   ;;  %s17434_s12 = inlined_call_operand.hbm [shape: f32[128,128], index: 12, kind: input, shape index: {}]   ;;  %s17435_s13 = inlined_call_operand.hbm [shape: f32[1,128], index: 13, kind: input, shape index: {}]   ;;  %s17436_s14 = inlined_call_operand.hbm [shape: bf16[9,128,128], index: 14, kind: input, shape index: {}]   ;;  %s17437_s15 = inlined_call_operand.hbm [shape: f32[1,128], index: 15, kind: input, shape index: {}]   ;;  %s17438_s16 = inlined_call_operand.vmem [shape: f32[128,40], index: 16, kind: input, shape index: {}]   ;;  %s17439_s17 = inlined_call_operand.hbm [shape: f32[1,40], index: 17, kind: input, shape index: {}]   ;;  %s17440_s18 = inlined_call_operand.hbm [shape: f32[40,128], index: 18, kind: input, shape index: {}]   ;;  %s17441_s19 = inlined_call_operand.hbm [shape: f32[1,128], index: 19, kind: input, shape index: {}]   ;;  %s17442_s20 = inlined_call_operand.hbm [shape: f32[128,128], index: 20, kind: input, shape index: {}]   ;;  %s17443_s21 = inlined_call_operand.hbm [shape: f32[1,128], index: 21, kind: input, shape index: {}]   ;;  %s17444_s22 = inlined_call_operand.vmem [shape: f32[128,5], index: 22, kind: input, shape index: {}]   ;;  %s17445_s23 = inlined_call_operand.hbm [shape: f32[1,5], index: 23, kind: input, shape index: {}]   ;;  %s17446_s24 = inlined_call_operand.vmem [shape: f32[2,256,5], index: 24, kind: output, shape index: {}]  }
   0x1   :  { %17544 = sst [smem:[#allocation94_spill]] %s17422_s0 }
   0x2   :  { %17545 = sst [smem:[#allocation95_spill]] %s17423_s1 }
   0x3   :  { %17546 = sst [smem:[#allocation96_spill]] %s17424_s2 }
   0x4   :  { %17547 = sst [smem:[#allocation97_spill]] %s17425_s3 }
   0x5   :  { %17548 = sst [smem:[#allocation98_spill]] %s17426_s4 }
   0x6   :  { %17549 = sst [smem:[#allocation99_spill]] %s17427_s5 }
   0x7   :  { %17550 = sst [smem:[#allocation100_spill]] %s17428_s6 }
   0x8   :  { %17551 = sst [smem:[#allocation101_spill]] %s17429_s7 }
   0x9   :  { %17552 = sst [smem:[#allocation102_spill]] %s17430_s8 }
   0xa   :  { %17553 = sst [smem:[#allocation103_spill]] %s17432_s10 }
   0xb   :  { %17554 = sst [smem:[#allocation104_spill]] %s17434_s12 }
   0xc   :  { %17555 = sst [smem:[#allocation105_spill]] %s17438_s16 }
   0xd   :  { %17556 = sst [smem:[#allocation106_spill]] %s17444_s22 }
   0xe   :  { %17557 = sst [smem:[#allocation107_spill]] %s17446_s24 }
   0xf   :  { %29 = vsyncpa [#allocation3], 0 }
  0x10   :  { %30 = vsyncpa [#allocation5], 0 }
  0x11   :  { %31 = vsyncpa [#allocation8], 0 }
  0x12   :  { %32 = vsyncpa [#allocation11], 0 }
  0x13   :  { %33 = vsyncpa [#allocation14], 0 }
  0x14   :  { %34 = vsyncpa [#allocation17], 0 }
  0x15   :  { %35 = vsyncpa [#allocation20], 0 }
  0x16   :  { %36 = vsyncpa [#allocation23], 0 }
  0x17   :  { %37 = vsyncpa [#allocation26], 0 }
  0x18   :  { %38 = vsyncpa [#allocation29], 0  ;;  %s15105_s5 = smov 0  }
  0x19 LB: > { %17558 = sst [smem:[#allocation41_spill]] %s14952_s5  ;;  %s14954_s26 = smov [#allocation4]   ;;  %s14952_s5 = sphi %s15105_s5, %s44_s5  }
  0x1a   : > { %s618_s27 = sshll.u32 %s14954_s26, 4  ;;  %s15111_s28 = sadd.s32 4294967295, %s14952_s5   ;;  %s15116_s27 = int_to_ptr.vmem [resolvable:$true] %s618_s27 }
  0x1b   : > { %17559 = sst [smem:[#allocation42_spill]] %s15111_s28  ;;  %p9845_p0 = scmp.ge.s32.totalorder %s14952_s5, 1 }
  0x1c   : > { %p589_p1 = scmp.lt.s32.totalorder %s14952_s5, 3  ;;  %p17460_p2 = scmp.eq.s32.totalorder %s15111_s28, 0 }
  0x1d   : > { %s14955_s2 = smov [#allocation7]   ;;  %s14956_s7 = smov [#allocation10]  }
  0x1e   : > { %p15118_p3 = pnand %p9845_p0, %p589_p1  ;;  %s640_s29 = sshll.u32 %s14955_s2, 4  ;;  %s15124_s29 = int_to_ptr.vmem [resolvable:$true] %s640_s29 }
  0x1f   : > { %s661_s30 = sshll.u32 %s14956_s7, 4  ;;  %s14957_s3 = smov [#allocation13]   ;;  %s15132_s30 = int_to_ptr.vmem [resolvable:$true] %s661_s30 }
  0x20   : > { %s17560_s6 = scalar_select %p15118_p3, 1, 0 }
  0x21   : > { %p13736_p4 = pneg %p15118_p3  ;;  %s15134_s25 = sshll.u32 %s14957_s3, 4  ;;  %s689_s25 = int_to_ptr.vmem [resolvable:$true] %s15134_s25 }
  0x22   : > { %17561 = sst [smem:[#allocation43_spill]] %s17560_s6  ;;  %s17563_s1 = sld [smem:[#allocation98_spill]] }
  0x23   : > { %p15128_p5 = pnand %p17460_p2, %p13736_p4 }
  0x25   : > { %p15144_p7 = pneg %p15128_p5 }
  0x28   : > { %s14374_s26 = scalar_lea.hbm %s17563_s1, 64 }
  0x29   : > { %p14375_p6 = scmp.ne.s32.totalorder %s17563_s1, %s14374_s26  ;;  %p14381_p10 = scmp.lt.u32.totalorder %s14374_s26, %s17563_s1 }
  0x2b   : > { %p14377_p8 = pnand %p15144_p7, %p14375_p6 }
  0x2d   : > { %p14378_p9 = pneg %p14377_p8 }
  0x2f   : > { %p14383_p11 = pnand %p14381_p10, %p14378_p9 }
  0x31   : > { %14386 = shalt.err (!%p14383_p11)
}
  0x32   : > { %s14387_s5 = scalar_lea.vmem %s15116_s27, 64  ;;  %p14395_p1 = scmp.lt.s32.totalorder %s15116_s27, %s15116_s27 }
  0x33   : > { %p14388_p12 = scmp.ne.s32.totalorder %s15116_s27, %s14387_s5  ;;  %p14396_p4 = scmp.lt.s32.totalorder %s14387_s5, %s14387_s5 }
  0x35   : > { %p14390_p13 = pnand %p14388_p12, %p15144_p7  ;;  %p14397_p6 = por %p14396_p4, %p14395_p1 }
  0x37   : > { %p14391_p0 = pneg %p14390_p13 }
  0x39   : > { %p14398_p8 = pnand %p14397_p6, %p14391_p0 }
  0x3b   : > { %14401 = shalt.err (!%p14398_p8)
}
  0x3c   : > { %13742 = dma.hbm_to_vmem [thread:$0]  (!%p15128_p5), %s17563_s1, 64, %s15116_s27, [#allocation5]  }
  0x3d   : > { %s17565_s7 = sld [smem:[#allocation100_spill]] }
  0x43   : > { %s14402_s3 = scalar_lea.hbm %s17565_s7, 128 }
  0x44   : > { %p14403_p9 = scmp.ne.s32.totalorder %s17565_s7, %s14402_s3  ;;  %p14409_p12 = scmp.lt.u32.totalorder %s14402_s3, %s17565_s7 }
  0x46   : > { %p14405_p10 = pnand %p14403_p9, %p15144_p7 }
  0x48   : > { %p14406_p11 = pneg %p14405_p10 }
  0x4a   : > { %p14411_p13 = pnand %p14409_p12, %p14406_p11 }
  0x4c   : > { %14414 = shalt.err (!%p14411_p13)
}
  0x4d   : > { %s14415_s27 = scalar_lea.vmem %s15124_s29, 128  ;;  %p14423_p6 = scmp.lt.s32.totalorder %s15124_s29, %s15124_s29 }
  0x4e   : > { %p14416_p0 = scmp.ne.s32.totalorder %s15124_s29, %s14415_s27  ;;  %p14424_p8 = scmp.lt.s32.totalorder %s14415_s27, %s14415_s27 }
  0x50   : > { %p14418_p1 = pnand %p14416_p0, %p15144_p7  ;;  %p14425_p9 = por %p14424_p8, %p14423_p6 }
  0x52   : > { %p14419_p4 = pneg %p14418_p1 }
  0x54   : > { %p14426_p10 = pnand %p14425_p9, %p14419_p4 }
  0x56   : > { %14429 = shalt.err (!%p14426_p10)
}
  0x57   : > { %13748 = dma.hbm_to_vmem [thread:$0]  (!%p15128_p5), %s17565_s7, 128, %s15124_s29, [#allocation8]  }
  0x58   : > { %s17566_s4 = sld [smem:[#allocation102_spill]] }
  0x5e   : > { %s14430_s26 = scalar_lea.hbm %s17566_s4, 512 }
  0x5f   : > { %p14431_p11 = scmp.ne.s32.totalorder %s17566_s4, %s14430_s26  ;;  %p14437_p0 = scmp.lt.u32.totalorder %s14430_s26, %s17566_s4 }
  0x61   : > { %p14433_p12 = pnand %p14431_p11, %p15144_p7 }
  0x63   : > { %p14434_p13 = pneg %p14433_p12 }
  0x65   : > { %p14439_p1 = pnand %p14437_p0, %p14434_p13 }
  0x67   : > { %14442 = shalt.err (!%p14439_p1)
}
  0x68   : > { %s14443_s29 = scalar_lea.vmem %s15132_s30, 512  ;;  %p14451_p9 = scmp.lt.s32.totalorder %s15132_s30, %s15132_s30 }
  0x69   : > { %p14444_p4 = scmp.ne.s32.totalorder %s15132_s30, %s14443_s29  ;;  %p14452_p10 = scmp.lt.s32.totalorder %s14443_s29, %s14443_s29 }
  0x6b   : > { %p14446_p6 = pnand %p14444_p4, %p15144_p7  ;;  %p14453_p11 = por %p14452_p10, %p14451_p9 }
  0x6d   : > { %p14447_p8 = pneg %p14446_p6 }
  0x6f   : > { %p14454_p12 = pnand %p14453_p11, %p14447_p8 }
  0x71   : > { %14457 = shalt.err (!%p14454_p12)
}
  0x72   : > { %s17462_s16 = smov 128   ;;  %s17464_s22 = smov 8  }
  0x73   : > { %13754 = dma.hbm_to_vmem [thread:$0]  (!%p15128_p5), %s17566_s4, 512, %s15132_s30, [#allocation11], %s17462_s16, %s17462_s16, %s17464_s22  }
  0x74   : > { %s17567_s10 = sld [smem:[#allocation103_spill]] }
  0x7a   : > { %s14458_s3 = scalar_lea.hbm %s17567_s10, 16 }
  0x7b   : > { %p14459_p13 = scmp.ne.s32.totalorder %s17567_s10, %s14458_s3  ;;  %p14465_p4 = scmp.lt.u32.totalorder %s14458_s3, %s17567_s10 }
  0x7d   : > { %p14461_p0 = pnand %p14459_p13, %p15144_p7 }
  0x7f   : > { %p14462_p1 = pneg %p14461_p0 }
  0x81   : > { %p14467_p6 = pnand %p14465_p4, %p14462_p1 }
  0x83   : > { %14470 = shalt.err (!%p14467_p6)
}
  0x84   : > { %s14471_s28 = scalar_lea.vmem %s689_s25, 16  ;;  %s14478_s30 = scalar_lea.vmem %s689_s25, 32 }
  0x85   : > { %p14472_p8 = scmp.ne.s32.totalorder %s689_s25, %s14471_s28  ;;  %p14479_p11 = scmp.lt.s32.totalorder %s689_s25, %s689_s25 }
  0x86   : > { %p14480_p12 = scmp.lt.s32.totalorder %s14478_s30, %s14471_s28 }
  0x87   : > { %p14474_p9 = pnand %p14472_p8, %p15144_p7 }
  0x88   : > { %p14481_p2 = por %p14480_p12, %p14479_p11 }
  0x89   : > { %p14475_p10 = pneg %p14474_p9 }
  0x8b   : > { %p14482_p3 = pnand %p14481_p2, %p14475_p10 }
  0x8d   : > { %14485 = shalt.err (!%p14482_p3)
}
  0x8e   : > { %13760 = dma.hbm_to_vmem [thread:$0]  (!%p15128_p5), %s17567_s10, 16, %s689_s25, [#allocation14]  }
  0x8f   : > { %s14960_s1 = smov [#allocation16]   ;;  %s14961_s3 = smov [#allocation19]  }
  0x90   : > { %s711_s2 = sshll.u32 %s14960_s1, 4  ;;  %s735_s5 = sshll.u32 %s14961_s3, 4  ;;  %s712_s2 = int_to_ptr.vmem [resolvable:$true] %s711_s2  ;;  %s736_s5 = int_to_ptr.vmem [resolvable:$true] %s735_s5 }
  0x91   : > { %s17568_s12 = sld [smem:[#allocation104_spill]] }
  0x97   : > { %s14486_s16 = scalar_lea.hbm %s17568_s12, 2048 }
  0x98   : > { %p14487_p2 = scmp.ne.s32.totalorder %s17568_s12, %s14486_s16  ;;  %p14493_p0 = scmp.lt.u32.totalorder %s14486_s16, %s17568_s12 }
  0x9a   : > { %p14489_p3 = pnand %p14487_p2, %p15144_p7 }
  0x9c   : > { %p14490_p13 = pneg %p14489_p3 }
  0x9e   : > { %p14495_p1 = pnand %p14493_p0, %p14490_p13 }
  0xa0   : > { %14498 = shalt.err (!%p14495_p1)
}
  0xa1   : > { %s14499_s25 = scalar_lea.vmem %s712_s2, 2048  ;;  %p14507_p9 = scmp.lt.s32.totalorder %s712_s2, %s712_s2 }
  0xa2   : > { %p14500_p4 = scmp.ne.s32.totalorder %s712_s2, %s14499_s25  ;;  %p14508_p10 = scmp.lt.s32.totalorder %s14499_s25, %s14499_s25 }
  0xa4   : > { %p14502_p6 = pnand %p14500_p4, %p15144_p7  ;;  %p14509_p11 = por %p14508_p10, %p14507_p9 }
  0xa6   : > { %p14503_p8 = pneg %p14502_p6 }
  0xa8   : > { %p14510_p12 = pnand %p14509_p11, %p14503_p8 }
  0xaa   : > { %14513 = shalt.err (!%p14510_p12)
}
  0xab   : > { %s17569_s26 = smov 8   ;;  %s17570_s1 = smov 128  }
  0xac   : > { %13766 = dma.hbm_to_vmem [thread:$0]  (!%p15128_p5), %s17568_s12, 2048, %s712_s2, [#allocation17], %s17570_s1, %s17570_s1, %s17569_s26  }
  0xad   : > { %s14514_s29 = scalar_lea.hbm %s17436_s14, 9216 }
  0xae   : > { %p14515_p2 = scmp.ne.s32.totalorder %s17436_s14, %s14514_s29  ;;  %p14521_p0 = scmp.lt.u32.totalorder %s14514_s29, %s17436_s14 }
  0xb0   : > { %p14517_p3 = pnand %p14515_p2, %p15144_p7 }
  0xb2   : > { %p14518_p13 = pneg %p14517_p3 }
  0xb4   : > { %p14523_p1 = pnand %p14521_p0, %p14518_p13 }
  0xb6   : > { %14526 = shalt.err (!%p14523_p1)
}
  0xb7   : > { %s14527_s22 = scalar_lea.vmem %s736_s5, 9216  ;;  %p14535_p9 = scmp.lt.s32.totalorder %s736_s5, %s736_s5 }
  0xb8   : > { %p14528_p4 = scmp.ne.s32.totalorder %s736_s5, %s14527_s22  ;;  %p14536_p10 = scmp.lt.s32.totalorder %s14527_s22, %s14527_s22 }
  0xba   : > { %p14530_p6 = pnand %p14528_p4, %p15144_p7  ;;  %p14537_p11 = por %p14536_p10, %p14535_p9 }
  0xbc   : > { %p14531_p8 = pneg %p14530_p6 }
  0xbe   : > { %p14538_p12 = pnand %p14537_p11, %p14531_p8 }
  0xc0   : > { %14541 = shalt.err (!%p14538_p12)
}
  0xc1   : > { %s14962_s2 = smov 64   ;;  %s14963_s16 = smov 4  }
  0xc2   : > { %13772 = dma.hbm_to_vmem [thread:$0]  (!%p15128_p5), %s17436_s14, 9216, %s736_s5, [#allocation20], %s14962_s2, %s14962_s2, %s14963_s16  }
  0xc3   : > { %s14964_s29 = smov [#allocation22]   ;;  %s14965_s30 = smov [#allocation25]  }
  0xc4   : > { %s763_s28 = sshll.u32 %s14964_s29, 4  ;;  %s787_s8 = sshll.u32 %s14965_s30, 4  ;;  %s764_s28 = int_to_ptr.vmem [resolvable:$true] %s763_s28  ;;  %s788_s8 = int_to_ptr.vmem [resolvable:$true] %s787_s8 }
  0xc5   : > { %s14542_s22 = scalar_lea.hbm %s17439_s17, 16 }
  0xc6   : > { %p14543_p2 = scmp.ne.s32.totalorder %s17439_s17, %s14542_s22  ;;  %p14549_p0 = scmp.lt.u32.totalorder %s14542_s22, %s17439_s17 }
  0xc8   : > { %p14545_p3 = pnand %p14543_p2, %p15144_p7 }
  0xca   : > { %p14546_p13 = pneg %p14545_p3 }
  0xcc   : > { %p14551_p1 = pnand %p14549_p0, %p14546_p13 }
  0xce   : > { %14554 = shalt.err (!%p14551_p1)
}
  0xcf   : > { %s14555_s5 = scalar_lea.vmem %s764_s28, 16  ;;  %s14562_s4 = scalar_lea.vmem %s764_s28, 32 }
  0xd0   : > { %p14556_p4 = scmp.ne.s32.totalorder %s764_s28, %s14555_s5  ;;  %p14563_p9 = scmp.lt.s32.totalorder %s764_s28, %s764_s28 }
  0xd1   : > { %p14564_p10 = scmp.lt.s32.totalorder %s14562_s4, %s14555_s5 }
  0xd2   : > { %p14558_p6 = pnand %p14556_p4, %p15144_p7 }
  0xd3   : > { %p14565_p11 = por %p14564_p10, %p14563_p9 }
  0xd4   : > { %p14559_p8 = pneg %p14558_p6 }
  0xd6   : > { %p14566_p12 = pnand %p14565_p11, %p14559_p8 }
  0xd8   : > { %14569 = shalt.err (!%p14566_p12)
}
  0xd9   : > { %13778 = dma.hbm_to_vmem [thread:$0]  (!%p15128_p5), %s17439_s17, 16, %s764_s28, [#allocation23]  }
  0xda   : > { %s14570_s2 = scalar_lea.hbm %s17441_s19, 16 }
  0xdb   : > { %p14571_p2 = scmp.ne.s32.totalorder %s17441_s19, %s14570_s2  ;;  %p14577_p0 = scmp.lt.u32.totalorder %s14570_s2, %s17441_s19 }
  0xdd   : > { %p14573_p3 = pnand %p14571_p2, %p15144_p7 }
  0xdf   : > { %p14574_p13 = pneg %p14573_p3 }
  0xe1   : > { %p14579_p1 = pnand %p14577_p0, %p14574_p13 }
  0xe3   : > { %14582 = shalt.err (!%p14579_p1)
}
  0xe4   : > { %s14583_s30 = scalar_lea.vmem %s788_s8, 16  ;;  %s14590_s28 = scalar_lea.vmem %s788_s8, 32 }
  0xe5   : > { %p14584_p4 = scmp.ne.s32.totalorder %s788_s8, %s14583_s30  ;;  %p14591_p9 = scmp.lt.s32.totalorder %s788_s8, %s788_s8 }
  0xe6   : > { %p14592_p10 = scmp.lt.s32.totalorder %s14590_s28, %s14583_s30 }
  0xe7   : > { %p14586_p6 = pnand %p14584_p4, %p15144_p7 }
  0xe8   : > { %p14593_p11 = por %p14592_p10, %p14591_p9 }
  0xe9   : > { %p14587_p8 = pneg %p14586_p6 }
  0xeb   : > { %p14594_p12 = pnand %p14593_p11, %p14587_p8 }
  0xed   : > { %14597 = shalt.err (!%p14594_p12)
}
  0xee   : > { %13784 = dma.hbm_to_vmem [thread:$0]  (!%p15128_p5), %s17441_s19, 16, %s788_s8, [#allocation26]  }
  0xef   : > { %s14966_s5 = smov [#allocation28]   ;;  %s14967_s10 = smov [#allocation2]  }
  0xf0   : > { %s811_s4 = sshll.u32 %s14966_s5, 4  ;;  %s604_s7 = sshll.u32 %s14967_s10, 4  ;;  %s812_s4 = int_to_ptr.vmem [resolvable:$true] %s811_s4  ;;  %s605_s7 = int_to_ptr.vmem [resolvable:$true] %s604_s7 }
  0xf1   : > { %s14598_s2 = scalar_lea.hbm %s17443_s21, 16 }
  0xf2   : > { %p14599_p2 = scmp.ne.s32.totalorder %s17443_s21, %s14598_s2  ;;  %p14605_p0 = scmp.lt.u32.totalorder %s14598_s2, %s17443_s21 }
  0xf4   : > { %p14601_p3 = pnand %p14599_p2, %p15144_p7 }
  0xf6   : > { %p14602_p13 = pneg %p14601_p3 }
  0xf8   : > { %p14607_p1 = pnand %p14605_p0, %p14602_p13 }
  0xfa   : > { %14610 = shalt.err (!%p14607_p1)
}
  0xfb   : > { %s14611_s8 = scalar_lea.vmem %s812_s4, 16  ;;  %s14618_s30 = scalar_lea.vmem %s812_s4, 32 }
  0xfc   : > { %p14612_p4 = scmp.ne.s32.totalorder %s812_s4, %s14611_s8  ;;  %p14619_p9 = scmp.lt.s32.totalorder %s812_s4, %s812_s4 }
  0xfd   : > { %p14620_p10 = scmp.lt.s32.totalorder %s14618_s30, %s14611_s8 }
  0xfe   : > { %p14614_p6 = pnand %p14612_p4, %p15144_p7 }
  0xff   : > { %p14621_p11 = por %p14620_p10, %p14619_p9 }
 0x100   : > { %p14615_p8 = pneg %p14614_p6 }
 0x102   : > { %p14622_p12 = pnand %p14621_p11, %p14615_p8 }
 0x104   : > { %14625 = shalt.err (!%p14622_p12)
}
 0x105   : > { %13790 = dma.hbm_to_vmem [thread:$0]  (!%p15128_p5), %s17443_s21, 16, %s812_s4, [#allocation29]  }
 0x106   : > { %s17571_s10 = sld [smem:[#allocation97_spill]] }
 0x10c   : > { %s14626_s12 = scalar_lea.hbm %s17571_s10, 36864 }
 0x10d   : > { %p14627_p2 = scmp.ne.s32.totalorder %s17571_s10, %s14626_s12  ;;  %p14633_p0 = scmp.lt.u32.totalorder %s14626_s12, %s17571_s10 }
 0x10f   : > { %p14629_p3 = pnand %p14627_p2, %p15144_p7 }
 0x111   : > { %p14630_p13 = pneg %p14629_p3 }
 0x113   : > { %p14635_p1 = pnand %p14633_p0, %p14630_p13 }
 0x115   : > { %14638 = shalt.err (!%p14635_p1)
}
 0x116   : > { %s14639_s27 = scalar_lea.vmem %s605_s7, 36864  ;;  %p14647_p9 = scmp.lt.s32.totalorder %s605_s7, %s605_s7 }
 0x117   : > { %p14640_p4 = scmp.ne.s32.totalorder %s605_s7, %s14639_s27  ;;  %p14648_p10 = scmp.lt.s32.totalorder %s14639_s27, %s14639_s27 }
 0x119   : > { %p14642_p6 = pnand %p14640_p4, %p15144_p7  ;;  %p14649_p11 = por %p14648_p10, %p14647_p9 }
 0x11b   : > { %p14643_p8 = pneg %p14642_p6 }
 0x11d   : > { %p14650_p12 = pnand %p14649_p11, %p14643_p8 }
 0x11f   : > { %14653 = shalt.err (!%p14650_p12)
}
 0x120   : > { %13739 = dma.hbm_to_vmem [thread:$0]  (!%p15128_p5), %s17571_s10, 36864, %s605_s7, [#allocation3], %s17570_s1, %s17570_s1, %s17569_s26  }
 0x121   : > { %s14968_s8 = smov [#allocation6]   ;;  %s14969_s28 = smov [#allocation9]  }
 0x122   : > { %s629_s30 = sshll.u32 %s14968_s8, 4  ;;  %s651_s25 = sshll.u32 %s14969_s28, 4  ;;  %s630_s30 = int_to_ptr.vmem [resolvable:$true] %s629_s30  ;;  %s652_s25 = int_to_ptr.vmem [resolvable:$true] %s651_s25 }
 0x123   : > { %s17572_s12 = sld [smem:[#allocation99_spill]] }
 0x129   : > { %s14654_s6 = scalar_lea.hbm %s17572_s12, 16 }
 0x12a   : > { %p14655_p2 = scmp.ne.s32.totalorder %s17572_s12, %s14654_s6  ;;  %p14661_p0 = scmp.lt.u32.totalorder %s14654_s6, %s17572_s12 }
 0x12c   : > { %p14657_p3 = pnand %p14655_p2, %p15144_p7 }
 0x12e   : > { %p14658_p13 = pneg %p14657_p3 }
 0x130   : > { %p14663_p1 = pnand %p14661_p0, %p14658_p13 }
 0x132   : > { %14666 = shalt.err (!%p14663_p1)
}
 0x133   : > { %s14667_s7 = scalar_lea.vmem %s630_s30, 16  ;;  %s14674_s4 = scalar_lea.vmem %s630_s30, 32 }
 0x134   : > { %p14668_p4 = scmp.ne.s32.totalorder %s630_s30, %s14667_s7  ;;  %p14675_p9 = scmp.lt.s32.totalorder %s630_s30, %s630_s30 }
 0x135   : > { %p14676_p10 = scmp.lt.s32.totalorder %s14674_s4, %s14667_s7 }
 0x136   : > { %p14670_p6 = pnand %p14668_p4, %p15144_p7 }
 0x137   : > { %p14677_p11 = por %p14676_p10, %p14675_p9 }
 0x138   : > { %p14671_p8 = pneg %p14670_p6 }
 0x13a   : > { %p14678_p12 = pnand %p14677_p11, %p14671_p8 }
 0x13c   : > { %14681 = shalt.err (!%p14678_p12)
}
 0x13d   : > { %13745 = dma.hbm_to_vmem [thread:$0]  (!%p15128_p5), %s17572_s12, 16, %s630_s30, [#allocation5]  }
 0x13e   : > { %s17573_s5 = sld [smem:[#allocation101_spill]] }
 0x144   : > { %s17574_s6 = smov %s17573_s5  ;;  %s14682_s2 = scalar_lea.hbm %s17573_s5, 16 }
 0x145   : > { %p14683_p2 = scmp.ne.s32.totalorder %s17574_s6, %s14682_s2  ;;  %p14689_p0 = scmp.lt.u32.totalorder %s14682_s2, %s17574_s6 }
 0x147   : > { %p14685_p3 = pnand %p14683_p2, %p15144_p7 }
 0x149   : > { %p14686_p13 = pneg %p14685_p3 }
 0x14b   : > { %p14691_p1 = pnand %p14689_p0, %p14686_p13 }
 0x14d   : > { %14694 = shalt.err (!%p14691_p1)
}
 0x14e   : > { %s14695_s4 = scalar_lea.vmem %s652_s25, 16  ;;  %s14702_s30 = scalar_lea.vmem %s652_s25, 32 }
 0x14f   : > { %p14696_p4 = scmp.ne.s32.totalorder %s652_s25, %s14695_s4  ;;  %p14703_p9 = scmp.lt.s32.totalorder %s652_s25, %s652_s25 }
 0x150   : > { %p14704_p10 = scmp.lt.s32.totalorder %s14702_s30, %s14695_s4 }
 0x151   : > { %p14698_p6 = pnand %p14696_p4, %p15144_p7 }
 0x152   : > { %p14705_p11 = por %p14704_p10, %p14703_p9 }
 0x153   : > { %p14699_p8 = pneg %p14698_p6 }
 0x155   : > { %p14706_p12 = pnand %p14705_p11, %p14699_p8 }
 0x157   : > { %14709 = shalt.err (!%p14706_p12)
}
 0x158   : > { %13751 = dma.hbm_to_vmem [thread:$0]  (!%p15128_p5), %s17574_s6, 16, %s652_s25, [#allocation8]  }
 0x159   : > { %s14970_s28 = smov [#allocation12]   ;;  %s14971_s5 = smov [#allocation15]  }
 0x15a   : > { %s674_s22 = sshll.u32 %s14970_s28, 4  ;;  %s698_s2 = sshll.u32 %s14971_s5, 4  ;;  %s675_s22 = int_to_ptr.vmem [resolvable:$true] %s674_s22  ;;  %s699_s2 = int_to_ptr.vmem [resolvable:$true] %s698_s2 }
 0x15b   : > { %s14710_s27 = scalar_lea.hbm %s17431_s9, 2048 }
 0x15c   : > { %p14711_p2 = scmp.ne.s32.totalorder %s17431_s9, %s14710_s27  ;;  %p14717_p0 = scmp.lt.u32.totalorder %s14710_s27, %s17431_s9 }
 0x15e   : > { %p14713_p3 = pnand %p14711_p2, %p15144_p7 }
 0x160   : > { %p14714_p13 = pneg %p14713_p3 }
 0x162   : > { %p14719_p1 = pnand %p14717_p0, %p14714_p13 }
 0x164   : > { %14722 = shalt.err (!%p14719_p1)
}
 0x165   : > { %s14723_s25 = scalar_lea.vmem %s675_s22, 2048  ;;  %p14731_p9 = scmp.lt.s32.totalorder %s675_s22, %s675_s22 }
 0x166   : > { %p14724_p4 = scmp.ne.s32.totalorder %s675_s22, %s14723_s25  ;;  %p14732_p10 = scmp.lt.s32.totalorder %s14723_s25, %s14723_s25 }
 0x168   : > { %p14726_p6 = pnand %p14724_p4, %p15144_p7  ;;  %p14733_p11 = por %p14732_p10, %p14731_p9 }
 0x16a   : > { %p14727_p8 = pneg %p14726_p6 }
 0x16c   : > { %p14734_p12 = pnand %p14733_p11, %p14727_p8 }
 0x16e   : > { %14737 = shalt.err (!%p14734_p12)
}
 0x16f   : > { %13757 = dma.hbm_to_vmem [thread:$0]  (!%p15128_p5), %s17431_s9, 2048, %s675_s22, [#allocation11], %s17570_s1, %s17570_s1, %s17569_s26  }
 0x170   : > { %s14738_s3 = scalar_lea.hbm %s17433_s11, 512 }
 0x171   : > { %p14739_p2 = scmp.ne.s32.totalorder %s17433_s11, %s14738_s3  ;;  %p14745_p0 = scmp.lt.u32.totalorder %s14738_s3, %s17433_s11 }
 0x173   : > { %p14741_p3 = pnand %p14739_p2, %p15144_p7 }
 0x175   : > { %p14742_p13 = pneg %p14741_p3 }
 0x177   : > { %p14747_p1 = pnand %p14745_p0, %p14742_p13 }
 0x179   : > { %14750 = shalt.err (!%p14747_p1)
}
 0x17a   : > { %s14751_s29 = scalar_lea.vmem %s699_s2, 512  ;;  %p14759_p9 = scmp.lt.s32.totalorder %s699_s2, %s699_s2 }
 0x17b   : > { %p14752_p4 = scmp.ne.s32.totalorder %s699_s2, %s14751_s29  ;;  %p14760_p10 = scmp.lt.s32.totalorder %s14751_s29, %s14751_s29 }
 0x17d   : > { %p14754_p6 = pnand %p14752_p4, %p15144_p7  ;;  %p14761_p11 = por %p14760_p10, %p14759_p9 }
 0x17f   : > { %p14755_p8 = pneg %p14754_p6 }
 0x181   : > { %p14762_p12 = pnand %p14761_p11, %p14755_p8 }
 0x183   : > { %14765 = shalt.err (!%p14762_p12)
}
 0x184   : > { %13763 = dma.hbm_to_vmem [thread:$0]  (!%p15128_p5), %s17433_s11, 512, %s699_s2, [#allocation14], %s17570_s1, %s17570_s1, %s17569_s26  }
 0x185   : > { %s14972_s8 = smov [#allocation18]   ;;  %s14973_s5 = smov [#allocation21]  }
 0x186   : > { %s725_s28 = sshll.u32 %s14972_s8, 4  ;;  %s749_s16 = sshll.u32 %s14973_s5, 4  ;;  %s726_s28 = int_to_ptr.vmem [resolvable:$true] %s725_s28  ;;  %s750_s16 = int_to_ptr.vmem [resolvable:$true] %s749_s16 }
 0x187   : > { %s14766_s7 = scalar_lea.hbm %s17435_s13, 16 }
 0x188   : > { %p14767_p2 = scmp.ne.s32.totalorder %s17435_s13, %s14766_s7  ;;  %p14773_p0 = scmp.lt.u32.totalorder %s14766_s7, %s17435_s13 }
 0x18a   : > { %p14769_p3 = pnand %p14767_p2, %p15144_p7 }
 0x18c   : > { %p14770_p13 = pneg %p14769_p3 }
 0x18e   : > { %p14775_p1 = pnand %p14773_p0, %p14770_p13 }
 0x190   : > { %14778 = shalt.err (!%p14775_p1)
}
 0x191   : > { %s14779_s2 = scalar_lea.vmem %s726_s28, 16  ;;  %s14786_s25 = scalar_lea.vmem %s726_s28, 32 }
 0x192   : > { %p14780_p4 = scmp.ne.s32.totalorder %s726_s28, %s14779_s2  ;;  %p14787_p9 = scmp.lt.s32.totalorder %s726_s28, %s726_s28 }
 0x193   : > { %p14788_p10 = scmp.lt.s32.totalorder %s14786_s25, %s14779_s2 }
 0x194   : > { %p14782_p6 = pnand %p14780_p4, %p15144_p7 }
 0x195   : > { %p14789_p11 = por %p14788_p10, %p14787_p9 }
 0x196   : > { %p14783_p8 = pneg %p14782_p6 }
 0x198   : > { %p14790_p12 = pnand %p14789_p11, %p14783_p8 }
 0x19a   : > { %14793 = shalt.err (!%p14790_p12)
}
 0x19b   : > { %13769 = dma.hbm_to_vmem [thread:$0]  (!%p15128_p5), %s17435_s13, 16, %s726_s28, [#allocation17]  }
 0x19c   : > { %s14794_s7 = scalar_lea.hbm %s17437_s15, 16 }
 0x19d   : > { %p14795_p2 = scmp.ne.s32.totalorder %s17437_s15, %s14794_s7  ;;  %p14801_p0 = scmp.lt.u32.totalorder %s14794_s7, %s17437_s15 }
 0x19f   : > { %p14797_p3 = pnand %p14795_p2, %p15144_p7 }
 0x1a1   : > { %p14798_p13 = pneg %p14797_p3 }
 0x1a3   : > { %p14803_p1 = pnand %p14801_p0, %p14798_p13 }
 0x1a5   : > { %14806 = shalt.err (!%p14803_p1)
}
 0x1a6   : > { %s14807_s2 = scalar_lea.vmem %s750_s16, 16  ;;  %s14814_s28 = scalar_lea.vmem %s750_s16, 32 }
 0x1a7   : > { %p14808_p4 = scmp.ne.s32.totalorder %s750_s16, %s14807_s2  ;;  %p14815_p9 = scmp.lt.s32.totalorder %s750_s16, %s750_s16 }
 0x1a8   : > { %p14816_p10 = scmp.lt.s32.totalorder %s14814_s28, %s14807_s2 }
 0x1a9   : > { %p14810_p6 = pnand %p14808_p4, %p15144_p7 }
 0x1aa   : > { %p14817_p11 = por %p14816_p10, %p14815_p9 }
 0x1ab   : > { %p14811_p8 = pneg %p14810_p6 }
 0x1ad   : > { %p14818_p12 = pnand %p14817_p11, %p14811_p8 }
 0x1af   : > { %14821 = shalt.err (!%p14818_p12)
}
 0x1b0   : > { %13775 = dma.hbm_to_vmem [thread:$0]  (!%p15128_p5), %s17437_s15, 16, %s750_s16, [#allocation20]  }
 0x1b1   : > { %s14974_s5 = smov [#allocation24]   ;;  %s14975_s27 = smov [#allocation27]  }
 0x1b2   : > { %s773_s3 = sshll.u32 %s14974_s5, 4  ;;  %s797_s7 = sshll.u32 %s14975_s27, 4  ;;  %s774_s3 = int_to_ptr.vmem [resolvable:$true] %s773_s3  ;;  %s798_s7 = int_to_ptr.vmem [resolvable:$true] %s797_s7 }
 0x1b3   : > { %s14822_s29 = scalar_lea.hbm %s17440_s18, 640 }
 0x1b4   : > { %p14823_p2 = scmp.ne.s32.totalorder %s17440_s18, %s14822_s29  ;;  %p14829_p0 = scmp.lt.u32.totalorder %s14822_s29, %s17440_s18 }
 0x1b6   : > { %p14825_p3 = pnand %p14823_p2, %p15144_p7 }
 0x1b8   : > { %p14826_p13 = pneg %p14825_p3 }
 0x1ba   : > { %p14831_p1 = pnand %p14829_p0, %p14826_p13 }
 0x1bc   : > { %14834 = shalt.err (!%p14831_p1)
}
 0x1bd   : > { %s14835_s16 = scalar_lea.vmem %s774_s3, 640  ;;  %p14843_p9 = scmp.lt.s32.totalorder %s774_s3, %s774_s3 }
 0x1be   : > { %p14836_p4 = scmp.ne.s32.totalorder %s774_s3, %s14835_s16  ;;  %p14844_p10 = scmp.lt.s32.totalorder %s14835_s16, %s14835_s16 }
 0x1c0   : > { %p14838_p6 = pnand %p14836_p4, %p15144_p7  ;;  %p14845_p11 = por %p14844_p10, %p14843_p9 }
 0x1c2   : > { %p14839_p8 = pneg %p14838_p6 }
 0x1c4   : > { %p14846_p12 = pnand %p14845_p11, %p14839_p8 }
 0x1c6   : > { %14849 = shalt.err (!%p14846_p12)
}
 0x1c7   : > { %13781 = dma.hbm_to_vmem [thread:$0]  (!%p15128_p5), %s17440_s18, 640, %s774_s3, [#allocation23], %s17570_s1, %s17570_s1, %s17569_s26  }
 0x1c8   : > { %s14850_s30 = scalar_lea.hbm %s17442_s20, 2048 }
 0x1c9   : > { %p14851_p2 = scmp.ne.s32.totalorder %s17442_s20, %s14850_s30  ;;  %p14857_p0 = scmp.lt.u32.totalorder %s14850_s30, %s17442_s20 }
 0x1cb   : > { %p14853_p3 = pnand %p14851_p2, %p15144_p7 }
 0x1cd   : > { %p14854_p13 = pneg %p14853_p3 }
 0x1cf   : > { %p14859_p1 = pnand %p14857_p0, %p14854_p13 }
 0x1d1   : > { %14862 = shalt.err (!%p14859_p1)
}
 0x1d2   : > { %s14863_s25 = scalar_lea.vmem %s798_s7, 2048  ;;  %p14871_p9 = scmp.lt.s32.totalorder %s798_s7, %s798_s7 }
 0x1d3   : > { %p14864_p4 = scmp.ne.s32.totalorder %s798_s7, %s14863_s25  ;;  %p14872_p10 = scmp.lt.s32.totalorder %s14863_s25, %s14863_s25 }
 0x1d5   : > { %p14866_p6 = pnand %p14864_p4, %p15144_p7  ;;  %p14873_p11 = por %p14872_p10, %p14871_p9 }
 0x1d7   : > { %p14867_p8 = pneg %p14866_p6 }
 0x1d9   : > { %p14874_p12 = pnand %p14873_p11, %p14867_p8 }
 0x1db   : > { %14877 = shalt.err (!%p14874_p12)
}
 0x1dc   : > { %13787 = dma.hbm_to_vmem [thread:$0]  (!%p15128_p5), %s17442_s20, 2048, %s798_s7, [#allocation26], %s17570_s1, %s17570_s1, %s17569_s26  }
 0x1dd   : > { %s14976_s8 = smov [#allocation30]   ;;  %s14878_s30 = scalar_lea.hbm %s17445_s23, 16 }
 0x1de   : > { %s825_s5 = sshll.u32 %s14976_s8, 4  ;;  %p14879_p2 = scmp.ne.s32.totalorder %s17445_s23, %s14878_s30  ;;  %s826_s5 = int_to_ptr.vmem [resolvable:$true] %s825_s5 }
 0x1df   : > { %p14885_p0 = scmp.lt.u32.totalorder %s14878_s30, %s17445_s23 }
 0x1e0   : > { %p14881_p3 = pnand %p14879_p2, %p15144_p7 }
 0x1e2   : > { %p14882_p13 = pneg %p14881_p3 }
 0x1e4   : > { %p14887_p1 = pnand %p14885_p0, %p14882_p13 }
 0x1e6   : > { %14890 = shalt.err (!%p14887_p1)
}
 0x1e7   : > { %s14891_s26 = scalar_lea.vmem %s826_s5, 16  ;;  %s14898_s1 = scalar_lea.vmem %s826_s5, 32 }
 0x1e8   : > { %p14892_p4 = scmp.ne.s32.totalorder %s826_s5, %s14891_s26  ;;  %p14899_p9 = scmp.lt.s32.totalorder %s826_s5, %s826_s5 }
 0x1e9   : > { %p14900_p10 = scmp.lt.s32.totalorder %s14898_s1, %s14891_s26 }
 0x1ea   : > { %p14894_p6 = pnand %p14892_p4, %p15144_p7 }
 0x1eb   : > { %p14901_p11 = por %p14900_p10, %p14899_p9 }
 0x1ec   : > { %p14895_p8 = pneg %p14894_p6 }
 0x1ee   : > { %p14902_p12 = pnand %p14901_p11, %p14895_p8 }
 0x1f0   : > { %14905 = shalt.err (!%p14902_p12)
}
 0x1f1   : > { %13793 = dma.hbm_to_vmem [thread:$0]  (!%p15128_p5), %s17445_s23, 16, %s826_s5, [#allocation29]  }
 0x1f2   : > { %s17575_s3 = sld [smem:[#allocation43_spill]] }
 0x1f8   : > { %p17576_p2 = scmp.ne.s32.totalorder %s17575_s3, 0 }
 0x1fa   : > { %854 = sbr.rel (%p17576_p2) target bundleno = 4104 (0x1008), region = 116 }
 0x201   : > { %s17577_s16 = sld [smem:[#allocation42_spill]] }
 0x207   : > { %p17578_p3 = scmp.eq.s32.totalorder %s17577_s16, 0 }
 0x209   : > { %14911 = dma.done.wait (%p17578_p3), [#allocation3], 36864   ;;  %p17579_p7 = pmov %p17578_p3 }
 0x20a   : > { %p17580_p13 = pmov %p17578_p3 }
 0x20b   : > { %14913 = vsyncadd (%p17579_p7), [#allocation3], 4294930432 }
 0x20c   : > { %14915 = dma.done.wait (%p17580_p13), [#allocation5], 80   ;;  %p17581_p0 = pmov %p17578_p3 }
 0x20e   : > { %14917 = vsyncadd (%p17581_p0), [#allocation5], 4294967216  ;;  %p17582_p1 = pmov %p17581_p0 }
 0x20f   : > { %p17583_p5 = pmov %p17581_p0 }
 0x210   : > { %14919 = dma.done.wait (%p17582_p1), [#allocation8], 144  }
 0x211   : > { %14921 = vsyncadd (%p17583_p5), [#allocation8], 4294967152  ;;  %p17584_p4 = pmov %p17581_p0 }
 0x212   : > { %p17585_p6 = pmov %p17581_p0 }
 0x213   : > { %14923 = dma.done.wait (%p17584_p4), [#allocation11], 2560  }
 0x214   : > { %14925 = vsyncadd (%p17585_p6), [#allocation11], 4294964736  ;;  %p17586_p8 = pmov %p17581_p0 }
 0x215   : > { %p17587_p9 = pmov %p17581_p0 }
 0x216   : > { %14927 = dma.done.wait (%p17586_p8), [#allocation14], 528  }
 0x217   : > { %14929 = vsyncadd (%p17587_p9), [#allocation14], 4294966768  ;;  %p17588_p10 = pmov %p17581_p0 }
 0x218   : > { %p17589_p11 = pmov %p17581_p0 }
 0x219   : > { %14931 = dma.done.wait (%p17588_p10), [#allocation17], 2064  }
 0x21a   : > { %14933 = vsyncadd (%p17589_p11), [#allocation17], 4294965232  ;;  %p17590_p12 = pmov %p17581_p0 }
 0x21b   : > { %p17591_p2 = pmov %p17581_p0 }
 0x21c   : > { %14935 = dma.done.wait (%p17590_p12), [#allocation20], 9232  }
 0x21d   : > { %14937 = vsyncadd (%p17591_p2), [#allocation20], 4294958064  ;;  %p17592_p3 = pmov %p17581_p0 }
 0x21e   : > { %p17593_p7 = pmov %p17581_p0 }
 0x21f   : > { %14939 = dma.done.wait (%p17592_p3), [#allocation23], 656  }
 0x220   : > { %14941 = vsyncadd (%p17593_p7), [#allocation23], 4294966640  ;;  %p17594_p13 = pmov %p17581_p0 }
 0x222   : > { %14943 = dma.done.wait (%p17594_p13), [#allocation26], 2064  }
 0x223   : > { %14945 = vsyncadd (%p17581_p0), [#allocation26], 4294965232  ;;  %p17595_p1 = pmov %p17581_p0 }
 0x224   : > { %p17596_p5 = pmov %p17581_p0 }
 0x225   : > { %14947 = dma.done.wait (%p17595_p1), [#allocation29], 32  }
 0x226   : > { %14949 = vsyncadd (%p17596_p5), [#allocation29], 4294967264  ;;  %p997_p4 = scmp.lt.s32.totalorder %s17577_s16, 1  ;;  %s17597_s5 = sld [smem:[#allocation95_spill]]  ;;  %vm1029_vm0 = vcmask 64512   ;;  %v1021_v0 = vld [vmem:[#allocation7] sm:$0xff] }
 0x227   : > { %11998 = vmatprep.subr.mxu0 %v1021_v0  ;;  %s17598_s29 = sld [smem:[#allocation96_spill]]  ;;  %vm1199_vm1 = vcmask 523264   ;;  %s17599_s26 = sld [smem:[#allocation94_spill]]  ;;  %v1553_v10 = vld [vmem:[#allocation4] sm:$0xf]  ;;  %vm1658_vm2 = vcmask 1043456  }
 0x228   : > { %s17780_s16 = smov (!%p997_p4, %s17577_s16), 1  ;;  %11999 = vmatpush3.msra.mxu0 %v1021_v0  ;;  %vm1561_vm3 = vcmask 31744   ;;  %v2529_v20 = vld [vmem:[#allocation16] sm:$0xff]  ;;  %v2530_v21 = vld [vmem:[#allocation16 + $0x8] sm:$0xff]  ;;  %v2531_v24 = vld [vmem:[#allocation16 + $0x10] sm:$0xff]  ;;  %vm2164_vm4 = vcmask 261120  }
 0x229   : > { %s10403_s24 = sshll.u32 %s17780_s16, 6  ;;  %s10402_s22 = sshll.u32 %s17780_s16, 8  ;;  %12076 = vmatprep.subr.msk.mxu0 %vm1658_vm2, %v1553_v10  ;;  %v13094_v23 = vpack.c.bf16 %v2530_v21, %v2529_v20  ;;  %v2532_v25 = vld [vmem:[#allocation16 + $0x18] sm:$0xff]  ;;  %v2533_v28 = vld [vmem:[#allocation16 + $0x20] sm:$0xff]  ;;  %v2534_v29 = vld [vmem:[#allocation16 + $0x28] sm:$0xff]  ;;  %vm14978_vm5 = vmmov 0  }
 0x22a   : > { %v13098_v27 = vpack.c.bf16 %v2532_v25, %v2531_v24  ;;  %v13102_v32 = vpack.c.bf16 %v2534_v29, %v2533_v28  ;;  %v2535_v33 = vld [vmem:[#allocation16 + $0x30] sm:$0xff]  ;;  %v2536_v34 = vld [vmem:[#allocation16 + $0x38] sm:$0xff]  ;;  %v2537_v38 = vld [vmem:[#allocation16 + $0x40] sm:$0xff]  ;;  %s17758_s4 = sld [smem:[#allocation105_spill]]  ;;  %vm8884_vm6 = vcmask 326656   ;;  %s17759_s25 = sld [smem:[#allocation106_spill]] }
 0x22b   : > { %v13106_v37 = vpack.c.bf16 %v2536_v34, %v2535_v33  ;;  %v2538_v39 = vld [vmem:[#allocation16 + $0x48] sm:$0xff]  ;;  %v2539_v43 = vld [vmem:[#allocation16 + $0x50] sm:$0xff]  ;;  %v2540_v44 = vld [vmem:[#allocation16 + $0x58] sm:$0xff]  ;;  %s17777_s28 = sld [smem:[#allocation107_spill]]  ;;  %vm9560_vm7 = vcmask 39936  }
 0x22c   : > { %s1006_s27 = scalar_lea.vmem %s17597_s5, %s10403_s24  ;;  %v13110_v42 = vpack.c.bf16 %v2538_v39, %v2537_v38  ;;  %v13114_v47 = vpack.c.bf16 %v2540_v44, %v2539_v43  ;;  %v2541_v48 = vld [vmem:[#allocation16 + $0x60] sm:$0xff]  ;;  %v2542_v49 = vld [vmem:[#allocation16 + $0x68] sm:$0xff]  ;;  %v2543_v53 = vld [vmem:[#allocation16 + $0x70] sm:$0xff] }
 0x22d   : > { %v1013_v1 = vld [vmem:[%s1006_s27] sm:$0xff]  ;;  %v1014_v2 = vld [vmem:[%s1006_s27 + $0x8] sm:$0xff]  ;;  %v1015_v3 = vld [vmem:[%s1006_s27 + $0x10] sm:$0xff]  ;;  %s15589_s1 = scalar_lea.vmem %s17599_s26, %s10402_s22  ;;  %v13118_v52 = vpack.c.bf16 %v2542_v49, %v2541_v48 }
 0x22e   : > { %12000 = vmatprep.mubr.msk.f32.mxu0 %vm1029_vm0, %v1013_v1  ;;  %v1016_v4 = vld [vmem:[%s1006_s27 + $0x18] sm:$0xff]  ;;  %v1017_v5 = vld [vmem:[%s1006_s27 + $0x20] sm:$0xff]  ;;  %v1018_v6 = vld [vmem:[%s1006_s27 + $0x28] sm:$0xff] }
 0x22f   : > { %12001 = vmatmul.mubr.msk.f32.vlgmr.msra.gmra.mrb[0].mxu0 %vm1029_vm0, %v1014_v2  ;;  %v1019_v7 = vld [vmem:[%s1006_s27 + $0x30] sm:$0xff]  ;;  %v1020_v8 = vld [vmem:[%s1006_s27 + $0x38] sm:$0xff]  ;;  %v1167_v9 = vld [vmem:[%s17598_s29] sm:$0xff] }
 0x230   : > { %12003 = vmatprep.mubr.msk.f32.mxu0 %vm1029_vm0, %v1015_v3  ;;  %12028 = vmatprep.mubr.msk.f32.mxu1 %vm1199_vm1, %v1167_v9  ;;  %v1521_v11 = vld [vmem:[%s15589_s1] sm:$0xff]  ;;  %v1522_v12 = vld [vmem:[%s15589_s1 + $0x8] sm:$0xff]  ;;  %v1523_v13 = vld [vmem:[%s15589_s1 + $0x10] sm:$0xff] }
 0x231   : > { %12077 = vmatpush3.msk.msra.mxu0 %vm1658_vm2, %v1553_v10  ;;  %v1524_v14 = vld [vmem:[%s15589_s1 + $0x18] sm:$0xff]  ;;  %v1525_v15 = vld [vmem:[%s15589_s1 + $0x20] sm:$0xff]  ;;  %v1526_v16 = vld [vmem:[%s15589_s1 + $0x28] sm:$0xff]  ;;  %s17321_s26 = scalar_lea.vmem %s17777_s28, %s10402_s22 }
 0x232   : > { %v1527_v17 = vld [vmem:[%s15589_s1 + $0x30] sm:$0xff]  ;;  %v1528_v18 = vld [vmem:[%s15589_s1 + $0x38] sm:$0xff]  ;;  %v1529_v19 = vld [vmem:[%s15589_s1 + $0x40] sm:$0xff]  ;;  %13095 = vmatprep.subr.bf16.mxu0 %v13094_v23 }
 0x233   : > { %12004 = vmatmul.mubr.msk.f32.gmra.mrb[2].mxu0 %vm1029_vm0, %v1016_v4  ;;  %v1530_v22 = vld [vmem:[%s15589_s1 + $0x48] sm:$0xff]  ;;  %v1531_v26 = vld [vmem:[%s15589_s1 + $0x50] sm:$0xff]  ;;  %v1532_v30 = vld [vmem:[%s15589_s1 + $0x58] sm:$0xff] }
 0x234   : > { %12006 = vmatprep.mubr.msk.f32.mxu0 %vm1029_vm0, %v1017_v5  ;;  %v1533_v31 = vld [vmem:[%s15589_s1 + $0x60] sm:$0xff]  ;;  %v1534_v35 = vld [vmem:[%s15589_s1 + $0x68] sm:$0xff]  ;;  %v1535_v36 = vld [vmem:[%s15589_s1 + $0x70] sm:$0xff] }
 0x235   : > { %v1536_v40 = vld [vmem:[%s15589_s1 + $0x78] sm:$0xff]  ;;  %v1537_v41 = vld [vmem:[%s15589_s1 + $0x80] sm:$0xff]  ;;  %v1538_v45 = vld [vmem:[%s15589_s1 + $0x88] sm:$0xff] }
 0x236   : > { %v1539_v46 = vld [vmem:[%s15589_s1 + $0x90] sm:$0xff]  ;;  %v1540_v50 = vld [vmem:[%s15589_s1 + $0x98] sm:$0xff]  ;;  %v1541_v51 = vld [vmem:[%s15589_s1 + $0xa0] sm:$0xff] }
 0x237   : > { %12007 = vmatmul.mubr.msk.f32.gmra.mrb[4].mxu0 %vm1029_vm0, %v1018_v6  ;;  %v2544_v54 = vld [vmem:[#allocation16 + $0x78] sm:$0xff]  ;;  %v1544_v58 = vld [vmem:[%s15589_s1 + $0xb8] sm:$0xff]  ;;  %v1545_v59 = vld [vmem:[%s15589_s1 + $0xc0] sm:$0xff] }
 0x238   : > { %12009 = vmatprep.mubr.msk.f32.mxu0 %vm1029_vm0, %v1019_v7  ;;  %v1542_v55 = vld [vmem:[%s15589_s1 + $0xa8] sm:$0xff]  ;;  %v1543_v56 = vld [vmem:[%s15589_s1 + $0xb0] sm:$0xff]  ;;  %v13122_v57 = vpack.c.bf16 %v2544_v54, %v2543_v53  ;;  %v1548_v6 = vld [vmem:[%s15589_s1 + $0xd8] sm:$0xff] }
 0x239   : > { %v9892_v60 = vld [vmem:[#allocation9] ss:$0 sm:$0xff]  ;;  %v1547_v1 = vld [vmem:[%s15589_s1 + $0xd0] sm:$0xff]  ;;  %v1549_v9 = vld [vmem:[%s15589_s1 + $0xe0] sm:$0xff] }
 0x23a   : > { %v1546_v62 = vld [vmem:[%s15589_s1 + $0xc8] sm:$0xff]  ;;  %v1552_v24 = vld [vmem:[%s15589_s1 + $0xf8] sm:$0xff]  ;;  %v1169_v38 = vld [vmem:[%s17598_s29 + $0x10] sm:$0xff] }
 0x23b   : > { %12010 = vmatmul.mubr.msk.f32.gmra.mrb[6].mxu0 %vm1029_vm0, %v1020_v8  ;;  %v1171_v43 = vld [vmem:[%s17598_s29 + $0x20] sm:$0xff]  ;;  %v1173_v48 = vld [vmem:[%s17598_s29 + $0x30] sm:$0xff] }
 0x23c   : > { %12078 = vmatprep.mubr.msk.f32.mxu0 %vm1561_vm3, %v1521_v11  ;;  %v1175_v53 = vld [vmem:[%s17598_s29 + $0x40] sm:$0xff] }
 0x23f   : > { %12079 = vmatmul.mubr.msk.f32.vlgmr.msra.gmra.mrb[8].mxu0 %vm1561_vm3, %v1522_v12 }
 0x240   : > { %12081 = vmatprep.mubr.msk.f32.mxu0 %vm1561_vm3, %v1523_v13  ;;  %13097 = vmatpush3.bf16.msra.mxu0 %v13094_v23 }
 0x241   : > { %13099 = vmatprep.subr.bf16.mxu0 %v13098_v27 }
 0x243   : > { %12082 = vmatmul.mubr.msk.f32.gmra.mrb[10].mxu0 %vm1561_vm3, %v1524_v14 }
 0x244   : > { %12084 = vmatprep.mubr.msk.f32.mxu0 %vm1561_vm3, %v1525_v15  ;;  %13101 = vmatpush3.bf16.msra.mxu0 %v13098_v27  ;;  %v1550_v15 = vld [vmem:[%s15589_s1 + $0xe8] sm:$0xff] }
 0x245   : > { %13103 = vmatprep.subr.bf16.mxu0 %v13102_v32 }
 0x247   : > { %12085 = vmatmul.mubr.msk.f32.gmra.mrb[12].mxu0 %vm1561_vm3, %v1526_v16 }
 0x248   : > { %12087 = vmatprep.mubr.msk.f32.mxu0 %vm1561_vm3, %v1527_v17  ;;  %13105 = vmatpush3.bf16.msra.mxu0 %v13102_v32 }
 0x249   : > { %13107 = vmatprep.subr.bf16.mxu0 %v13106_v37 }
 0x24b   : > { %12088 = vmatmul.mubr.msk.f32.gmra.mrb[14].mxu0 %vm1561_vm3, %v1528_v18  ;;  %v1551_v18 = vld [vmem:[%s15589_s1 + $0xf0] sm:$0xff] }
 0x24c   : > { %12090 = vmatprep.mubr.msk.f32.mxu0 %vm1561_vm3, %v1529_v19  ;;  %13109 = vmatpush3.bf16.msra.mxu0 %v13106_v37  ;;  %v1168_v37 = vld [vmem:[%s17598_s29 + $0x8] sm:$0xff] }
 0x24d   : > { %13111 = vmatprep.subr.bf16.mxu0 %v13110_v42 }
 0x24f   : > { %12091 = vmatmul.mubr.msk.f32.gmra.mrb[16].mxu0 %vm1561_vm3, %v1530_v22 }
 0x250   : > { %12093 = vmatprep.mubr.msk.f32.mxu0 %vm1561_vm3, %v1531_v26  ;;  %13113 = vmatpush3.bf16.msra.mxu0 %v13110_v42  ;;  %v1170_v42 = vld [vmem:[%s17598_s29 + $0x18] sm:$0xff] }
 0x251   : > { %13115 = vmatprep.subr.bf16.mxu0 %v13114_v47 }
 0x253   : > { %12094 = vmatmul.mubr.msk.f32.gmra.mrb[18].mxu0 %vm1561_vm3, %v1532_v30  ;;  %v1923_v30 = vld [vmem:[#allocation12] sm:$0xff] }
 0x254   : > { %12096 = vmatprep.mubr.msk.f32.mxu0 %vm1561_vm3, %v1533_v31  ;;  %13117 = vmatpush3.bf16.msra.mxu0 %v13114_v47  ;;  %v1924_v31 = vld [vmem:[#allocation12 + $0x8] sm:$0xff]  ;;  %v1172_v47 = vld [vmem:[%s17598_s29 + $0x28] sm:$0xff] }
 0x255   : > { %13119 = vmatprep.subr.bf16.mxu0 %v13118_v52  ;;  %v13054_v34 = vpack.c.bf16 %v1924_v31, %v1923_v30 }
 0x257   : > { %12097 = vmatmul.mubr.msk.f32.gmra.mrb[20].mxu0 %vm1561_vm3, %v1534_v35  ;;  %v1925_v35 = vld [vmem:[#allocation12 + $0x10] sm:$0xff] }
 0x258   : > { %12099 = vmatprep.mubr.msk.f32.mxu0 %vm1561_vm3, %v1535_v36  ;;  %13121 = vmatpush3.bf16.msra.mxu0 %v13118_v52  ;;  %v1926_v36 = vld [vmem:[#allocation12 + $0x18] sm:$0xff]  ;;  %v1174_v52 = vld [vmem:[%s17598_s29 + $0x38] sm:$0xff] }
 0x259   : > { %13123 = vmatprep.subr.bf16.mxu0 %v13122_v57  ;;  %v13058_v39 = vpack.c.bf16 %v1926_v36, %v1925_v35 }
 0x25b   : > { %12100 = vmatmul.mubr.msk.f32.gmra.mrb[22].mxu0 %vm1561_vm3, %v1536_v40  ;;  %v1927_v40 = vld [vmem:[#allocation12 + $0x20] sm:$0xff] }
 0x25c   : > { %12102 = vmatprep.mubr.msk.f32.mxu0 %vm1561_vm3, %v1537_v41  ;;  %13125 = vmatpush3.bf16.msra.mxu0 %v13122_v57  ;;  %v1928_v41 = vld [vmem:[#allocation12 + $0x28] sm:$0xff]  ;;  %v1176_v57 = vld [vmem:[%s17598_s29 + $0x48] sm:$0xff] }
 0x25d   : > { %v13062_v44 = vpack.c.bf16 %v1928_v41, %v1927_v40 }
 0x25f   : > { %12103 = vmatmul.mubr.msk.f32.gmra.mrb[24].mxu0 %vm1561_vm3, %v1538_v45  ;;  %v1929_v45 = vld [vmem:[#allocation12 + $0x30] sm:$0xff] }
 0x260   : > { %12105 = vmatprep.mubr.msk.f32.mxu0 %vm1561_vm3, %v1539_v46  ;;  %v1930_v46 = vld [vmem:[#allocation12 + $0x38] sm:$0xff] }
 0x261   : > { %v13066_v49 = vpack.c.bf16 %v1930_v46, %v1929_v45 }
 0x263   : > { %12106 = vmatmul.mubr.msk.f32.gmra.mrb[26].mxu0 %vm1561_vm3, %v1540_v50  ;;  %v1931_v50 = vld [vmem:[#allocation12 + $0x40] sm:$0xff] }
 0x264   : > { %12108 = vmatprep.mubr.msk.f32.mxu0 %vm1561_vm3, %v1541_v51  ;;  %v1932_v51 = vld [vmem:[#allocation12 + $0x48] sm:$0xff] }
 0x265   : > { %v13070_v54 = vpack.c.bf16 %v1932_v51, %v1931_v50 }
 0x267   : > { %12109 = vmatmul.mubr.msk.f32.gmra.mrb[28].mxu0 %vm1561_vm3, %v1542_v55  ;;  %v1933_v55 = vld [vmem:[#allocation12 + $0x50] sm:$0xff] }
 0x268   : > { %12111 = vmatprep.mubr.msk.f32.mxu0 %vm1561_vm3, %v1543_v56  ;;  %v1934_v56 = vld [vmem:[#allocation12 + $0x58] sm:$0xff] }
 0x26b   : > { %12112 = vmatmul.mubr.msk.f32.gmra.mrb[30].mxu0 %vm1561_vm3, %v1544_v58  ;;  %v1177_v58 = vld [vmem:[%s17598_s29 + $0x50] sm:$0xff] }
 0x26c   : > { %12114 = vmatprep.mubr.msk.f32.mxu0 %vm1561_vm3, %v1545_v59  ;;  %v13074_v59 = vpack.c.bf16 %v1934_v56, %v1933_v55 }
 0x26f   : > { %12115 = vmatmul.mubr.msk.f32.gmra.mrb[32].mxu0 %vm1561_vm3, %v1546_v62  ;;  %v1178_v62 = vld [vmem:[%s17598_s29 + $0x58] sm:$0xff] }
 0x270   : > { %12117 = vmatprep.mubr.msk.f32.mxu0 %vm1561_vm3, %v1547_v1  ;;  %v1937_v1 = vld [vmem:[#allocation12 + $0x70] sm:$0xff] }
 0x273   : > { %12118 = vmatmul.mubr.msk.f32.gmra.mrb[34].mxu0 %vm1561_vm3, %v1548_v6  ;;  %v1182_v6 = vld [vmem:[%s17598_s29 + $0x78] sm:$0xff] }
 0x274   : > { %12120 = vmatprep.mubr.msk.f32.mxu0 %vm1561_vm3, %v1549_v9  ;;  %v1185_v9 = vld [vmem:[%s17598_s29 + $0x90] sm:$0xff] }
 0x277   : > { %12121 = vmatmul.mubr.msk.f32.gmra.mrb[36].mxu0 %vm1561_vm3, %v1550_v15  ;;  %v1191_v15 = vld [vmem:[%s17598_s29 + $0xc0] sm:$0xff] }
 0x278   : > { %12123 = vmatprep.mubr.msk.f32.mxu0 %vm1561_vm3, %v1551_v18  ;;  %v1194_v18 = vld [vmem:[%s17598_s29 + $0xd8] sm:$0xff] }
 0x27b   : > { %12124 = vmatmul.mubr.msk.f32.gmra.mrb[38].mxu0 %vm1561_vm3, %v1552_v24  ;;  %v2526_v24 = vld [vmem:[#allocation15 + $0x8] sm:$0xff] }
 0x302   : > { %v12002_v61 = vpop.f32.mrb[0].mxu0 }
 0x303   : > { %v1126_v63 = vadd.f32 %v12002_v61, %v9892_v60  ;;  %v1120_v0 = vpop.f32.mrb[1].mxu0  ;;  %v1936_v61 = vld [vmem:[#allocation12 + $0x68] sm:$0xff] }
 0x304   : > { %v1121_v2 = vadd.f32 %v9892_v60, %v1120_v0 }
 0x305   : > { %v1160_v3 = vmax.f32 %v1126_v63, 0.0  ;;  %v1179_v63 = vld [vmem:[%s17598_s29 + $0x60] sm:$0xff] }
 0x306   : > { %v12005_v4 = vpop.f32.mrb[2].mxu0  ;;  %v1159_v5 = vmax.f32 %v1121_v2, 0.0  ;;  %v1938_v2 = vld [vmem:[#allocation12 + $0x78] sm:$0xff] }
 0x307   : > { %v1136_v7 = vadd.f32 %v12005_v4, %v9892_v60  ;;  %v1130_v8 = vpop.f32.mrb[3].mxu0  ;;  %v1181_v4 = vld [vmem:[%s17598_s29 + $0x70] sm:$0xff] }
 0x308   : > { %v1131_v10 = vadd.f32 %v9892_v60, %v1130_v8  ;;  %v13038_v11 = vpack.c.bf16 %v1160_v3, %v1159_v5  ;;  %v1180_v3 = vld [vmem:[%s17598_s29 + $0x68] sm:$0xff]  ;;  %v13082_v5 = vpack.c.bf16 %v1938_v2, %v1937_v1 }
 0x309   : > { %v1162_v12 = vmax.f32 %v1136_v7, 0.0  ;;  %v1183_v7 = vld [vmem:[%s17598_s29 + $0x80] sm:$0xff]  ;;  %v1184_v8 = vld [vmem:[%s17598_s29 + $0x88] sm:$0xff] }
 0x30a   : > { %v1161_v13 = vmax.f32 %v1131_v10, 0.0  ;;  %v12008_v14 = vpop.f32.mrb[4].mxu0  ;;  %13039 = vmatprep.subr.bf16.mxu1 %v13038_v11  ;;  %v1186_v10 = vld [vmem:[%s17598_s29 + $0x98] sm:$0xff] }
 0x30b   : > { %v1146_v16 = vadd.f32 %v12008_v14, %v9892_v60  ;;  %v1140_v17 = vpop.f32.mrb[5].mxu0  ;;  %13041 = vmatpush3.bf16.msra.mxu1 %v13038_v11  ;;  %v1187_v11 = vld [vmem:[%s17598_s29 + $0xa0] sm:$0xff]  ;;  %v1190_v14 = vld [vmem:[%s17598_s29 + $0xb8] sm:$0xff] }
 0x30c   : > { %v1141_v19 = vadd.f32 %v9892_v60, %v1140_v17  ;;  %v13042_v20 = vpack.c.bf16 %v1162_v12, %v1161_v13  ;;  %v1188_v12 = vld [vmem:[%s17598_s29 + $0xa8] sm:$0xff]  ;;  %v1189_v13 = vld [vmem:[%s17598_s29 + $0xb0] sm:$0xff] }
 0x30d   : > { %v1164_v21 = vmax.f32 %v1146_v16, 0.0  ;;  %v1192_v16 = vld [vmem:[%s17598_s29 + $0xc8] sm:$0xff]  ;;  %v1193_v17 = vld [vmem:[%s17598_s29 + $0xd0] sm:$0xff] }
 0x30e   : > { %v1163_v22 = vmax.f32 %v1141_v19, 0.0  ;;  %v12011_v23 = vpop.f32.mrb[6].mxu0  ;;  %13043 = vmatprep.subr.bf16.mxu1 %v13042_v20  ;;  %v1195_v19 = vld [vmem:[%s17598_s29 + $0xe0] sm:$0xff] }
 0x30f   : > { %v1156_v25 = vadd.f32 %v12011_v23, %v9892_v60  ;;  %v1150_v26 = vpop.f32.mrb[7].mxu0  ;;  %13045 = vmatpush3.bf16.msra.mxu1 %v13042_v20  ;;  %v1196_v20 = vld [vmem:[%s17598_s29 + $0xe8] sm:$0xff]  ;;  %v2525_v23 = vld [vmem:[#allocation15] sm:$0xff] }
 0x310   : > { %v1151_v27 = vadd.f32 %v9892_v60, %v1150_v26  ;;  %v13046_v28 = vpack.c.bf16 %v1164_v21, %v1163_v22  ;;  %v1935_v60 = vld [vmem:[#allocation12 + $0x60] sm:$0xff]  ;;  %v1198_v22 = vld [vmem:[%s17598_s29 + $0xf8] sm:$0xff] }
 0x311   : > { %v1166_v29 = vmax.f32 %v1156_v25, 0.0  ;;  %v13078_v0 = vpack.c.bf16 %v1936_v61, %v1935_v60  ;;  %v1197_v21 = vld [vmem:[%s17598_s29 + $0xf0] sm:$0xff]  ;;  %v13126_v25 = vpack.c.bf16 %v2526_v24, %v2525_v23  ;;  %v1921_v61 = vld [vmem:[#allocation10 + $0x10] sm:$0xff] }
 0x312   : > { %v1165_v32 = vmax.f32 %v1151_v27, 0.0  ;;  %13047 = vmatprep.subr.bf16.mxu1 %v13046_v28  ;;  %v1919_v26 = vld [vmem:[#allocation10] sm:$0xff]  ;;  %v1920_v27 = vld [vmem:[#allocation10 + $0x8] sm:$0xff] }
 0x313   : > { %13049 = vmatpush3.bf16.msra.mxu1 %v13046_v28  ;;  %13127 = vmatprep.subr.bf16.mxu0 %v13126_v25  ;;  %v13086_v28 = vpack.c.bf16 %v1920_v27, %v1919_v26 }
 0x314   : > { %v13050_v33 = vpack.c.bf16 %v1166_v29, %v1165_v32  ;;  %v15779_v29 = vpop.f32.mrb[8].mxu0 }
 0x315   : > { %v15781_v30 = vpop.f32.mrb[9].mxu0 }
 0x316   : > { %13051 = vmatprep.subr.bf16.mxu1 %v13050_v33  ;;  %v15783_v31 = vpop.f32.mrb[10].mxu0 }
 0x317   : > { %13053 = vmatpush3.bf16.msra.mxu1 %v13050_v33  ;;  %v15785_v32 = vpop.f32.mrb[11].mxu0 }
 0x318   : > { %13055 = vmatprep.subr.bf16.mxu1 %v13054_v34 }
 0x31a   : > { %12029 = vmatmul.mubr.msk.f32.vlgmr.msra.gmra.mrb[0].mxu1 %vm1199_vm1, %v1168_v37  ;;  %v15787_v33 = vpop.f32.mrb[12].mxu0 }
 0x31b   : > { %12031 = vmatprep.mubr.msk.f32.mxu1 %vm1199_vm1, %v1169_v38  ;;  %13057 = vmatpush3.bf16.msra.mxu1 %v13054_v34  ;;  %v15789_v34 = vpop.f32.mrb[13].mxu0 }
 0x31c   : > { %13059 = vmatprep.subr.bf16.mxu1 %v13058_v39 }
 0x31e   : > { %12032 = vmatmul.mubr.msk.f32.gmra.mrb[2].mxu1 %vm1199_vm1, %v1170_v42  ;;  %v15791_v35 = vpop.f32.mrb[14].mxu0 }
 0x31f   : > { %12034 = vmatprep.mubr.msk.f32.mxu1 %vm1199_vm1, %v1171_v43  ;;  %13061 = vmatpush3.bf16.msra.mxu1 %v13058_v39  ;;  %v15793_v36 = vpop.f32.mrb[15].mxu0 }
 0x320   : > { %13063 = vmatprep.subr.bf16.mxu1 %v13062_v44 }
 0x322   : > { %12035 = vmatmul.mubr.msk.f32.gmra.mrb[4].mxu1 %vm1199_vm1, %v1172_v47  ;;  %v15795_v37 = vpop.f32.mrb[16].mxu0 }
 0x323   : > { %12037 = vmatprep.mubr.msk.f32.mxu1 %vm1199_vm1, %v1173_v48  ;;  %13065 = vmatpush3.bf16.msra.mxu1 %v13062_v44  ;;  %v15797_v38 = vpop.f32.mrb[17].mxu0 }
 0x324   : > { %13067 = vmatprep.subr.bf16.mxu1 %v13066_v49 }
 0x326   : > { %12038 = vmatmul.mubr.msk.f32.gmra.mrb[6].mxu1 %vm1199_vm1, %v1174_v52  ;;  %v15799_v39 = vpop.f32.mrb[18].mxu0 }
 0x327   : > { %12040 = vmatprep.mubr.msk.f32.mxu1 %vm1199_vm1, %v1175_v53  ;;  %13069 = vmatpush3.bf16.msra.mxu1 %v13066_v49  ;;  %v15801_v40 = vpop.f32.mrb[19].mxu0 }
 0x328   : > { %13071 = vmatprep.subr.bf16.mxu1 %v13070_v54 }
 0x32a   : > { %12041 = vmatmul.mubr.msk.f32.gmra.mrb[8].mxu1 %vm1199_vm1, %v1176_v57  ;;  %v15803_v41 = vpop.f32.mrb[20].mxu0 }
 0x32b   : > { %12043 = vmatprep.mubr.msk.f32.mxu1 %vm1199_vm1, %v1177_v58  ;;  %13073 = vmatpush3.bf16.msra.mxu1 %v13070_v54  ;;  %v15805_v42 = vpop.f32.mrb[21].mxu0 }
 0x32c   : > { %13075 = vmatprep.subr.bf16.mxu1 %v13074_v59 }
 0x32e   : > { %12044 = vmatmul.mubr.msk.f32.gmra.mrb[10].mxu1 %vm1199_vm1, %v1178_v62  ;;  %v15807_v43 = vpop.f32.mrb[22].mxu0  ;;  %v1922_v62 = vld [vmem:[#allocation10 + $0x18] sm:$0xff] }
 0x32f   : > { %12046 = vmatprep.mubr.msk.f32.mxu1 %vm1199_vm1, %v1179_v63  ;;  %13077 = vmatpush3.bf16.msra.mxu1 %v13074_v59  ;;  %v15809_v44 = vpop.f32.mrb[23].mxu0  ;;  %v2527_v63 = vld [vmem:[#allocation15 + $0x10] sm:$0xff] }
 0x330   : > { %13079 = vmatprep.subr.bf16.mxu1 %v13078_v0 }
 0x332   : > { %12047 = vmatmul.mubr.msk.f32.gmra.mrb[12].mxu1 %vm1199_vm1, %v1180_v3  ;;  %v15811_v45 = vpop.f32.mrb[24].mxu0  ;;  %v13090_v3 = vpack.c.bf16 %v1922_v62, %v1921_v61 }
 0x333   : > { %12049 = vmatprep.mubr.msk.f32.mxu1 %vm1199_vm1, %v1181_v4  ;;  %13081 = vmatpush3.bf16.msra.mxu1 %v13078_v0  ;;  %v15813_v46 = vpop.f32.mrb[25].mxu0  ;;  %v2528_v0 = vld [vmem:[#allocation15 + $0x18] sm:$0xff] }
 0x334   : > { %13083 = vmatprep.subr.bf16.mxu1 %v13082_v5  ;;  %v13130_v4 = vpack.c.bf16 %v2528_v0, %v2527_v63  ;;  %v15843_v63 = vld [vmem:[#allocation6] ss:$0 sm:$0xff] }
 0x336   : > { %12050 = vmatmul.mubr.msk.f32.gmra.mrb[14].mxu1 %vm1199_vm1, %v1182_v6  ;;  %v15815_v47 = vpop.f32.mrb[26].mxu0 }
 0x337   : > { %12052 = vmatprep.mubr.msk.f32.mxu1 %vm1199_vm1, %v1183_v7  ;;  %13085 = vmatpush3.bf16.msra.mxu1 %v13082_v5  ;;  %v15817_v48 = vpop.f32.mrb[27].mxu0 }
 0x338   : > { %13087 = vmatprep.subr.bf16.mxu1 %v13086_v28 }
 0x33a   : > { %12053 = vmatmul.mubr.msk.f32.gmra.mrb[16].mxu1 %vm1199_vm1, %v1184_v8  ;;  %v15819_v49 = vpop.f32.mrb[28].mxu0 }
 0x33b   : > { %12055 = vmatprep.mubr.msk.f32.mxu1 %vm1199_vm1, %v1185_v9  ;;  %v15821_v50 = vpop.f32.mrb[29].mxu0 }
 0x33e   : > { %12056 = vmatmul.mubr.msk.f32.gmra.mrb[18].mxu1 %vm1199_vm1, %v1186_v10  ;;  %v15823_v51 = vpop.f32.mrb[30].mxu0 }
 0x33f   : > { %12058 = vmatprep.mubr.msk.f32.mxu1 %vm1199_vm1, %v1187_v11  ;;  %v15825_v52 = vpop.f32.mrb[31].mxu0 }
 0x342   : > { %12059 = vmatmul.mubr.msk.f32.gmra.mrb[20].mxu1 %vm1199_vm1, %v1188_v12  ;;  %v15827_v53 = vpop.f32.mrb[32].mxu0 }
 0x343   : > { %12061 = vmatprep.mubr.msk.f32.mxu1 %vm1199_vm1, %v1189_v13  ;;  %v15829_v54 = vpop.f32.mrb[33].mxu0 }
 0x346   : > { %12062 = vmatmul.mubr.msk.f32.gmra.mrb[22].mxu1 %vm1199_vm1, %v1190_v14  ;;  %v15831_v55 = vpop.f32.mrb[34].mxu0 }
 0x347   : > { %12064 = vmatprep.mubr.msk.f32.mxu1 %vm1199_vm1, %v1191_v15  ;;  %v15833_v56 = vpop.f32.mrb[35].mxu0 }
 0x34a   : > { %12065 = vmatmul.mubr.msk.f32.gmra.mrb[24].mxu1 %vm1199_vm1, %v1192_v16  ;;  %v15835_v57 = vpop.f32.mrb[36].mxu0 }
 0x34b   : > { %12067 = vmatprep.mubr.msk.f32.mxu1 %vm1199_vm1, %v1193_v17  ;;  %v15837_v58 = vpop.f32.mrb[37].mxu0 }
 0x34e   : > { %12068 = vmatmul.mubr.msk.f32.gmra.mrb[26].mxu1 %vm1199_vm1, %v1194_v18  ;;  %v15839_v59 = vpop.f32.mrb[38].mxu0 }
 0x34f   : > { %12070 = vmatprep.mubr.msk.f32.mxu1 %vm1199_vm1, %v1195_v19  ;;  %v15841_v60 = vpop.f32.mrb[39].mxu0 }
 0x352   : > { %12071 = vmatmul.mubr.msk.f32.gmra.mrb[28].mxu1 %vm1199_vm1, %v1196_v20 }
 0x353   : > { %12073 = vmatprep.mubr.msk.f32.mxu1 %vm1199_vm1, %v1197_v21 }
 0x356   : > { %12074 = vmatmul.mubr.msk.f32.gmra.mrb[30].mxu1 %vm1199_vm1, %v1198_v22 }
 0x3ed   : > { %v12030_v1 = vpop.f32.mrb[0].mxu1 }
 0x3ee   : > { %v1362_v2 = vpop.f32.mrb[1].mxu1 }
 0x3ef   : > { %12158 = vmatprep.mubr.f32.mxu1 %v1362_v2  ;;  %12294 = vmatprep.mubr.f32.mxu0 %v1362_v2 }
 0x3f0   : > { %12159 = vmatmul.mubr.f32.vlgmr.msra.gmra.mrb[32].mxu1 %v12030_v1  ;;  %12295 = vmatmul.mubr.f32.vlgmr.msra.gmra.mrb[40].mxu0 %v12030_v1  ;;  %v1729_v1 = vadd.f32 %v15843_v63, %v15781_v30 }
 0x3f1   : > { %v12033_v5 = vpop.f32.mrb[2].mxu1  ;;  %13129 = vmatpush3.bf16.msra.mxu0 %v13126_v25  ;;  %13089 = vmatpush3.bf16.msra.mxu1 %v13086_v28 }
 0x3f2   : > { %v1372_v6 = vpop.f32.mrb[3].mxu1  ;;  %13091 = vmatprep.subr.bf16.mxu1 %v13090_v3  ;;  %13131 = vmatprep.subr.bf16.mxu0 %v13130_v4 }
 0x3f3   : > { %12161 = vmatprep.mubr.f32.mxu1 %v1372_v6  ;;  %12297 = vmatprep.mubr.f32.mxu0 %v1372_v6  ;;  %v1734_v6 = vadd.f32 %v15779_v29, %v15843_v63 }
 0x3f4   : > { %12162 = vmatmul.mubr.f32.gmra.mrb[34].mxu1 %v12033_v5  ;;  %12298 = vmatmul.mubr.f32.gmra.mrb[42].mxu0 %v12033_v5  ;;  %v1739_v5 = vadd.f32 %v15843_v63, %v15785_v32  ;;  %v1744_v32 = vadd.f32 %v15783_v31, %v15843_v63 }
 0x3f5   : > { %v12036_v7 = vpop.f32.mrb[4].mxu1  ;;  %13093 = vmatpush3.bf16.msra.mxu1 %v13090_v3  ;;  %13133 = vmatpush3.bf16.msra.mxu0 %v13130_v4  ;;  %v1887_v4 = vmax.f32 %v1729_v1, 0.0  ;;  %v1869_v1 = vadd.f32 %v15843_v63, %v15837_v58  ;;  %v1874_v58 = vadd.f32 %v15835_v57, %v15843_v63 }
 0x3f6   : > { %v1382_v8 = vpop.f32.mrb[5].mxu1  ;;  %v1889_v30 = vmax.f32 %v1739_v5, 0.0 }
 0x3f7   : > { %12164 = vmatprep.mubr.f32.mxu1 %v1382_v8  ;;  %12300 = vmatprep.mubr.f32.mxu0 %v1382_v8  ;;  %v1749_v8 = vadd.f32 %v15843_v63, %v15789_v34  ;;  %v1754_v34 = vadd.f32 %v15787_v33, %v15843_v63  ;;  %v1916_v5 = vmax.f32 %v1874_v58, 0.0 }
 0x3f8   : > { %12165 = vmatmul.mubr.f32.gmra.mrb[36].mxu1 %v12036_v7  ;;  %12301 = vmatmul.mubr.f32.gmra.mrb[44].mxu0 %v12036_v7 }
 0x3f9   : > { %v12039_v9 = vpop.f32.mrb[6].mxu1  ;;  %v1891_v29 = vmax.f32 %v1749_v8, 0.0 }
 0x3fa   : > { %v1392_v10 = vpop.f32.mrb[7].mxu1 }
 0x3fb   : > { %12167 = vmatprep.mubr.f32.mxu1 %v1392_v10  ;;  %12303 = vmatprep.mubr.f32.mxu0 %v1392_v10  ;;  %v1759_v10 = vadd.f32 %v15843_v63, %v15793_v36  ;;  %v1764_v36 = vadd.f32 %v15791_v35, %v15843_v63 }
 0x3fc   : > { %12168 = vmatmul.mubr.f32.gmra.mrb[38].mxu1 %v12039_v9  ;;  %12304 = vmatmul.mubr.f32.gmra.mrb[46].mxu0 %v12039_v9  ;;  %v1888_v9 = vmax.f32 %v1734_v6, 0.0  ;;  %v1884_v6 = vadd.f32 %v15839_v59, %v15843_v63 }
 0x3fd   : > { %v12042_v11 = vpop.f32.mrb[8].mxu1  ;;  %v1893_v31 = vmax.f32 %v1759_v10, 0.0 }
 0x3fe   : > { %v1402_v12 = vpop.f32.mrb[9].mxu1  ;;  %v1918_v57 = vmax.f32 %v1884_v6, 0.0 }
 0x3ff   : > { %12170 = vmatprep.mubr.f32.mxu1 %v1402_v12  ;;  %12306 = vmatprep.mubr.f32.mxu0 %v1402_v12  ;;  %v1769_v12 = vadd.f32 %v15843_v63, %v15797_v38  ;;  %v1774_v38 = vadd.f32 %v15795_v37, %v15843_v63 }
 0x400   : > { %12171 = vmatmul.mubr.f32.gmra.mrb[40].mxu1 %v12042_v11  ;;  %12307 = vmatmul.mubr.f32.gmra.mrb[48].mxu0 %v12042_v11  ;;  %v1890_v11 = vmax.f32 %v1744_v32, 0.0 }
 0x401   : > { %v12045_v13 = vpop.f32.mrb[10].mxu1  ;;  %v1895_v33 = vmax.f32 %v1769_v12, 0.0 }
 0x402   : > { %v1412_v14 = vpop.f32.mrb[11].mxu1 }
 0x403   : > { %12173 = vmatprep.mubr.f32.mxu1 %v1412_v14  ;;  %12309 = vmatprep.mubr.f32.mxu0 %v1412_v14  ;;  %v1779_v14 = vadd.f32 %v15843_v63, %v15801_v40  ;;  %v1784_v40 = vadd.f32 %v15799_v39, %v15843_v63 }
 0x404   : > { %12174 = vmatmul.mubr.f32.gmra.mrb[42].mxu1 %v12045_v13  ;;  %12310 = vmatmul.mubr.f32.gmra.mrb[50].mxu0 %v12045_v13  ;;  %v1892_v13 = vmax.f32 %v1754_v34, 0.0 }
 0x405   : > { %v12048_v15 = vpop.f32.mrb[12].mxu1  ;;  %v1897_v35 = vmax.f32 %v1779_v14, 0.0 }
 0x406   : > { %v1422_v16 = vpop.f32.mrb[13].mxu1 }
 0x407   : > { %12176 = vmatprep.mubr.f32.mxu1 %v1422_v16  ;;  %12312 = vmatprep.mubr.f32.mxu0 %v1422_v16  ;;  %v1789_v16 = vadd.f32 %v15843_v63, %v15805_v42  ;;  %v1794_v42 = vadd.f32 %v15803_v41, %v15843_v63 }
 0x408   : > { %12177 = vmatmul.mubr.f32.gmra.mrb[44].mxu1 %v12048_v15  ;;  %12313 = vmatmul.mubr.f32.gmra.mrb[52].mxu0 %v12048_v15  ;;  %v1894_v15 = vmax.f32 %v1764_v36, 0.0 }
 0x409   : > { %v12051_v17 = vpop.f32.mrb[14].mxu1  ;;  %v1899_v37 = vmax.f32 %v1789_v16, 0.0 }
 0x40a   : > { %v1432_v18 = vpop.f32.mrb[15].mxu1 }
 0x40b   : > { %12179 = vmatprep.mubr.f32.mxu1 %v1432_v18  ;;  %12315 = vmatprep.mubr.f32.mxu0 %v1432_v18  ;;  %v1799_v18 = vadd.f32 %v15843_v63, %v15809_v44  ;;  %v1804_v44 = vadd.f32 %v15807_v43, %v15843_v63 }
 0x40c   : > { %12180 = vmatmul.mubr.f32.gmra.mrb[46].mxu1 %v12051_v17  ;;  %12316 = vmatmul.mubr.f32.gmra.mrb[54].mxu0 %v12051_v17  ;;  %v1896_v17 = vmax.f32 %v1774_v38, 0.0 }
 0x40d   : > { %v12054_v19 = vpop.f32.mrb[16].mxu1  ;;  %v1901_v39 = vmax.f32 %v1799_v18, 0.0 }
 0x40e   : > { %v1442_v20 = vpop.f32.mrb[17].mxu1 }
 0x40f   : > { %12182 = vmatprep.mubr.f32.mxu1 %v1442_v20  ;;  %12318 = vmatprep.mubr.f32.mxu0 %v1442_v20  ;;  %v1809_v20 = vadd.f32 %v15843_v63, %v15813_v46  ;;  %v1814_v46 = vadd.f32 %v15811_v45, %v15843_v63 }
 0x410   : > { %12183 = vmatmul.mubr.f32.gmra.mrb[48].mxu1 %v12054_v19  ;;  %12319 = vmatmul.mubr.f32.gmra.mrb[56].mxu0 %v12054_v19  ;;  %v1898_v19 = vmax.f32 %v1784_v40, 0.0 }
 0x411   : > { %v12057_v21 = vpop.f32.mrb[18].mxu1  ;;  %v1903_v41 = vmax.f32 %v1809_v20, 0.0 }
 0x412   : > { %v1452_v22 = vpop.f32.mrb[19].mxu1 }
 0x413   : > { %12185 = vmatprep.mubr.f32.mxu1 %v1452_v22  ;;  %12321 = vmatprep.mubr.f32.mxu0 %v1452_v22  ;;  %v1819_v22 = vadd.f32 %v15843_v63, %v15817_v48  ;;  %v1824_v48 = vadd.f32 %v15815_v47, %v15843_v63 }
 0x414   : > { %12186 = vmatmul.mubr.f32.gmra.mrb[50].mxu1 %v12057_v21  ;;  %12322 = vmatmul.mubr.f32.gmra.mrb[58].mxu0 %v12057_v21  ;;  %v1900_v21 = vmax.f32 %v1794_v42, 0.0 }
 0x415   : > { %v12060_v23 = vpop.f32.mrb[20].mxu1  ;;  %v1905_v43 = vmax.f32 %v1819_v22, 0.0 }
 0x416   : > { %v1462_v24 = vpop.f32.mrb[21].mxu1 }
 0x417   : > { %12188 = vmatprep.mubr.f32.mxu1 %v1462_v24  ;;  %12324 = vmatprep.mubr.f32.mxu0 %v1462_v24  ;;  %v1829_v24 = vadd.f32 %v15843_v63, %v15821_v50  ;;  %v1834_v50 = vadd.f32 %v15819_v49, %v15843_v63 }
 0x418   : > { %12189 = vmatmul.mubr.f32.gmra.mrb[52].mxu1 %v12060_v23  ;;  %12325 = vmatmul.mubr.f32.gmra.mrb[60].mxu0 %v12060_v23  ;;  %v1902_v23 = vmax.f32 %v1804_v44, 0.0 }
 0x419   : > { %v12063_v25 = vpop.f32.mrb[22].mxu1  ;;  %v1907_v45 = vmax.f32 %v1829_v24, 0.0 }
 0x41a   : > { %v1472_v26 = vpop.f32.mrb[23].mxu1 }
 0x41b   : > { %12191 = vmatprep.mubr.f32.mxu1 %v1472_v26  ;;  %12327 = vmatprep.mubr.f32.mxu0 %v1472_v26  ;;  %v1839_v26 = vadd.f32 %v15843_v63, %v15825_v52  ;;  %v1844_v52 = vadd.f32 %v15823_v51, %v15843_v63 }
 0x41c   : > { %12192 = vmatmul.mubr.f32.gmra.mrb[54].mxu1 %v12063_v25  ;;  %12328 = vmatmul.mubr.f32.gmra.mrb[62].mxu0 %v12063_v25  ;;  %v1904_v25 = vmax.f32 %v1814_v46, 0.0 }
 0x41d   : > { %v12066_v27 = vpop.f32.mrb[24].mxu1  ;;  %v1909_v47 = vmax.f32 %v1839_v26, 0.0 }
 0x41e   : > { %v1482_v28 = vpop.f32.mrb[25].mxu1 }
 0x41f   : > { %12194 = vmatprep.mubr.f32.mxu1 %v1482_v28  ;;  %12330 = vmatprep.mubr.f32.mxu0 %v1482_v28  ;;  %v1849_v28 = vadd.f32 %v15843_v63, %v15829_v54  ;;  %v1854_v54 = vadd.f32 %v15827_v53, %v15843_v63  ;;  %v1915_v53 = vmax.f32 %v1869_v1, 0.0 }
 0x420   : > { %12195 = vmatmul.mubr.f32.gmra.mrb[56].mxu1 %v12066_v27  ;;  %12331 = vmatmul.mubr.f32.gmra.mrb[64].mxu0 %v12066_v27  ;;  %v1906_v27 = vmax.f32 %v1824_v48, 0.0 }
 0x421   : > { %v12069_v61 = vpop.f32.mrb[26].mxu1  ;;  %v1911_v49 = vmax.f32 %v1849_v28, 0.0 }
 0x422   : > { %v1492_v62 = vpop.f32.mrb[27].mxu1 }
 0x423   : > { %12197 = vmatprep.mubr.f32.mxu1 %v1492_v62  ;;  %12333 = vmatprep.mubr.f32.mxu0 %v1492_v62  ;;  %v1859_v62 = vadd.f32 %v15843_v63, %v15833_v56  ;;  %v1864_v56 = vadd.f32 %v15831_v55, %v15843_v63 }
 0x424   : > { %12198 = vmatmul.mubr.f32.gmra.mrb[58].mxu1 %v12069_v61  ;;  %12334 = vmatmul.mubr.f32.gmra.mrb[66].mxu0 %v12069_v61  ;;  %v1908_v61 = vmax.f32 %v1834_v50, 0.0 }
 0x425   : > { %v12072_v0 = vpop.f32.mrb[28].mxu1  ;;  %v1913_v51 = vmax.f32 %v1859_v62, 0.0 }
 0x426   : > { %v1502_v2 = vpop.f32.mrb[29].mxu1 }
 0x427   : > { %12200 = vmatprep.mubr.f32.mxu1 %v1502_v2  ;;  %12336 = vmatprep.mubr.f32.mxu0 %v1502_v2  ;;  %v1912_v2 = vmax.f32 %v1854_v54, 0.0 }
 0x428   : > { %12201 = vmatmul.mubr.f32.gmra.mrb[60].mxu1 %v12072_v0  ;;  %12337 = vmatmul.mubr.f32.gmra.mrb[68].mxu0 %v12072_v0  ;;  %v1910_v0 = vmax.f32 %v1844_v52, 0.0 }
 0x429   : > { %v12075_v3 = vpop.f32.mrb[30].mxu1 }
 0x42a   : > { %v1512_v7 = vpop.f32.mrb[31].mxu1 }
 0x42b   : > { %12203 = vmatprep.mubr.f32.mxu1 %v1512_v7  ;;  %12339 = vmatprep.mubr.f32.mxu0 %v1512_v7  ;;  %v15973_v7 = vld [vmem:[#allocation18] ss:$0 sm:$0xff] }
 0x42c   : > { %12204 = vmatmul.mubr.f32.gmra.mrb[62].mxu1 %v12075_v3  ;;  %12340 = vmatmul.mubr.f32.gmra.mrb[70].mxu0 %v12075_v3  ;;  %v1879_v3 = vadd.f32 %v15843_v63, %v15841_v60  ;;  %v13868_v60 = vld [vmem:[#allocation2 + $0x4] ss:$8 sps:$4 sm:$0xff]  }
 0x42d   : > { %12214 = vmatprep.mubr.msk.f32.mxu1 %vm2164_vm4, %v1887_v4  ;;  %12350 = vmatprep.mubr.msk.f32.mxu0 %vm2164_vm4, %v1887_v4  ;;  %v1914_v4 = vmax.f32 %v1864_v56, 0.0 }
 0x42e   : > { %v1917_v55 = vmax.f32 %v1879_v3, 0.0 }
 0x430   : > { %12215 = vmatmul.mubr.msk.f32.vlgmr.msra.gmra.mrb[32].mxu1 %vm2164_vm4, %v1888_v9  ;;  %12351 = vmatmul.mubr.msk.f32.vlgmr.msra.gmra.mrb[40].mxu0 %vm2164_vm4, %v1888_v9 }
 0x431   : > { %12217 = vmatprep.mubr.msk.f32.mxu1 %vm2164_vm4, %v1889_v30  ;;  %12353 = vmatprep.mubr.msk.f32.mxu0 %vm2164_vm4, %v1889_v30 }
 0x434   : > { %12218 = vmatmul.mubr.msk.f32.gmra.mrb[34].mxu1 %vm2164_vm4, %v1890_v11  ;;  %12354 = vmatmul.mubr.msk.f32.gmra.mrb[42].mxu0 %vm2164_vm4, %v1890_v11 }
 0x435   : > { %12220 = vmatprep.mubr.msk.f32.mxu1 %vm2164_vm4, %v1891_v29  ;;  %12356 = vmatprep.mubr.msk.f32.mxu0 %vm2164_vm4, %v1891_v29 }
 0x438   : > { %12221 = vmatmul.mubr.msk.f32.gmra.mrb[36].mxu1 %vm2164_vm4, %v1892_v13  ;;  %12357 = vmatmul.mubr.msk.f32.gmra.mrb[44].mxu0 %vm2164_vm4, %v1892_v13 }
 0x439   : > { %12223 = vmatprep.mubr.msk.f32.mxu1 %vm2164_vm4, %v1893_v31  ;;  %12359 = vmatprep.mubr.msk.f32.mxu0 %vm2164_vm4, %v1893_v31 }
 0x43c   : > { %12224 = vmatmul.mubr.msk.f32.gmra.mrb[38].mxu1 %vm2164_vm4, %v1894_v15  ;;  %12360 = vmatmul.mubr.msk.f32.gmra.mrb[46].mxu0 %vm2164_vm4, %v1894_v15 }
 0x43d   : > { %12226 = vmatprep.mubr.msk.f32.mxu1 %vm2164_vm4, %v1895_v33  ;;  %12362 = vmatprep.mubr.msk.f32.mxu0 %vm2164_vm4, %v1895_v33 }
 0x440   : > { %12227 = vmatmul.mubr.msk.f32.gmra.mrb[40].mxu1 %vm2164_vm4, %v1896_v17  ;;  %12363 = vmatmul.mubr.msk.f32.gmra.mrb[48].mxu0 %vm2164_vm4, %v1896_v17 }
 0x441   : > { %12229 = vmatprep.mubr.msk.f32.mxu1 %vm2164_vm4, %v1897_v35  ;;  %12365 = vmatprep.mubr.msk.f32.mxu0 %vm2164_vm4, %v1897_v35 }
 0x444   : > { %12230 = vmatmul.mubr.msk.f32.gmra.mrb[42].mxu1 %vm2164_vm4, %v1898_v19  ;;  %12366 = vmatmul.mubr.msk.f32.gmra.mrb[50].mxu0 %vm2164_vm4, %v1898_v19 }
 0x445   : > { %12232 = vmatprep.mubr.msk.f32.mxu1 %vm2164_vm4, %v1899_v37  ;;  %12368 = vmatprep.mubr.msk.f32.mxu0 %vm2164_vm4, %v1899_v37 }
 0x448   : > { %12233 = vmatmul.mubr.msk.f32.gmra.mrb[44].mxu1 %vm2164_vm4, %v1900_v21  ;;  %12369 = vmatmul.mubr.msk.f32.gmra.mrb[52].mxu0 %vm2164_vm4, %v1900_v21 }
 0x449   : > { %12235 = vmatprep.mubr.msk.f32.mxu1 %vm2164_vm4, %v1901_v39  ;;  %12371 = vmatprep.mubr.msk.f32.mxu0 %vm2164_vm4, %v1901_v39 }
 0x44c   : > { %12236 = vmatmul.mubr.msk.f32.gmra.mrb[46].mxu1 %vm2164_vm4, %v1902_v23  ;;  %12372 = vmatmul.mubr.msk.f32.gmra.mrb[54].mxu0 %vm2164_vm4, %v1902_v23 }
 0x44d   : > { %12238 = vmatprep.mubr.msk.f32.mxu1 %vm2164_vm4, %v1903_v41  ;;  %12374 = vmatprep.mubr.msk.f32.mxu0 %vm2164_vm4, %v1903_v41 }
 0x450   : > { %12239 = vmatmul.mubr.msk.f32.gmra.mrb[48].mxu1 %vm2164_vm4, %v1904_v25  ;;  %12375 = vmatmul.mubr.msk.f32.gmra.mrb[56].mxu0 %vm2164_vm4, %v1904_v25 }
 0x451   : > { %12377 = vmatprep.mubr.msk.f32.mxu0 %vm2164_vm4, %v1905_v43  ;;  %12241 = vmatprep.mubr.msk.f32.mxu1 %vm2164_vm4, %v1905_v43 }
 0x454   : > { %12378 = vmatmul.mubr.msk.f32.gmra.mrb[58].mxu0 %vm2164_vm4, %v1906_v27  ;;  %12242 = vmatmul.mubr.msk.f32.gmra.mrb[50].mxu1 %vm2164_vm4, %v1906_v27 }
 0x455   : > { %12380 = vmatprep.mubr.msk.f32.mxu0 %vm2164_vm4, %v1907_v45  ;;  %12244 = vmatprep.mubr.msk.f32.mxu1 %vm2164_vm4, %v1907_v45 }
 0x458   : > { %12381 = vmatmul.mubr.msk.f32.gmra.mrb[60].mxu0 %vm2164_vm4, %v1908_v61  ;;  %12245 = vmatmul.mubr.msk.f32.gmra.mrb[52].mxu1 %vm2164_vm4, %v1908_v61 }
 0x459   : > { %12383 = vmatprep.mubr.msk.f32.mxu0 %vm2164_vm4, %v1909_v47  ;;  %12247 = vmatprep.mubr.msk.f32.mxu1 %vm2164_vm4, %v1909_v47 }
 0x45c   : > { %12384 = vmatmul.mubr.msk.f32.gmra.mrb[62].mxu0 %vm2164_vm4, %v1910_v0  ;;  %12248 = vmatmul.mubr.msk.f32.gmra.mrb[54].mxu1 %vm2164_vm4, %v1910_v0 }
 0x45d   : > { %12386 = vmatprep.mubr.msk.f32.mxu0 %vm2164_vm4, %v1911_v49  ;;  %12250 = vmatprep.mubr.msk.f32.mxu1 %vm2164_vm4, %v1911_v49 }
 0x460   : > { %12387 = vmatmul.mubr.msk.f32.gmra.mrb[64].mxu0 %vm2164_vm4, %v1912_v2  ;;  %12251 = vmatmul.mubr.msk.f32.gmra.mrb[56].mxu1 %vm2164_vm4, %v1912_v2 }
 0x461   : > { %12389 = vmatprep.mubr.msk.f32.mxu0 %vm2164_vm4, %v1913_v51  ;;  %12253 = vmatprep.mubr.msk.f32.mxu1 %vm2164_vm4, %v1913_v51 }
 0x464   : > { %12390 = vmatmul.mubr.msk.f32.gmra.mrb[66].mxu0 %vm2164_vm4, %v1914_v4  ;;  %12254 = vmatmul.mubr.msk.f32.gmra.mrb[58].mxu1 %vm2164_vm4, %v1914_v4 }
 0x465   : > { %12392 = vmatprep.mubr.msk.f32.mxu0 %vm2164_vm4, %v1915_v53  ;;  %12256 = vmatprep.mubr.msk.f32.mxu1 %vm2164_vm4, %v1915_v53 }
 0x468   : > { %12393 = vmatmul.mubr.msk.f32.gmra.mrb[68].mxu0 %vm2164_vm4, %v1916_v5  ;;  %12257 = vmatmul.mubr.msk.f32.gmra.mrb[60].mxu1 %vm2164_vm4, %v1916_v5 }
 0x469   : > { %12395 = vmatprep.mubr.msk.f32.mxu0 %vm2164_vm4, %v1917_v55  ;;  %12259 = vmatprep.mubr.msk.f32.mxu1 %vm2164_vm4, %v1917_v55 }
 0x46c   : > { %12396 = vmatmul.mubr.msk.f32.gmra.mrb[70].mxu0 %vm2164_vm4, %v1918_v57  ;;  %12260 = vmatmul.mubr.msk.f32.gmra.mrb[62].mxu1 %vm2164_vm4, %v1918_v57 }
 0x46d   : > { %3306 = vmatprep.mubr.bf16.mxu0 %v13868_v60 }
 0x503   : > { %v12352_v30 = vpop.f32.mrb[40].mxu0 }
 0x504   : > { %v3003_v59 = vadd.f32 %v12352_v30, %v15973_v7  ;;  %v2836_v63 = vpop.f32.mrb[41].mxu0 }
 0x505   : > { %v3002_v8 = vadd.f32 %v15973_v7, %v2836_v63 }
 0x506   : > { %v3035_v9 = vmax.f32 %v3003_v59, 0.0 }
 0x507   : > { %v3034_v32 = vmax.f32 %v3002_v8, 0.0  ;;  %v12355_v29 = vpop.f32.mrb[42].mxu0 }
 0x508   : > { %v3005_v10 = vadd.f32 %v12355_v29, %v15973_v7  ;;  %v2846_v11 = vpop.f32.mrb[43].mxu0 }
 0x509   : > { %v15978_v34 = vpack.c.bf16 %v3035_v9, %v3034_v32  ;;  %v3004_v31 = vadd.f32 %v15973_v7, %v2846_v11 }
 0x50a   : > { %v3037_v12 = vmax.f32 %v3005_v10, 0.0 }
 0x50b   : > { %17600 = vst [vmem:[#allocation44_spill] sm:$0xff] %v15978_v34  ;;  %v3036_v13 = vmax.f32 %v3004_v31, 0.0  ;;  %v12358_v36 = vpop.f32.mrb[44].mxu0 }
 0x50c   : > { %v3007_v33 = vadd.f32 %v12358_v36, %v15973_v7  ;;  %v2856_v14 = vpop.f32.mrb[45].mxu0 }
 0x50d   : > { %v15982_v15 = vpack.c.bf16 %v3037_v12, %v3036_v13  ;;  %v3006_v38 = vadd.f32 %v15973_v7, %v2856_v14 }
 0x50e   : > { %v3039_v35 = vmax.f32 %v3007_v33, 0.0 }
 0x50f   : > { %17601 = vst [vmem:[#allocation45_spill] sm:$0xff] %v15982_v15  ;;  %v3038_v16 = vmax.f32 %v3006_v38, 0.0  ;;  %v12361_v17 = vpop.f32.mrb[46].mxu0 }
 0x510   : > { %v3009_v40 = vadd.f32 %v12361_v17, %v15973_v7  ;;  %v2866_v37 = vpop.f32.mrb[47].mxu0 }
 0x511   : > { %v15986_v18 = vpack.c.bf16 %v3039_v35, %v3038_v16  ;;  %v3008_v19 = vadd.f32 %v15973_v7, %v2866_v37 }
 0x512   : > { %v3041_v42 = vmax.f32 %v3009_v40, 0.0 }
 0x513   : > { %17602 = vst [vmem:[#allocation46_spill] sm:$0xff] %v15986_v18  ;;  %v3040_v39 = vmax.f32 %v3008_v19, 0.0  ;;  %v12364_v20 = vpop.f32.mrb[48].mxu0 }
 0x514   : > { %v3011_v21 = vadd.f32 %v12364_v20, %v15973_v7  ;;  %v2876_v44 = vpop.f32.mrb[49].mxu0 }
 0x515   : > { %v15990_v41 = vpack.c.bf16 %v3041_v42, %v3040_v39  ;;  %v3010_v22 = vadd.f32 %v15973_v7, %v2876_v44 }
 0x516   : > { %v3043_v23 = vmax.f32 %v3011_v21, 0.0 }
 0x517   : > { %17603 = vst [vmem:[#allocation47_spill] sm:$0xff] %v15990_v41  ;;  %v3042_v46 = vmax.f32 %v3010_v22, 0.0  ;;  %v12367_v43 = vpop.f32.mrb[50].mxu0 }
 0x518   : > { %v3013_v24 = vadd.f32 %v12367_v43, %v15973_v7  ;;  %v2886_v25 = vpop.f32.mrb[51].mxu0 }
 0x519   : > { %v15994_v48 = vpack.c.bf16 %v3043_v23, %v3042_v46  ;;  %v3012_v45 = vadd.f32 %v15973_v7, %v2886_v25 }
 0x51a   : > { %v3045_v26 = vmax.f32 %v3013_v24, 0.0 }
 0x51b   : > { %17604 = vst [vmem:[#allocation48_spill] sm:$0xff] %v15994_v48  ;;  %v3044_v27 = vmax.f32 %v3012_v45, 0.0  ;;  %v12370_v50 = vpop.f32.mrb[52].mxu0 }
 0x51c   : > { %v3015_v47 = vadd.f32 %v12370_v50, %v15973_v7  ;;  %v2896_v28 = vpop.f32.mrb[53].mxu0 }
 0x51d   : > { %v15998_v61 = vpack.c.bf16 %v3045_v26, %v3044_v27  ;;  %v3014_v52 = vadd.f32 %v15973_v7, %v2896_v28 }
 0x51e   : > { %v3047_v49 = vmax.f32 %v3015_v47, 0.0 }
 0x51f   : > { %17605 = vst [vmem:[#allocation49_spill] sm:$0xff] %v15998_v61  ;;  %v3046_v62 = vmax.f32 %v3014_v52, 0.0  ;;  %v12373_v0 = vpop.f32.mrb[54].mxu0 }
 0x520   : > { %v3017_v54 = vadd.f32 %v12373_v0, %v15973_v7  ;;  %v2906_v51 = vpop.f32.mrb[55].mxu0 }
 0x521   : > { %v16002_v1 = vpack.c.bf16 %v3047_v49, %v3046_v62  ;;  %v3016_v2 = vadd.f32 %v15973_v7, %v2906_v51 }
 0x522   : > { %v3049_v56 = vmax.f32 %v3017_v54, 0.0 }
 0x523   : > { %17606 = vst [vmem:[#allocation50_spill] sm:$0xff] %v16002_v1  ;;  %v3048_v53 = vmax.f32 %v3016_v2, 0.0  ;;  %v12376_v3 = vpop.f32.mrb[56].mxu0 }
 0x524   : > { %v3019_v4 = vadd.f32 %v12376_v3, %v15973_v7  ;;  %v2916_v58 = vpop.f32.mrb[57].mxu0 }
 0x525   : > { %v16006_v55 = vpack.c.bf16 %v3049_v56, %v3048_v53  ;;  %v3018_v5 = vadd.f32 %v15973_v7, %v2916_v58  ;;  %v13871_v58 = vld [vmem:[#allocation2 + $0x10] ss:$8 sps:$4 sm:$0xff]  }
 0x526   : > { %v3051_v6 = vmax.f32 %v3019_v4, 0.0  ;;  %v13866_v4 = vld [vmem:[#allocation2] ss:$8 sps:$4 sm:$0xff]  }
 0x527   : > { %17607 = vst [vmem:[#allocation51_spill] sm:$0xff] %v16006_v55  ;;  %v3050_v57 = vmax.f32 %v3018_v5, 0.0  ;;  %v12379_v60 = vpop.f32.mrb[58].mxu0  ;;  %v13872_v5 = vld [vmem:[#allocation2 + $0x24] ss:$8 sps:$4 sm:$0xff]  }
 0x528   : > { %v3021_v30 = vadd.f32 %v12379_v60, %v15973_v7  ;;  %v2926_v59 = vpop.f32.mrb[59].mxu0  ;;  %v13877_v60 = vld [vmem:[#allocation2 + $0x30] ss:$8 sps:$4 sm:$0xff]  }
 0x529   : > { %v16010_v63 = vpack.c.bf16 %v3051_v6, %v3050_v57  ;;  %v3020_v8 = vadd.f32 %v15973_v7, %v2926_v59  ;;  %v13874_v6 = vld [vmem:[#allocation2 + $0x20] ss:$8 sps:$4 sm:$0xff]   ;;  %v13875_v57 = vld [vmem:[#allocation2 + $0x34] ss:$8 sps:$4 sm:$0xff]  }
 0x52a   : > { %v3053_v9 = vmax.f32 %v3021_v30, 0.0  ;;  %v13878_v30 = vld [vmem:[#allocation2 + $0x44] ss:$8 sps:$4 sm:$0xff]   ;;  %v13880_v59 = vld [vmem:[#allocation2 + $0x40] ss:$8 sps:$4 sm:$0xff]  }
 0x52b   : > { %17608 = vst [vmem:[#allocation52_spill] sm:$0xff] %v16010_v63  ;;  %v3052_v32 = vmax.f32 %v3020_v8, 0.0  ;;  %v12382_v29 = vpop.f32.mrb[60].mxu0  ;;  %10655 = vmatprep.subr.bf16.mxu0 %v16010_v63  ;;  %13228 = vmatprep.subr.bf16.mxu1 %v16010_v63  ;;  %v13881_v8 = vld [vmem:[#allocation2 + $0x54] ss:$8 sps:$4 sm:$0xff]  }
 0x52c   : > { %v3023_v10 = vadd.f32 %v12382_v29, %v15973_v7  ;;  %v2936_v11 = vpop.f32.mrb[61].mxu0  ;;  %10656 = vmatpush3.bf16.msra.mxu0 %v15978_v34  ;;  %13236 = vmatpush3.bf16.msra.mxu1 %v15978_v34  ;;  %v13886_v29 = vld [vmem:[#allocation2 + $0x60] ss:$8 sps:$4 sm:$0xff]  }
 0x52d   : > { %v16018_v31 = vpack.c.bf16 %v3053_v9, %v3052_v32  ;;  %v3022_v12 = vadd.f32 %v15973_v7, %v2936_v11  ;;  %v13883_v9 = vld [vmem:[#allocation2 + $0x50] ss:$8 sps:$4 sm:$0xff]   ;;  %v13884_v32 = vld [vmem:[#allocation2 + $0x64] ss:$8 sps:$4 sm:$0xff]  }
 0x52e   : > { %v3055_v13 = vmax.f32 %v3023_v10, 0.0  ;;  %v13887_v10 = vld [vmem:[#allocation2 + $0x74] ss:$8 sps:$4 sm:$0xff]   ;;  %v13889_v11 = vld [vmem:[#allocation2 + $0x70] ss:$8 sps:$4 sm:$0xff]  }
 0x52f   : > { %17609 = vst [vmem:[#allocation53_spill] sm:$0xff] %v16018_v31  ;;  %v3054_v36 = vmax.f32 %v3022_v12, 0.0  ;;  %v12385_v33 = vpop.f32.mrb[62].mxu0  ;;  %10657 = vmatprep.subr.bf16.mxu0 %v16018_v31  ;;  %13229 = vmatprep.subr.bf16.mxu1 %v16018_v31  ;;  %v13890_v12 = vld [vmem:[#allocation2 + $0x84] ss:$8 sps:$4 sm:$0xff]  }
 0x530   : > { %v3025_v14 = vadd.f32 %v12385_v33, %v15973_v7  ;;  %v2946_v38 = vpop.f32.mrb[63].mxu0  ;;  %10658 = vmatpush3.bf16.msra.mxu0 %v15982_v15  ;;  %13237 = vmatpush3.bf16.msra.mxu1 %v15982_v15  ;;  %v13893_v33 = vld [vmem:[#allocation2 + $0x100] ss:$8 sps:$4 sm:$0xff]  }
 0x531   : > { %v16026_v35 = vpack.c.bf16 %v3055_v13, %v3054_v36  ;;  %v3024_v16 = vadd.f32 %v15973_v7, %v2946_v38  ;;  %v13892_v13 = vld [vmem:[#allocation2 + $0x80] ss:$8 sps:$4 sm:$0xff]   ;;  %v13895_v36 = vld [vmem:[#allocation2 + $0x104] ss:$8 sps:$4 sm:$0xff]   ;;  %v13898_v38 = vld [vmem:[#allocation2 + $0x110] ss:$8 sps:$4 sm:$0xff]  }
 0x532   : > { %v3057_v17 = vmax.f32 %v3025_v14, 0.0  ;;  %v13896_v14 = vld [vmem:[#allocation2 + $0x114] ss:$8 sps:$4 sm:$0xff]  }
 0x533   : > { %17610 = vst [vmem:[#allocation54_spill] sm:$0xff] %v16026_v35  ;;  %v3056_v40 = vmax.f32 %v3024_v16, 0.0  ;;  %v12388_v37 = vpop.f32.mrb[64].mxu0  ;;  %10659 = vmatprep.subr.bf16.mxu0 %v16026_v35  ;;  %13230 = vmatprep.subr.bf16.mxu1 %v16026_v35  ;;  %v13899_v16 = vld [vmem:[#allocation2 + $0x124] ss:$8 sps:$4 sm:$0xff]  }
 0x534   : > { %v3027_v19 = vadd.f32 %v12388_v37, %v15973_v7  ;;  %v2956_v42 = vpop.f32.mrb[65].mxu0  ;;  %10660 = vmatpush3.bf16.msra.mxu0 %v15986_v18  ;;  %13238 = vmatpush3.bf16.msra.mxu1 %v15986_v18  ;;  %v13901_v37 = vld [vmem:[#allocation2 + $0x120] ss:$8 sps:$4 sm:$0xff]  }
 0x535   : > { %v16034_v39 = vpack.c.bf16 %v3057_v17, %v3056_v40  ;;  %v3026_v20 = vadd.f32 %v15973_v7, %v2956_v42  ;;  %v13944_v17 = vld [vmem:[#allocation2 + $0x90] ss:$8 sps:$4 sm:$0xff]   ;;  %v13946_v40 = vld [vmem:[#allocation2 + $0x94] ss:$8 sps:$4 sm:$0xff]   ;;  %v13950_v42 = vld [vmem:[#allocation2 + $0xa4] ss:$8 sps:$4 sm:$0xff]  }
 0x536   : > { %v3059_v21 = vmax.f32 %v3027_v19, 0.0  ;;  %3378 = vmatprep.mubr.bf16.mxu1 %v13946_v40  ;;  %v13902_v19 = vld [vmem:[#allocation2 + $0x134] ss:$8 sps:$4 sm:$0xff]   ;;  %v13943_v40 = vld [vmem:[#allocation2 + $0x204] ss:$8 sps:$4 sm:$0xff]  }
 0x537   : > { %17611 = vst [vmem:[#allocation55_spill] sm:$0xff] %v16034_v39  ;;  %v3058_v44 = vmax.f32 %v3026_v20, 0.0  ;;  %v12391_v22 = vpop.f32.mrb[66].mxu0  ;;  %10661 = vmatprep.subr.bf16.mxu0 %v16034_v39  ;;  %13231 = vmatprep.subr.bf16.mxu1 %v16034_v39  ;;  %v13954_v20 = vld [vmem:[#allocation2 + $0xa0] ss:$8 sps:$4 sm:$0xff]  }
 0x538   : > { %v3029_v23 = vadd.f32 %v12391_v22, %v15973_v7  ;;  %v2966_v46 = vpop.f32.mrb[67].mxu0  ;;  %10662 = vmatpush3.bf16.msra.mxu0 %v15990_v41  ;;  %13239 = vmatpush3.bf16.msra.mxu1 %v15990_v41  ;;  %v13956_v22 = vld [vmem:[#allocation2 + $0xb4] ss:$8 sps:$4 sm:$0xff]  }
 0x539   : > { %v16042_v43 = vpack.c.bf16 %v3059_v21, %v3058_v44  ;;  %v3028_v24 = vadd.f32 %v15973_v7, %v2966_v46  ;;  %v13904_v21 = vld [vmem:[#allocation2 + $0x130] ss:$8 sps:$4 sm:$0xff]   ;;  %v13905_v44 = vld [vmem:[#allocation2 + $0x144] ss:$8 sps:$4 sm:$0xff]   ;;  %v13907_v46 = vld [vmem:[#allocation2 + $0x140] ss:$8 sps:$4 sm:$0xff]  }
 0x53a   : > { %v3061_v25 = vmax.f32 %v3029_v23, 0.0  ;;  %v13960_v23 = vld [vmem:[#allocation2 + $0xb0] ss:$8 sps:$4 sm:$0xff]  }
 0x53b   : > { %17612 = vst [vmem:[#allocation56_spill] sm:$0xff] %v16042_v43  ;;  %v3060_v45 = vmax.f32 %v3028_v24, 0.0  ;;  %v12394_v26 = vpop.f32.mrb[68].mxu0  ;;  %10663 = vmatprep.subr.bf16.mxu0 %v16042_v43  ;;  %13232 = vmatprep.subr.bf16.mxu1 %v16042_v43  ;;  %v13908_v24 = vld [vmem:[#allocation2 + $0x154] ss:$8 sps:$4 sm:$0xff]  }
 0x53c   : > { %v3031_v27 = vadd.f32 %v12394_v26, %v15973_v7  ;;  %v2976_v50 = vpop.f32.mrb[69].mxu0  ;;  %10664 = vmatpush3.bf16.msra.mxu0 %v15994_v48  ;;  %13240 = vmatpush3.bf16.msra.mxu1 %v15994_v48  ;;  %v13968_v26 = vld [vmem:[#allocation2 + $0xd4] ss:$8 sps:$4 sm:$0xff]  }
 0x53d   : > { %v16050_v47 = vpack.c.bf16 %v3061_v25, %v3060_v45  ;;  %v3030_v28 = vadd.f32 %v15973_v7, %v2976_v50  ;;  %v13962_v25 = vld [vmem:[#allocation2 + $0xc4] ss:$8 sps:$4 sm:$0xff]   ;;  %v13966_v45 = vld [vmem:[#allocation2 + $0xc0] ss:$8 sps:$4 sm:$0xff]  }
 0x53e   : > { %v3063_v52 = vmax.f32 %v3031_v27, 0.0  ;;  %v13910_v27 = vld [vmem:[#allocation2 + $0x150] ss:$8 sps:$4 sm:$0xff]   ;;  %v13911_v50 = vld [vmem:[#allocation2 + $0x164] ss:$8 sps:$4 sm:$0xff]  }
 0x53f   : > { %17613 = vst [vmem:[#allocation57_spill] sm:$0xff] %v16050_v47  ;;  %v3062_v49 = vmax.f32 %v3030_v28, 0.0  ;;  %v12397_v62 = vpop.f32.mrb[70].mxu0  ;;  %10665 = vmatprep.subr.bf16.mxu0 %v16050_v47  ;;  %13233 = vmatprep.subr.bf16.mxu1 %v16050_v47  ;;  %v13972_v28 = vld [vmem:[#allocation2 + $0xd0] ss:$8 sps:$4 sm:$0xff]  }
 0x540   : > { %v3033_v0 = vadd.f32 %v12397_v62, %v15973_v7  ;;  %v2986_v54 = vpop.f32.mrb[71].mxu0  ;;  %10666 = vmatpush3.bf16.msra.mxu0 %v15998_v61  ;;  %13241 = vmatpush3.bf16.msra.mxu1 %v15998_v61  ;;  %v13914_v62 = vld [vmem:[#allocation2 + $0x174] ss:$8 sps:$4 sm:$0xff]  }
 0x541   : > { %v16058_v51 = vpack.c.bf16 %v3063_v52, %v3062_v49  ;;  %v3032_v2 = vadd.f32 %v15973_v7, %v2986_v54  ;;  %v13869_v7 = vld [vmem:[#allocation2 + $0x14] ss:$8 sps:$4 sm:$0xff]   ;;  %v13974_v52 = vld [vmem:[#allocation2 + $0xe4] ss:$8 sps:$4 sm:$0xff]   ;;  %v13913_v49 = vld [vmem:[#allocation2 + $0x160] ss:$8 sps:$4 sm:$0xff]  }
 0x542   : > { %v3065_v56 = vmax.f32 %v3033_v0, 0.0  ;;  %v13978_v0 = vld [vmem:[#allocation2 + $0xe0] ss:$8 sps:$4 sm:$0xff]   ;;  %v13980_v54 = vld [vmem:[#allocation2 + $0xf4] ss:$8 sps:$4 sm:$0xff]  }
 0x543   : > { %17614 = vst [vmem:[#allocation58_spill] sm:$0xff] %v16058_v51  ;;  %v3064_v53 = vmax.f32 %v3032_v2, 0.0  ;;  %10667 = vmatprep.subr.bf16.mxu0 %v16058_v51  ;;  %13234 = vmatprep.subr.bf16.mxu1 %v16058_v51  ;;  %v13916_v2 = vld [vmem:[#allocation2 + $0x170] ss:$8 sps:$4 sm:$0xff]  }
 0x544   : > { %10668 = vmatpush3.bf16.msra.mxu0 %v16002_v1  ;;  %13242 = vmatpush3.bf16.msra.mxu1 %v16002_v1 }
 0x545   : > { %v16065_v3 = vpack.c.bf16 %v3065_v56, %v3064_v53  ;;  %v13917_v56 = vld [vmem:[#allocation2 + $0x184] ss:$8 sps:$4 sm:$0xff]   ;;  %v13984_v53 = vld [vmem:[#allocation2 + $0xf0] ss:$8 sps:$4 sm:$0xff]  }
 0x547   : > { %17615 = vst [vmem:[#allocation59_spill] sm:$0xff] %v16065_v3  ;;  %10669 = vmatprep.subr.bf16.mxu0 %v16065_v3  ;;  %13235 = vmatprep.subr.bf16.mxu1 %v16065_v3 }
 0x548   : > { %10670 = vmatpush3.bf16.msra.mxu0 %v16006_v55  ;;  %13243 = vmatpush3.bf16.msra.mxu1 %v16006_v55 }
 0x549   : > { %10767 = vmatprep.subr.bf16.mxu0 %v16010_v63 }
 0x54b   : > { %3307 = vmatmul.mubr.bf16.vlgmr.msra.gmra.mrb[72].mxu0 %v13866_v4  ;;  %3379 = vmatmul.mubr.bf16.vlgmr.msra.gmra.mrb[64].mxu1 %v13944_v17  ;;  %v13919_v4 = vld [vmem:[#allocation2 + $0x180] ss:$8 sps:$4 sm:$0xff]   ;;  %v13940_v17 = vld [vmem:[#allocation2 + $0x1f0] ss:$8 sps:$4 sm:$0xff]  }
 0x54c   : > { %10768 = vmatpush3.bf16.msra.mxu0 %v15978_v34  ;;  %3314 = vmatprep.mubr.bf16.mxu0 %v13869_v7  ;;  %v13920_v7 = vld [vmem:[#allocation2 + $0x194] ss:$8 sps:$4 sm:$0xff]  }
 0x54d   : > { %10769 = vmatprep.subr.bf16.mxu0 %v16018_v31  ;;  %3386 = vmatprep.mubr.bf16.mxu1 %v13950_v42  ;;  %v13949_v42 = vld [vmem:[#allocation2 + $0x210] ss:$8 sps:$4 sm:$0xff]  }
 0x550   : > { %10770 = vmatpush3.bf16.msra.mxu0 %v15982_v15 }
 0x551   : > { %10771 = vmatprep.subr.bf16.mxu0 %v16026_v35 }
 0x553   : > { %3315 = vmatmul.mubr.bf16.gmra.mrb[76].mxu0 %v13871_v58  ;;  %3387 = vmatmul.mubr.bf16.gmra.mrb[68].mxu1 %v13954_v20  ;;  %v14001_v58 = vld [vmem:[#allocation19 + $0x40] sm:$0xff]   ;;  %v13952_v20 = vld [vmem:[#allocation2 + $0x224] ss:$8 sps:$4 sm:$0xff]  }
 0x554   : > { %10772 = vmatpush3.bf16.msra.mxu0 %v15986_v18  ;;  %3322 = vmatprep.mubr.bf16.mxu0 %v13872_v5  ;;  %v13922_v5 = vld [vmem:[#allocation2 + $0x190] ss:$8 sps:$4 sm:$0xff]  }
 0x555   : > { %10773 = vmatprep.subr.bf16.mxu0 %v16034_v39  ;;  %3394 = vmatprep.mubr.bf16.mxu1 %v13956_v22 }
 0x556   : > { %12398 = vmatprep.subr.bf16.mxu1 %v14001_v58 }
 0x557   : > { %12399 = vmatpush3.bf16.msra.mxu1 %v14001_v58 }
 0x558   : > { %10774 = vmatpush3.bf16.msra.mxu0 %v15990_v41 }
 0x559   : > { %10775 = vmatprep.subr.bf16.mxu0 %v16042_v43 }
 0x55b   : > { %3323 = vmatmul.mubr.bf16.gmra.mrb[80].mxu0 %v13874_v6  ;;  %3395 = vmatmul.mubr.bf16.gmra.mrb[72].mxu1 %v13960_v23  ;;  %v13923_v6 = vld [vmem:[#allocation2 + $0x1a4] ss:$8 sps:$4 sm:$0xff]   ;;  %v13958_v23 = vld [vmem:[#allocation2 + $0x234] ss:$8 sps:$4 sm:$0xff]  }
 0x55c   : > { %10776 = vmatpush3.bf16.msra.mxu0 %v15994_v48  ;;  %3330 = vmatprep.mubr.bf16.mxu0 %v13875_v57  ;;  %v14002_v57 = vld [vmem:[#allocation19 + $0x48] sm:$0xff]  }
 0x55d   : > { %10777 = vmatprep.subr.bf16.mxu0 %v16050_v47  ;;  %3402 = vmatprep.mubr.bf16.mxu1 %v13962_v25 }
 0x55e   : > { %12400 = vmatprep.subr.bf16.mxu1 %v14002_v57 }
 0x55f   : > { %12401 = vmatpush3.bf16.msra.mxu1 %v14002_v57 }
 0x560   : > { %10778 = vmatpush3.bf16.msra.mxu0 %v15998_v61 }
 0x561   : > { %10779 = vmatprep.subr.bf16.mxu0 %v16058_v51 }
 0x563   : > { %3331 = vmatmul.mubr.bf16.gmra.mrb[84].mxu0 %v13877_v60  ;;  %3403 = vmatmul.mubr.bf16.gmra.mrb[76].mxu1 %v13966_v45  ;;  %v14006_v60 = vld [vmem:[#allocation19 + $0x50] sm:$0xff]  }
 0x564   : > { %10780 = vmatpush3.bf16.msra.mxu0 %v16002_v1  ;;  %3338 = vmatprep.mubr.bf16.mxu0 %v13878_v30  ;;  %v13925_v30 = vld [vmem:[#allocation2 + $0x1a0] ss:$8 sps:$4 sm:$0xff]  }
 0x565   : > { %10781 = vmatprep.subr.bf16.mxu0 %v16065_v3  ;;  %3410 = vmatprep.mubr.bf16.mxu1 %v13968_v26 }
 0x566   : > { %12402 = vmatprep.subr.bf16.mxu1 %v14006_v60 }
 0x567   : > { %12403 = vmatpush3.bf16.msra.mxu1 %v14006_v60 }
 0x568   : > { %10782 = vmatpush3.bf16.msra.mxu0 %v16006_v55 }
 0x569   : > { %10927 = vmatprep.subr.bf16.mxu0 %v16010_v63 }
 0x56b   : > { %3339 = vmatmul.mubr.bf16.gmra.mrb[88].mxu0 %v13880_v59  ;;  %3411 = vmatmul.mubr.bf16.gmra.mrb[80].mxu1 %v13972_v28  ;;  %v13926_v59 = vld [vmem:[#allocation2 + $0x1b4] ss:$8 sps:$4 sm:$0xff]  }
 0x56c   : > { %3346 = vmatprep.mubr.bf16.mxu0 %v13881_v8  ;;  %3418 = vmatprep.mubr.bf16.mxu1 %v13974_v52  ;;  %v14007_v8 = vld [vmem:[#allocation19 + $0x58] sm:$0xff]  }
 0x56d   : > { %12404 = vmatprep.subr.bf16.mxu1 %v14007_v8  ;;  %v13964_v52 = vld [vmem:[#allocation2 + $0x244] ss:$8 sps:$4 sm:$0xff]  }
 0x56e   : > { %12405 = vmatpush3.bf16.msra.mxu1 %v14007_v8 }
 0x573   : > { %3347 = vmatmul.mubr.bf16.gmra.mrb[92].mxu0 %v13883_v9  ;;  %3419 = vmatmul.mubr.bf16.gmra.mrb[84].mxu1 %v13978_v0  ;;  %v14011_v9 = vld [vmem:[#allocation19 + $0x60] sm:$0xff]  }
 0x574   : > { %3354 = vmatprep.mubr.bf16.mxu0 %v13884_v32  ;;  %3426 = vmatprep.mubr.bf16.mxu1 %v13980_v54  ;;  %v13928_v32 = vld [vmem:[#allocation2 + $0x1b0] ss:$8 sps:$4 sm:$0xff]  }
 0x575   : > { %12406 = vmatprep.subr.bf16.mxu1 %v14011_v9 }
 0x576   : > { %12407 = vmatpush3.bf16.msra.mxu1 %v14011_v9  ;;  %v13976_v9 = vld [vmem:[#allocation2 + $0x264] ss:$8 sps:$4 sm:$0xff]  }
 0x57b   : > { %3355 = vmatmul.mubr.bf16.gmra.mrb[96].mxu0 %v13886_v29  ;;  %3427 = vmatmul.mubr.bf16.gmra.mrb[88].mxu1 %v13984_v53  ;;  %v13929_v29 = vld [vmem:[#allocation2 + $0x1c4] ss:$8 sps:$4 sm:$0xff]   ;;  %v13967_v53 = vld [vmem:[#allocation2 + $0x240] ss:$8 sps:$4 sm:$0xff]  }
 0x57c   : > { %3362 = vmatprep.mubr.bf16.mxu0 %v13887_v10  ;;  %v14012_v10 = vld [vmem:[#allocation19 + $0x68] sm:$0xff]  }
 0x57d   : > { %12408 = vmatprep.subr.bf16.mxu1 %v14012_v10 }
 0x57e   : > { %12409 = vmatpush3.bf16.msra.mxu1 %v14012_v10 }
 0x583   : > { %3363 = vmatmul.mubr.bf16.gmra.mrb[100].mxu0 %v13889_v11  ;;  %v14016_v11 = vld [vmem:[#allocation19 + $0x70] sm:$0xff]  }
 0x584   : > { %3370 = vmatprep.mubr.bf16.mxu0 %v13890_v12  ;;  %v13931_v12 = vld [vmem:[#allocation2 + $0x1c0] ss:$8 sps:$4 sm:$0xff]   ;;  %12410 = vmatprep.subr.bf16.mxu1 %v14016_v11 }
 0x585   : > { %12411 = vmatpush3.bf16.msra.mxu1 %v14016_v11 }
 0x58b   : > { %3371 = vmatmul.mubr.bf16.gmra.mrb[104].mxu0 %v13892_v13  ;;  %v13932_v13 = vld [vmem:[#allocation2 + $0x1d4] ss:$8 sps:$4 sm:$0xff]  }
 0x58c   : > { %3692 = vmatprep.mubr.bf16.mxu0 %v13895_v36  ;;  %v14017_v36 = vld [vmem:[#allocation19 + $0x78] sm:$0xff]  }
 0x58d   : > { %12412 = vmatprep.subr.bf16.mxu1 %v14017_v36 }
 0x58e   : > { %12413 = vmatpush3.bf16.msra.mxu1 %v14017_v36  ;;  %v13979_v36 = vld [vmem:[#allocation2 + $0x260] ss:$8 sps:$4 sm:$0xff]  }
 0x593   : > { %3693 = vmatmul.mubr.bf16.vlgmr.msra.gmra.mrb[108].mxu0 %v13893_v33  ;;  %v13934_v33 = vld [vmem:[#allocation2 + $0x1d0] ss:$8 sps:$4 sm:$0xff]  }
 0x594   : > { %10928 = vmatpush3.bf16.msra.mxu0 %v15978_v34  ;;  %3700 = vmatprep.mubr.bf16.mxu0 %v13896_v14  ;;  %v13935_v14 = vld [vmem:[#allocation2 + $0x1e4] ss:$8 sps:$4 sm:$0xff]  }
 0x595   : > { %10929 = vmatprep.subr.bf16.mxu0 %v16018_v31 }
 0x598   : > { %10930 = vmatpush3.bf16.msra.mxu0 %v15982_v15 }
 0x599   : > { %10931 = vmatprep.subr.bf16.mxu0 %v16026_v35 }
 0x59b   : > { %3701 = vmatmul.mubr.bf16.gmra.mrb[112].mxu0 %v13898_v38  ;;  %v13937_v38 = vld [vmem:[#allocation2 + $0x1e0] ss:$8 sps:$4 sm:$0xff]  }
 0x59c   : > { %10932 = vmatpush3.bf16.msra.mxu0 %v15986_v18  ;;  %3708 = vmatprep.mubr.bf16.mxu0 %v13899_v16  ;;  %v13938_v16 = vld [vmem:[#allocation2 + $0x1f4] ss:$8 sps:$4 sm:$0xff]  }
 0x59d   : > { %10933 = vmatprep.subr.bf16.mxu0 %v16034_v39 }
 0x5a0   : > { %10934 = vmatpush3.bf16.msra.mxu0 %v15990_v41 }
 0x5a1   : > { %10935 = vmatprep.subr.bf16.mxu0 %v16042_v43 }
 0x5a3   : > { %3709 = vmatmul.mubr.bf16.gmra.mrb[116].mxu0 %v13901_v37  ;;  %v13941_v37 = vld [vmem:[#allocation2 + $0x200] ss:$8 sps:$4 sm:$0xff]  }
 0x5a4   : > { %10936 = vmatpush3.bf16.msra.mxu0 %v15994_v48  ;;  %3716 = vmatprep.mubr.bf16.mxu0 %v13902_v19  ;;  %v13947_v19 = vld [vmem:[#allocation2 + $0x214] ss:$8 sps:$4 sm:$0xff]  }
 0x5a5   : > { %10937 = vmatprep.subr.bf16.mxu0 %v16050_v47 }
 0x5a8   : > { %10938 = vmatpush3.bf16.msra.mxu0 %v15998_v61 }
 0x5a9   : > { %10939 = vmatprep.subr.bf16.mxu0 %v16058_v51 }
 0x5ab   : > { %3717 = vmatmul.mubr.bf16.gmra.mrb[120].mxu0 %v13904_v21 }
 0x5ac   : > { %10940 = vmatpush3.bf16.msra.mxu0 %v16002_v1  ;;  %3724 = vmatprep.mubr.bf16.mxu0 %v13905_v44  ;;  %v13955_v44 = vld [vmem:[#allocation2 + $0x220] ss:$8 sps:$4 sm:$0xff]  }
 0x5ad   : > { %10941 = vmatprep.subr.bf16.mxu0 %v16065_v3 }
 0x5b0   : > { %10942 = vmatpush3.bf16.msra.mxu0 %v16006_v55 }
 0x5b1   : > { %11063 = vmatprep.subr.bf16.mxu0 %v16010_v63 }
 0x5b3   : > { %3725 = vmatmul.mubr.bf16.gmra.mrb[124].mxu0 %v13907_v46 }
 0x5b4   : > { %3732 = vmatprep.mubr.bf16.mxu0 %v13908_v24 }
 0x5bb   : > { %3733 = vmatmul.mubr.bf16.gmra.mrb[128].mxu0 %v13910_v27 }
 0x5bc   : > { %3740 = vmatprep.mubr.bf16.mxu0 %v13911_v50  ;;  %v13961_v50 = vld [vmem:[#allocation2 + $0x230] ss:$8 sps:$4 sm:$0xff]  }
 0x5c3   : > { %3741 = vmatmul.mubr.bf16.gmra.mrb[132].mxu0 %v13913_v49 }
 0x5c4   : > { %3748 = vmatprep.mubr.bf16.mxu0 %v13914_v62 }
 0x5cb   : > { %3749 = vmatmul.mubr.bf16.gmra.mrb[136].mxu0 %v13916_v2  ;;  %v14029_v2 = vld [vmem:[#allocation2 + $0x330] ss:$8 sps:$4 sm:$0xff]  }
 0x5cc   : > { %3756 = vmatprep.mubr.bf16.mxu0 %v13917_v56 }
 0x5d3   : > { %3757 = vmatmul.mubr.bf16.gmra.mrb[140].mxu0 %v13919_v4 }
 0x5d4   : > { %3764 = vmatprep.mubr.bf16.mxu0 %v13920_v7  ;;  %v13970_v7 = vld [vmem:[#allocation2 + $0x254] ss:$8 sps:$4 sm:$0xff]  }
 0x5db   : > { %3765 = vmatmul.mubr.bf16.gmra.mrb[144].mxu0 %v13922_v5 }
 0x5dc   : > { %3772 = vmatprep.mubr.bf16.mxu0 %v13923_v6 }
 0x5e3   : > { %3773 = vmatmul.mubr.bf16.gmra.mrb[148].mxu0 %v13925_v30 }
 0x5e4   : > { %3780 = vmatprep.mubr.bf16.mxu0 %v13926_v59  ;;  %v13973_v59 = vld [vmem:[#allocation2 + $0x250] ss:$8 sps:$4 sm:$0xff]  }
 0x5eb   : > { %3781 = vmatmul.mubr.bf16.gmra.mrb[152].mxu0 %v13928_v32 }
 0x5ec   : > { %3788 = vmatprep.mubr.bf16.mxu0 %v13929_v29 }
 0x5f3   : > { %3789 = vmatmul.mubr.bf16.gmra.mrb[156].mxu0 %v13931_v12 }
 0x5f4   : > { %3796 = vmatprep.mubr.bf16.mxu0 %v13932_v13 }
 0x5fb   : > { %3797 = vmatmul.mubr.bf16.gmra.mrb[160].mxu0 %v13934_v33 }
 0x5fc   : > { %3804 = vmatprep.mubr.bf16.mxu0 %v13935_v14  ;;  %v13982_v14 = vld [vmem:[#allocation2 + $0x274] ss:$8 sps:$4 sm:$0xff]  }
 0x603   : > { %3805 = vmatmul.mubr.bf16.gmra.mrb[164].mxu0 %v13937_v38 }
 0x604   : > { %3812 = vmatprep.mubr.bf16.mxu0 %v13938_v16 }
 0x60b   : > { %3813 = vmatmul.mubr.bf16.gmra.mrb[168].mxu0 %v13940_v17 }
 0x60c   : > { %4497 = vmatprep.mubr.bf16.mxu0 %v13943_v40 }
 0x613   : > { %4498 = vmatmul.mubr.bf16.vlgmr.msra.gmra.mrb[172].mxu0 %v13941_v37 }
 0x614   : > { %11064 = vmatpush3.bf16.msra.mxu0 %v15978_v34  ;;  %4505 = vmatprep.mubr.bf16.mxu0 %v13947_v19 }
 0x615   : > { %11065 = vmatprep.subr.bf16.mxu0 %v16018_v31 }
 0x618   : > { %11066 = vmatpush3.bf16.msra.mxu0 %v15982_v15 }
 0x619   : > { %11067 = vmatprep.subr.bf16.mxu0 %v16026_v35 }
 0x61b   : > { %4506 = vmatmul.mubr.bf16.gmra.mrb[176].mxu0 %v13949_v42  ;;  %v13985_v42 = vld [vmem:[#allocation2 + $0x270] ss:$8 sps:$4 sm:$0xff]  }
 0x61c   : > { %11068 = vmatpush3.bf16.msra.mxu0 %v15986_v18  ;;  %4513 = vmatprep.mubr.bf16.mxu0 %v13952_v20 }
 0x61d   : > { %11069 = vmatprep.subr.bf16.mxu0 %v16034_v39 }
 0x61e   : > { %v10671_v21 = vpop.f32.mrb[72].mxu0 }
 0x61f   : > { %v10672_v22 = vpop.f32.mrb[73].mxu0 }
 0x620   : > { %11070 = vmatpush3.bf16.msra.mxu0 %v15990_v41  ;;  %v16111_v46 = vadd.f32 %v10672_v22, %v10671_v21  ;;  %v10674_v24 = vpop.f32.mrb[74].mxu0  ;;  %v13986_v21 = vld [vmem:[#allocation2 + $0x284] ss:$8 sps:$4 sm:$0xff]  }
 0x621   : > { %11071 = vmatprep.subr.bf16.mxu0 %v16042_v43  ;;  %v10675_v25 = vpop.f32.mrb[75].mxu0 }
 0x622   : > { %v16114_v45 = vadd.f32 %v10675_v25, %v10674_v24  ;;  %v16154_v25 = vld [vmem:[#allocation19] sm:$0xff]  }
 0x623   : > { %4514 = vmatmul.mubr.bf16.gmra.mrb[180].mxu0 %v13955_v44  ;;  %12446 = vmatprep.subr.bf16.mxu1 %v16154_v25 }
 0x624   : > { %11072 = vmatpush3.bf16.msra.mxu0 %v15994_v48  ;;  %4521 = vmatprep.mubr.bf16.mxu0 %v13958_v23 }
 0x625   : > { %11073 = vmatprep.subr.bf16.mxu0 %v16050_v47 }
 0x626   : > { %v10677_v27 = vpop.f32.mrb[76].mxu0 }
 0x627   : > { %v10678_v28 = vpop.f32.mrb[77].mxu0 }
 0x628   : > { %11074 = vmatpush3.bf16.msra.mxu0 %v15998_v61  ;;  %v16121_v49 = vadd.f32 %v10678_v28, %v10677_v27  ;;  %v10680_v62 = vpop.f32.mrb[78].mxu0  ;;  %v13988_v28 = vld [vmem:[#allocation2 + $0x280] ss:$8 sps:$4 sm:$0xff]  }
 0x629   : > { %11075 = vmatprep.subr.bf16.mxu0 %v16058_v51  ;;  %v10681_v0 = vpop.f32.mrb[79].mxu0 }
 0x62a   : > { %v16124_v54 = vadd.f32 %v10681_v0, %v10680_v62  ;;  %v13989_v62 = vld [vmem:[#allocation2 + $0x294] ss:$8 sps:$4 sm:$0xff]  }
 0x62b   : > { %4522 = vmatmul.mubr.bf16.gmra.mrb[184].mxu0 %v13961_v50 }
 0x62c   : > { %11076 = vmatpush3.bf16.msra.mxu0 %v16002_v1  ;;  %4529 = vmatprep.mubr.bf16.mxu0 %v13964_v52 }
 0x62d   : > { %11077 = vmatprep.subr.bf16.mxu0 %v16065_v3 }
 0x62e   : > { %v10683_v56 = vpop.f32.mrb[80].mxu0 }
 0x62f   : > { %v10684_v4 = vpop.f32.mrb[81].mxu0 }
 0x630   : > { %11078 = vmatpush3.bf16.msra.mxu0 %v16006_v55  ;;  %v16131_v58 = vadd.f32 %v10684_v4, %v10683_v56  ;;  %v10686_v5 = vpop.f32.mrb[82].mxu0 }
 0x631   : > { %11335 = vmatprep.subr.bf16.mxu0 %v16010_v63  ;;  %v10687_v6 = vpop.f32.mrb[83].mxu0 }
 0x632   : > { %v16134_v57 = vadd.f32 %v10687_v6, %v10686_v5  ;;  %v13991_v6 = vld [vmem:[#allocation2 + $0x290] ss:$8 sps:$4 sm:$0xff]  }
 0x633   : > { %4530 = vmatmul.mubr.bf16.gmra.mrb[188].mxu0 %v13967_v53 }
 0x634   : > { %4537 = vmatprep.mubr.bf16.mxu0 %v13970_v7 }
 0x636   : > { %v10689_v30 = vpop.f32.mrb[84].mxu0 }
 0x637   : > { %v10690_v8 = vpop.f32.mrb[85].mxu0 }
 0x638   : > { %v16138_v32 = vadd.f32 %v10690_v8, %v10689_v30  ;;  %v10692_v29 = vpop.f32.mrb[86].mxu0 }
 0x639   : > { %v10693_v10 = vpop.f32.mrb[87].mxu0 }
 0x63a   : > { %v16140_v11 = vadd.f32 %v10693_v10, %v10692_v29 }
 0x63b   : > { %4538 = vmatmul.mubr.bf16.gmra.mrb[192].mxu0 %v13973_v59  ;;  %v13992_v59 = vld [vmem:[#allocation2 + $0x2a4] ss:$8 sps:$4 sm:$0xff]  }
 0x63c   : > { %4545 = vmatprep.mubr.bf16.mxu0 %v13976_v9 }
 0x63e   : > { %v10695_v13 = vpop.f32.mrb[88].mxu0 }
 0x63f   : > { %v10696_v33 = vpop.f32.mrb[89].mxu0 }
 0x640   : > { %v16144_v38 = vadd.f32 %v10696_v33, %v10695_v13  ;;  %v10698_v16 = vpop.f32.mrb[90].mxu0  ;;  %v13994_v33 = vld [vmem:[#allocation2 + $0x2a0] ss:$8 sps:$4 sm:$0xff]  }
 0x641   : > { %v10699_v17 = vpop.f32.mrb[91].mxu0 }
 0x642   : > { %v16146_v40 = vadd.f32 %v10699_v17, %v10698_v16  ;;  %v13995_v16 = vld [vmem:[#allocation2 + $0x2b4] ss:$8 sps:$4 sm:$0xff]  }
 0x643   : > { %4546 = vmatmul.mubr.bf16.gmra.mrb[196].mxu0 %v13979_v36 }
 0x644   : > { %4553 = vmatprep.mubr.bf16.mxu0 %v13982_v14 }
 0x646   : > { %v10701_v19 = vpop.f32.mrb[92].mxu0 }
 0x647   : > { %v10702_v20 = vpop.f32.mrb[93].mxu0 }
 0x648   : > { %v16150_v44 = vadd.f32 %v10702_v20, %v10701_v19  ;;  %v10704_v22 = vpop.f32.mrb[94].mxu0 }
 0x649   : > { %v10705_v23 = vpop.f32.mrb[95].mxu0 }
 0x64a   : > { %v16152_v24 = vadd.f32 %v10705_v23, %v10704_v22  ;;  %v13997_v23 = vld [vmem:[#allocation2 + $0x2b0] ss:$8 sps:$4 sm:$0xff]  }
 0x64b   : > { %4554 = vmatmul.mubr.bf16.gmra.mrb[200].mxu0 %v13985_v42 }
 0x64c   : > { %4561 = vmatprep.mubr.bf16.mxu0 %v13986_v21 }
 0x64e   : > { %v10707_v50 = vpop.f32.mrb[96].mxu0 }
 0x64f   : > { %v10708_v52 = vpop.f32.mrb[97].mxu0 }
 0x650   : > { %v16159_v0 = vadd.f32 %v10708_v52, %v10707_v50  ;;  %v10710_v56 = vpop.f32.mrb[98].mxu0 }
 0x651   : > { %v10711_v53 = vpop.f32.mrb[99].mxu0 }
 0x652   : > { %v16161_v4 = vadd.f32 %v10711_v53, %v10710_v56 }
 0x653   : > { %4562 = vmatmul.mubr.bf16.gmra.mrb[204].mxu0 %v13988_v28  ;;  %v13998_v28 = vld [vmem:[#allocation2 + $0x2c4] ss:$8 sps:$4 sm:$0xff]  }
 0x654   : > { %4569 = vmatprep.mubr.bf16.mxu0 %v13989_v62 }
 0x656   : > { %v10713_v5 = vpop.f32.mrb[100].mxu0 }
 0x657   : > { %v10714_v30 = vpop.f32.mrb[101].mxu0 }
 0x658   : > { %v16165_v8 = vadd.f32 %v10714_v30, %v10713_v5  ;;  %v10716_v9 = vpop.f32.mrb[102].mxu0  ;;  %v14000_v30 = vld [vmem:[#allocation2 + $0x2c0] ss:$8 sps:$4 sm:$0xff]  }
 0x659   : > { %v10717_v29 = vpop.f32.mrb[103].mxu0 }
 0x65a   : > { %v16167_v10 = vadd.f32 %v10717_v29, %v10716_v9  ;;  %v14003_v9 = vld [vmem:[#allocation2 + $0x2d4] ss:$8 sps:$4 sm:$0xff]  }
 0x65b   : > { %4570 = vmatmul.mubr.bf16.gmra.mrb[208].mxu0 %v13991_v6 }
 0x65c   : > { %4577 = vmatprep.mubr.bf16.mxu0 %v13992_v59 }
 0x65e   : > { %v10719_v36 = vpop.f32.mrb[104].mxu0 }
 0x65f   : > { %v10720_v14 = vpop.f32.mrb[105].mxu0 }
 0x660   : > { %v16171_v17 = vadd.f32 %v10720_v14, %v10719_v36  ;;  %v10722_v19 = vpop.f32.mrb[106].mxu0 }
 0x661   : > { %v10723_v42 = vpop.f32.mrb[107].mxu0 }
 0x662   : > { %v16173_v20 = vadd.f32 %v10723_v42, %v10722_v19  ;;  %v14043_v19 = vld [vmem:[#allocation19 + $0x8] sm:$0xff]  }
 0x663   : > { %4578 = vmatmul.mubr.bf16.gmra.mrb[212].mxu0 %v13994_v33 }
 0x664   : > { %4585 = vmatprep.mubr.bf16.mxu0 %v13995_v16 }
 0x666   : > { %v10783_v22 = vpop.f32.mrb[108].mxu0 }
 0x667   : > { %v10784_v50 = vpop.f32.mrb[109].mxu0 }
 0x668   : > { %v10785_v52 = vadd.f32 %v10784_v50, %v10783_v22  ;;  %v10786_v62 = vpop.f32.mrb[110].mxu0  ;;  %v14005_v22 = vld [vmem:[#allocation2 + $0x2d0] ss:$8 sps:$4 sm:$0xff]  }
 0x669   : > { %v10787_v56 = vpop.f32.mrb[111].mxu0 }
 0x66a   : > { %v10788_v53 = vadd.f32 %v10787_v56, %v10786_v62  ;;  %v14047_v62 = vld [vmem:[#allocation19 + $0x10] sm:$0xff]  }
 0x66b   : > { %4586 = vmatmul.mubr.bf16.gmra.mrb[216].mxu0 %v13997_v23  ;;  %v14008_v23 = vld [vmem:[#allocation2 + $0x2e4] ss:$8 sps:$4 sm:$0xff]  }
 0x66c   : > { %4593 = vmatprep.mubr.bf16.mxu0 %v13998_v28  ;;  %v3821_v5 = vpack.c.bf16 %v10788_v53, %v10785_v52 }
 0x66e   : > { %v10789_v6 = vpop.f32.mrb[112].mxu0  ;;  %12414 = vmatprep.mubr.bf16.mxu1 %v3821_v5 }
 0x66f   : > { %v10790_v59 = vpop.f32.mrb[113].mxu0 }
 0x670   : > { %v10791_v29 = vadd.f32 %v10790_v59, %v10789_v6  ;;  %v10792_v36 = vpop.f32.mrb[114].mxu0  ;;  %v14048_v6 = vld [vmem:[#allocation19 + $0x18] sm:$0xff]   ;;  %v14010_v59 = vld [vmem:[#allocation2 + $0x2e0] ss:$8 sps:$4 sm:$0xff]  }
 0x671   : > { %v10793_v33 = vpop.f32.mrb[115].mxu0 }
 0x672   : > { %v10794_v14 = vadd.f32 %v10793_v33, %v10792_v36  ;;  %v14052_v33 = vld [vmem:[#allocation19 + $0x20] sm:$0xff]  }
 0x673   : > { %4594 = vmatmul.mubr.bf16.gmra.mrb[220].mxu0 %v14000_v30 }
 0x674   : > { %4601 = vmatprep.mubr.bf16.mxu0 %v14003_v9  ;;  %v3822_v16 = vpack.c.bf16 %v10794_v14, %v10791_v29  ;;  %v14013_v29 = vld [vmem:[#allocation2 + $0x2f4] ss:$8 sps:$4 sm:$0xff]  }
 0x676   : > { %v10795_v42 = vpop.f32.mrb[116].mxu0  ;;  %12415 = vmatmul.mubr.bf16.vlgmr.msra.gmra.mrb[92].mxu1 %v3822_v16 }
 0x677   : > { %v10796_v50 = vpop.f32.mrb[117].mxu0  ;;  %12447 = vmatpush3.bf16.msra.mxu1 %v16154_v25 }
 0x678   : > { %v10797_v28 = vadd.f32 %v10796_v50, %v10795_v42  ;;  %v10798_v52 = vpop.f32.mrb[118].mxu0  ;;  %12448 = vmatprep.subr.bf16.mxu1 %v14043_v19  ;;  %v10725_v42 = vpop.f32.mrb[64].mxu1 }
 0x679   : > { %v10799_v56 = vpop.f32.mrb[119].mxu0 }
 0x67a   : > { %v10800_v53 = vadd.f32 %v10799_v56, %v10798_v52 }
 0x67b   : > { %4602 = vmatmul.mubr.bf16.gmra.mrb[224].mxu0 %v14005_v22  ;;  %12449 = vmatpush3.bf16.msra.mxu1 %v14043_v19  ;;  %v14053_v22 = vld [vmem:[#allocation19 + $0x28] sm:$0xff]  }
 0x67c   : > { %4609 = vmatprep.mubr.bf16.mxu0 %v14008_v23  ;;  %v3823_v5 = vpack.c.bf16 %v10800_v53, %v10797_v28  ;;  %12450 = vmatprep.subr.bf16.mxu1 %v14047_v62  ;;  %v10726_v23 = vpop.f32.mrb[65].mxu1  ;;  %v14015_v28 = vld [vmem:[#allocation2 + $0x2f0] ss:$8 sps:$4 sm:$0xff]   ;;  %v14020_v53 = vld [vmem:[#allocation2 + $0x304] ss:$8 sps:$4 sm:$0xff]  }
 0x67d   : > { %v10728_v56 = vpop.f32.mrb[66].mxu1 }
 0x67e   : > { %v10801_v30 = vpop.f32.mrb[120].mxu0  ;;  %12418 = vmatprep.mubr.bf16.mxu1 %v3823_v5 }
 0x67f   : > { %v10802_v9 = vpop.f32.mrb[121].mxu0  ;;  %12451 = vmatpush3.bf16.msra.mxu1 %v14047_v62  ;;  %v16178_v62 = vadd.f32 %v10726_v23, %v10725_v42 }
 0x680   : > { %v10803_v25 = vadd.f32 %v10802_v9, %v10801_v30  ;;  %v10804_v36 = vpop.f32.mrb[122].mxu0  ;;  %12452 = vmatprep.subr.bf16.mxu1 %v14048_v6 }
 0x681   : > { %v10805_v14 = vpop.f32.mrb[123].mxu0 }
 0x682   : > { %v10806_v16 = vadd.f32 %v10805_v14, %v10804_v36 }
 0x683   : > { %4610 = vmatmul.mubr.bf16.gmra.mrb[228].mxu0 %v14010_v59  ;;  %12453 = vmatpush3.bf16.msra.mxu1 %v14048_v6  ;;  %v14057_v59 = vld [vmem:[#allocation19 + $0x30] sm:$0xff]   ;;  %v10729_v6 = vpop.f32.mrb[67].mxu1 }
 0x684   : > { %4617 = vmatprep.mubr.bf16.mxu0 %v14013_v29  ;;  %v3824_v19 = vpack.c.bf16 %v10806_v16, %v10803_v25  ;;  %12454 = vmatprep.subr.bf16.mxu1 %v14052_v33  ;;  %v16180_v29 = vadd.f32 %v10729_v6, %v10728_v56  ;;  %v10731_v25 = vpop.f32.mrb[68].mxu1 }
 0x685   : > { %v10732_v14 = vpop.f32.mrb[69].mxu1 }
 0x686   : > { %v10807_v50 = vpop.f32.mrb[124].mxu0  ;;  %12419 = vmatmul.mubr.bf16.gmra.mrb[96].mxu1 %v3824_v19  ;;  %v16184_v16 = vadd.f32 %v10732_v14, %v10731_v25  ;;  %v10734_v42 = vpop.f32.mrb[70].mxu1 }
 0x687   : > { %v10808_v52 = vpop.f32.mrb[125].mxu0  ;;  %12455 = vmatpush3.bf16.msra.mxu1 %v14052_v33  ;;  %v10735_v23 = vpop.f32.mrb[71].mxu1 }
 0x688   : > { %v10809_v5 = vadd.f32 %v10808_v52, %v10807_v50  ;;  %v10810_v30 = vpop.f32.mrb[126].mxu0  ;;  %12456 = vmatprep.subr.bf16.mxu1 %v14053_v22  ;;  %v14058_v50 = vld [vmem:[#allocation19 + $0x38] sm:$0xff]   ;;  %v16186_v52 = vadd.f32 %v10735_v23, %v10734_v42  ;;  %v10737_v56 = vpop.f32.mrb[72].mxu1  ;;  %v16192_v23 = vld [vmem:[#allocation19 + $0x80] sm:$0xff]  }
 0x689   : > { %v10811_v9 = vpop.f32.mrb[127].mxu0 }
 0x68a   : > { %v10812_v36 = vadd.f32 %v10811_v9, %v10810_v30  ;;  %v10738_v30 = vpop.f32.mrb[73].mxu1  ;;  %v14018_v9 = vld [vmem:[#allocation2 + $0x300] ss:$8 sps:$4 sm:$0xff]  }
 0x68b   : > { %4618 = vmatmul.mubr.bf16.gmra.mrb[232].mxu0 %v14015_v28  ;;  %12457 = vmatpush3.bf16.msra.mxu1 %v14053_v22  ;;  %v16190_v25 = vadd.f32 %v10738_v30, %v10737_v56  ;;  %v10740_v14 = vpop.f32.mrb[74].mxu1 }
 0x68c   : > { %5125 = vmatprep.mubr.bf16.mxu0 %v14020_v53  ;;  %v3825_v19 = vpack.c.bf16 %v10812_v36, %v10809_v5  ;;  %12458 = vmatprep.subr.bf16.mxu1 %v14057_v59  ;;  %v14021_v53 = vld [vmem:[#allocation2 + $0x314] ss:$8 sps:$4 sm:$0xff]   ;;  %v10741_v33 = vpop.f32.mrb[75].mxu1 }
 0x68d   : > { %v16194_v21 = vadd.f32 %v10741_v33, %v10740_v14 }
 0x68e   : > { %v10813_v6 = vpop.f32.mrb[128].mxu0  ;;  %12422 = vmatprep.mubr.bf16.mxu1 %v3825_v19  ;;  %v10743_v19 = vpop.f32.mrb[76].mxu1 }
 0x68f   : > { %v10814_v28 = vpop.f32.mrb[129].mxu0  ;;  %12459 = vmatpush3.bf16.msra.mxu1 %v14057_v59  ;;  %v10744_v7 = vpop.f32.mrb[77].mxu1 }
 0x690   : > { %v10815_v5 = vadd.f32 %v10814_v28, %v10813_v6  ;;  %v10816_v36 = vpop.f32.mrb[130].mxu0  ;;  %12460 = vmatprep.subr.bf16.mxu1 %v14058_v50  ;;  %v16198_v56 = vadd.f32 %v10744_v7, %v10743_v19  ;;  %v10746_v30 = vpop.f32.mrb[78].mxu1  ;;  %v14024_v7 = vld [vmem:[#allocation2 + $0x324] ss:$8 sps:$4 sm:$0xff]  }
 0x691   : > { %v10817_v42 = vpop.f32.mrb[131].mxu0  ;;  %v10747_v33 = vpop.f32.mrb[79].mxu1 }
 0x692   : > { %v10818_v13 = vadd.f32 %v10817_v42, %v10816_v36  ;;  %v16203_v14 = vadd.f32 %v10747_v33, %v10746_v30 }
 0x693   : > { %5126 = vmatmul.mubr.bf16.vlgmr.msra.gmra.mrb[236].mxu0 %v14018_v9  ;;  %12461 = vmatpush3.bf16.msra.mxu1 %v14058_v50  ;;  %v10749_v50 = vpop.f32.mrb[80].mxu1  ;;  %v14023_v9 = vld [vmem:[#allocation2 + $0x310] ss:$8 sps:$4 sm:$0xff]  }
 0x694   : > { %11336 = vmatpush3.bf16.msra.mxu0 %v15978_v34  ;;  %5133 = vmatprep.mubr.bf16.mxu0 %v14021_v53  ;;  %v3826_v6 = vpack.c.bf16 %v10818_v13, %v10815_v5  ;;  %v10750_v42 = vpop.f32.mrb[81].mxu1 }
 0x695   : > { %11337 = vmatprep.subr.bf16.mxu0 %v16018_v31  ;;  %12494 = vmatprep.subr.bf16.mxu1 %v16192_v23  ;;  %v16208_v5 = vadd.f32 %v10750_v42, %v10749_v50  ;;  %v10752_v59 = vpop.f32.mrb[82].mxu1 }
 0x696   : > { %v10819_v28 = vpop.f32.mrb[132].mxu0  ;;  %12423 = vmatmul.mubr.bf16.gmra.mrb[100].mxu1 %v3826_v6  ;;  %v10753_v30 = vpop.f32.mrb[83].mxu1 }
 0x697   : > { %v10820_v36 = vpop.f32.mrb[133].mxu0  ;;  %v16211_v22 = vadd.f32 %v10753_v30, %v10752_v59  ;;  %v10755_v27 = vpop.f32.mrb[84].mxu1 }
 0x698   : > { %11338 = vmatpush3.bf16.msra.mxu0 %v15982_v15  ;;  %v10821_v19 = vadd.f32 %v10820_v36, %v10819_v28  ;;  %v10822_v53 = vpop.f32.mrb[134].mxu0  ;;  %v10756_v37 = vpop.f32.mrb[85].mxu1 }
 0x699   : > { %11339 = vmatprep.subr.bf16.mxu0 %v16026_v35  ;;  %v10823_v6 = vpop.f32.mrb[135].mxu0  ;;  %v16216_v50 = vadd.f32 %v10756_v37, %v10755_v27  ;;  %v10758_v42 = vpop.f32.mrb[86].mxu1 }
 0x69a   : > { %v10824_v33 = vadd.f32 %v10823_v6, %v10822_v53  ;;  %v10759_v13 = vpop.f32.mrb[87].mxu1  ;;  %v14026_v53 = vld [vmem:[#allocation2 + $0x320] ss:$8 sps:$4 sm:$0xff]   ;;  %v14027_v6 = vld [vmem:[#allocation2 + $0x334] ss:$8 sps:$4 sm:$0xff]  }
 0x69b   : > { %5134 = vmatmul.mubr.bf16.gmra.mrb[240].mxu0 %v14023_v9  ;;  %v16219_v59 = vadd.f32 %v10759_v13, %v10758_v42  ;;  %v10761_v37 = vpop.f32.mrb[88].mxu1 }
 0x69c   : > { %11340 = vmatpush3.bf16.msra.mxu0 %v15986_v18  ;;  %5141 = vmatprep.mubr.bf16.mxu0 %v14024_v7  ;;  %v3827_v28 = vpack.c.bf16 %v10824_v33, %v10821_v19  ;;  %v10762_v33 = vpop.f32.mrb[89].mxu1 }
 0x69d   : > { %11341 = vmatprep.subr.bf16.mxu0 %v16034_v39  ;;  %v16225_v60 = vadd.f32 %v10762_v33, %v10761_v37  ;;  %v10764_v13 = vpop.f32.mrb[90].mxu1  ;;  %v14030_v37 = vld [vmem:[#allocation2 + $0x344] ss:$8 sps:$4 sm:$0xff]  }
 0x69e   : > { %v10825_v12 = vpop.f32.mrb[136].mxu0  ;;  %12426 = vmatprep.mubr.bf16.mxu1 %v3827_v28  ;;  %v10765_v28 = vpop.f32.mrb[91].mxu1 }
 0x69f   : > { %v10826_v9 = vpop.f32.mrb[137].mxu0 }
 0x6a0   : > { %11342 = vmatpush3.bf16.msra.mxu0 %v15990_v41  ;;  %v10827_v7 = vadd.f32 %v10826_v9, %v10825_v12  ;;  %v10828_v19 = vpop.f32.mrb[138].mxu0  ;;  %v16228_v12 = vadd.f32 %v10765_v28, %v10764_v13  ;;  %v14032_v13 = vld [vmem:[#allocation2 + $0x340] ss:$8 sps:$4 sm:$0xff]  }
 0x6a1   : > { %11343 = vmatprep.subr.bf16.mxu0 %v16042_v43  ;;  %v10829_v27 = vpop.f32.mrb[139].mxu0 }
 0x6a2   : > { %v10830_v36 = vadd.f32 %v10829_v27, %v10828_v19 }
 0x6a3   : > { %5142 = vmatmul.mubr.bf16.gmra.mrb[244].mxu0 %v14026_v53 }
 0x6a4   : > { %11344 = vmatpush3.bf16.msra.mxu0 %v15994_v48  ;;  %5149 = vmatprep.mubr.bf16.mxu0 %v14027_v6  ;;  %v3828_v42 = vpack.c.bf16 %v10830_v36, %v10827_v7 }
 0x6a5   : > { %11345 = vmatprep.subr.bf16.mxu0 %v16050_v47 }
 0x6a6   : > { %v10831_v9 = vpop.f32.mrb[140].mxu0  ;;  %12427 = vmatmul.mubr.bf16.gmra.mrb[104].mxu1 %v3828_v42  ;;  %v14035_v42 = vld [vmem:[#allocation2 + $0x354] ss:$8 sps:$4 sm:$0xff]  }
 0x6a7   : > { %v10832_v19 = vpop.f32.mrb[141].mxu0 }
 0x6a8   : > { %11346 = vmatpush3.bf16.msra.mxu0 %v15998_v61  ;;  %v10833_v53 = vadd.f32 %v10832_v19, %v10831_v9  ;;  %v10834_v27 = vpop.f32.mrb[142].mxu0 }
 0x6a9   : > { %11347 = vmatprep.subr.bf16.mxu0 %v16058_v51  ;;  %v10835_v6 = vpop.f32.mrb[143].mxu0 }
 0x6aa   : > { %v10836_v36 = vadd.f32 %v10835_v6, %v10834_v27 }
 0x6ab   : > { %5150 = vmatmul.mubr.bf16.gmra.mrb[248].mxu0 %v14029_v2 }
 0x6ac   : > { %11348 = vmatpush3.bf16.msra.mxu0 %v16002_v1  ;;  %5157 = vmatprep.mubr.bf16.mxu0 %v14030_v37  ;;  %v3829_v7 = vpack.c.bf16 %v10836_v36, %v10833_v53  ;;  %v14033_v53 = vld [vmem:[#allocation2 + $0x350] ss:$8 sps:$4 sm:$0xff]   ;;  %v14038_v36 = vld [vmem:[#allocation2 + $0x364] ss:$8 sps:$4 sm:$0xff]  }
 0x6ad   : > { %11349 = vmatprep.subr.bf16.mxu0 %v16065_v3 }
 0x6ae   : > { %v10837_v33 = vpop.f32.mrb[144].mxu0  ;;  %12430 = vmatprep.mubr.bf16.mxu1 %v3829_v7 }
 0x6af   : > { %v10838_v28 = vpop.f32.mrb[145].mxu0 }
 0x6b0   : > { %11350 = vmatpush3.bf16.msra.mxu0 %v16006_v55  ;;  %v10839_v9 = vadd.f32 %v10838_v28, %v10837_v33  ;;  %v10840_v19 = vpop.f32.mrb[146].mxu0 }
 0x6b1   : > { %11471 = vmatprep.subr.bf16.mxu0 %v16010_v63  ;;  %v10841_v30 = vpop.f32.mrb[147].mxu0  ;;  %v14036_v63 = vld [vmem:[#allocation2 + $0x360] ss:$8 sps:$4 sm:$0xff]  }
 0x6b2   : > { %v10842_v27 = vadd.f32 %v10841_v30, %v10840_v19  ;;  %v14041_v30 = vld [vmem:[#allocation2 + $0x374] ss:$8 sps:$4 sm:$0xff]  }
 0x6b3   : > { %5158 = vmatmul.mubr.bf16.gmra.mrb[252].mxu0 %v14032_v13 }
 0x6b4   : > { %5165 = vmatprep.mubr.bf16.mxu0 %v14035_v42  ;;  %v3830_v2 = vpack.c.bf16 %v10842_v27, %v10839_v9 }
 0x6b6   : > { %v10843_v37 = vpop.f32.mrb[148].mxu0  ;;  %12431 = vmatmul.mubr.bf16.gmra.mrb[108].mxu1 %v3830_v2 }
 0x6b7   : > { %v10844_v6 = vpop.f32.mrb[149].mxu0 }
 0x6b8   : > { %v10845_v7 = vadd.f32 %v10844_v6, %v10843_v37  ;;  %v10846_v26 = vpop.f32.mrb[150].mxu0  ;;  %v14039_v37 = vld [vmem:[#allocation2 + $0x370] ss:$8 sps:$4 sm:$0xff]  }
 0x6b9   : > { %v10847_v3 = vpop.f32.mrb[151].mxu0 }
 0x6ba   : > { %v10848_v1 = vadd.f32 %v10847_v3, %v10846_v26  ;;  %v14046_v3 = vld [vmem:[#allocation2 + $0x384] ss:$8 sps:$4 sm:$0xff]  }
 0x6bb   : > { %5166 = vmatmul.mubr.bf16.gmra.mrb[0].mxu0 %v14033_v53 }
 0x6bc   : > { %5173 = vmatprep.mubr.bf16.mxu0 %v14038_v36  ;;  %v3831_v33 = vpack.c.bf16 %v10848_v1, %v10845_v7 }
 0x6be   : > { %v10849_v28 = vpop.f32.mrb[152].mxu0  ;;  %12434 = vmatprep.mubr.bf16.mxu1 %v3831_v33 }
 0x6bf   : > { %v10850_v55 = vpop.f32.mrb[153].mxu0 }
 0x6c0   : > { %v10851_v13 = vadd.f32 %v10850_v55, %v10849_v28  ;;  %v10852_v42 = vpop.f32.mrb[154].mxu0  ;;  %v14044_v55 = vld [vmem:[#allocation2 + $0x380] ss:$8 sps:$4 sm:$0xff]  }
 0x6c1   : > { %v10853_v9 = vpop.f32.mrb[155].mxu0 }
 0x6c2   : > { %v10854_v19 = vadd.f32 %v10853_v9, %v10852_v42 }
 0x6c3   : > { %5174 = vmatmul.mubr.bf16.gmra.mrb[4].mxu0 %v14036_v63 }
 0x6c4   : > { %5181 = vmatprep.mubr.bf16.mxu0 %v14041_v30  ;;  %v3832_v27 = vpack.c.bf16 %v10854_v19, %v10851_v13  ;;  %v14051_v30 = vld [vmem:[#allocation2 + $0x394] ss:$8 sps:$4 sm:$0xff]  }
 0x6c6   : > { %v10855_v2 = vpop.f32.mrb[156].mxu0  ;;  %12435 = vmatmul.mubr.bf16.gmra.mrb[112].mxu1 %v3832_v27 }
 0x6c7   : > { %v10856_v6 = vpop.f32.mrb[157].mxu0 }
 0x6c8   : > { %v10857_v26 = vadd.f32 %v10856_v6, %v10855_v2  ;;  %v10858_v53 = vpop.f32.mrb[158].mxu0  ;;  %v14049_v2 = vld [vmem:[#allocation2 + $0x390] ss:$8 sps:$4 sm:$0xff]  }
 0x6c9   : > { %v10859_v1 = vpop.f32.mrb[159].mxu0 }
 0x6ca   : > { %v10860_v36 = vadd.f32 %v10859_v1, %v10858_v53 }
 0x6cb   : > { %5182 = vmatmul.mubr.bf16.gmra.mrb[8].mxu0 %v14039_v37 }
 0x6cc   : > { %5189 = vmatprep.mubr.bf16.mxu0 %v14046_v3  ;;  %v3833_v7 = vpack.c.bf16 %v10860_v36, %v10857_v26  ;;  %v14056_v3 = vld [vmem:[#allocation2 + $0x3a4] ss:$8 sps:$4 sm:$0xff]  }
 0x6ce   : > { %v10861_v33 = vpop.f32.mrb[160].mxu0  ;;  %12438 = vmatprep.mubr.bf16.mxu1 %v3833_v7 }
 0x6cf   : > { %v10862_v28 = vpop.f32.mrb[161].mxu0 }
 0x6d0   : > { %v10863_v42 = vadd.f32 %v10862_v28, %v10861_v33  ;;  %v10864_v63 = vpop.f32.mrb[162].mxu0  ;;  %v14054_v28 = vld [vmem:[#allocation2 + $0x3a0] ss:$8 sps:$4 sm:$0xff]  }
 0x6d1   : > { %v10865_v13 = vpop.f32.mrb[163].mxu0 }
 0x6d2   : > { %v10866_v9 = vadd.f32 %v10865_v13, %v10864_v63 }
 0x6d3   : > { %5190 = vmatmul.mubr.bf16.gmra.mrb[12].mxu0 %v14044_v55 }
 0x6d4   : > { %5197 = vmatprep.mubr.bf16.mxu0 %v14051_v30  ;;  %v3834_v19 = vpack.c.bf16 %v10866_v9, %v10863_v42  ;;  %v14061_v30 = vld [vmem:[#allocation2 + $0x3b4] ss:$8 sps:$4 sm:$0xff]  }
 0x6d6   : > { %v10867_v27 = vpop.f32.mrb[164].mxu0  ;;  %12439 = vmatmul.mubr.bf16.gmra.mrb[116].mxu1 %v3834_v19 }
 0x6d7   : > { %v10868_v6 = vpop.f32.mrb[165].mxu0 }
 0x6d8   : > { %v10869_v53 = vadd.f32 %v10868_v6, %v10867_v27  ;;  %v10870_v37 = vpop.f32.mrb[166].mxu0  ;;  %v17616_v27 = vpack.c.bf16 %v16114_v45, %v16111_v46  ;;  %v17618_v45 = vpack.c.bf16 %v16134_v57, %v16131_v58  ;;  %v17619_v58 = vpack.c.bf16 %v16140_v11, %v16138_v32  ;;  %v14085_v32 = vld [vmem:[#allocation19 + $0xa8] sm:$0xff]  }
 0x6d9   : > { %v10871_v26 = vpop.f32.mrb[167].mxu0 }
 0x6da   : > { %v10872_v1 = vadd.f32 %v10871_v26, %v10870_v37 }
 0x6db   : > { %5198 = vmatmul.mubr.bf16.gmra.mrb[16].mxu0 %v14049_v2  ;;  %v14059_v2 = vld [vmem:[#allocation2 + $0x3b0] ss:$8 sps:$4 sm:$0xff]  }
 0x6dc   : > { %5205 = vmatprep.mubr.bf16.mxu0 %v14056_v3  ;;  %v3835_v36 = vpack.c.bf16 %v10872_v1, %v10869_v53  ;;  %v14064_v53 = vld [vmem:[#allocation2 + $0x3c4] ss:$8 sps:$4 sm:$0xff]  }
 0x6de   : > { %v10873_v7 = vpop.f32.mrb[168].mxu0  ;;  %12442 = vmatprep.mubr.bf16.mxu1 %v3835_v36  ;;  %v14075_v36 = vld [vmem:[#allocation19 + $0x88] sm:$0xff]  }
 0x6df   : > { %v10874_v33 = vpop.f32.mrb[169].mxu0 }
 0x6e0   : > { %v10875_v63 = vadd.f32 %v10874_v33, %v10873_v7  ;;  %v10876_v55 = vpop.f32.mrb[170].mxu0  ;;  %v17617_v33 = vpack.c.bf16 %v16124_v54, %v16121_v49  ;;  %v14080_v54 = vld [vmem:[#allocation19 + $0x98] sm:$0xff]  }
 0x6e1   : > { %v10877_v42 = vpop.f32.mrb[171].mxu0 }
 0x6e2   : > { %v10878_v13 = vadd.f32 %v10877_v42, %v10876_v55  ;;  %v14067_v55 = vld [vmem:[#allocation2 + $0x3d4] ss:$8 sps:$4 sm:$0xff]  }
 0x6e3   : > { %5206 = vmatmul.mubr.bf16.gmra.mrb[20].mxu0 %v14054_v28  ;;  %v14062_v28 = vld [vmem:[#allocation2 + $0x3c0] ss:$8 sps:$4 sm:$0xff]  }
 0x6e4   : > { %v3836_v9 = vpack.c.bf16 %v10878_v13, %v10875_v63  ;;  %5213 = vmatprep.mubr.bf16.mxu0 %v14061_v30  ;;  %v14079_v13 = vld [vmem:[#allocation19 + $0x90] sm:$0xff]  }
 0x6e6   : > { %12443 = vmatmul.mubr.bf16.gmra.mrb[120].mxu1 %v3836_v9  ;;  %v10943_v19 = vpop.f32.mrb[172].mxu0 }
 0x6e7   : > { %12462 = vmatprep.mubr.bf16.mxu1 %v17616_v27  ;;  %v10944_v6 = vpop.f32.mrb[173].mxu0  ;;  %v14065_v27 = vld [vmem:[#allocation2 + $0x3d0] ss:$8 sps:$4 sm:$0xff]  }
 0x6e8   : > { %v16242_v37 = vadd.f32 %v10944_v6, %v10943_v19  ;;  %v10946_v3 = vpop.f32.mrb[174].mxu0  ;;  %v14070_v6 = vld [vmem:[#allocation2 + $0x3e4] ss:$8 sps:$4 sm:$0xff]  }
 0x6e9   : > { %v10947_v26 = vpop.f32.mrb[175].mxu0 }
 0x6ea   : > { %v16244_v1 = vadd.f32 %v10947_v26, %v10946_v3  ;;  %v14084_v26 = vld [vmem:[#allocation19 + $0xa0] sm:$0xff]  }
 0x6eb   : > { %5214 = vmatmul.mubr.bf16.gmra.mrb[24].mxu0 %v14059_v2 }
 0x6ec   : > { %5221 = vmatprep.mubr.bf16.mxu0 %v14064_v53  ;;  %v4626_v7 = vpack.c.bf16 %v16244_v1, %v16242_v37  ;;  %v17633_v1 = vld [vmem:[#allocation59_spill] sm:$0xff] }
 0x6ee   : > { %12463 = vmatmul.mubr.bf16.vlgmr.msra.gmra.mrb[92].mxu1 %v17617_v33  ;;  %v10949_v46 = vpop.f32.mrb[176].mxu0 }
 0x6ef   : > { %12466 = vmatprep.mubr.bf16.mxu1 %v17618_v45  ;;  %v10950_v63 = vpop.f32.mrb[177].mxu0  ;;  %12495 = vmatpush3.bf16.msra.mxu1 %v16192_v23  ;;  %v17620_v23 = vpack.c.bf16 %v16146_v40, %v16144_v38  ;;  %v17621_v38 = vpack.c.bf16 %v16152_v24, %v16150_v44  ;;  %v14068_v45 = vld [vmem:[#allocation2 + $0x3e0] ss:$8 sps:$4 sm:$0xff]   ;;  %v14090_v44 = vld [vmem:[#allocation19 + $0xb8] sm:$0xff]  }
 0x6f0   : > { %v16255_v30 = vadd.f32 %v10950_v63, %v10949_v46  ;;  %v10952_v42 = vpop.f32.mrb[178].mxu0  ;;  %12496 = vmatprep.subr.bf16.mxu1 %v14075_v36  ;;  %v17622_v46 = vpack.c.bf16 %v16161_v4, %v16159_v0  ;;  %v14073_v63 = vld [vmem:[#allocation2 + $0x3f4] ss:$8 sps:$4 sm:$0xff]   ;;  %v17623_v0 = vpack.c.bf16 %v16167_v10, %v16165_v8  ;;  %v17625_v10 = vpack.c.bf16 %v16180_v29, %v16178_v62 }
 0x6f1   : > { %v10953_v9 = vpop.f32.mrb[179].mxu0  ;;  %v17627_v29 = vpack.c.bf16 %v16194_v21, %v16190_v25  ;;  %v17629_v25 = vpack.c.bf16 %v16211_v22, %v16208_v5  ;;  %v17631_v5 = vpack.c.bf16 %v16228_v12, %v16225_v60  ;;  %v17632_v60 = vld [vmem:[#allocation50_spill] sm:$0xff] }
 0x6f2   : > { %v16257_v19 = vadd.f32 %v10953_v9, %v10952_v42  ;;  %v14095_v12 = vld [vmem:[#allocation19 + $0xc8] sm:$0xff]  }
 0x6f3   : > { %5222 = vmatmul.mubr.bf16.gmra.mrb[28].mxu0 %v14062_v28  ;;  %12497 = vmatpush3.bf16.msra.mxu1 %v14075_v36 }
 0x6f4   : > { %5229 = vmatprep.mubr.bf16.mxu0 %v14067_v55  ;;  %v4627_v49 = vpack.c.bf16 %v16257_v19, %v16255_v30  ;;  %12498 = vmatprep.subr.bf16.mxu1 %v14079_v13 }
 0x6f6   : > { %12467 = vmatmul.mubr.bf16.gmra.mrb[96].mxu1 %v17619_v58  ;;  %v10955_v57 = vpop.f32.mrb[180].mxu0  ;;  %v17624_v58 = vpack.c.bf16 %v16173_v20, %v16171_v17  ;;  %v14076_v20 = vld [vmem:[#allocation2 + $0x500] ss:$8 sps:$4 sm:$0xff]  }
 0x6f7   : > { %12470 = vmatprep.mubr.bf16.mxu1 %v17620_v23  ;;  %v10956_v2 = vpop.f32.mrb[181].mxu0  ;;  %12499 = vmatpush3.bf16.msra.mxu1 %v14079_v13  ;;  %v14089_v13 = vld [vmem:[#allocation19 + $0xb0] sm:$0xff]  }
 0x6f8   : > { %v16267_v53 = vadd.f32 %v10956_v2, %v10955_v57  ;;  %v10958_v3 = vpop.f32.mrb[182].mxu0  ;;  %12500 = vmatprep.subr.bf16.mxu1 %v14080_v54  ;;  %v14071_v57 = vld [vmem:[#allocation2 + $0x3f0] ss:$8 sps:$4 sm:$0xff]  }
 0x6f9   : > { %v10959_v36 = vpop.f32.mrb[183].mxu0 }
 0x6fa   : > { %v16269_v33 = vadd.f32 %v10959_v36, %v10958_v3  ;;  %v16293_v3 = vld [vmem:[#allocation19 + $0xc0] sm:$0xff]  }
 0x6fb   : > { %5230 = vmatmul.mubr.bf16.gmra.mrb[32].mxu0 %v14065_v27  ;;  %12501 = vmatpush3.bf16.msra.mxu1 %v14080_v54  ;;  %v14078_v27 = vld [vmem:[#allocation2 + $0x504] ss:$8 sps:$4 sm:$0xff]  }
 0x6fc   : > { %5237 = vmatprep.mubr.bf16.mxu0 %v14070_v6  ;;  %12502 = vmatprep.subr.bf16.mxu1 %v14084_v26  ;;  %v4628_v11 = vpack.c.bf16 %v16269_v33, %v16267_v53 }
 0x6fe   : > { %12471 = vmatmul.mubr.bf16.gmra.mrb[100].mxu1 %v17621_v38  ;;  %v10961_v40 = vpop.f32.mrb[184].mxu0 }
 0x6ff   : > { %12474 = vmatprep.mubr.bf16.mxu1 %v17622_v46  ;;  %v10962_v28 = vpop.f32.mrb[185].mxu0  ;;  %12503 = vmatpush3.bf16.msra.mxu1 %v14084_v26 }
 0x700   : > { %v16279_v55 = vadd.f32 %v10962_v28, %v10961_v40  ;;  %v10964_v42 = vpop.f32.mrb[186].mxu0  ;;  %12504 = vmatprep.subr.bf16.mxu1 %v14085_v32  ;;  %v14083_v40 = vld [vmem:[#allocation2 + $0x514] ss:$8 sps:$4 sm:$0xff]  }
 0x701   : > { %v10965_v9 = vpop.f32.mrb[187].mxu0 }
 0x702   : > { %v16281_v54 = vadd.f32 %v10965_v9, %v10964_v42  ;;  %v17628_v42 = vpack.c.bf16 %v16203_v14, %v16198_v56  ;;  %v14088_v9 = vld [vmem:[#allocation2 + $0x524] ss:$8 sps:$4 sm:$0xff]   ;;  %v14086_v14 = vld [vmem:[#allocation2 + $0x520] ss:$8 sps:$4 sm:$0xff]  }
 0x703   : > { %5238 = vmatmul.mubr.bf16.gmra.mrb[36].mxu0 %v14068_v45  ;;  %12505 = vmatpush3.bf16.msra.mxu1 %v14085_v32  ;;  %v17626_v32 = vpack.c.bf16 %v16186_v52, %v16184_v16  ;;  %v14081_v52 = vld [vmem:[#allocation2 + $0x510] ss:$8 sps:$4 sm:$0xff]  }
 0x704   : > { %5245 = vmatprep.mubr.bf16.mxu0 %v14073_v63  ;;  %12506 = vmatprep.subr.bf16.mxu1 %v14089_v13  ;;  %v4629_v24 = vpack.c.bf16 %v16281_v54, %v16279_v55  ;;  %v14105_v55 = vld [vmem:[#allocation19 + $0xe8] sm:$0xff]  }
 0x706   : > { %12475 = vmatmul.mubr.bf16.gmra.mrb[104].mxu1 %v17623_v0  ;;  %v10967_v4 = vpop.f32.mrb[188].mxu0 }
 0x707   : > { %12478 = vmatprep.mubr.bf16.mxu1 %v17624_v58  ;;  %v10968_v23 = vpop.f32.mrb[189].mxu0  ;;  %12507 = vmatpush3.bf16.msra.mxu1 %v14089_v13 }
 0x708   : > { %v16291_v2 = vadd.f32 %v10968_v23, %v10967_v4  ;;  %v10970_v6 = vpop.f32.mrb[190].mxu0  ;;  %12508 = vmatprep.subr.bf16.mxu1 %v14090_v44 }
 0x709   : > { %v10971_v26 = vpop.f32.mrb[191].mxu0 }
 0x70a   : > { %v16295_v36 = vadd.f32 %v10971_v26, %v10970_v6 }
 0x70b   : > { %5246 = vmatmul.mubr.bf16.gmra.mrb[40].mxu0 %v14071_v57  ;;  %12509 = vmatpush3.bf16.msra.mxu1 %v14090_v44  ;;  %v17630_v57 = vpack.c.bf16 %v16219_v59, %v16216_v50  ;;  %v14091_v59 = vld [vmem:[#allocation2 + $0x530] ss:$8 sps:$4 sm:$0xff]  }
 0x70c   : > { %6381 = vmatprep.mubr.bf16.mxu0 %v14078_v27  ;;  %12542 = vmatprep.subr.bf16.mxu1 %v16293_v3  ;;  %v4630_v8 = vpack.c.bf16 %v16295_v36, %v16291_v2  ;;  %v14093_v27 = vld [vmem:[#allocation2 + $0x534] ss:$8 sps:$4 sm:$0xff]   ;;  %v14106_v2 = vld [vmem:[#allocation2 + $0x560] ss:$8 sps:$4 sm:$0xff]  }
 0x70e   : > { %12479 = vmatmul.mubr.bf16.gmra.mrb[108].mxu1 %v17625_v10  ;;  %v10973_v17 = vpop.f32.mrb[192].mxu0 }
 0x70f   : > { %12482 = vmatprep.mubr.bf16.mxu1 %v17626_v32  ;;  %v10974_v38 = vpop.f32.mrb[193].mxu0  ;;  %v14098_v32 = vld [vmem:[#allocation2 + $0x544] ss:$8 sps:$4 sm:$0xff]  }
 0x710   : > { %v16306_v46 = vadd.f32 %v10974_v38, %v10973_v17  ;;  %v10976_v45 = vpop.f32.mrb[194].mxu0 }
 0x711   : > { %v10977_v28 = vpop.f32.mrb[195].mxu0 }
 0x712   : > { %v16308_v63 = vadd.f32 %v10977_v28, %v10976_v45 }
 0x713   : > { %6382 = vmatmul.mubr.bf16.vlgmr.msra.gmra.mrb[44].mxu0 %v14076_v20 }
 0x714   : > { %11472 = vmatpush3.bf16.msra.mxu0 %v15978_v34  ;;  %6389 = vmatprep.mubr.bf16.mxu0 %v14083_v40  ;;  %v4631_v62 = vpack.c.bf16 %v16308_v63, %v16306_v46  ;;  %v14110_v46 = vld [vmem:[#allocation19 + $0xf8] sm:$0xff]  }
 0x715   : > { %11473 = vmatprep.subr.bf16.mxu0 %v16018_v31 }
 0x716   : > { %12483 = vmatmul.mubr.bf16.gmra.mrb[112].mxu1 %v17627_v29  ;;  %v10979_v16 = vpop.f32.mrb[196].mxu0  ;;  %v14096_v29 = vld [vmem:[#allocation2 + $0x540] ss:$8 sps:$4 sm:$0xff]  }
 0x717   : > { %12486 = vmatprep.mubr.bf16.mxu1 %v17628_v42  ;;  %v10980_v13 = vpop.f32.mrb[197].mxu0  ;;  %v14099_v42 = vld [vmem:[#allocation19 + $0xd0] sm:$0xff]  }
 0x718   : > { %11474 = vmatpush3.bf16.msra.mxu0 %v15982_v15  ;;  %v16321_v44 = vadd.f32 %v10980_v13, %v10979_v16  ;;  %v10982_v0 = vpop.f32.mrb[198].mxu0  ;;  %v14103_v13 = vld [vmem:[#allocation2 + $0x554] ss:$8 sps:$4 sm:$0xff]  }
 0x719   : > { %11475 = vmatprep.subr.bf16.mxu0 %v16026_v35  ;;  %v10983_v4 = vpop.f32.mrb[199].mxu0 }
 0x71a   : > { %v16324_v58 = vadd.f32 %v10983_v4, %v10982_v0  ;;  %v17635_v4 = vld [vmem:[#allocation52_spill] sm:$0xff] }
 0x71b   : > { %6390 = vmatmul.mubr.bf16.gmra.mrb[48].mxu0 %v14081_v52  ;;  %v17634_v52 = vld [vmem:[#allocation51_spill] sm:$0xff] }
 0x71c   : > { %11476 = vmatpush3.bf16.msra.mxu0 %v15986_v18  ;;  %6397 = vmatprep.mubr.bf16.mxu0 %v14088_v9  ;;  %v4632_v21 = vpack.c.bf16 %v16324_v58, %v16321_v44  ;;  %v14111_v44 = vld [vmem:[#allocation2 + $0x570] ss:$8 sps:$4 sm:$0xff]  }
 0x71d   : > { %11477 = vmatprep.subr.bf16.mxu0 %v16034_v39 }
 0x71e   : > { %12487 = vmatmul.mubr.bf16.gmra.mrb[116].mxu1 %v17629_v25  ;;  %v10985_v56 = vpop.f32.mrb[200].mxu0  ;;  %v14104_v25 = vld [vmem:[#allocation19 + $0xe0] sm:$0xff]  }
 0x71f   : > { %12490 = vmatprep.mubr.bf16.mxu1 %v17630_v57  ;;  %v10986_v23 = vpop.f32.mrb[201].mxu0 }
 0x720   : > { %11478 = vmatpush3.bf16.msra.mxu0 %v15990_v41  ;;  %v16337_v6 = vadd.f32 %v10986_v23, %v10985_v56  ;;  %v10988_v26 = vpop.f32.mrb[202].mxu0  ;;  %v14108_v56 = vld [vmem:[#allocation2 + $0x564] ss:$8 sps:$4 sm:$0xff]  }
 0x721   : > { %11479 = vmatprep.subr.bf16.mxu0 %v16042_v43  ;;  %v10989_v10 = vpop.f32.mrb[203].mxu0 }
 0x722   : > { %v16340_v17 = vadd.f32 %v10989_v10, %v10988_v26  ;;  %v14113_v26 = vld [vmem:[#allocation2 + $0x574] ss:$8 sps:$4 sm:$0xff]  }
 0x723   : > { %6398 = vmatmul.mubr.bf16.gmra.mrb[52].mxu0 %v14086_v14 }
 0x724   : > { %11480 = vmatpush3.bf16.msra.mxu0 %v15994_v48  ;;  %6405 = vmatprep.mubr.bf16.mxu0 %v14093_v27  ;;  %v4633_v22 = vpack.c.bf16 %v16340_v17, %v16337_v6 }
 0x725   : > { %11481 = vmatprep.subr.bf16.mxu0 %v16050_v47 }
 0x726   : > { %12491 = vmatmul.mubr.bf16.gmra.mrb[120].mxu1 %v17631_v5  ;;  %v10991_v50 = vpop.f32.mrb[204].mxu0 }
 0x727   : > { %12510 = vmatprep.mubr.bf16.mxu1 %v4626_v7  ;;  %v10992_v20 = vpop.f32.mrb[205].mxu0 }
 0x728   : > { %11482 = vmatpush3.bf16.msra.mxu0 %v15998_v61  ;;  %v16353_v38 = vadd.f32 %v10992_v20, %v10991_v50  ;;  %v10994_v40 = vpop.f32.mrb[206].mxu0 }
 0x729   : > { %11483 = vmatprep.subr.bf16.mxu0 %v16058_v51  ;;  %v10995_v45 = vpop.f32.mrb[207].mxu0 }
 0x72a   : > { %v16356_v28 = vadd.f32 %v10995_v45, %v10994_v40 }
 0x72b   : > { %6406 = vmatmul.mubr.bf16.gmra.mrb[56].mxu0 %v14091_v59 }
 0x72c   : > { %11484 = vmatpush3.bf16.msra.mxu0 %v17632_v60  ;;  %6413 = vmatprep.mubr.bf16.mxu0 %v14098_v32  ;;  %v4634_v37 = vpack.c.bf16 %v16356_v28, %v16353_v38  ;;  %v14119_v38 = vld [vmem:[#allocation2 + $0x594] ss:$8 sps:$4 sm:$0xff]  }
 0x72d   : > { %11485 = vmatprep.subr.bf16.mxu0 %v17633_v1 }
 0x72e   : > { %12511 = vmatmul.mubr.bf16.vlgmr.msra.gmra.mrb[92].mxu1 %v4627_v49  ;;  %v10997_v7 = vpop.f32.mrb[208].mxu0  ;;  %v14100_v49 = vld [vmem:[#allocation19 + $0xd8] sm:$0xff]  }
 0x72f   : > { %12543 = vmatpush3.bf16.msra.mxu1 %v16293_v3  ;;  %12514 = vmatprep.mubr.bf16.mxu1 %v4628_v11  ;;  %v10998_v16 = vpop.f32.mrb[209].mxu0  ;;  %v14101_v11 = vld [vmem:[#allocation2 + $0x550] ss:$8 sps:$4 sm:$0xff]  }
 0x730   : > { %11486 = vmatpush3.bf16.msra.mxu0 %v17634_v52  ;;  %12544 = vmatprep.subr.bf16.mxu1 %v14095_v12  ;;  %v16370_v9 = vadd.f32 %v10998_v16, %v10997_v7  ;;  %v11000_v0 = vpop.f32.mrb[210].mxu0 }
 0x731   : > { %11607 = vmatprep.subr.bf16.mxu0 %v17635_v4  ;;  %v11001_v30 = vpop.f32.mrb[211].mxu0 }
 0x732   : > { %v11002_v19 = vadd.f32 %v11001_v30, %v11000_v0  ;;  %v14122_v0 = vld [vmem:[#allocation2 + $0x5a4] ss:$8 sps:$4 sm:$0xff]  }
 0x733   : > { %12545 = vmatpush3.bf16.msra.mxu1 %v14095_v12  ;;  %6414 = vmatmul.mubr.bf16.gmra.mrb[60].mxu0 %v14096_v29 }
 0x734   : > { %12546 = vmatprep.subr.bf16.mxu1 %v14099_v42  ;;  %6421 = vmatprep.mubr.bf16.mxu0 %v14103_v13  ;;  %v4635_v53 = vpack.c.bf16 %v11002_v19, %v16370_v9  ;;  %v14117_v13 = vld [vmem:[#allocation2 + $0x590] ss:$8 sps:$4 sm:$0xff]  }
 0x736   : > { %12515 = vmatmul.mubr.bf16.gmra.mrb[96].mxu1 %v4629_v24  ;;  %v11003_v33 = vpop.f32.mrb[212].mxu0 }
 0x737   : > { %12547 = vmatpush3.bf16.msra.mxu1 %v14099_v42  ;;  %12518 = vmatprep.mubr.bf16.mxu1 %v4630_v8  ;;  %v11004_v3 = vpop.f32.mrb[213].mxu0  ;;  %v14109_v8 = vld [vmem:[#allocation19 + $0xf0] sm:$0xff]  }
 0x738   : > { %12548 = vmatprep.subr.bf16.mxu1 %v14100_v49  ;;  %v11005_v14 = vadd.f32 %v11004_v3, %v11003_v33  ;;  %v11006_v57 = vpop.f32.mrb[214].mxu0  ;;  %v14120_v3 = vld [vmem:[#allocation2 + $0x5a0] ss:$8 sps:$4 sm:$0xff]  }
 0x739   : > { %v11007_v23 = vpop.f32.mrb[215].mxu0 }
 0x73a   : > { %v11008_v27 = vadd.f32 %v11007_v23, %v11006_v57  ;;  %v14125_v57 = vld [vmem:[#allocation2 + $0x5b4] ss:$8 sps:$4 sm:$0xff]  }
 0x73b   : > { %12549 = vmatpush3.bf16.msra.mxu1 %v14100_v49  ;;  %6422 = vmatmul.mubr.bf16.gmra.mrb[64].mxu0 %v14101_v11 }
 0x73c   : > { %12550 = vmatprep.subr.bf16.mxu1 %v14104_v25  ;;  %6429 = vmatprep.mubr.bf16.mxu0 %v14108_v56  ;;  %v4636_v54 = vpack.c.bf16 %v11008_v27, %v11005_v14 }
 0x73e   : > { %12519 = vmatmul.mubr.bf16.gmra.mrb[100].mxu1 %v4631_v62  ;;  %v11009_v24 = vpop.f32.mrb[216].mxu0 }
 0x73f   : > { %12551 = vmatpush3.bf16.msra.mxu1 %v14104_v25  ;;  %12522 = vmatprep.mubr.bf16.mxu1 %v4632_v21  ;;  %v11010_v36 = vpop.f32.mrb[217].mxu0  ;;  %v14116_v21 = vld [vmem:[#allocation2 + $0x584] ss:$8 sps:$4 sm:$0xff]  }
 0x740   : > { %12552 = vmatprep.subr.bf16.mxu1 %v14105_v55  ;;  %v11011_v10 = vadd.f32 %v11010_v36, %v11009_v24  ;;  %v11012_v5 = vpop.f32.mrb[218].mxu0  ;;  %v14123_v24 = vld [vmem:[#allocation2 + $0x5b0] ss:$8 sps:$4 sm:$0xff]  }
 0x741   : > { %v11013_v50 = vpop.f32.mrb[219].mxu0 }
 0x742   : > { %v11014_v59 = vadd.f32 %v11013_v50, %v11012_v5 }
 0x743   : > { %12553 = vmatpush3.bf16.msra.mxu1 %v14105_v55  ;;  %6430 = vmatmul.mubr.bf16.gmra.mrb[68].mxu0 %v14106_v2 }
 0x744   : > { %12554 = vmatprep.subr.bf16.mxu1 %v14109_v8  ;;  %6437 = vmatprep.mubr.bf16.mxu0 %v14113_v26  ;;  %v4637_v63 = vpack.c.bf16 %v11014_v59, %v11011_v10  ;;  %v14128_v26 = vld [vmem:[#allocation2 + $0x5c4] ss:$8 sps:$4 sm:$0xff]  }
 0x746   : > { %12523 = vmatmul.mubr.bf16.gmra.mrb[104].mxu1 %v4633_v22  ;;  %v11015_v62 = vpop.f32.mrb[220].mxu0  ;;  %v14114_v22 = vld [vmem:[#allocation2 + $0x580] ss:$8 sps:$4 sm:$0xff]  }
 0x747   : > { %12555 = vmatpush3.bf16.msra.mxu1 %v14109_v8  ;;  %12526 = vmatprep.mubr.bf16.mxu1 %v4634_v37  ;;  %v11016_v58 = vpop.f32.mrb[221].mxu0 }
 0x748   : > { %12556 = vmatprep.subr.bf16.mxu1 %v14110_v46  ;;  %v11017_v20 = vadd.f32 %v11016_v58, %v11015_v62  ;;  %v11018_v32 = vpop.f32.mrb[222].mxu0  ;;  %v14131_v58 = vld [vmem:[#allocation2 + $0x5d4] ss:$8 sps:$4 sm:$0xff]  }
 0x749   : > { %v11019_v40 = vpop.f32.mrb[223].mxu0 }
 0x74a   : > { %v11020_v45 = vadd.f32 %v11019_v40, %v11018_v32 }
 0x74b   : > { %12557 = vmatpush3.bf16.msra.mxu1 %v14110_v46  ;;  %6438 = vmatmul.mubr.bf16.gmra.mrb[72].mxu0 %v14111_v44 }
 0x74c   : > { %11199 = vmatprep.subr.bf16.mxu1 %v17635_v4  ;;  %6445 = vmatprep.mubr.bf16.mxu0 %v14116_v21  ;;  %v4638_v6 = vpack.c.bf16 %v11020_v45, %v11017_v20  ;;  %v14129_v45 = vld [vmem:[#allocation2 + $0x5d0] ss:$8 sps:$4 sm:$0xff]  }
 0x74e   : > { %12527 = vmatmul.mubr.bf16.gmra.mrb[108].mxu1 %v4635_v53  ;;  %v11021_v17 = vpop.f32.mrb[224].mxu0 }
 0x74f   : > { %12530 = vmatprep.mubr.bf16.mxu1 %v4636_v54  ;;  %v11022_v12 = vpop.f32.mrb[225].mxu0 }
 0x750   : > { %v11023_v28 = vadd.f32 %v11022_v12, %v11021_v17  ;;  %v11024_v37 = vpop.f32.mrb[226].mxu0  ;;  %v14134_v17 = vld [vmem:[#allocation2 + $0x5e4] ss:$8 sps:$4 sm:$0xff]  }
 0x751   : > { %v11025_v7 = vpop.f32.mrb[227].mxu0 }
 0x752   : > { %v11026_v29 = vadd.f32 %v11025_v7, %v11024_v37 }
 0x753   : > { %6446 = vmatmul.mubr.bf16.gmra.mrb[76].mxu0 %v14114_v22 }
 0x754   : > { %6453 = vmatprep.mubr.bf16.mxu0 %v14119_v38  ;;  %v4639_v16 = vpack.c.bf16 %v11026_v29, %v11023_v28  ;;  %v14132_v29 = vld [vmem:[#allocation2 + $0x5e0] ss:$8 sps:$4 sm:$0xff]  }
 0x756   : > { %12531 = vmatmul.mubr.bf16.gmra.mrb[112].mxu1 %v4637_v63  ;;  %v11027_v42 = vpop.f32.mrb[228].mxu0  ;;  %v14126_v63 = vld [vmem:[#allocation2 + $0x5c0] ss:$8 sps:$4 sm:$0xff]  }
 0x757   : > { %v11028_v9 = vpop.f32.mrb[229].mxu0  ;;  %12534 = vmatprep.mubr.bf16.mxu1 %v4638_v6 }
 0x758   : > { %v11029_v30 = vadd.f32 %v11028_v9, %v11027_v42  ;;  %v11030_v19 = vpop.f32.mrb[230].mxu0  ;;  %v14137_v42 = vld [vmem:[#allocation2 + $0x5f4] ss:$8 sps:$4 sm:$0xff]  }
 0x759   : > { %v11031_v49 = vpop.f32.mrb[231].mxu0 }
 0x75a   : > { %v11032_v53 = vadd.f32 %v11031_v49, %v11030_v19 }
 0x75b   : > { %6454 = vmatmul.mubr.bf16.gmra.mrb[80].mxu0 %v14117_v13 }
 0x75c   : > { %6461 = vmatprep.mubr.bf16.mxu0 %v14122_v0  ;;  %v4640_v33 = vpack.c.bf16 %v11032_v53, %v11029_v30  ;;  %v14135_v53 = vld [vmem:[#allocation2 + $0x5f0] ss:$8 sps:$4 sm:$0xff]  }
 0x75e   : > { %v11033_v11 = vpop.f32.mrb[232].mxu0  ;;  %12535 = vmatmul.mubr.bf16.gmra.mrb[116].mxu1 %v4639_v16 }
 0x75f   : > { %v11034_v25 = vpop.f32.mrb[233].mxu0  ;;  %12538 = vmatprep.mubr.bf16.mxu1 %v4640_v33 }
 0x760   : > { %v11035_v56 = vadd.f32 %v11034_v25, %v11033_v11  ;;  %v11036_v14 = vpop.f32.mrb[234].mxu0  ;;  %v14140_v11 = vld [vmem:[#allocation2 + $0x604] ss:$8 sps:$4 sm:$0xff]  }
 0x761   : > { %v11037_v23 = vpop.f32.mrb[235].mxu0 }
 0x762   : > { %v11038_v27 = vadd.f32 %v11037_v23, %v11036_v14 }
 0x763   : > { %6462 = vmatmul.mubr.bf16.gmra.mrb[84].mxu0 %v14120_v3 }
 0x764   : > { %6469 = vmatprep.mubr.bf16.mxu0 %v14125_v57  ;;  %v4641_v55 = vpack.c.bf16 %v11038_v27, %v11035_v56  ;;  %v14138_v27 = vld [vmem:[#allocation2 + $0x600] ss:$8 sps:$4 sm:$0xff]  }
 0x766   : > { %v11079_v54 = vpop.f32.mrb[236].mxu0  ;;  %12539 = vmatmul.mubr.bf16.gmra.mrb[120].mxu1 %v4641_v55 }
 0x767   : > { %v11080_v2 = vpop.f32.mrb[237].mxu0 }
 0x768   : > { %v11081_v36 = vadd.f32 %v11080_v2, %v11079_v54  ;;  %v11082_v8 = vpop.f32.mrb[238].mxu0 }
 0x769   : > { %v11083_v10 = vpop.f32.mrb[239].mxu0 }
 0x76a   : > { %v11084_v5 = vadd.f32 %v11083_v10, %v11082_v8 }
 0x76b   : > { %6470 = vmatmul.mubr.bf16.gmra.mrb[88].mxu0 %v14123_v24 }
 0x76c   : > { %6477 = vmatprep.mubr.bf16.mxu0 %v14128_v26  ;;  %v5254_v50 = vpack.c.bf16 %v11084_v5, %v11081_v36 }
 0x76e   : > { %v11085_v59 = vpop.f32.mrb[240].mxu0  ;;  %12558 = vmatprep.mubr.bf16.mxu1 %v5254_v50 }
 0x76f   : > { %v11086_v46 = vpop.f32.mrb[241].mxu0 }
 0x770   : > { %v11087_v62 = vadd.f32 %v11086_v46, %v11085_v59  ;;  %v11088_v44 = vpop.f32.mrb[242].mxu0 }
 0x771   : > { %v11089_v21 = vpop.f32.mrb[243].mxu0 }
 0x772   : > { %v11090_v20 = vadd.f32 %v11089_v21, %v11088_v44 }
 0x773   : > { %6478 = vmatmul.mubr.bf16.gmra.mrb[92].mxu0 %v14126_v63 }
 0x774   : > { %v5255_v32 = vpack.c.bf16 %v11090_v20, %v11087_v62  ;;  %6485 = vmatprep.mubr.bf16.mxu0 %v14131_v58 }
 0x776   : > { %12559 = vmatmul.mubr.bf16.vlgmr.msra.gmra.mrb[92].mxu1 %v5255_v32  ;;  %v11091_v40 = vpop.f32.mrb[244].mxu0 }
 0x777   : > { %11200 = vmatpush3.bf16.msra.mxu1 %v15978_v34  ;;  %v11092_v6 = vpop.f32.mrb[245].mxu0 }
 0x778   : > { %11201 = vmatprep.subr.bf16.mxu1 %v16018_v31  ;;  %v11093_v22 = vadd.f32 %v11092_v6, %v11091_v40  ;;  %v11094_v12 = vpop.f32.mrb[246].mxu0 }
 0x779   : > { %v11095_v38 = vpop.f32.mrb[247].mxu0 }
 0x77a   : > { %v11096_v28 = vadd.f32 %v11095_v38, %v11094_v12 }
 0x77b   : > { %11202 = vmatpush3.bf16.msra.mxu1 %v15982_v15  ;;  %6486 = vmatmul.mubr.bf16.gmra.mrb[96].mxu0 %v14129_v45 }
 0x77c   : > { %11203 = vmatprep.subr.bf16.mxu1 %v16026_v35  ;;  %6493 = vmatprep.mubr.bf16.mxu0 %v14134_v17  ;;  %v5256_v37 = vpack.c.bf16 %v11096_v28, %v11093_v22 }
 0x77e   : > { %v11097_v7 = vpop.f32.mrb[248].mxu0  ;;  %12562 = vmatprep.mubr.bf16.mxu1 %v5256_v37 }
 0x77f   : > { %11204 = vmatpush3.bf16.msra.mxu1 %v15986_v18  ;;  %v11098_v16 = vpop.f32.mrb[249].mxu0 }
 0x780   : > { %11205 = vmatprep.subr.bf16.mxu1 %v16034_v39  ;;  %v11099_v13 = vadd.f32 %v11098_v16, %v11097_v7  ;;  %v11100_v9 = vpop.f32.mrb[250].mxu0  ;;  %v14172_v16 = vld [vmem:[#allocation2 + $0x614] ss:$8 sps:$4 sm:$0xff]  }
 0x781   : > { %v11101_v0 = vpop.f32.mrb[251].mxu0 }
 0x782   : > { %v11102_v30 = vadd.f32 %v11101_v0, %v11100_v9 }
 0x783   : > { %11206 = vmatpush3.bf16.msra.mxu1 %v15990_v41  ;;  %6494 = vmatmul.mubr.bf16.gmra.mrb[100].mxu0 %v14132_v29  ;;  %v14170_v29 = vld [vmem:[#allocation2 + $0x610] ss:$8 sps:$4 sm:$0xff]  }
 0x784   : > { %11207 = vmatprep.subr.bf16.mxu1 %v16042_v43  ;;  %6501 = vmatprep.mubr.bf16.mxu0 %v14137_v42  ;;  %v5257_v19 = vpack.c.bf16 %v11102_v30, %v11099_v13 }
 0x786   : > { %v11103_v49 = vpop.f32.mrb[252].mxu0  ;;  %12563 = vmatmul.mubr.bf16.gmra.mrb[96].mxu1 %v5257_v19 }
 0x787   : > { %11208 = vmatpush3.bf16.msra.mxu1 %v15994_v48  ;;  %v11104_v33 = vpop.f32.mrb[253].mxu0 }
 0x788   : > { %11209 = vmatprep.subr.bf16.mxu1 %v16050_v47  ;;  %v11105_v3 = vadd.f32 %v11104_v33, %v11103_v49  ;;  %v11106_v25 = vpop.f32.mrb[254].mxu0  ;;  %v14178_v33 = vld [vmem:[#allocation2 + $0x624] ss:$8 sps:$4 sm:$0xff]  }
 0x789   : > { %v11107_v56 = vpop.f32.mrb[255].mxu0 }
 0x78a   : > { %v11108_v14 = vadd.f32 %v11107_v56, %v11106_v25 }
 0x78b   : > { %11210 = vmatpush3.bf16.msra.mxu1 %v15998_v61  ;;  %6502 = vmatmul.mubr.bf16.gmra.mrb[104].mxu0 %v14135_v53  ;;  %v14176_v53 = vld [vmem:[#allocation2 + $0x620] ss:$8 sps:$4 sm:$0xff]  }
 0x78c   : > { %11211 = vmatprep.subr.bf16.mxu1 %v16058_v51  ;;  %7009 = vmatprep.mubr.bf16.mxu0 %v14140_v11  ;;  %v5258_v57 = vpack.c.bf16 %v11108_v14, %v11105_v3 }
 0x78e   : > { %v11109_v23 = vpop.f32.mrb[0].mxu0  ;;  %12566 = vmatprep.mubr.bf16.mxu1 %v5258_v57 }
 0x78f   : > { %11212 = vmatpush3.bf16.msra.mxu1 %v17632_v60  ;;  %v11110_v55 = vpop.f32.mrb[1].mxu0 }
 0x790   : > { %11213 = vmatprep.subr.bf16.mxu1 %v17633_v1  ;;  %v11111_v54 = vadd.f32 %v11110_v55, %v11109_v23  ;;  %v11112_v24 = vpop.f32.mrb[2].mxu0  ;;  %v14184_v55 = vld [vmem:[#allocation2 + $0x634] ss:$8 sps:$4 sm:$0xff]  }
 0x791   : > { %v11113_v2 = vpop.f32.mrb[3].mxu0 }
 0x792   : > { %v11114_v36 = vadd.f32 %v11113_v2, %v11112_v24 }
 0x793   : > { %11214 = vmatpush3.bf16.msra.mxu1 %v17634_v52  ;;  %7010 = vmatmul.mubr.bf16.vlgmr.msra.gmra.mrb[108].mxu0 %v14138_v27  ;;  %v14182_v27 = vld [vmem:[#allocation2 + $0x630] ss:$8 sps:$4 sm:$0xff]  }
 0x794   : > { %11608 = vmatpush3.bf16.msra.mxu0 %v15978_v34  ;;  %v5259_v8 = vpack.c.bf16 %v11114_v36, %v11111_v54  ;;  %7017 = vmatprep.mubr.bf16.mxu0 %v14172_v16 }
 0x795   : > { %11609 = vmatprep.subr.bf16.mxu0 %v16018_v31 }
 0x796   : > { %v11115_v26 = vpop.f32.mrb[4].mxu0  ;;  %12567 = vmatmul.mubr.bf16.gmra.mrb[100].mxu1 %v5259_v8 }
 0x797   : > { %v11116_v10 = vpop.f32.mrb[5].mxu0 }
 0x798   : > { %11610 = vmatpush3.bf16.msra.mxu0 %v15982_v15  ;;  %v11117_v5 = vadd.f32 %v11116_v10, %v11115_v26  ;;  %v11118_v50 = vpop.f32.mrb[6].mxu0 }
 0x799   : > { %11611 = vmatprep.subr.bf16.mxu0 %v16026_v35  ;;  %v11119_v59 = vpop.f32.mrb[7].mxu0 }
 0x79a   : > { %v11120_v46 = vadd.f32 %v11119_v59, %v11118_v50  ;;  %v14190_v50 = vld [vmem:[#allocation2 + $0x644] ss:$8 sps:$4 sm:$0xff]  }
 0x79b   : > { %7018 = vmatmul.mubr.bf16.gmra.mrb[112].mxu0 %v14170_v29 }
 0x79c   : > { %11612 = vmatpush3.bf16.msra.mxu0 %v15986_v18  ;;  %v5260_v63 = vpack.c.bf16 %v11120_v46, %v11117_v5  ;;  %7025 = vmatprep.mubr.bf16.mxu0 %v14178_v33  ;;  %v14188_v5 = vld [vmem:[#allocation2 + $0x640] ss:$8 sps:$4 sm:$0xff]  }
 0x79d   : > { %11613 = vmatprep.subr.bf16.mxu0 %v16034_v39 }
 0x79e   : > { %v11121_v62 = vpop.f32.mrb[8].mxu0  ;;  %12570 = vmatprep.mubr.bf16.mxu1 %v5260_v63 }
 0x79f   : > { %v11122_v44 = vpop.f32.mrb[9].mxu0 }
 0x7a0   : > { %11614 = vmatpush3.bf16.msra.mxu0 %v15990_v41  ;;  %v11123_v58 = vadd.f32 %v11122_v44, %v11121_v62  ;;  %v11124_v21 = vpop.f32.mrb[10].mxu0 }
 0x7a1   : > { %11615 = vmatprep.subr.bf16.mxu0 %v16042_v43  ;;  %v11125_v20 = vpop.f32.mrb[11].mxu0 }
 0x7a2   : > { %v11126_v32 = vadd.f32 %v11125_v20, %v11124_v21  ;;  %v14194_v20 = vld [vmem:[#allocation2 + $0x650] ss:$8 sps:$4 sm:$0xff]  }
 0x7a3   : > { %7026 = vmatmul.mubr.bf16.gmra.mrb[116].mxu0 %v14176_v53 }
 0x7a4   : > { %11616 = vmatpush3.bf16.msra.mxu0 %v15994_v48  ;;  %v5261_v40 = vpack.c.bf16 %v11126_v32, %v11123_v58  ;;  %7033 = vmatprep.mubr.bf16.mxu0 %v14184_v55  ;;  %v14196_v32 = vld [vmem:[#allocation2 + $0x654] ss:$8 sps:$4 sm:$0xff]  }
 0x7a5   : > { %11617 = vmatprep.subr.bf16.mxu0 %v16050_v47  ;;  %v14234_v55 = vld [vmem:[#allocation19 + $0x100] sm:$0xff]  }
 0x7a6   : > { %v11127_v45 = vpop.f32.mrb[12].mxu0  ;;  %12571 = vmatmul.mubr.bf16.gmra.mrb[104].mxu1 %v5261_v40  ;;  %12590 = vmatprep.subr.bf16.mxu1 %v14234_v55 }
 0x7a7   : > { %v11128_v6 = vpop.f32.mrb[13].mxu0 }
 0x7a8   : > { %11618 = vmatpush3.bf16.msra.mxu0 %v15998_v61  ;;  %v11129_v17 = vadd.f32 %v11128_v6, %v11127_v45  ;;  %v11130_v22 = vpop.f32.mrb[14].mxu0 }
 0x7a9   : > { %11619 = vmatprep.subr.bf16.mxu0 %v16058_v51  ;;  %v11131_v12 = vpop.f32.mrb[15].mxu0 }
 0x7aa   : > { %v11132_v38 = vadd.f32 %v11131_v12, %v11130_v22 }
 0x7ab   : > { %7034 = vmatmul.mubr.bf16.gmra.mrb[120].mxu0 %v14182_v27 }
 0x7ac   : > { %11620 = vmatpush3.bf16.msra.mxu0 %v17632_v60  ;;  %v5262_v28 = vpack.c.bf16 %v11132_v38, %v11129_v17  ;;  %7041 = vmatprep.mubr.bf16.mxu0 %v14190_v50 }
 0x7ad   : > { %11621 = vmatprep.subr.bf16.mxu0 %v17633_v1 }
 0x7ae   : > { %v11133_v37 = vpop.f32.mrb[16].mxu0  ;;  %12574 = vmatprep.mubr.bf16.mxu1 %v5262_v28  ;;  %v14200_v28 = vld [vmem:[#allocation2 + $0x660] ss:$8 sps:$4 sm:$0xff]  }
 0x7af   : > { %v11134_v7 = vpop.f32.mrb[17].mxu0 }
 0x7b0   : > { %11622 = vmatpush3.bf16.msra.mxu0 %v17634_v52  ;;  %v11135_v42 = vadd.f32 %v11134_v7, %v11133_v37  ;;  %v11136_v13 = vpop.f32.mrb[18].mxu0  ;;  %v14202_v37 = vld [vmem:[#allocation2 + $0x664] ss:$8 sps:$4 sm:$0xff]  }
 0x7b1   : > { %v11137_v9 = vpop.f32.mrb[19].mxu0 }
 0x7b2   : > { %v11138_v0 = vadd.f32 %v11137_v9, %v11136_v13 }
 0x7b3   : > { %7042 = vmatmul.mubr.bf16.gmra.mrb[124].mxu0 %v14188_v5 }
 0x7b4   : > { %v5263_v30 = vpack.c.bf16 %v11138_v0, %v11135_v42  ;;  %7049 = vmatprep.mubr.bf16.mxu0 %v14196_v32 }
 0x7b6   : > { %v11139_v19 = vpop.f32.mrb[20].mxu0  ;;  %12575 = vmatmul.mubr.bf16.gmra.mrb[108].mxu1 %v5263_v30  ;;  %v14206_v30 = vld [vmem:[#allocation2 + $0x670] ss:$8 sps:$4 sm:$0xff]  }
 0x7b7   : > { %v11140_v49 = vpop.f32.mrb[21].mxu0 }
 0x7b8   : > { %v11141_v11 = vadd.f32 %v11140_v49, %v11139_v19  ;;  %v11142_v3 = vpop.f32.mrb[22].mxu0  ;;  %v14208_v19 = vld [vmem:[#allocation2 + $0x674] ss:$8 sps:$4 sm:$0xff]  }
 0x7b9   : > { %v11143_v25 = vpop.f32.mrb[23].mxu0 }
 0x7ba   : > { %v11144_v56 = vadd.f32 %v11143_v25, %v11142_v3  ;;  %v14143_v3 = vld [vmem:[#allocation2 + $0x404] ss:$8 sps:$4 sm:$0xff]  }
 0x7bb   : > { %7050 = vmatmul.mubr.bf16.gmra.mrb[128].mxu0 %v14194_v20  ;;  %v14146_v20 = vld [vmem:[#allocation2 + $0x410] ss:$8 sps:$4 sm:$0xff]  }
 0x7bc   : > { %v5264_v14 = vpack.c.bf16 %v11144_v56, %v11141_v11  ;;  %7057 = vmatprep.mubr.bf16.mxu0 %v14202_v37  ;;  %v14210_v56 = vld [vmem:[#allocation2 + $0x680] ss:$8 sps:$4 sm:$0xff]  }
 0x7be   : > { %v11145_v57 = vpop.f32.mrb[24].mxu0  ;;  %12578 = vmatprep.mubr.bf16.mxu1 %v5264_v14  ;;  %v14212_v14 = vld [vmem:[#allocation2 + $0x684] ss:$8 sps:$4 sm:$0xff]  }
 0x7bf   : > { %v11146_v23 = vpop.f32.mrb[25].mxu0 }
 0x7c0   : > { %v11147_v54 = vadd.f32 %v11146_v23, %v11145_v57  ;;  %v11148_v24 = vpop.f32.mrb[26].mxu0  ;;  %v14215_v57 = vld [vmem:[#allocation2 + $0x694] ss:$8 sps:$4 sm:$0xff]   ;;  %v14141_v23 = vld [vmem:[#allocation2 + $0x400] ss:$8 sps:$4 sm:$0xff]  }
 0x7c1   : > { %v11149_v2 = vpop.f32.mrb[27].mxu0 }
 0x7c2   : > { %v11150_v36 = vadd.f32 %v11149_v2, %v11148_v24 }
 0x7c3   : > { %7058 = vmatmul.mubr.bf16.gmra.mrb[132].mxu0 %v14200_v28 }
 0x7c4   : > { %v5265_v8 = vpack.c.bf16 %v11150_v36, %v11147_v54  ;;  %7065 = vmatprep.mubr.bf16.mxu0 %v14208_v19  ;;  %v14144_v54 = vld [vmem:[#allocation2 + $0x414] ss:$8 sps:$4 sm:$0xff]  }
 0x7c6   : > { %v11151_v26 = vpop.f32.mrb[28].mxu0  ;;  %12579 = vmatmul.mubr.bf16.gmra.mrb[112].mxu1 %v5265_v8  ;;  %v14241_v8 = vld [vmem:[#allocation19 + $0x108] sm:$0xff]  }
 0x7c7   : > { %v11152_v10 = vpop.f32.mrb[29].mxu0 }
 0x7c8   : > { %v11153_v59 = vadd.f32 %v11152_v10, %v11151_v26  ;;  %v11154_v46 = vpop.f32.mrb[30].mxu0  ;;  %v14213_v10 = vld [vmem:[#allocation2 + $0x690] ss:$8 sps:$4 sm:$0xff]  }
 0x7c9   : > { %v11155_v63 = vpop.f32.mrb[31].mxu0 }
 0x7ca   : > { %v11156_v62 = vadd.f32 %v11155_v63, %v11154_v46 }
 0x7cb   : > { %7066 = vmatmul.mubr.bf16.gmra.mrb[136].mxu0 %v14206_v30  ;;  %v14224_v30 = vld [vmem:[#allocation2 + $0x6c4] ss:$8 sps:$4 sm:$0xff]  }
 0x7cc   : > { %v5266_v44 = vpack.c.bf16 %v11156_v62, %v11153_v59  ;;  %7073 = vmatprep.mubr.bf16.mxu0 %v14212_v14  ;;  %v14218_v59 = vld [vmem:[#allocation2 + $0x6a4] ss:$8 sps:$4 sm:$0xff]   ;;  %v14222_v14 = vld [vmem:[#allocation2 + $0x6c0] ss:$8 sps:$4 sm:$0xff]  }
 0x7ce   : > { %v11157_v58 = vpop.f32.mrb[32].mxu0  ;;  %12582 = vmatprep.mubr.bf16.mxu1 %v5266_v44 }
 0x7cf   : > { %v11158_v21 = vpop.f32.mrb[33].mxu0 }
 0x7d0   : > { %v11159_v40 = vadd.f32 %v11158_v21, %v11157_v58  ;;  %v11160_v45 = vpop.f32.mrb[34].mxu0  ;;  %v14248_v58 = vld [vmem:[#allocation19 + $0x110] sm:$0xff]  }
 0x7d1   : > { %v11161_v6 = vpop.f32.mrb[35].mxu0 }
 0x7d2   : > { %v11162_v17 = vadd.f32 %v11161_v6, %v11160_v45  ;;  %v14255_v6 = vld [vmem:[#allocation19 + $0x118] sm:$0xff]  }
 0x7d3   : > { %7074 = vmatmul.mubr.bf16.gmra.mrb[140].mxu0 %v14210_v56 }
 0x7d4   : > { %v5267_v22 = vpack.c.bf16 %v11162_v17, %v11159_v40  ;;  %7081 = vmatprep.mubr.bf16.mxu0 %v14215_v57  ;;  %v14147_v40 = vld [vmem:[#allocation2 + $0x424] ss:$8 sps:$4 sm:$0xff]   ;;  %v14216_v17 = vld [vmem:[#allocation2 + $0x6a0] ss:$8 sps:$4 sm:$0xff]  }
 0x7d6   : > { %v11163_v12 = vpop.f32.mrb[36].mxu0  ;;  %12583 = vmatmul.mubr.bf16.gmra.mrb[116].mxu1 %v5267_v22 }
 0x7d7   : > { %v11164_v38 = vpop.f32.mrb[37].mxu0 }
 0x7d8   : > { %v11165_v7 = vadd.f32 %v11164_v38, %v11163_v12  ;;  %v11166_v29 = vpop.f32.mrb[38].mxu0  ;;  %v14221_v12 = vld [vmem:[#allocation2 + $0x6b4] ss:$8 sps:$4 sm:$0xff]  }
 0x7d9   : > { %v11167_v16 = vpop.f32.mrb[39].mxu0 }
 0x7da   : > { %v11168_v42 = vadd.f32 %v11167_v16, %v11166_v29  ;;  %v14149_v29 = vld [vmem:[#allocation2 + $0x420] ss:$8 sps:$4 sm:$0xff]  }
 0x7db   : > { %7082 = vmatmul.mubr.bf16.gmra.mrb[144].mxu0 %v14213_v10 }
 0x7dc   : > { %v5268_v13 = vpack.c.bf16 %v11168_v42, %v11165_v7  ;;  %7089 = vmatprep.mubr.bf16.mxu0 %v14218_v59  ;;  %v14150_v42 = vld [vmem:[#allocation2 + $0x434] ss:$8 sps:$4 sm:$0xff]  }
 0x7de   : > { %v11169_v9 = vpop.f32.mrb[40].mxu0  ;;  %12586 = vmatprep.mubr.bf16.mxu1 %v5268_v13 }
 0x7df   : > { %v11170_v0 = vpop.f32.mrb[41].mxu0 }
 0x7e0   : > { %v11171_v49 = vadd.f32 %v11170_v0, %v11169_v9  ;;  %v11172_v53 = vpop.f32.mrb[42].mxu0  ;;  %v14219_v9 = vld [vmem:[#allocation2 + $0x6b0] ss:$8 sps:$4 sm:$0xff]  }
 0x7e1   : > { %v11173_v33 = vpop.f32.mrb[43].mxu0 }
 0x7e2   : > { %v11174_v11 = vadd.f32 %v11173_v33, %v11172_v53 }
 0x7e3   : > { %7090 = vmatmul.mubr.bf16.gmra.mrb[148].mxu0 %v14216_v17  ;;  %v14159_v17 = vld [vmem:[#allocation2 + $0x464] ss:$8 sps:$4 sm:$0xff]  }
 0x7e4   : > { %v5269_v25 = vpack.c.bf16 %v11174_v11, %v11171_v49  ;;  %7097 = vmatprep.mubr.bf16.mxu0 %v14221_v12  ;;  %v14152_v11 = vld [vmem:[#allocation2 + $0x430] ss:$8 sps:$4 sm:$0xff]   ;;  %v14228_v12 = vld [vmem:[#allocation2 + $0x6e0] ss:$8 sps:$4 sm:$0xff]  }
 0x7e6   : > { %12587 = vmatmul.mubr.bf16.gmra.mrb[120].mxu1 %v5269_v25  ;;  %v11351_v27 = vpop.f32.mrb[44].mxu0  ;;  %v14153_v25 = vld [vmem:[#allocation2 + $0x444] ss:$8 sps:$4 sm:$0xff]  }
 0x7e7   : > { %5753 = vmatprep.mubr.bf16.mxu1 %v14143_v3  ;;  %v11352_v24 = vpop.f32.mrb[45].mxu0 }
 0x7e8   : > { %v16423_v2 = vadd.f32 %v11352_v24, %v11351_v27  ;;  %v11354_v36 = vpop.f32.mrb[46].mxu0 }
 0x7e9   : > { %v11355_v26 = vpop.f32.mrb[47].mxu0 }
 0x7ea   : > { %v16425_v5 = vadd.f32 %v11355_v26, %v11354_v36  ;;  %v14155_v36 = vld [vmem:[#allocation2 + $0x440] ss:$8 sps:$4 sm:$0xff]   ;;  %v14156_v26 = vld [vmem:[#allocation2 + $0x454] ss:$8 sps:$4 sm:$0xff]  }
 0x7eb   : > { %7098 = vmatmul.mubr.bf16.gmra.mrb[152].mxu0 %v14219_v9 }
 0x7ec   : > { %7105 = vmatprep.mubr.bf16.mxu0 %v14224_v30 }
 0x7ee   : > { %5754 = vmatmul.mubr.bf16.vlgmr.msra.gmra.mrb[124].mxu1 %v14141_v23  ;;  %v11357_v50 = vpop.f32.mrb[48].mxu0  ;;  %v14227_v23 = vld [vmem:[#allocation2 + $0x6d4] ss:$8 sps:$4 sm:$0xff]  }
 0x7ef   : > { %5761 = vmatprep.mubr.bf16.mxu1 %v14144_v54  ;;  %v11358_v46 = vpop.f32.mrb[49].mxu0  ;;  %12591 = vmatpush3.bf16.msra.mxu1 %v14234_v55 }
 0x7f0   : > { %v16429_v62 = vadd.f32 %v11358_v46, %v11357_v50  ;;  %v11360_v44 = vpop.f32.mrb[50].mxu0  ;;  %12592 = vmatprep.subr.bf16.mxu1 %v14241_v8  ;;  %v14225_v50 = vld [vmem:[#allocation2 + $0x6d0] ss:$8 sps:$4 sm:$0xff]   ;;  %v14230_v46 = vld [vmem:[#allocation2 + $0x6e4] ss:$8 sps:$4 sm:$0xff]  }
 0x7f1   : > { %v11361_v21 = vpop.f32.mrb[51].mxu0 }
 0x7f2   : > { %v16431_v32 = vadd.f32 %v11361_v21, %v11360_v44 }
 0x7f3   : > { %12593 = vmatpush3.bf16.msra.mxu1 %v14241_v8  ;;  %7106 = vmatmul.mubr.bf16.gmra.mrb[156].mxu0 %v14222_v14 }
 0x7f4   : > { %12594 = vmatprep.subr.bf16.mxu1 %v14248_v58  ;;  %7113 = vmatprep.mubr.bf16.mxu0 %v14227_v23 }
 0x7f6   : > { %5762 = vmatmul.mubr.bf16.gmra.mrb[128].mxu1 %v14146_v20  ;;  %v11363_v22 = vpop.f32.mrb[52].mxu0 }
 0x7f7   : > { %5769 = vmatprep.mubr.bf16.mxu1 %v14147_v40  ;;  %v11364_v38 = vpop.f32.mrb[53].mxu0  ;;  %12595 = vmatpush3.bf16.msra.mxu1 %v14248_v58  ;;  %v14158_v40 = vld [vmem:[#allocation2 + $0x450] ss:$8 sps:$4 sm:$0xff]  }
 0x7f8   : > { %v16435_v28 = vadd.f32 %v11364_v38, %v11363_v22  ;;  %v11366_v37 = vpop.f32.mrb[54].mxu0  ;;  %12596 = vmatprep.subr.bf16.mxu1 %v14255_v6 }
 0x7f9   : > { %v11367_v7 = vpop.f32.mrb[55].mxu0 }
 0x7fa   : > { %v16437_v16 = vadd.f32 %v11367_v7, %v11366_v37  ;;  %v14233_v37 = vld [vmem:[#allocation2 + $0x6f4] ss:$8 sps:$4 sm:$0xff]  }
 0x7fb   : > { %12597 = vmatpush3.bf16.msra.mxu1 %v14255_v6  ;;  %7114 = vmatmul.mubr.bf16.gmra.mrb[160].mxu0 %v14225_v50  ;;  %v14235_v50 = vld [vmem:[#allocation2 + $0x700] ss:$8 sps:$4 sm:$0xff]  }
 0x7fc   : > { %7121 = vmatprep.mubr.bf16.mxu0 %v14230_v46  ;;  %v14167_v46 = vld [vmem:[#allocation2 + $0x480] ss:$8 sps:$4 sm:$0xff]  }
 0x7fe   : > { %5770 = vmatmul.mubr.bf16.gmra.mrb[132].mxu1 %v14149_v29  ;;  %v11369_v0 = vpop.f32.mrb[56].mxu0 }
 0x7ff   : > { %5777 = vmatprep.mubr.bf16.mxu1 %v14150_v42  ;;  %v11370_v19 = vpop.f32.mrb[57].mxu0 }
 0x800   : > { %v16441_v49 = vadd.f32 %v11370_v19, %v11369_v0  ;;  %v11372_v53 = vpop.f32.mrb[58].mxu0  ;;  %v14161_v0 = vld [vmem:[#allocation2 + $0x460] ss:$8 sps:$4 sm:$0xff]   ;;  %v14162_v19 = vld [vmem:[#allocation2 + $0x474] ss:$8 sps:$4 sm:$0xff]  }
 0x801   : > { %v11373_v33 = vpop.f32.mrb[59].mxu0 }
 0x802   : > { %v16443_v3 = vadd.f32 %v11373_v33, %v11372_v53  ;;  %v14231_v33 = vld [vmem:[#allocation2 + $0x6f0] ss:$8 sps:$4 sm:$0xff]  }
 0x803   : > { %7122 = vmatmul.mubr.bf16.gmra.mrb[164].mxu0 %v14228_v12  ;;  %v14242_v12 = vld [vmem:[#allocation2 + $0x720] ss:$8 sps:$4 sm:$0xff]  }
 0x804   : > { %7129 = vmatprep.mubr.bf16.mxu0 %v14233_v37  ;;  %v14179_v37 = vld [vmem:[#allocation2 + $0x4a0] ss:$8 sps:$4 sm:$0xff]  }
 0x806   : > { %5778 = vmatmul.mubr.bf16.gmra.mrb[136].mxu1 %v14152_v11  ;;  %v11375_v57 = vpop.f32.mrb[60].mxu0 }
 0x807   : > { %5785 = vmatprep.mubr.bf16.mxu1 %v14153_v25  ;;  %v11376_v27 = vpop.f32.mrb[61].mxu0  ;;  %v14237_v25 = vld [vmem:[#allocation2 + $0x704] ss:$8 sps:$4 sm:$0xff]  }
 0x808   : > { %v16447_v55 = vadd.f32 %v11376_v27, %v11375_v57  ;;  %v11378_v54 = vpop.f32.mrb[62].mxu0 }
 0x809   : > { %v11379_v24 = vpop.f32.mrb[63].mxu0 }
 0x80a   : > { %v16449_v8 = vadd.f32 %v11379_v24, %v11378_v54  ;;  %v14164_v54 = vld [vmem:[#allocation2 + $0x470] ss:$8 sps:$4 sm:$0xff]  }
 0x80b   : > { %7130 = vmatmul.mubr.bf16.gmra.mrb[168].mxu0 %v14231_v33 }
 0x80c   : > { %7637 = vmatprep.mubr.bf16.mxu0 %v14237_v25  ;;  %v14185_v25 = vld [vmem:[#allocation2 + $0x4b0] ss:$8 sps:$4 sm:$0xff]  }
 0x80e   : > { %5786 = vmatmul.mubr.bf16.gmra.mrb[140].mxu1 %v14155_v36  ;;  %v11381_v59 = vpop.f32.mrb[64].mxu0  ;;  %v14165_v36 = vld [vmem:[#allocation2 + $0x484] ss:$8 sps:$4 sm:$0xff]  }
 0x80f   : > { %5793 = vmatprep.mubr.bf16.mxu1 %v14156_v26  ;;  %v11382_v44 = vpop.f32.mrb[65].mxu0 }
 0x810   : > { %v16453_v58 = vadd.f32 %v11382_v44, %v11381_v59  ;;  %v11384_v21 = vpop.f32.mrb[66].mxu0  ;;  %v14240_v59 = vld [vmem:[#allocation2 + $0x714] ss:$8 sps:$4 sm:$0xff]  }
 0x811   : > { %v11385_v20 = vpop.f32.mrb[67].mxu0  ;;  %v14168_v44 = vld [vmem:[#allocation2 + $0x494] ss:$8 sps:$4 sm:$0xff]  }
 0x812   : > { %v16455_v6 = vadd.f32 %v11385_v20, %v11384_v21  ;;  %v14238_v21 = vld [vmem:[#allocation2 + $0x710] ss:$8 sps:$4 sm:$0xff]   ;;  %v14244_v20 = vld [vmem:[#allocation2 + $0x724] ss:$8 sps:$4 sm:$0xff]  }
 0x813   : > { %7638 = vmatmul.mubr.bf16.vlgmr.msra.gmra.mrb[172].mxu0 %v14235_v50 }
 0x814   : > { %7645 = vmatprep.mubr.bf16.mxu0 %v14240_v59  ;;  %v14249_v59 = vld [vmem:[#allocation2 + $0x740] ss:$8 sps:$4 sm:$0xff]  }
 0x816   : > { %5794 = vmatmul.mubr.bf16.gmra.mrb[144].mxu1 %v14158_v40  ;;  %v11387_v38 = vpop.f32.mrb[68].mxu0  ;;  %v14173_v40 = vld [vmem:[#allocation2 + $0x490] ss:$8 sps:$4 sm:$0xff]  }
 0x817   : > { %5801 = vmatprep.mubr.bf16.mxu1 %v14159_v17  ;;  %v11388_v7 = vpop.f32.mrb[69].mxu0  ;;  %v14174_v17 = vld [vmem:[#allocation2 + $0x4a4] ss:$8 sps:$4 sm:$0xff]  }
 0x818   : > { %v16459_v29 = vadd.f32 %v11388_v7, %v11387_v38  ;;  %v11390_v42 = vpop.f32.mrb[70].mxu0  ;;  %v14247_v38 = vld [vmem:[#allocation2 + $0x734] ss:$8 sps:$4 sm:$0xff]  }
 0x819   : > { %v11391_v9 = vpop.f32.mrb[71].mxu0  ;;  %v14180_v7 = vld [vmem:[#allocation2 + $0x4b4] ss:$8 sps:$4 sm:$0xff]  }
 0x81a   : > { %v16461_v30 = vadd.f32 %v11391_v9, %v11390_v42  ;;  %v14245_v42 = vld [vmem:[#allocation2 + $0x730] ss:$8 sps:$4 sm:$0xff]   ;;  %v14251_v9 = vld [vmem:[#allocation2 + $0x744] ss:$8 sps:$4 sm:$0xff]  }
 0x81b   : > { %7646 = vmatmul.mubr.bf16.gmra.mrb[176].mxu0 %v14238_v21  ;;  %v14264_v21 = vld [vmem:[#allocation19 + $0x130] sm:$0xff]  }
 0x81c   : > { %7653 = vmatprep.mubr.bf16.mxu0 %v14244_v20 }
 0x81e   : > { %5802 = vmatmul.mubr.bf16.gmra.mrb[148].mxu1 %v14161_v0  ;;  %v11393_v11 = vpop.f32.mrb[72].mxu0 }
 0x81f   : > { %5809 = vmatprep.mubr.bf16.mxu1 %v14162_v19  ;;  %v11394_v14 = vpop.f32.mrb[73].mxu0  ;;  %v14259_v19 = vld [vmem:[#allocation19 + $0x120] sm:$0xff]  }
 0x820   : > { %v16465_v57 = vadd.f32 %v11394_v14, %v11393_v11  ;;  %v11396_v23 = vpop.f32.mrb[74].mxu0  ;;  %12598 = vmatprep.subr.bf16.mxu1 %v14259_v19 }
 0x821   : > { %v11397_v27 = vpop.f32.mrb[75].mxu0  ;;  %12599 = vmatpush3.bf16.msra.mxu1 %v14259_v19  ;;  %v14258_v19 = vld [vmem:[#allocation2 + $0x764] ss:$8 sps:$4 sm:$0xff]  }
 0x822   : > { %v16467_v24 = vadd.f32 %v11397_v27, %v11396_v23  ;;  %v14186_v23 = vld [vmem:[#allocation2 + $0x4c4] ss:$8 sps:$4 sm:$0xff]  }
 0x823   : > { %7654 = vmatmul.mubr.bf16.gmra.mrb[180].mxu0 %v14242_v12 }
 0x824   : > { %7661 = vmatprep.mubr.bf16.mxu0 %v14247_v38  ;;  %v14192_v38 = vld [vmem:[#allocation2 + $0x4d4] ss:$8 sps:$4 sm:$0xff]  }
 0x826   : > { %5810 = vmatmul.mubr.bf16.gmra.mrb[152].mxu1 %v14164_v54  ;;  %v11399_v0 = vpop.f32.mrb[76].mxu0 }
 0x827   : > { %5817 = vmatprep.mubr.bf16.mxu1 %v14165_v36  ;;  %v11400_v33 = vpop.f32.mrb[77].mxu0  ;;  %v14260_v36 = vld [vmem:[#allocation19 + $0x128] sm:$0xff]  }
 0x828   : > { %v11402_v11 = vpop.f32.mrb[78].mxu0  ;;  %v16471_v27 = vadd.f32 %v11400_v33, %v11399_v0  ;;  %12600 = vmatprep.subr.bf16.mxu1 %v14260_v36  ;;  %v14252_v0 = vld [vmem:[#allocation2 + $0x750] ss:$8 sps:$4 sm:$0xff]  }
 0x829   : > { %v11403_v14 = vpop.f32.mrb[79].mxu0  ;;  %12601 = vmatpush3.bf16.msra.mxu1 %v14260_v36  ;;  %v14198_v36 = vld [vmem:[#allocation2 + $0x4e4] ss:$8 sps:$4 sm:$0xff]  }
 0x82a   : > { %v16473_v54 = vadd.f32 %v11403_v14, %v11402_v11  ;;  %12602 = vmatprep.subr.bf16.mxu1 %v14264_v21  ;;  %v14197_v14 = vld [vmem:[#allocation2 + $0x4d0] ss:$8 sps:$4 sm:$0xff]  }
 0x82b   : > { %7662 = vmatmul.mubr.bf16.gmra.mrb[184].mxu0 %v14245_v42  ;;  %v14265_v42 = vld [vmem:[#allocation19 + $0x138] sm:$0xff]  }
 0x82c   : > { %7669 = vmatprep.mubr.bf16.mxu0 %v14251_v9  ;;  %v14209_v9 = vld [vmem:[#allocation2 + $0x4f0] ss:$8 sps:$4 sm:$0xff]  }
 0x82d   : > { %12603 = vmatpush3.bf16.msra.mxu1 %v14264_v21  ;;  %v14256_v21 = vld [vmem:[#allocation2 + $0x760] ss:$8 sps:$4 sm:$0xff]  }
 0x82e   : > { %5818 = vmatmul.mubr.bf16.gmra.mrb[156].mxu1 %v14167_v46  ;;  %v14254_v46 = vld [vmem:[#allocation2 + $0x754] ss:$8 sps:$4 sm:$0xff]   ;;  %12604 = vmatprep.subr.bf16.mxu1 %v14265_v42 }
 0x82f   : > { %5825 = vmatprep.mubr.bf16.mxu1 %v14168_v44  ;;  %v11405_v44 = vpop.f32.mrb[80].mxu0 }
 0x830   : > { %v11406_v20 = vpop.f32.mrb[81].mxu0 }
 0x831   : > { %12605 = vmatpush3.bf16.msra.mxu1 %v14265_v42 }
 0x833   : > { %7670 = vmatmul.mubr.bf16.gmra.mrb[188].mxu0 %v14249_v59 }
 0x834   : > { %7677 = vmatprep.mubr.bf16.mxu0 %v14254_v46 }
 0x836   : > { %5826 = vmatmul.mubr.bf16.gmra.mrb[160].mxu1 %v14173_v40  ;;  %v11408_v40 = vpop.f32.mrb[82].mxu0 }
 0x837   : > { %5833 = vmatprep.mubr.bf16.mxu1 %v14174_v17  ;;  %v14191_v17 = vld [vmem:[#allocation2 + $0x4c0] ss:$8 sps:$4 sm:$0xff]   ;;  %v11409_v12 = vpop.f32.mrb[83].mxu0 }
 0x838   : > { %v11411_v33 = vpop.f32.mrb[84].mxu0 }
 0x839   : > { %v11412_v11 = vpop.f32.mrb[85].mxu0 }
 0x83a   : > { %v16483_v59 = vadd.f32 %v11412_v11, %v11411_v33 }
 0x83b   : > { %7678 = vmatmul.mubr.bf16.gmra.mrb[192].mxu0 %v14252_v0  ;;  %v14204_v0 = vld [vmem:[#allocation2 + $0x4f4] ss:$8 sps:$4 sm:$0xff]  }
 0x83c   : > { %7685 = vmatprep.mubr.bf16.mxu0 %v14258_v19 }
 0x83e   : > { %5834 = vmatmul.mubr.bf16.gmra.mrb[164].mxu1 %v14179_v37  ;;  %v16477_v37 = vadd.f32 %v11406_v20, %v11405_v44  ;;  %v14263_v20 = vld [vmem:[#allocation2 + $0x774] ss:$8 sps:$4 sm:$0xff]  }
 0x83f   : > { %5841 = vmatprep.mubr.bf16.mxu1 %v14180_v7  ;;  %v16479_v7 = vadd.f32 %v11409_v12, %v11408_v40 }
 0x843   : > { %7686 = vmatmul.mubr.bf16.gmra.mrb[196].mxu0 %v14256_v21 }
 0x844   : > { %7693 = vmatprep.mubr.bf16.mxu0 %v14263_v20 }
 0x846   : > { %5842 = vmatmul.mubr.bf16.gmra.mrb[168].mxu1 %v14185_v25  ;;  %v11414_v25 = vpop.f32.mrb[86].mxu0 }
 0x847   : > { %5849 = vmatprep.mubr.bf16.mxu1 %v14186_v23  ;;  %v11415_v23 = vpop.f32.mrb[87].mxu0 }
 0x848   : > { %v16485_v46 = vadd.f32 %v11415_v23, %v11414_v25  ;;  %v11417_v40 = vpop.f32.mrb[88].mxu0  ;;  %v14261_v25 = vld [vmem:[#allocation2 + $0x770] ss:$8 sps:$4 sm:$0xff]  }
 0x84b   : > { %7694 = vmatmul.mubr.bf16.gmra.mrb[200].mxu0 %v14261_v25 }
 0x84e   : > { %5850 = vmatmul.mubr.bf16.gmra.mrb[172].mxu1 %v14191_v17  ;;  %v11418_v17 = vpop.f32.mrb[89].mxu0 }
 0x84f   : > { %5857 = vmatprep.mubr.bf16.mxu1 %v14192_v38  ;;  %v11420_v12 = vpop.f32.mrb[90].mxu0  ;;  %v14203_v38 = vld [vmem:[#allocation2 + $0x4e0] ss:$8 sps:$4 sm:$0xff]   ;;  %v16489_v19 = vadd.f32 %v11418_v17, %v11417_v40 }
 0x850   : > { %v11421_v42 = vpop.f32.mrb[91].mxu0  ;;  %v14266_v17 = vld [vmem:[#allocation2 + $0x780] ss:$8 sps:$4 sm:$0xff]  }
 0x851   : > { %v16491_v33 = vadd.f32 %v11421_v42, %v11420_v12  ;;  %v11423_v23 = vpop.f32.mrb[92].mxu0  ;;  %v14271_v12 = vld [vmem:[#allocation2 + $0x794] ss:$8 sps:$4 sm:$0xff]  }
 0x856   : > { %5858 = vmatmul.mubr.bf16.gmra.mrb[176].mxu1 %v14197_v14  ;;  %v14268_v14 = vld [vmem:[#allocation2 + $0x784] ss:$8 sps:$4 sm:$0xff]  }
 0x857   : > { %5865 = vmatprep.mubr.bf16.mxu1 %v14198_v36  ;;  %v11424_v36 = vpop.f32.mrb[93].mxu0  ;;  %7701 = vmatprep.mubr.bf16.mxu0 %v14268_v14  ;;  %v14269_v14 = vld [vmem:[#allocation2 + $0x790] ss:$8 sps:$4 sm:$0xff]  }
 0x858   : > { %v11426_v44 = vpop.f32.mrb[94].mxu0  ;;  %v16495_v50 = vadd.f32 %v11424_v36, %v11423_v23  ;;  %7702 = vmatmul.mubr.bf16.gmra.mrb[204].mxu0 %v14266_v17  ;;  %v14274_v23 = vld [vmem:[#allocation2 + $0x7a4] ss:$8 sps:$4 sm:$0xff]  }
 0x859   : > { %v11427_v21 = vpop.f32.mrb[95].mxu0  ;;  %7709 = vmatprep.mubr.bf16.mxu0 %v14271_v12 }
 0x85a   : > { %v16497_v20 = vadd.f32 %v11427_v21, %v11426_v44 }
 0x85e   : > { %5866 = vmatmul.mubr.bf16.gmra.mrb[180].mxu1 %v14203_v38  ;;  %v11429_v38 = vpop.f32.mrb[96].mxu0 }
 0x85f   : > { %5873 = vmatprep.mubr.bf16.mxu1 %v14204_v0  ;;  %v11430_v42 = vpop.f32.mrb[97].mxu0 }
 0x860   : > { %v11432_v0 = vpop.f32.mrb[98].mxu0  ;;  %v16501_v26 = vadd.f32 %v11430_v42, %v11429_v38  ;;  %7710 = vmatmul.mubr.bf16.gmra.mrb[208].mxu0 %v14269_v14  ;;  %v14277_v38 = vld [vmem:[#allocation2 + $0x7b4] ss:$8 sps:$4 sm:$0xff]  }
 0x861   : > { %v11433_v11 = vpop.f32.mrb[99].mxu0  ;;  %7717 = vmatprep.mubr.bf16.mxu0 %v14274_v23 }
 0x862   : > { %v16503_v25 = vadd.f32 %v11433_v11, %v11432_v0  ;;  %v11435_v36 = vpop.f32.mrb[100].mxu0  ;;  %v14272_v11 = vld [vmem:[#allocation2 + $0x7a0] ss:$8 sps:$4 sm:$0xff]  }
 0x863   : > { %v11436_v21 = vpop.f32.mrb[101].mxu0 }
 0x864   : > { %v16507_v53 = vadd.f32 %v11436_v21, %v11435_v36  ;;  %v14280_v36 = vld [vmem:[#allocation2 + $0x7c4] ss:$8 sps:$4 sm:$0xff]  }
 0x866   : > { %5874 = vmatmul.mubr.bf16.gmra.mrb[184].mxu1 %v14209_v9  ;;  %v11438_v9 = vpop.f32.mrb[102].mxu0 }
 0x867   : > { %v11439_v40 = vpop.f32.mrb[103].mxu0 }
 0x868   : > { %v16509_v17 = vadd.f32 %v11439_v40, %v11438_v9  ;;  %v11441_v42 = vpop.f32.mrb[104].mxu0  ;;  %7718 = vmatmul.mubr.bf16.gmra.mrb[212].mxu0 %v14272_v11  ;;  %v14275_v40 = vld [vmem:[#allocation2 + $0x7b0] ss:$8 sps:$4 sm:$0xff]  }
 0x869   : > { %v11442_v0 = vpop.f32.mrb[105].mxu0  ;;  %7725 = vmatprep.mubr.bf16.mxu0 %v14277_v38 }
 0x86a   : > { %v11444_v44 = vpop.f32.mrb[106].mxu0  ;;  %v16513_v10 = vadd.f32 %v11442_v0, %v11441_v42 }
 0x86b   : > { %v11445_v22 = vpop.f32.mrb[107].mxu0 }
 0x86c   : > { %v16515_v14 = vadd.f32 %v11445_v22, %v11444_v44  ;;  %v11487_v21 = vpop.f32.mrb[108].mxu0  ;;  %v14278_v22 = vld [vmem:[#allocation2 + $0x7c0] ss:$8 sps:$4 sm:$0xff]   ;;  %v14283_v44 = vld [vmem:[#allocation2 + $0x7d4] ss:$8 sps:$4 sm:$0xff]  }
 0x86d   : > { %v11488_v9 = vpop.f32.mrb[109].mxu0 }
 0x86e   : > { %v11490_v12 = vpop.f32.mrb[110].mxu0  ;;  %v16519_v13 = vadd.f32 %v11488_v9, %v11487_v21 }
 0x86f   : > { %v11491_v56 = vpop.f32.mrb[111].mxu0 }
 0x870   : > { %7726 = vmatmul.mubr.bf16.gmra.mrb[216].mxu0 %v14275_v40  ;;  %v16521_v11 = vadd.f32 %v11491_v56, %v11490_v12  ;;  %v11493_v42 = vpop.f32.mrb[112].mxu0  ;;  %v14281_v56 = vld [vmem:[#allocation2 + $0x7d0] ss:$8 sps:$4 sm:$0xff]   ;;  %v14286_v12 = vld [vmem:[#allocation2 + $0x7e4] ss:$8 sps:$4 sm:$0xff]  }
 0x871   : > { %7733 = vmatprep.mubr.bf16.mxu0 %v14280_v36  ;;  %v11494_v0 = vpop.f32.mrb[113].mxu0  ;;  %v16537_v36 = vld [vmem:[#allocation19 + $0x140] sm:$0xff]  }
 0x872   : > { %v11496_v23 = vpop.f32.mrb[114].mxu0  ;;  %v16525_v63 = vadd.f32 %v11494_v0, %v11493_v42  ;;  %12638 = vmatprep.subr.bf16.mxu1 %v16537_v36 }
 0x873   : > { %v11497_v45 = vpop.f32.mrb[115].mxu0 }
 0x874   : > { %v16527_v40 = vadd.f32 %v11497_v45, %v11496_v23  ;;  %v14284_v45 = vld [vmem:[#allocation2 + $0x7e0] ss:$8 sps:$4 sm:$0xff]   ;;  %v14289_v23 = vld [vmem:[#allocation2 + $0x7f4] ss:$8 sps:$4 sm:$0xff]  }
 0x876   : > { %v11499_v21 = vpop.f32.mrb[116].mxu0 }
 0x877   : > { %v11500_v9 = vpop.f32.mrb[117].mxu0 }
 0x878   : > { %7734 = vmatmul.mubr.bf16.gmra.mrb[220].mxu0 %v14278_v22  ;;  %v11502_v38 = vpop.f32.mrb[118].mxu0  ;;  %v16531_v1 = vadd.f32 %v11500_v9, %v11499_v21 }
 0x879   : > { %7741 = vmatprep.mubr.bf16.mxu0 %v14283_v44  ;;  %v11503_v52 = vpop.f32.mrb[119].mxu0 }
 0x87a   : > { %v16533_v22 = vadd.f32 %v11503_v52, %v11502_v38  ;;  %v14287_v38 = vld [vmem:[#allocation2 + $0x7f0] ss:$8 sps:$4 sm:$0xff]  }
 0x87e   : > { %v11505_v42 = vpop.f32.mrb[120].mxu0 }
 0x87f   : > { %v11506_v0 = vpop.f32.mrb[121].mxu0 }
 0x880   : > { %7742 = vmatmul.mubr.bf16.gmra.mrb[224].mxu0 %v14281_v56  ;;  %v11508_v60 = vpop.f32.mrb[122].mxu0  ;;  %v16540_v56 = vadd.f32 %v11506_v0, %v11505_v42 }
 0x881   : > { %7749 = vmatprep.mubr.bf16.mxu0 %v14286_v12  ;;  %v11509_v51 = vpop.f32.mrb[123].mxu0 }
 0x882   : > { %v16542_v12 = vadd.f32 %v11509_v51, %v11508_v60 }
 0x886   : > { %v11511_v21 = vpop.f32.mrb[124].mxu0 }
 0x887   : > { %v11512_v9 = vpop.f32.mrb[125].mxu0 }
 0x888   : > { %7750 = vmatmul.mubr.bf16.gmra.mrb[228].mxu0 %v14284_v45  ;;  %v11514_v44 = vpop.f32.mrb[126].mxu0  ;;  %v16546_v47 = vadd.f32 %v11512_v9, %v11511_v21 }
 0x889   : > { %7757 = vmatprep.mubr.bf16.mxu0 %v14289_v23  ;;  %v11515_v61 = vpop.f32.mrb[127].mxu0 }
 0x88a   : > { %v16548_v45 = vadd.f32 %v11515_v61, %v11514_v44 }
 0x88e   : > { %v11517_v42 = vpop.f32.mrb[128].mxu0 }
 0x88f   : > { %v11518_v0 = vpop.f32.mrb[129].mxu0 }
 0x890   : > { %7758 = vmatmul.mubr.bf16.gmra.mrb[232].mxu0 %v14287_v38  ;;  %v11520_v51 = vpop.f32.mrb[130].mxu0  ;;  %v16552_v48 = vadd.f32 %v11518_v0, %v11517_v42 }
 0x891   : > { %v11521_v60 = vpop.f32.mrb[131].mxu0 }
 0x892   : > { %17636 = vst [vmem:[#allocation60_spill] sm:$0xff] %v16552_v48  ;;  %v16554_v52 = vadd.f32 %v11521_v60, %v11520_v51 }
 0x894   : > { %17637 = vst [vmem:[#allocation61_spill] sm:$0xff] %v16554_v52 }
 0x896   : > { %v11523_v38 = vpop.f32.mrb[132].mxu0 }
 0x897   : > { %v11524_v41 = vpop.f32.mrb[133].mxu0 }
 0x898   : > { %v11526_v21 = vpop.f32.mrb[134].mxu0  ;;  %v16558_v61 = vadd.f32 %v11524_v41, %v11523_v38 }
 0x899   : > { %v11527_v9 = vpop.f32.mrb[135].mxu0 }
 0x89a   : > { %17638 = vst [vmem:[#allocation62_spill] sm:$0xff] %v16558_v61  ;;  %v16560_v44 = vadd.f32 %v11527_v9, %v11526_v21 }
 0x89c   : > { %17639 = vst [vmem:[#allocation63_spill] sm:$0xff] %v16560_v44 }
 0x89e   : > { %v11529_v39 = vpop.f32.mrb[136].mxu0 }
 0x89f   : > { %v11530_v18 = vpop.f32.mrb[137].mxu0 }
 0x8a0   : > { %v11532_v42 = vpop.f32.mrb[138].mxu0  ;;  %v16564_v51 = vadd.f32 %v11530_v18, %v11529_v39 }
 0x8a1   : > { %v11533_v0 = vpop.f32.mrb[139].mxu0 }
 0x8a2   : > { %17640 = vst [vmem:[#allocation64_spill] sm:$0xff] %v16564_v51  ;;  %v16566_v60 = vadd.f32 %v11533_v0, %v11532_v42 }
 0x8a4   : > { %17641 = vst [vmem:[#allocation65_spill] sm:$0xff] %v16566_v60 }
 0x8a6   : > { %v11535_v35 = vpop.f32.mrb[140].mxu0 }
 0x8a7   : > { %v11536_v15 = vpop.f32.mrb[141].mxu0 }
 0x8a8   : > { %v11538_v38 = vpop.f32.mrb[142].mxu0  ;;  %v16570_v23 = vadd.f32 %v11536_v15, %v11535_v35 }
 0x8a9   : > { %v11539_v9 = vpop.f32.mrb[143].mxu0 }
 0x8aa   : > { %17642 = vst [vmem:[#allocation66_spill] sm:$0xff] %v16570_v23  ;;  %v16572_v4 = vadd.f32 %v11539_v9, %v11538_v38 }
 0x8ac   : > { %17643 = vst [vmem:[#allocation67_spill] sm:$0xff] %v16572_v4 }
 0x8ae   : > { %v11541_v0 = vpop.f32.mrb[144].mxu0 }
 0x8af   : > { %v11542_v43 = vpop.f32.mrb[145].mxu0 }
 0x8b0   : > { %v11544_v60 = vpop.f32.mrb[146].mxu0 }
 0x8b1   : > { %v11545_v48 = vpop.f32.mrb[147].mxu0 }
 0x8b2   : > { %v16578_v15 = vadd.f32 %v11545_v48, %v11544_v60  ;;  %v14292_v48 = vld [vmem:[#allocation19 + $0x150] sm:$0xff]  }
 0x8b4   : > { %17645 = vst [vmem:[#allocation69_spill] sm:$0xff] %v16578_v15 }
 0x8b6   : > { %v11547_v9 = vpop.f32.mrb[148].mxu0 }
 0x8c1   : > { %v11215_v41 = vpop.f32.mrb[124].mxu1 }
 0x8c2   : > { %v11216_v21 = vpop.f32.mrb[125].mxu1 }
 0x8c3   : > { %v11217_v31 = vadd.f32 %v11216_v21, %v11215_v41  ;;  %v11218_v34 = vpop.f32.mrb[126].mxu1  ;;  %v16576_v21 = vadd.f32 %v11542_v43, %v11541_v0 }
 0x8c4   : > { %v11219_v61 = vpop.f32.mrb[127].mxu1 }
 0x8c5   : > { %v11220_v18 = vadd.f32 %v11219_v61, %v11218_v34  ;;  %17644 = vst [vmem:[#allocation68_spill] sm:$0xff] %v16576_v21 }
 0x8c7   : > { %v5882_v42 = vpack.c.bf16 %v11220_v18, %v11217_v31  ;;  %v14291_v31 = vld [vmem:[#allocation19 + $0x148] sm:$0xff]   ;;  %v11548_v18 = vpop.f32.mrb[149].mxu0 }
 0x8c8   : > { %v16583_v60 = vadd.f32 %v11548_v18, %v11547_v9 }
 0x8c9   : > { %v11221_v51 = vpop.f32.mrb[128].mxu1  ;;  %12606 = vmatprep.mubr.bf16.mxu1 %v5882_v42  ;;  %v11550_v42 = vpop.f32.mrb[150].mxu0 }
 0x8ca   : > { %v11222_v44 = vpop.f32.mrb[129].mxu1  ;;  %17646 = vst [vmem:[#allocation70_spill] sm:$0xff] %v16583_v60 }
 0x8cb   : > { %v11223_v52 = vadd.f32 %v11222_v44, %v11221_v51  ;;  %v11224_v41 = vpop.f32.mrb[130].mxu1  ;;  %v11551_v44 = vpop.f32.mrb[151].mxu0 }
 0x8cc   : > { %v11225_v35 = vpop.f32.mrb[131].mxu1  ;;  %v16585_v0 = vadd.f32 %v11551_v44, %v11550_v42  ;;  %v11553_v34 = vpop.f32.mrb[152].mxu0  ;;  %v14294_v44 = vld [vmem:[#allocation19 + $0x160] sm:$0xff]  }
 0x8cd   : > { %v11226_v38 = vadd.f32 %v11225_v35, %v11224_v41 }
 0x8ce   : > { %17647 = vst [vmem:[#allocation71_spill] sm:$0xff] %v16585_v0 }
 0x8cf   : > { %v5883_v61 = vpack.c.bf16 %v11226_v38, %v11223_v52 }
 0x8d1   : > { %v11227_v39 = vpop.f32.mrb[132].mxu1  ;;  %12607 = vmatmul.mubr.bf16.vlgmr.msra.gmra.mrb[92].mxu1 %v5883_v61  ;;  %v14293_v61 = vld [vmem:[#allocation19 + $0x158] sm:$0xff]  }
 0x8d2   : > { %v11228_v23 = vpop.f32.mrb[133].mxu1  ;;  %12639 = vmatpush3.bf16.msra.mxu1 %v16537_v36  ;;  %v11554_v36 = vpop.f32.mrb[153].mxu0 }
 0x8d3   : > { %v11229_v43 = vadd.f32 %v11228_v23, %v11227_v39  ;;  %v11230_v51 = vpop.f32.mrb[134].mxu1  ;;  %12640 = vmatprep.subr.bf16.mxu1 %v14291_v31  ;;  %v11556_v23 = vpop.f32.mrb[154].mxu0 }
 0x8d4   : > { %v11231_v41 = vpop.f32.mrb[135].mxu1  ;;  %v11557_v9 = vpop.f32.mrb[155].mxu0 }
 0x8d5   : > { %v11232_v52 = vadd.f32 %v11231_v41, %v11230_v51  ;;  %v16589_v51 = vadd.f32 %v11554_v36, %v11553_v34  ;;  %v16591_v41 = vadd.f32 %v11557_v9, %v11556_v23  ;;  %v11559_v60 = vpop.f32.mrb[156].mxu0  ;;  %v14296_v9 = vld [vmem:[#allocation19 + $0x170] sm:$0xff]  }
 0x8d6   : > { %12641 = vmatpush3.bf16.msra.mxu1 %v14291_v31 }
 0x8d7   : > { %v5884_v38 = vpack.c.bf16 %v11232_v52, %v11229_v43  ;;  %12642 = vmatprep.subr.bf16.mxu1 %v14292_v48  ;;  %17648 = vst [vmem:[#allocation72_spill] sm:$0xff] %v16589_v51  ;;  %17649 = vst [vmem:[#allocation73_spill] sm:$0xff] %v16591_v41 }
 0x8d9   : > { %v11233_v21 = vpop.f32.mrb[136].mxu1  ;;  %12610 = vmatprep.mubr.bf16.mxu1 %v5884_v38  ;;  %v14295_v38 = vld [vmem:[#allocation19 + $0x168] sm:$0xff]  }
 0x8da   : > { %v11234_v39 = vpop.f32.mrb[137].mxu1  ;;  %12643 = vmatpush3.bf16.msra.mxu1 %v14292_v48  ;;  %v11560_v48 = vpop.f32.mrb[157].mxu0 }
 0x8db   : > { %v11235_v18 = vadd.f32 %v11234_v39, %v11233_v21  ;;  %v11236_v42 = vpop.f32.mrb[138].mxu1  ;;  %12644 = vmatprep.subr.bf16.mxu1 %v14293_v61  ;;  %v11562_v21 = vpop.f32.mrb[158].mxu0 }
 0x8dc   : > { %v11237_v31 = vpop.f32.mrb[139].mxu1  ;;  %v11563_v34 = vpop.f32.mrb[159].mxu0 }
 0x8dd   : > { %v11238_v43 = vadd.f32 %v11237_v31, %v11236_v42  ;;  %v16595_v42 = vadd.f32 %v11560_v48, %v11559_v60  ;;  %v16597_v31 = vadd.f32 %v11563_v34, %v11562_v21  ;;  %v11565_v51 = vpop.f32.mrb[160].mxu0  ;;  %v16601_v34 = vld [vmem:[#allocation19 + $0x180] sm:$0xff]  }
 0x8de   : > { %12645 = vmatpush3.bf16.msra.mxu1 %v14293_v61 }
 0x8df   : > { %v5885_v35 = vpack.c.bf16 %v11238_v43, %v11235_v18  ;;  %12646 = vmatprep.subr.bf16.mxu1 %v14294_v44  ;;  %17650 = vst [vmem:[#allocation74_spill] sm:$0xff] %v16595_v42  ;;  %17651 = vst [vmem:[#allocation75_spill] sm:$0xff] %v16597_v31 }
 0x8e1   : > { %v11239_v0 = vpop.f32.mrb[140].mxu1  ;;  %12611 = vmatmul.mubr.bf16.gmra.mrb[96].mxu1 %v5885_v35  ;;  %v14297_v35 = vld [vmem:[#allocation19 + $0x178] sm:$0xff]  }
 0x8e2   : > { %v11240_v39 = vpop.f32.mrb[141].mxu1  ;;  %12647 = vmatpush3.bf16.msra.mxu1 %v14294_v44  ;;  %v11566_v44 = vpop.f32.mrb[161].mxu0 }
 0x8e3   : > { %v11241_v36 = vadd.f32 %v11240_v39, %v11239_v0  ;;  %v11242_v23 = vpop.f32.mrb[142].mxu1  ;;  %12648 = vmatprep.subr.bf16.mxu1 %v14295_v38  ;;  %v11568_v0 = vpop.f32.mrb[162].mxu0 }
 0x8e4   : > { %v11243_v61 = vpop.f32.mrb[143].mxu1  ;;  %v11569_v60 = vpop.f32.mrb[163].mxu0 }
 0x8e5   : > { %v11244_v18 = vadd.f32 %v11243_v61, %v11242_v23  ;;  %v16603_v23 = vadd.f32 %v11566_v44, %v11565_v51  ;;  %v16605_v61 = vadd.f32 %v11569_v60, %v11568_v0 }
 0x8e6   : > { %12649 = vmatpush3.bf16.msra.mxu1 %v14295_v38 }
 0x8e7   : > { %v5886_v52 = vpack.c.bf16 %v11244_v18, %v11241_v36  ;;  %12650 = vmatprep.subr.bf16.mxu1 %v14296_v9  ;;  %17652 = vst [vmem:[#allocation76_spill] sm:$0xff] %v16603_v23  ;;  %17653 = vst [vmem:[#allocation77_spill] sm:$0xff] %v16605_v61 }
 0x8e9   : > { %v11245_v41 = vpop.f32.mrb[144].mxu1  ;;  %12614 = vmatprep.mubr.bf16.mxu1 %v5886_v52 }
 0x8ea   : > { %v11246_v39 = vpop.f32.mrb[145].mxu1  ;;  %12651 = vmatpush3.bf16.msra.mxu1 %v14296_v9  ;;  %v11571_v9 = vpop.f32.mrb[164].mxu0 }
 0x8eb   : > { %v11247_v48 = vadd.f32 %v11246_v39, %v11245_v41  ;;  %v11248_v21 = vpop.f32.mrb[146].mxu1  ;;  %12652 = vmatprep.subr.bf16.mxu1 %v14297_v35  ;;  %v11572_v43 = vpop.f32.mrb[165].mxu0 }
 0x8ec   : > { %v11249_v38 = vpop.f32.mrb[147].mxu1  ;;  %v11574_v39 = vpop.f32.mrb[166].mxu0  ;;  %v16610_v0 = vadd.f32 %v11572_v43, %v11571_v9 }
 0x8ed   : > { %v11250_v36 = vadd.f32 %v11249_v38, %v11248_v21  ;;  %v11575_v31 = vpop.f32.mrb[167].mxu0 }
 0x8ee   : > { %12653 = vmatpush3.bf16.msra.mxu1 %v14297_v35  ;;  %17654 = vst [vmem:[#allocation78_spill] sm:$0xff] %v16610_v0  ;;  %v16612_v60 = vadd.f32 %v11575_v31, %v11574_v39 }
 0x8ef   : > { %v5887_v52 = vpack.c.bf16 %v11250_v36, %v11247_v48  ;;  %12686 = vmatprep.subr.bf16.mxu1 %v16601_v34  ;;  %v11577_v36 = vpop.f32.mrb[168].mxu0 }
 0x8f0   : > { %17655 = vst [vmem:[#allocation79_spill] sm:$0xff] %v16612_v60  ;;  %v11578_v18 = vpop.f32.mrb[169].mxu0 }
 0x8f1   : > { %v11251_v41 = vpop.f32.mrb[148].mxu1  ;;  %12615 = vmatmul.mubr.bf16.gmra.mrb[100].mxu1 %v5887_v52  ;;  %v11580_v52 = vpop.f32.mrb[170].mxu0 }
 0x8f2   : > { %v11252_v42 = vpop.f32.mrb[149].mxu1  ;;  %v11581_v15 = vpop.f32.mrb[171].mxu0 }
 0x8f3   : > { %v11253_v51 = vadd.f32 %v11252_v42, %v11251_v41  ;;  %v11254_v44 = vpop.f32.mrb[150].mxu1  ;;  %v16616_v41 = vadd.f32 %v11578_v18, %v11577_v36  ;;  %v16618_v43 = vadd.f32 %v11581_v15, %v11580_v52 }
 0x8f4   : > { %v11255_v21 = vpop.f32.mrb[151].mxu1 }
 0x8f5   : > { %v11256_v38 = vadd.f32 %v11255_v21, %v11254_v44  ;;  %17656 = vst [vmem:[#allocation80_spill] sm:$0xff] %v16616_v41  ;;  %17657 = vst [vmem:[#allocation81_spill] sm:$0xff] %v16618_v43 }
 0x8f7   : > { %v5888_v48 = vpack.c.bf16 %v11256_v38, %v11253_v51  ;;  %v11623_v51 = vpop.f32.mrb[172].mxu0 }
 0x8f8   : > { %v11624_v21 = vpop.f32.mrb[173].mxu0 }
 0x8f9   : > { %v11257_v23 = vpop.f32.mrb[152].mxu1  ;;  %12618 = vmatprep.mubr.bf16.mxu1 %v5888_v48  ;;  %v11626_v48 = vpop.f32.mrb[174].mxu0 }
 0x8fa   : > { %v11258_v61 = vpop.f32.mrb[153].mxu1  ;;  %v11627_v0 = vpop.f32.mrb[175].mxu0 }
 0x8fb   : > { %v11259_v4 = vadd.f32 %v11258_v61, %v11257_v23  ;;  %v11260_v42 = vpop.f32.mrb[154].mxu1  ;;  %v16622_v61 = vadd.f32 %v11624_v21, %v11623_v51  ;;  %v16624_v18 = vadd.f32 %v11627_v0, %v11626_v48 }
 0x8fc   : > { %v11261_v31 = vpop.f32.mrb[155].mxu1 }
 0x8fd   : > { %v11262_v9 = vadd.f32 %v11261_v31, %v11260_v42  ;;  %17658 = vst [vmem:[#allocation82_spill] sm:$0xff] %v16622_v61  ;;  %17659 = vst [vmem:[#allocation83_spill] sm:$0xff] %v16624_v18 }
 0x8ff   : > { %v5889_v44 = vpack.c.bf16 %v11262_v9, %v11259_v4  ;;  %v11629_v4 = vpop.f32.mrb[176].mxu0 }
 0x900   : > { %v11630_v31 = vpop.f32.mrb[177].mxu0 }
 0x901   : > { %v11263_v38 = vpop.f32.mrb[156].mxu1  ;;  %12619 = vmatmul.mubr.bf16.gmra.mrb[104].mxu1 %v5889_v44  ;;  %v11632_v44 = vpop.f32.mrb[178].mxu0 }
 0x902   : > { %v11264_v35 = vpop.f32.mrb[157].mxu1  ;;  %v11633_v41 = vpop.f32.mrb[179].mxu0 }
 0x903   : > { %v11265_v60 = vadd.f32 %v11264_v35, %v11263_v38  ;;  %v11266_v23 = vpop.f32.mrb[158].mxu1  ;;  %v16628_v38 = vadd.f32 %v11630_v31, %v11629_v4  ;;  %v16630_v51 = vadd.f32 %v11633_v41, %v11632_v44 }
 0x904   : > { %v11267_v15 = vpop.f32.mrb[159].mxu1 }
 0x905   : > { %v11268_v36 = vadd.f32 %v11267_v15, %v11266_v23  ;;  %17660 = vst [vmem:[#allocation84_spill] sm:$0xff] %v16628_v38  ;;  %17661 = vst [vmem:[#allocation85_spill] sm:$0xff] %v16630_v51 }
 0x907   : > { %v5890_v42 = vpack.c.bf16 %v11268_v36, %v11265_v60  ;;  %v11635_v60 = vpop.f32.mrb[180].mxu0 }
 0x908   : > { %v11636_v15 = vpop.f32.mrb[181].mxu0 }
 0x909   : > { %v11269_v9 = vpop.f32.mrb[160].mxu1  ;;  %12622 = vmatprep.mubr.bf16.mxu1 %v5890_v42  ;;  %v11638_v42 = vpop.f32.mrb[182].mxu0 }
 0x90a   : > { %v11270_v39 = vpop.f32.mrb[161].mxu1  ;;  %v11639_v61 = vpop.f32.mrb[183].mxu0 }
 0x90b   : > { %v11271_v43 = vadd.f32 %v11270_v39, %v11269_v9  ;;  %v11272_v35 = vpop.f32.mrb[162].mxu1  ;;  %v16634_v9 = vadd.f32 %v11636_v15, %v11635_v60  ;;  %v16636_v4 = vadd.f32 %v11639_v61, %v11638_v42 }
 0x90c   : > { %v11273_v0 = vpop.f32.mrb[163].mxu1 }
 0x90d   : > { %v11274_v21 = vadd.f32 %v11273_v0, %v11272_v35  ;;  %17662 = vst [vmem:[#allocation86_spill] sm:$0xff] %v16634_v9  ;;  %17663 = vst [vmem:[#allocation87_spill] sm:$0xff] %v16636_v4 }
 0x90f   : > { %v5891_v23 = vpack.c.bf16 %v11274_v21, %v11271_v43  ;;  %v11641_v43 = vpop.f32.mrb[184].mxu0 }
 0x910   : > { %v11642_v0 = vpop.f32.mrb[185].mxu0 }
 0x911   : > { %v11275_v36 = vpop.f32.mrb[164].mxu1  ;;  %12623 = vmatmul.mubr.bf16.gmra.mrb[108].mxu1 %v5891_v23  ;;  %v11644_v23 = vpop.f32.mrb[186].mxu0 }
 0x912   : > { %v11276_v52 = vpop.f32.mrb[165].mxu1  ;;  %v11645_v38 = vpop.f32.mrb[187].mxu0 }
 0x913   : > { %v11277_v18 = vadd.f32 %v11276_v52, %v11275_v36  ;;  %v11278_v39 = vpop.f32.mrb[166].mxu1  ;;  %v16640_v36 = vadd.f32 %v11642_v0, %v11641_v43  ;;  %v16642_v60 = vadd.f32 %v11645_v38, %v11644_v23 }
 0x914   : > { %v11279_v41 = vpop.f32.mrb[167].mxu1 }
 0x915   : > { %v11280_v31 = vadd.f32 %v11279_v41, %v11278_v39  ;;  %17664 = vst [vmem:[#allocation88_spill] sm:$0xff] %v16640_v36  ;;  %17665 = vst [vmem:[#allocation89_spill] sm:$0xff] %v16642_v60 }
 0x917   : > { %v5892_v35 = vpack.c.bf16 %v11280_v31, %v11277_v18  ;;  %v11647_v18 = vpop.f32.mrb[188].mxu0 }
 0x918   : > { %v11648_v41 = vpop.f32.mrb[189].mxu0 }
 0x919   : > { %v11281_v21 = vpop.f32.mrb[168].mxu1  ;;  %12626 = vmatprep.mubr.bf16.mxu1 %v5892_v35  ;;  %v11650_v35 = vpop.f32.mrb[190].mxu0 }
 0x91a   : > { %v11282_v48 = vpop.f32.mrb[169].mxu1  ;;  %v11651_v9 = vpop.f32.mrb[191].mxu0 }
 0x91b   : > { %v11283_v51 = vadd.f32 %v11282_v48, %v11281_v21  ;;  %v11284_v52 = vpop.f32.mrb[170].mxu1  ;;  %v16646_v21 = vadd.f32 %v11648_v41, %v11647_v18  ;;  %v16648_v43 = vadd.f32 %v11651_v9, %v11650_v35 }
 0x91c   : > { %v11285_v61 = vpop.f32.mrb[171].mxu1 }
 0x91d   : > { %v11286_v15 = vadd.f32 %v11285_v61, %v11284_v52  ;;  %17666 = vst [vmem:[#allocation90_spill] sm:$0xff] %v16646_v21  ;;  %17667 = vst [vmem:[#allocation91_spill] sm:$0xff] %v16648_v43 }
 0x91f   : > { %v5893_v39 = vpack.c.bf16 %v11286_v15, %v11283_v51  ;;  %v11653_v51 = vpop.f32.mrb[192].mxu0 }
 0x920   : > { %v11654_v61 = vpop.f32.mrb[193].mxu0 }
 0x921   : > { %v11287_v31 = vpop.f32.mrb[172].mxu1  ;;  %12627 = vmatmul.mubr.bf16.gmra.mrb[112].mxu1 %v5893_v39  ;;  %v11656_v39 = vpop.f32.mrb[194].mxu0 }
 0x922   : > { %v11288_v44 = vpop.f32.mrb[173].mxu1  ;;  %v11657_v36 = vpop.f32.mrb[195].mxu0 }
 0x923   : > { %v11289_v4 = vadd.f32 %v11288_v44, %v11287_v31  ;;  %v11290_v48 = vpop.f32.mrb[174].mxu1  ;;  %v16652_v31 = vadd.f32 %v11654_v61, %v11653_v51  ;;  %v16654_v18 = vadd.f32 %v11657_v36, %v11656_v39 }
 0x924   : > { %v11291_v38 = vpop.f32.mrb[175].mxu1 }
 0x925   : > { %v11292_v0 = vadd.f32 %v11291_v38, %v11290_v48  ;;  %17668 = vst [vmem:[#allocation92_spill] sm:$0xff] %v16652_v31  ;;  %17669 = vst [vmem:[#allocation93_spill] sm:$0xff] %v16654_v18 }
 0x927   : > { %v5894_v52 = vpack.c.bf16 %v11292_v0, %v11289_v4  ;;  %v11659_v4 = vpop.f32.mrb[196].mxu0 }
 0x928   : > { %v11660_v38 = vpop.f32.mrb[197].mxu0 }
 0x929   : > { %v11293_v15 = vpop.f32.mrb[176].mxu1  ;;  %12630 = vmatprep.mubr.bf16.mxu1 %v5894_v52  ;;  %v11662_v52 = vpop.f32.mrb[198].mxu0 }
 0x92a   : > { %v11294_v42 = vpop.f32.mrb[177].mxu1  ;;  %v11663_v21 = vpop.f32.mrb[199].mxu0 }
 0x92b   : > { %v11295_v60 = vadd.f32 %v11294_v42, %v11293_v15  ;;  %v11296_v44 = vpop.f32.mrb[178].mxu1  ;;  %v16658_v15 = vadd.f32 %v11660_v38, %v11659_v4  ;;  %v16660_v51 = vadd.f32 %v11663_v21, %v11662_v52 }
 0x92c   : > { %v11297_v9 = vpop.f32.mrb[179].mxu1 }
 0x92d   : > { %v11298_v41 = vadd.f32 %v11297_v9, %v11296_v44  ;;  %v7772_v39 = vpack.c.bf16 %v16660_v51, %v16658_v15  ;;  %v17757_v15 = vld [vmem:[#allocation51_spill] sm:$0xff] }
 0x92e   : > { %v14316_v51 = vld [vmem:[#allocation2 + $0x804] ss:$8 sps:$4 sm:$0xff]  }
 0x92f   : > { %v5895_v48 = vpack.c.bf16 %v11298_v41, %v11295_v60  ;;  %v11665_v60 = vpop.f32.mrb[200].mxu0 }
 0x930   : > { %v11666_v9 = vpop.f32.mrb[201].mxu0 }
 0x931   : > { %v11299_v0 = vpop.f32.mrb[180].mxu1  ;;  %12631 = vmatmul.mubr.bf16.gmra.mrb[116].mxu1 %v5895_v48  ;;  %v11668_v48 = vpop.f32.mrb[202].mxu0 }
 0x932   : > { %v11300_v23 = vpop.f32.mrb[181].mxu1  ;;  %v11669_v31 = vpop.f32.mrb[203].mxu0 }
 0x933   : > { %v11301_v43 = vadd.f32 %v11300_v23, %v11299_v0  ;;  %v11302_v42 = vpop.f32.mrb[182].mxu1  ;;  %v16664_v0 = vadd.f32 %v11666_v9, %v11665_v60  ;;  %v16666_v4 = vadd.f32 %v11669_v31, %v11668_v48  ;;  %v14299_v9 = vld [vmem:[#allocation19 + $0x188] sm:$0xff]  }
 0x934   : > { %v11303_v36 = vpop.f32.mrb[183].mxu1 }
 0x935   : > { %v11304_v61 = vadd.f32 %v11303_v36, %v11302_v42  ;;  %v7773_v52 = vpack.c.bf16 %v16666_v4, %v16664_v0  ;;  %v14314_v0 = vld [vmem:[#allocation2 + $0x800] ss:$8 sps:$4 sm:$0xff]   ;;  %v14317_v4 = vld [vmem:[#allocation2 + $0x814] ss:$8 sps:$4 sm:$0xff]  }
 0x937   : > { %v5896_v44 = vpack.c.bf16 %v11304_v61, %v11301_v43  ;;  %v11671_v43 = vpop.f32.mrb[204].mxu0 }
 0x938   : > { %v11672_v36 = vpop.f32.mrb[205].mxu0 }
 0x939   : > { %v11305_v41 = vpop.f32.mrb[184].mxu1  ;;  %12634 = vmatprep.mubr.bf16.mxu1 %v5896_v44  ;;  %v11674_v61 = vpop.f32.mrb[206].mxu0  ;;  %v17670_v44 = vpack.c.bf16 %v16425_v5, %v16423_v2  ;;  %v17672_v2 = vpack.c.bf16 %v16437_v16, %v16435_v28  ;;  %v17673_v28 = vpack.c.bf16 %v16443_v3, %v16441_v49  ;;  %v14303_v49 = vld [vmem:[#allocation19 + $0x1a8] sm:$0xff]  }
 0x93a   : > { %v11306_v35 = vpop.f32.mrb[185].mxu1 }
 0x93b   : > { %v11307_v18 = vadd.f32 %v11306_v35, %v11305_v41  ;;  %v11308_v23 = vpop.f32.mrb[186].mxu1  ;;  %v11675_v35 = vpop.f32.mrb[207].mxu0  ;;  %v16673_v41 = vadd.f32 %v11672_v36, %v11671_v43 }
 0x93c   : > { %v11309_v21 = vpop.f32.mrb[187].mxu1  ;;  %v16675_v60 = vadd.f32 %v11675_v35, %v11674_v61  ;;  %v11677_v48 = vpop.f32.mrb[208].mxu0  ;;  %v14302_v35 = vld [vmem:[#allocation19 + $0x1a0] sm:$0xff]  }
 0x93d   : > { %v11310_v38 = vadd.f32 %v11309_v21, %v11308_v23  ;;  %v11678_v23 = vpop.f32.mrb[209].mxu0 }
 0x93e   : > { %v7774_v31 = vpack.c.bf16 %v16675_v60, %v16673_v41  ;;  %v11680_v21 = vpop.f32.mrb[210].mxu0  ;;  %v14364_v41 = vld [vmem:[#allocation19 + $0x210] sm:$0xff]   ;;  %v14319_v60 = vld [vmem:[#allocation2 + $0x810] ss:$8 sps:$4 sm:$0xff]  }
 0x93f   : > { %v5897_v42 = vpack.c.bf16 %v11310_v38, %v11307_v18  ;;  %v17671_v18 = vpack.c.bf16 %v16431_v32, %v16429_v62  ;;  %v11681_v5 = vpop.f32.mrb[211].mxu0  ;;  %v14300_v38 = vld [vmem:[#allocation19 + $0x190] sm:$0xff]   ;;  %v14301_v62 = vld [vmem:[#allocation19 + $0x198] sm:$0xff]  }
 0x940   : > { %v16688_v43 = vadd.f32 %v11681_v5, %v11680_v21  ;;  %v11683_v32 = vpop.f32.mrb[212].mxu0  ;;  %v17676_v21 = vpack.c.bf16 %v16461_v30, %v16459_v29  ;;  %v14304_v5 = vld [vmem:[#allocation19 + $0x1b0] sm:$0xff]   ;;  %v17677_v29 = vpack.c.bf16 %v16467_v24, %v16465_v57 }
 0x941   : > { %12635 = vmatmul.mubr.bf16.gmra.mrb[120].mxu1 %v5897_v42  ;;  %v16686_v42 = vadd.f32 %v11678_v23, %v11677_v48  ;;  %v11684_v61 = vpop.f32.mrb[213].mxu0 }
 0x942   : > { %12654 = vmatprep.mubr.bf16.mxu1 %v17670_v44  ;;  %v11686_v16 = vpop.f32.mrb[214].mxu0  ;;  %v16698_v48 = vadd.f32 %v11684_v61, %v11683_v32 }
 0x943   : > { %v7775_v36 = vpack.c.bf16 %v16688_v43, %v16686_v42  ;;  %v11687_v44 = vpop.f32.mrb[215].mxu0  ;;  %v14365_v42 = vld [vmem:[#allocation19 + $0x218] sm:$0xff]   ;;  %v14366_v43 = vld [vmem:[#allocation19 + $0x220] sm:$0xff]  }
 0x944   : > { %v11689_v3 = vpop.f32.mrb[216].mxu0 }
 0x949   : > { %12655 = vmatmul.mubr.bf16.vlgmr.msra.gmra.mrb[92].mxu1 %v17671_v18  ;;  %v11690_v18 = vpop.f32.mrb[217].mxu0 }
 0x94a   : > { %12658 = vmatprep.mubr.bf16.mxu1 %v17672_v2  ;;  %12687 = vmatpush3.bf16.msra.mxu1 %v16601_v34  ;;  %v17674_v34 = vpack.c.bf16 %v16449_v8, %v16447_v55  ;;  %v17675_v55 = vpack.c.bf16 %v16455_v6, %v16453_v58  ;;  %v11692_v8 = vpop.f32.mrb[218].mxu0  ;;  %v14305_v58 = vld [vmem:[#allocation19 + $0x1b8] sm:$0xff]  }
 0x94b   : > { %12688 = vmatprep.subr.bf16.mxu1 %v14299_v9  ;;  %v11693_v2 = vpop.f32.mrb[219].mxu0 }
 0x94c   : > { %v11695_v6 = vpop.f32.mrb[220].mxu0 }
 0x94d   : > { %v11696_v61 = vpop.f32.mrb[221].mxu0 }
 0x94e   : > { %12689 = vmatpush3.bf16.msra.mxu1 %v14299_v9  ;;  %v16700_v9 = vadd.f32 %v11687_v44, %v11686_v16  ;;  %v11698_v30 = vpop.f32.mrb[222].mxu0  ;;  %v16722_v44 = vadd.f32 %v11696_v61, %v11695_v6 }
 0x94f   : > { %12690 = vmatprep.subr.bf16.mxu1 %v14300_v38  ;;  %v11699_v16 = vpop.f32.mrb[223].mxu0 }
 0x950   : > { %v7776_v23 = vpack.c.bf16 %v16700_v9, %v16698_v48  ;;  %v14323_v48 = vld [vmem:[#allocation2 + $0x834] ss:$8 sps:$4 sm:$0xff]   ;;  %v14325_v9 = vld [vmem:[#allocation2 + $0x830] ss:$8 sps:$4 sm:$0xff]  }
 0x951   : > { %12659 = vmatmul.mubr.bf16.gmra.mrb[96].mxu1 %v17673_v28  ;;  %v17678_v28 = vpack.c.bf16 %v16473_v54, %v16471_v27  ;;  %v17680_v54 = vpack.c.bf16 %v16485_v46, %v16483_v59  ;;  %v17682_v59 = vpack.c.bf16 %v16497_v20, %v16495_v50 }
 0x952   : > { %12662 = vmatprep.mubr.bf16.mxu1 %v17674_v34  ;;  %12691 = vmatpush3.bf16.msra.mxu1 %v14300_v38  ;;  %v16710_v38 = vadd.f32 %v11690_v18, %v11689_v3  ;;  %v14306_v34 = vld [vmem:[#allocation19 + $0x1c0] sm:$0xff]   ;;  %v17679_v3 = vpack.c.bf16 %v16479_v7, %v16477_v37 }
 0x953   : > { %12692 = vmatprep.subr.bf16.mxu1 %v14301_v62  ;;  %v11701_v57 = vpop.f32.mrb[224].mxu0 }
 0x954   : > { %v11702_v24 = vpop.f32.mrb[225].mxu0 }
 0x955   : > { %v11704_v27 = vpop.f32.mrb[226].mxu0 }
 0x956   : > { %12693 = vmatpush3.bf16.msra.mxu1 %v14301_v62  ;;  %v16712_v62 = vadd.f32 %v11693_v2, %v11692_v8  ;;  %v11705_v18 = vpop.f32.mrb[227].mxu0 }
 0x957   : > { %12694 = vmatprep.subr.bf16.mxu1 %v14302_v35  ;;  %v16736_v8 = vadd.f32 %v11705_v18, %v11704_v27  ;;  %v17695_v27 = vld [vmem:[#allocation62_spill] sm:$0xff] }
 0x958   : > { %v7777_v32 = vpack.c.bf16 %v16712_v62, %v16710_v38  ;;  %v14328_v38 = vld [vmem:[#allocation2 + $0x840] ss:$8 sps:$4 sm:$0xff]   ;;  %v14329_v62 = vld [vmem:[#allocation2 + $0x854] ss:$8 sps:$4 sm:$0xff]  }
 0x959   : > { %12663 = vmatmul.mubr.bf16.gmra.mrb[100].mxu1 %v17675_v55  ;;  %v16734_v55 = vadd.f32 %v11702_v24, %v11701_v57  ;;  %v17685_v24 = vpack.c.bf16 %v16515_v14, %v16513_v10  ;;  %v14309_v10 = vld [vmem:[#allocation19 + $0x1d8] sm:$0xff]   ;;  %v17689_v14 = vpack.c.bf16 %v16542_v12, %v16540_v56  ;;  %v14312_v56 = vld [vmem:[#allocation19 + $0x1f0] sm:$0xff]  }
 0x95a   : > { %12666 = vmatprep.mubr.bf16.mxu1 %v17676_v21  ;;  %12695 = vmatpush3.bf16.msra.mxu1 %v14302_v35  ;;  %v16724_v35 = vadd.f32 %v11699_v16, %v11698_v30  ;;  %v17684_v16 = vpack.c.bf16 %v16509_v17, %v16507_v53  ;;  %v17688_v53 = vpack.c.bf16 %v16533_v22, %v16531_v1  ;;  %v14308_v17 = vld [vmem:[#allocation19 + $0x1d0] sm:$0xff]   ;;  %v14311_v1 = vld [vmem:[#allocation19 + $0x1e8] sm:$0xff]   ;;  %v17697_v12 = vld [vmem:[#allocation65_spill] sm:$0xff] }
 0x95b   : > { %12696 = vmatprep.subr.bf16.mxu1 %v14303_v49  ;;  %v7779_v21 = vpack.c.bf16 %v16736_v8, %v16734_v55  ;;  %v11707_v2 = vpop.f32.mrb[228].mxu0  ;;  %v14337_v55 = vld [vmem:[#allocation2 + $0x870] ss:$8 sps:$4 sm:$0xff]   ;;  %v14338_v8 = vld [vmem:[#allocation2 + $0x884] ss:$8 sps:$4 sm:$0xff]  }
 0x95e   : > { %12697 = vmatpush3.bf16.msra.mxu1 %v14303_v49  ;;  %v7778_v49 = vpack.c.bf16 %v16724_v35, %v16722_v44  ;;  %v14332_v44 = vld [vmem:[#allocation2 + $0x864] ss:$8 sps:$4 sm:$0xff]   ;;  %v14334_v35 = vld [vmem:[#allocation2 + $0x860] ss:$8 sps:$4 sm:$0xff]  }
 0x95f   : > { %12698 = vmatprep.subr.bf16.mxu1 %v14304_v5 }
 0x961   : > { %12667 = vmatmul.mubr.bf16.gmra.mrb[104].mxu1 %v17677_v29 }
 0x962   : > { %12670 = vmatprep.mubr.bf16.mxu1 %v17678_v28  ;;  %12699 = vmatpush3.bf16.msra.mxu1 %v14304_v5  ;;  %v11708_v5 = vpop.f32.mrb[229].mxu0  ;;  %v17683_v28 = vpack.c.bf16 %v16503_v25, %v16501_v26  ;;  %v17686_v26 = vpack.c.bf16 %v16521_v11, %v16519_v13  ;;  %v14307_v25 = vld [vmem:[#allocation19 + $0x1c8] sm:$0xff]   ;;  %v17690_v13 = vpack.c.bf16 %v16548_v45, %v16546_v47  ;;  %v17691_v11 = vld [vmem:[#allocation61_spill] sm:$0xff]  ;;  %v17698_v45 = vld [vmem:[#allocation64_spill] sm:$0xff] }
 0x963   : > { %12700 = vmatprep.subr.bf16.mxu1 %v14305_v58  ;;  %v16743_v37 = vadd.f32 %v11708_v5, %v11707_v2  ;;  %v11710_v7 = vpop.f32.mrb[230].mxu0  ;;  %v14313_v47 = vld [vmem:[#allocation19 + $0x1f8] sm:$0xff]   ;;  %v17699_v18 = vpack.c.bf16 %v17697_v12, %v17698_v45  ;;  %v17700_v2 = vld [vmem:[#allocation67_spill] sm:$0xff]  ;;  %v17701_v5 = vld [vmem:[#allocation66_spill] sm:$0xff] }
 0x964   : > { %v11711_v46 = vpop.f32.mrb[231].mxu0  ;;  %v17731_v12 = vld [vmem:[#allocation44_spill] sm:$0xff]  ;;  %v17732_v45 = vld [vmem:[#allocation87_spill] sm:$0xff] }
 0x965   : > { %v16748_v6 = vadd.f32 %v11711_v46, %v11710_v7  ;;  %v11713_v29 = vpop.f32.mrb[232].mxu0  ;;  %v17703_v7 = vld [vmem:[#allocation52_spill] sm:$0xff] }
 0x966   : > { %12701 = vmatpush3.bf16.msra.mxu1 %v14305_v58  ;;  %v17681_v58 = vpack.c.bf16 %v16491_v33, %v16489_v19  ;;  %v11714_v30 = vpop.f32.mrb[233].mxu0  ;;  %v17705_v46 = vld [vmem:[#allocation68_spill] sm:$0xff] }
 0x967   : > { %12734 = vmatprep.subr.bf16.mxu1 %v14306_v34  ;;  %v7780_v61 = vpack.c.bf16 %v16748_v6, %v16743_v37  ;;  %v16755_v19 = vadd.f32 %v11714_v30, %v11713_v29  ;;  %v11716_v33 = vpop.f32.mrb[234].mxu0  ;;  %v17707_v30 = vld [vmem:[#allocation71_spill] sm:$0xff]  ;;  %v14343_v6 = vld [vmem:[#allocation2 + $0x890] ss:$8 sps:$4 sm:$0xff]  }
 0x968   : > { %v11717_v50 = vpop.f32.mrb[235].mxu0  ;;  %v14341_v37 = vld [vmem:[#allocation2 + $0x894] ss:$8 sps:$4 sm:$0xff]  }
 0x969   : > { %12671 = vmatmul.mubr.bf16.gmra.mrb[108].mxu1 %v17679_v3  ;;  %v16760_v20 = vadd.f32 %v11717_v50, %v11716_v33  ;;  %v17687_v3 = vpack.c.bf16 %v16527_v40, %v16525_v63  ;;  %v14310_v63 = vld [vmem:[#allocation19 + $0x1e0] sm:$0xff]   ;;  %v17692_v40 = vld [vmem:[#allocation60_spill] sm:$0xff] }
 0x96a   : > { %12674 = vmatprep.mubr.bf16.mxu1 %v17680_v54  ;;  %v17693_v22 = vpack.c.bf16 %v17691_v11, %v17692_v40  ;;  %v17711_v50 = vld [vmem:[#allocation72_spill] sm:$0xff] }
 0x96b   : > { %v7781_v57 = vpack.c.bf16 %v16760_v20, %v16755_v19  ;;  %v17723_v11 = vld [vmem:[#allocation80_spill] sm:$0xff]  ;;  %v14347_v20 = vld [vmem:[#allocation2 + $0x8b4] ss:$8 sps:$4 sm:$0xff]  }
 0x96c   : > { %v14346_v19 = vld [vmem:[#allocation2 + $0x8a0] ss:$8 sps:$4 sm:$0xff]  }
 0x971   : > { %12675 = vmatmul.mubr.bf16.gmra.mrb[112].mxu1 %v17681_v58  ;;  %v17702_v58 = vpack.c.bf16 %v17700_v2, %v17701_v5  ;;  %v17735_v5 = vld [vmem:[#allocation53_spill] sm:$0xff] }
 0x972   : > { %12678 = vmatprep.mubr.bf16.mxu1 %v17682_v59  ;;  %v17704_v59 = vld [vmem:[#allocation69_spill] sm:$0xff] }
 0x973   : > { %v17706_v29 = vpack.c.bf16 %v17704_v59, %v17705_v46  ;;  %v17738_v59 = vld [vmem:[#allocation89_spill] sm:$0xff]  ;;  %v17739_v46 = vld [vmem:[#allocation88_spill] sm:$0xff] }
 0x979   : > { %12679 = vmatmul.mubr.bf16.gmra.mrb[116].mxu1 %v17683_v28  ;;  %v17708_v28 = vld [vmem:[#allocation70_spill] sm:$0xff] }
 0x97a   : > { %12682 = vmatprep.mubr.bf16.mxu1 %v17684_v16  ;;  %v17709_v33 = vpack.c.bf16 %v17707_v30, %v17708_v28  ;;  %v17710_v16 = vld [vmem:[#allocation73_spill] sm:$0xff]  ;;  %v17741_v30 = vld [vmem:[#allocation46_spill] sm:$0xff]  ;;  %v17742_v28 = vld [vmem:[#allocation91_spill] sm:$0xff] }
 0x981   : > { %12683 = vmatmul.mubr.bf16.gmra.mrb[120].mxu1 %v17685_v24  ;;  %v17712_v24 = vpack.c.bf16 %v17710_v16, %v17711_v50  ;;  %v17745_v50 = vld [vmem:[#allocation55_spill] sm:$0xff] }
 0x982   : > { %12702 = vmatprep.mubr.bf16.mxu1 %v17686_v26  ;;  %v17713_v26 = vld [vmem:[#allocation75_spill] sm:$0xff] }
 0x989   : > { %12703 = vmatmul.mubr.bf16.vlgmr.msra.gmra.mrb[92].mxu1 %v17687_v3 }
 0x98a   : > { %12735 = vmatpush3.bf16.msra.mxu1 %v14306_v34  ;;  %12706 = vmatprep.mubr.bf16.mxu1 %v17688_v53  ;;  %v17694_v34 = vld [vmem:[#allocation63_spill] sm:$0xff]  ;;  %v17716_v53 = vld [vmem:[#allocation77_spill] sm:$0xff] }
 0x98b   : > { %12736 = vmatprep.subr.bf16.mxu1 %v14307_v25  ;;  %v17696_v54 = vpack.c.bf16 %v17694_v34, %v17695_v27  ;;  %v17726_v34 = vld [vmem:[#allocation82_spill] sm:$0xff] }
 0x98e   : > { %12737 = vmatpush3.bf16.msra.mxu1 %v14307_v25  ;;  %v17714_v25 = vld [vmem:[#allocation74_spill] sm:$0xff] }
 0x98f   : > { %12738 = vmatprep.subr.bf16.mxu1 %v14308_v17  ;;  %v17715_v3 = vpack.c.bf16 %v17713_v26, %v17714_v25  ;;  %v17747_v26 = vld [vmem:[#allocation56_spill] sm:$0xff]  ;;  %v17748_v25 = vld [vmem:[#allocation93_spill] sm:$0xff] }
 0x991   : > { %12707 = vmatmul.mubr.bf16.gmra.mrb[96].mxu1 %v17689_v14  ;;  %v17719_v14 = vld [vmem:[#allocation79_spill] sm:$0xff] }
 0x992   : > { %12739 = vmatpush3.bf16.msra.mxu1 %v14308_v17  ;;  %12710 = vmatprep.mubr.bf16.mxu1 %v17690_v13  ;;  %v17717_v17 = vld [vmem:[#allocation76_spill] sm:$0xff]  ;;  %v17720_v13 = vld [vmem:[#allocation78_spill] sm:$0xff] }
 0x993   : > { %12740 = vmatprep.subr.bf16.mxu1 %v14309_v10 }
 0x996   : > { %12741 = vmatpush3.bf16.msra.mxu1 %v14309_v10  ;;  %v17718_v10 = vpack.c.bf16 %v17716_v53, %v17717_v17  ;;  %v17751_v17 = vld [vmem:[#allocation48_spill] sm:$0xff] }
 0x997   : > { %12742 = vmatprep.subr.bf16.mxu1 %v14310_v63 }
 0x999   : > { %12711 = vmatmul.mubr.bf16.gmra.mrb[100].mxu1 %v17693_v22  ;;  %v17725_v22 = vld [vmem:[#allocation83_spill] sm:$0xff] }
 0x99a   : > { %12743 = vmatpush3.bf16.msra.mxu1 %v14310_v63  ;;  %12714 = vmatprep.mubr.bf16.mxu1 %v17696_v54  ;;  %v17721_v63 = vpack.c.bf16 %v17719_v14, %v17720_v13  ;;  %v17727_v27 = vpack.c.bf16 %v17725_v22, %v17726_v34  ;;  %v17728_v54 = vld [vmem:[#allocation85_spill] sm:$0xff]  ;;  %v17754_v13 = vld [vmem:[#allocation58_spill] sm:$0xff]  ;;  %v14368_v22 = vld [vmem:[#allocation19 + $0x230] sm:$0xff]  }
 0x99b   : > { %12744 = vmatprep.subr.bf16.mxu1 %v14311_v1  ;;  %v17753_v14 = vld [vmem:[#allocation49_spill] sm:$0xff]  ;;  %v14352_v34 = vld [vmem:[#allocation2 + $0x8c0] ss:$8 sps:$4 sm:$0xff]  }
 0x99e   : > { %12745 = vmatpush3.bf16.msra.mxu1 %v14311_v1  ;;  %v17722_v1 = vld [vmem:[#allocation81_spill] sm:$0xff] }
 0x99f   : > { %12746 = vmatprep.subr.bf16.mxu1 %v14312_v56  ;;  %v17724_v40 = vpack.c.bf16 %v17722_v1, %v17723_v11  ;;  %v17756_v1 = vld [vmem:[#allocation59_spill] sm:$0xff]  ;;  %v14349_v11 = vld [vmem:[#allocation2 + $0x8b0] ss:$8 sps:$4 sm:$0xff]  }
 0x9a1   : > { %12715 = vmatmul.mubr.bf16.gmra.mrb[104].mxu1 %v17699_v18  ;;  %v17733_v18 = vld [vmem:[#allocation86_spill] sm:$0xff] }
 0x9a2   : > { %12747 = vmatpush3.bf16.msra.mxu1 %v14312_v56  ;;  %12718 = vmatprep.mubr.bf16.mxu1 %v17702_v58  ;;  %v17729_v56 = vld [vmem:[#allocation84_spill] sm:$0xff]  ;;  %v17734_v2 = vpack.c.bf16 %v17732_v45, %v17733_v18  ;;  %v17736_v58 = vld [vmem:[#allocation45_spill] sm:$0xff] }
 0x9a3   : > { %12748 = vmatprep.subr.bf16.mxu1 %v14313_v47  ;;  %v14359_v45 = vld [vmem:[#allocation2 + $0x8f4] ss:$8 sps:$4 sm:$0xff]   ;;  %v14361_v18 = vld [vmem:[#allocation2 + $0x8f0] ss:$8 sps:$4 sm:$0xff]  }
 0x9a6   : > { %12749 = vmatpush3.bf16.msra.mxu1 %v14313_v47  ;;  %v17730_v47 = vpack.c.bf16 %v17728_v54, %v17729_v56  ;;  %v14369_v54 = vld [vmem:[#allocation19 + $0x238] sm:$0xff]  }
 0x9a7   : > { %11743 = vmatprep.subr.bf16.mxu1 %v17703_v7  ;;  %v17737_v7 = vld [vmem:[#allocation54_spill] sm:$0xff] }
 0x9a8   : > { %v14355_v56 = vld [vmem:[#allocation2 + $0x8d0] ss:$8 sps:$4 sm:$0xff]  }
 0x9a9   : > { %12719 = vmatmul.mubr.bf16.gmra.mrb[108].mxu1 %v17706_v29  ;;  %v17740_v29 = vpack.c.bf16 %v17738_v59, %v17739_v46 }
 0x9aa   : > { %12722 = vmatprep.mubr.bf16.mxu1 %v17709_v33  ;;  %v17743_v33 = vld [vmem:[#allocation90_spill] sm:$0xff] }
 0x9ab   : > { %v17744_v16 = vpack.c.bf16 %v17742_v28, %v17743_v33 }
 0x9b1   : > { %12723 = vmatmul.mubr.bf16.gmra.mrb[112].mxu1 %v17712_v24  ;;  %v17746_v24 = vld [vmem:[#allocation47_spill] sm:$0xff] }
 0x9b2   : > { %12726 = vmatprep.mubr.bf16.mxu1 %v17715_v3  ;;  %v17749_v3 = vld [vmem:[#allocation92_spill] sm:$0xff] }
 0x9b3   : > { %v17750_v53 = vpack.c.bf16 %v17748_v25, %v17749_v3 }
 0x9b9   : > { %12727 = vmatmul.mubr.bf16.gmra.mrb[116].mxu1 %v17718_v10  ;;  %v17752_v10 = vld [vmem:[#allocation57_spill] sm:$0xff] }
 0x9ba   : > { %12730 = vmatprep.mubr.bf16.mxu1 %v17721_v63  ;;  %v17755_v63 = vld [vmem:[#allocation50_spill] sm:$0xff] }
 0x9c1   : > { %12731 = vmatmul.mubr.bf16.gmra.mrb[120].mxu1 %v17724_v40  ;;  %v14350_v40 = vld [vmem:[#allocation2 + $0x8c4] ss:$8 sps:$4 sm:$0xff]  }
 0x9c2   : > { %12750 = vmatprep.mubr.bf16.mxu1 %v17727_v27  ;;  %v14353_v27 = vld [vmem:[#allocation2 + $0x8d4] ss:$8 sps:$4 sm:$0xff]  }
 0x9c9   : > { %12751 = vmatmul.mubr.bf16.vlgmr.msra.gmra.mrb[92].mxu1 %v17730_v47  ;;  %v14356_v47 = vld [vmem:[#allocation2 + $0x8e4] ss:$8 sps:$4 sm:$0xff]  }
 0x9ca   : > { %11744 = vmatpush3.bf16.msra.mxu1 %v17731_v12  ;;  %12754 = vmatprep.mubr.bf16.mxu1 %v17734_v2  ;;  %v14358_v12 = vld [vmem:[#allocation2 + $0x8e0] ss:$8 sps:$4 sm:$0xff]  }
 0x9cb   : > { %11745 = vmatprep.subr.bf16.mxu1 %v17735_v5 }
 0x9ce   : > { %11746 = vmatpush3.bf16.msra.mxu1 %v17736_v58 }
 0x9cf   : > { %11747 = vmatprep.subr.bf16.mxu1 %v17737_v7 }
 0x9d1   : > { %12755 = vmatmul.mubr.bf16.gmra.mrb[96].mxu1 %v17740_v29 }
 0x9d2   : > { %11748 = vmatpush3.bf16.msra.mxu1 %v17741_v30  ;;  %12758 = vmatprep.mubr.bf16.mxu1 %v17744_v16 }
 0x9d3   : > { %11749 = vmatprep.subr.bf16.mxu1 %v17745_v50 }
 0x9d6   : > { %11750 = vmatpush3.bf16.msra.mxu1 %v17746_v24 }
 0x9d7   : > { %11751 = vmatprep.subr.bf16.mxu1 %v17747_v26 }
 0x9d9   : > { %12759 = vmatmul.mubr.bf16.gmra.mrb[100].mxu1 %v17750_v53 }
 0x9da   : > { %11752 = vmatpush3.bf16.msra.mxu1 %v17751_v17  ;;  %12762 = vmatprep.mubr.bf16.mxu1 %v7772_v39  ;;  %v14362_v39 = vld [vmem:[#allocation19 + $0x200] sm:$0xff]  }
 0x9db   : > { %11753 = vmatprep.subr.bf16.mxu1 %v17752_v10 }
 0x9de   : > { %11754 = vmatpush3.bf16.msra.mxu1 %v17753_v14 }
 0x9df   : > { %11755 = vmatprep.subr.bf16.mxu1 %v17754_v13 }
 0x9e1   : > { %12763 = vmatmul.mubr.bf16.gmra.mrb[104].mxu1 %v7773_v52  ;;  %v14363_v52 = vld [vmem:[#allocation19 + $0x208] sm:$0xff]  }
 0x9e2   : > { %11756 = vmatpush3.bf16.msra.mxu1 %v17755_v63  ;;  %12766 = vmatprep.mubr.bf16.mxu1 %v7774_v31  ;;  %v14320_v31 = vld [vmem:[#allocation2 + $0x824] ss:$8 sps:$4 sm:$0xff]  }
 0x9e3   : > { %11757 = vmatprep.subr.bf16.mxu1 %v17756_v1 }
 0x9e6   : > { %11758 = vmatpush3.bf16.msra.mxu1 %v17757_v15 }
 0x9e7   : > { %12782 = vmatprep.subr.bf16.mxu1 %v14362_v39 }
 0x9e9   : > { %12767 = vmatmul.mubr.bf16.gmra.mrb[108].mxu1 %v7775_v36  ;;  %v14322_v36 = vld [vmem:[#allocation2 + $0x820] ss:$8 sps:$4 sm:$0xff]  }
 0x9ea   : > { %12770 = vmatprep.mubr.bf16.mxu1 %v7776_v23  ;;  %v14326_v23 = vld [vmem:[#allocation2 + $0x844] ss:$8 sps:$4 sm:$0xff]  }
 0x9f1   : > { %12771 = vmatmul.mubr.bf16.gmra.mrb[112].mxu1 %v7777_v32  ;;  %v14331_v32 = vld [vmem:[#allocation2 + $0x850] ss:$8 sps:$4 sm:$0xff]  }
 0x9f2   : > { %12774 = vmatprep.mubr.bf16.mxu1 %v7778_v49  ;;  %v14335_v49 = vld [vmem:[#allocation2 + $0x874] ss:$8 sps:$4 sm:$0xff]  }
 0x9f9   : > { %12775 = vmatmul.mubr.bf16.gmra.mrb[116].mxu1 %v7779_v21  ;;  %v14340_v21 = vld [vmem:[#allocation2 + $0x880] ss:$8 sps:$4 sm:$0xff]  }
 0x9fa   : > { %12778 = vmatprep.mubr.bf16.mxu1 %v7780_v61  ;;  %v14344_v61 = vld [vmem:[#allocation2 + $0x8a4] ss:$8 sps:$4 sm:$0xff]  }
 0xa01   : > { %12779 = vmatmul.mubr.bf16.gmra.mrb[120].mxu1 %v7781_v57  ;;  %v14367_v57 = vld [vmem:[#allocation19 + $0x228] sm:$0xff]  }
 0xa02   : > { %8265 = vmatprep.mubr.bf16.mxu1 %v14316_v51 }
 0xa09   : > { %8266 = vmatmul.mubr.bf16.vlgmr.msra.gmra.mrb[188].mxu1 %v14314_v0 }
 0xa0a   : > { %8273 = vmatprep.mubr.bf16.mxu1 %v14317_v4  ;;  %12783 = vmatpush3.bf16.msra.mxu1 %v14362_v39 }
 0xa0b   : > { %12784 = vmatprep.subr.bf16.mxu1 %v14363_v52 }
 0xa0e   : > { %12785 = vmatpush3.bf16.msra.mxu1 %v14363_v52 }
 0xa0f   : > { %12786 = vmatprep.subr.bf16.mxu1 %v14364_v41 }
 0xa11   : > { %8274 = vmatmul.mubr.bf16.gmra.mrb[192].mxu1 %v14319_v60 }
 0xa12   : > { %8281 = vmatprep.mubr.bf16.mxu1 %v14320_v31  ;;  %12787 = vmatpush3.bf16.msra.mxu1 %v14364_v41 }
 0xa13   : > { %12788 = vmatprep.subr.bf16.mxu1 %v14365_v42 }
 0xa16   : > { %12789 = vmatpush3.bf16.msra.mxu1 %v14365_v42 }
 0xa17   : > { %12790 = vmatprep.subr.bf16.mxu1 %v14366_v43 }
 0xa19   : > { %8282 = vmatmul.mubr.bf16.gmra.mrb[196].mxu1 %v14322_v36 }
 0xa1a   : > { %8289 = vmatprep.mubr.bf16.mxu1 %v14323_v48  ;;  %12791 = vmatpush3.bf16.msra.mxu1 %v14366_v43 }
 0xa1b   : > { %12792 = vmatprep.subr.bf16.mxu1 %v14367_v57 }
 0xa1e   : > { %12793 = vmatpush3.bf16.msra.mxu1 %v14367_v57 }
 0xa1f   : > { %12794 = vmatprep.subr.bf16.mxu1 %v14368_v22 }
 0xa21   : > { %8290 = vmatmul.mubr.bf16.gmra.mrb[200].mxu1 %v14325_v9 }
 0xa22   : > { %8297 = vmatprep.mubr.bf16.mxu1 %v14326_v23  ;;  %12795 = vmatpush3.bf16.msra.mxu1 %v14368_v22 }
 0xa23   : > { %12796 = vmatprep.subr.bf16.mxu1 %v14369_v54 }
 0xa26   : > { %12797 = vmatpush3.bf16.msra.mxu1 %v14369_v54 }
 0xa29   : > { %8298 = vmatmul.mubr.bf16.gmra.mrb[204].mxu1 %v14328_v38 }
 0xa2a   : > { %8305 = vmatprep.mubr.bf16.mxu1 %v14329_v62 }
 0xa31   : > { %8306 = vmatmul.mubr.bf16.gmra.mrb[208].mxu1 %v14331_v32 }
 0xa32   : > { %8313 = vmatprep.mubr.bf16.mxu1 %v14332_v44 }
 0xa39   : > { %8314 = vmatmul.mubr.bf16.gmra.mrb[212].mxu1 %v14334_v35 }
 0xa3a   : > { %8321 = vmatprep.mubr.bf16.mxu1 %v14335_v49 }
 0xa41   : > { %8322 = vmatmul.mubr.bf16.gmra.mrb[216].mxu1 %v14337_v55 }
 0xa42   : > { %8329 = vmatprep.mubr.bf16.mxu1 %v14338_v8 }
 0xa49   : > { %8330 = vmatmul.mubr.bf16.gmra.mrb[220].mxu1 %v14340_v21 }
 0xa4a   : > { %8337 = vmatprep.mubr.bf16.mxu1 %v14341_v37 }
 0xa51   : > { %8338 = vmatmul.mubr.bf16.gmra.mrb[224].mxu1 %v14343_v6 }
 0xa52   : > { %8345 = vmatprep.mubr.bf16.mxu1 %v14344_v61 }
 0xa59   : > { %8346 = vmatmul.mubr.bf16.gmra.mrb[228].mxu1 %v14346_v19 }
 0xa5a   : > { %8353 = vmatprep.mubr.bf16.mxu1 %v14347_v20 }
 0xa61   : > { %8354 = vmatmul.mubr.bf16.gmra.mrb[232].mxu1 %v14349_v11 }
 0xa62   : > { %8361 = vmatprep.mubr.bf16.mxu1 %v14350_v40 }
 0xa69   : > { %8362 = vmatmul.mubr.bf16.gmra.mrb[236].mxu1 %v14352_v34 }
 0xa6a   : > { %8369 = vmatprep.mubr.bf16.mxu1 %v14353_v27 }
 0xa71   : > { %8370 = vmatmul.mubr.bf16.gmra.mrb[240].mxu1 %v14355_v56 }
 0xa72   : > { %8377 = vmatprep.mubr.bf16.mxu1 %v14356_v47 }
 0xa79   : > { %8378 = vmatmul.mubr.bf16.gmra.mrb[244].mxu1 %v14358_v12 }
 0xa7a   : > { %8385 = vmatprep.mubr.bf16.mxu1 %v14359_v45 }
 0xa81   : > { %8386 = vmatmul.mubr.bf16.gmra.mrb[248].mxu1 %v14361_v18 }
 0xadc   : > { %v11759_v2 = vpop.f32.mrb[188].mxu1 }
 0xadd   : > { %v11760_v5 = vpop.f32.mrb[189].mxu1 }
 0xade   : > { %v11761_v58 = vadd.f32 %v11760_v5, %v11759_v2  ;;  %v11762_v7 = vpop.f32.mrb[190].mxu1 }
 0xadf   : > { %v11763_v59 = vpop.f32.mrb[191].mxu1 }
 0xae0   : > { %v11764_v46 = vadd.f32 %v11763_v59, %v11762_v7 }
 0xae2   : > { %v8394_v29 = vpack.c.bf16 %v11764_v46, %v11761_v58 }
 0xae4   : > { %v11765_v30 = vpop.f32.mrb[192].mxu1  ;;  %12798 = vmatprep.mubr.bf16.mxu1 %v8394_v29 }
 0xae5   : > { %v11766_v28 = vpop.f32.mrb[193].mxu1 }
 0xae6   : > { %v11767_v33 = vadd.f32 %v11766_v28, %v11765_v30  ;;  %v11768_v16 = vpop.f32.mrb[194].mxu1 }
 0xae7   : > { %v11769_v50 = vpop.f32.mrb[195].mxu1 }
 0xae8   : > { %v11770_v24 = vadd.f32 %v11769_v50, %v11768_v16 }
 0xaea   : > { %v8395_v26 = vpack.c.bf16 %v11770_v24, %v11767_v33 }
 0xaec   : > { %12799 = vmatmul.mubr.bf16.vlgmr.msra.gmra.mrb[92].mxu1 %v8395_v26  ;;  %v11771_v25 = vpop.f32.mrb[196].mxu1 }
 0xaed   : > { %v11772_v3 = vpop.f32.mrb[197].mxu1 }
 0xaee   : > { %v11773_v53 = vadd.f32 %v11772_v3, %v11771_v25  ;;  %v11774_v17 = vpop.f32.mrb[198].mxu1 }
 0xaef   : > { %v11775_v10 = vpop.f32.mrb[199].mxu1 }
 0xaf0   : > { %v11776_v14 = vadd.f32 %v11775_v10, %v11774_v17 }
 0xaf2   : > { %v8396_v13 = vpack.c.bf16 %v11776_v14, %v11773_v53 }
 0xaf4   : > { %v11777_v63 = vpop.f32.mrb[200].mxu1  ;;  %12802 = vmatprep.mubr.bf16.mxu1 %v8396_v13 }
 0xaf5   : > { %v11778_v1 = vpop.f32.mrb[201].mxu1 }
 0xaf6   : > { %v11779_v15 = vadd.f32 %v11778_v1, %v11777_v63  ;;  %v11780_v51 = vpop.f32.mrb[202].mxu1 }
 0xaf7   : > { %v11781_v39 = vpop.f32.mrb[203].mxu1 }
 0xaf8   : > { %v11782_v0 = vadd.f32 %v11781_v39, %v11780_v51 }
 0xafa   : > { %v8397_v4 = vpack.c.bf16 %v11782_v0, %v11779_v15 }
 0xafc   : > { %12803 = vmatmul.mubr.bf16.gmra.mrb[96].mxu1 %v8397_v4  ;;  %v11783_v52 = vpop.f32.mrb[204].mxu1 }
 0xafd   : > { %v11784_v41 = vpop.f32.mrb[205].mxu1 }
 0xafe   : > { %v11785_v60 = vadd.f32 %v11784_v41, %v11783_v52  ;;  %v11786_v31 = vpop.f32.mrb[206].mxu1 }
 0xaff   : > { %v11787_v42 = vpop.f32.mrb[207].mxu1 }
 0xb00   : > { %v11788_v43 = vadd.f32 %v11787_v42, %v11786_v31 }
 0xb02   : > { %v8398_v36 = vpack.c.bf16 %v11788_v43, %v11785_v60 }
 0xb04   : > { %v11789_v48 = vpop.f32.mrb[208].mxu1  ;;  %12806 = vmatprep.mubr.bf16.mxu1 %v8398_v36 }
 0xb05   : > { %v11790_v9 = vpop.f32.mrb[209].mxu1 }
 0xb06   : > { %v11791_v23 = vadd.f32 %v11790_v9, %v11789_v48  ;;  %v11792_v38 = vpop.f32.mrb[210].mxu1 }
 0xb07   : > { %v11793_v62 = vpop.f32.mrb[211].mxu1 }
 0xb08   : > { %v11794_v32 = vadd.f32 %v11793_v62, %v11792_v38 }
 0xb0a   : > { %v8399_v44 = vpack.c.bf16 %v11794_v32, %v11791_v23 }
 0xb0c   : > { %12807 = vmatmul.mubr.bf16.gmra.mrb[100].mxu1 %v8399_v44  ;;  %v11795_v35 = vpop.f32.mrb[212].mxu1 }
 0xb0d   : > { %v11796_v49 = vpop.f32.mrb[213].mxu1 }
 0xb0e   : > { %v11797_v55 = vadd.f32 %v11796_v49, %v11795_v35  ;;  %v11798_v8 = vpop.f32.mrb[214].mxu1 }
 0xb0f   : > { %v11799_v21 = vpop.f32.mrb[215].mxu1 }
 0xb10   : > { %v11800_v37 = vadd.f32 %v11799_v21, %v11798_v8 }
 0xb12   : > { %v8400_v6 = vpack.c.bf16 %v11800_v37, %v11797_v55 }
 0xb14   : > { %v11801_v61 = vpop.f32.mrb[216].mxu1  ;;  %12810 = vmatprep.mubr.bf16.mxu1 %v8400_v6  ;;  %v8778_v6 = vld [vmem:[%s17758_s4] sm:$0xff] }
 0xb15   : > { %v11802_v19 = vpop.f32.mrb[217].mxu1 }
 0xb16   : > { %v11803_v20 = vadd.f32 %v11802_v19, %v11801_v61  ;;  %v11804_v57 = vpop.f32.mrb[218].mxu1  ;;  %v8779_v61 = vld [vmem:[%s17758_s4 + $0x8] sm:$0xff]  ;;  %v14977_v19 = vmov 0.0|0.0  }
 0xb17   : > { %v11805_v11 = vpop.f32.mrb[219].mxu1  ;;  %13134 = vmatprep.subr.bf16.mxu0 %v14977_v19 }
 0xb18   : > { %v11806_v40 = vadd.f32 %v11805_v11, %v11804_v57  ;;  %v8780_v57 = vld [vmem:[%s17758_s4 + $0x10] sm:$0xff]  ;;  %v8781_v11 = vld [vmem:[%s17758_s4 + $0x18] sm:$0xff] }
 0xb1a   : > { %v8401_v22 = vpack.c.bf16 %v11806_v40, %v11803_v20  ;;  %v13135_v20 = vpack.c.bf16 %v8779_v61, %v8778_v6  ;;  %v13138_v40 = vpack.c.bf16 %v8781_v11, %v8780_v57 }
 0xb1c   : > { %12811 = vmatmul.mubr.bf16.gmra.mrb[104].mxu1 %v8401_v22  ;;  %v11807_v34 = vpop.f32.mrb[220].mxu1  ;;  %13136 = vmatpush3.bf16.msra.mxu0 %v13135_v20  ;;  %v8782_v22 = vld [vmem:[%s17758_s4 + $0x20] sm:$0xff] }
 0xb1d   : > { %v11808_v27 = vpop.f32.mrb[221].mxu1  ;;  %13137 = vmatprep.subr.bf16.mxu0 %v14977_v19 }
 0xb1e   : > { %v11809_v54 = vadd.f32 %v11808_v27, %v11807_v34  ;;  %v11810_v56 = vpop.f32.mrb[222].mxu1  ;;  %v8783_v34 = vld [vmem:[%s17758_s4 + $0x28] sm:$0xff] }
 0xb1f   : > { %v11811_v47 = vpop.f32.mrb[223].mxu1  ;;  %v13141_v27 = vpack.c.bf16 %v8783_v34, %v8782_v22 }
 0xb20   : > { %v11812_v12 = vadd.f32 %v11811_v47, %v11810_v56  ;;  %13139 = vmatpush3.bf16.msra.mxu0 %v13138_v40  ;;  %v8785_v56 = vld [vmem:[%s17758_s4 + $0x38] sm:$0xff] }
 0xb21   : > { %13140 = vmatprep.subr.bf16.mxu0 %v14977_v19 }
 0xb22   : > { %v8402_v45 = vpack.c.bf16 %v11812_v12, %v11809_v54  ;;  %v8784_v54 = vld [vmem:[%s17758_s4 + $0x30] sm:$0xff]  ;;  %v8786_v12 = vld [vmem:[%s17758_s4 + $0x40] sm:$0xff] }
 0xb23   : > { %v13144_v47 = vpack.c.bf16 %v8785_v56, %v8784_v54 }
 0xb24   : > { %v11813_v18 = vpop.f32.mrb[224].mxu1  ;;  %12814 = vmatprep.mubr.bf16.mxu1 %v8402_v45  ;;  %13142 = vmatpush3.bf16.msra.mxu0 %v13141_v27  ;;  %v8787_v45 = vld [vmem:[%s17758_s4 + $0x48] sm:$0xff] }
 0xb25   : > { %v11814_v2 = vpop.f32.mrb[225].mxu1  ;;  %13143 = vmatprep.subr.bf16.mxu0 %v14977_v19 }
 0xb26   : > { %v11815_v5 = vadd.f32 %v11814_v2, %v11813_v18  ;;  %v11816_v58 = vpop.f32.mrb[226].mxu1  ;;  %v13147_v18 = vpack.c.bf16 %v8787_v45, %v8786_v12  ;;  %v8788_v2 = vld [vmem:[%s17758_s4 + $0x50] sm:$0xff] }
 0xb27   : > { %v11817_v7 = vpop.f32.mrb[227].mxu1 }
 0xb28   : > { %v11818_v59 = vadd.f32 %v11817_v7, %v11816_v58  ;;  %13145 = vmatpush3.bf16.msra.mxu0 %v13144_v47 }
 0xb29   : > { %13146 = vmatprep.subr.bf16.mxu0 %v14977_v19 }
 0xb2a   : > { %v8403_v46 = vpack.c.bf16 %v11818_v59, %v11815_v5  ;;  %v8789_v5 = vld [vmem:[%s17758_s4 + $0x58] sm:$0xff] }
 0xb2b   : > { %v13150_v7 = vpack.c.bf16 %v8789_v5, %v8788_v2 }
 0xb2c   : > { %12815 = vmatmul.mubr.bf16.gmra.mrb[108].mxu1 %v8403_v46  ;;  %v11819_v29 = vpop.f32.mrb[228].mxu1  ;;  %13148 = vmatpush3.bf16.msra.mxu0 %v13147_v18 }
 0xb2d   : > { %v11820_v30 = vpop.f32.mrb[229].mxu1  ;;  %13149 = vmatprep.subr.bf16.mxu0 %v14977_v19 }
 0xb2e   : > { %v11821_v28 = vadd.f32 %v11820_v30, %v11819_v29  ;;  %v11822_v33 = vpop.f32.mrb[230].mxu1  ;;  %v8790_v30 = vld [vmem:[%s17758_s4 + $0x60] sm:$0xff] }
 0xb2f   : > { %v11823_v16 = vpop.f32.mrb[231].mxu1 }
 0xb30   : > { %v11824_v50 = vadd.f32 %v11823_v16, %v11822_v33  ;;  %13151 = vmatpush3.bf16.msra.mxu0 %v13150_v7  ;;  %v8792_v16 = vld [vmem:[%s17758_s4 + $0x70] sm:$0xff] }
 0xb31   : > { %13152 = vmatprep.subr.bf16.mxu0 %v14977_v19 }
 0xb32   : > { %v8404_v24 = vpack.c.bf16 %v11824_v50, %v11821_v28  ;;  %v8791_v28 = vld [vmem:[%s17758_s4 + $0x68] sm:$0xff]  ;;  %v8793_v50 = vld [vmem:[%s17758_s4 + $0x78] sm:$0xff] }
 0xb33   : > { %v13153_v33 = vpack.c.bf16 %v8791_v28, %v8790_v30 }
 0xb34   : > { %v11825_v26 = vpop.f32.mrb[232].mxu1  ;;  %12818 = vmatprep.mubr.bf16.mxu1 %v8404_v24  ;;  %v13156_v24 = vpack.c.bf16 %v8793_v50, %v8792_v16 }
 0xb35   : > { %v11826_v25 = vpop.f32.mrb[233].mxu1  ;;  %13154 = vmatpush3.bf16.msra.mxu0 %v13153_v33 }
 0xb36   : > { %v11827_v3 = vadd.f32 %v11826_v25, %v11825_v26  ;;  %v11828_v53 = vpop.f32.mrb[234].mxu1  ;;  %13155 = vmatprep.subr.bf16.mxu0 %v14977_v19  ;;  %v14979_v26 = vmov 0.0   ;;  %v16938_v25 = vld [vmem:[#allocation21] ss:$0 sm:$0xff] }
 0xb37   : > { %v11829_v17 = vpop.f32.mrb[235].mxu1  ;;  %12862 = vmatprep.mubr.msk.f32.mxu0 %vm14978_vm5, %v14979_v26 }
 0xb38   : > { %v11830_v10 = vadd.f32 %v11829_v17, %v11828_v53 }
 0xb39   : > { %13157 = vmatpush3.bf16.msra.mxu0 %v13156_v24 }
 0xb3a   : > { %v8405_v14 = vpack.c.bf16 %v11830_v10, %v11827_v3  ;;  %13158 = vmatprep.subr.bf16.mxu0 %v14977_v19 }
 0xb3c   : > { %12819 = vmatmul.mubr.bf16.gmra.mrb[112].mxu1 %v8405_v14  ;;  %v11831_v13 = vpop.f32.mrb[236].mxu1 }
 0xb3d   : > { %v11832_v63 = vpop.f32.mrb[237].mxu1 }
 0xb3e   : > { %v11833_v1 = vadd.f32 %v11832_v63, %v11831_v13  ;;  %v11834_v15 = vpop.f32.mrb[238].mxu1 }
 0xb3f   : > { %v11835_v51 = vpop.f32.mrb[239].mxu1 }
 0xb40   : > { %v11836_v39 = vadd.f32 %v11835_v51, %v11834_v15 }
 0xb42   : > { %v8406_v0 = vpack.c.bf16 %v11836_v39, %v11833_v1 }
 0xb44   : > { %v11837_v4 = vpop.f32.mrb[240].mxu1  ;;  %12822 = vmatprep.mubr.bf16.mxu1 %v8406_v0 }
 0xb45   : > { %v11838_v52 = vpop.f32.mrb[241].mxu1 }
 0xb46   : > { %v11839_v41 = vadd.f32 %v11838_v52, %v11837_v4  ;;  %v11840_v60 = vpop.f32.mrb[242].mxu1 }
 0xb47   : > { %v11841_v31 = vpop.f32.mrb[243].mxu1 }
 0xb48   : > { %v11842_v42 = vadd.f32 %v11841_v31, %v11840_v60 }
 0xb4a   : > { %v8407_v43 = vpack.c.bf16 %v11842_v42, %v11839_v41 }
 0xb4c   : > { %12823 = vmatmul.mubr.bf16.gmra.mrb[116].mxu1 %v8407_v43  ;;  %v11843_v36 = vpop.f32.mrb[244].mxu1 }
 0xb4d   : > { %v11844_v48 = vpop.f32.mrb[245].mxu1 }
 0xb4e   : > { %v11845_v9 = vadd.f32 %v11844_v48, %v11843_v36  ;;  %v11846_v23 = vpop.f32.mrb[246].mxu1 }
 0xb4f   : > { %v11847_v38 = vpop.f32.mrb[247].mxu1 }
 0xb50   : > { %v11848_v62 = vadd.f32 %v11847_v38, %v11846_v23 }
 0xb52   : > { %v8408_v32 = vpack.c.bf16 %v11848_v62, %v11845_v9 }
 0xb54   : > { %v11849_v44 = vpop.f32.mrb[248].mxu1  ;;  %12826 = vmatprep.mubr.bf16.mxu1 %v8408_v32 }
 0xb55   : > { %v11850_v35 = vpop.f32.mrb[249].mxu1 }
 0xb56   : > { %v11851_v49 = vadd.f32 %v11850_v35, %v11849_v44  ;;  %v11852_v55 = vpop.f32.mrb[250].mxu1 }
 0xb57   : > { %v11853_v8 = vpop.f32.mrb[251].mxu1 }
 0xb58   : > { %v11854_v21 = vadd.f32 %v11853_v8, %v11852_v55 }
 0xb5a   : > { %v8409_v37 = vpack.c.bf16 %v11854_v21, %v11851_v49 }
 0xb5c   : > { %12827 = vmatmul.mubr.bf16.gmra.mrb[120].mxu1 %v8409_v37 }
 0xbbf   : > { %v12800_v58 = vpop.f32.mrb[92].mxu1 }
 0xbc0   : > { %v8509_v59 = vpop.f32.mrb[93].mxu1  ;;  %v16948_v1 = vadd.f32 %v12800_v58, %v16938_v25 }
 0xbc1   : > { %v12801_v46 = vpop.f32.mrb[94].mxu1  ;;  %v16944_v10 = vadd.f32 %v16938_v25, %v8509_v59 }
 0xbc2   : > { %v8512_v29 = vpop.f32.mrb[95].mxu1  ;;  %v8709_v39 = vmax.f32 %v16948_v1, 0.0  ;;  %v16957_v0 = vadd.f32 %v12801_v46, %v16938_v25 }
 0xbc3   : > { %v16941_v3 = vadd.f32 %v16938_v25, %v8512_v29  ;;  %v8707_v15 = vmax.f32 %v16944_v10, 0.0 }
 0xbc4   : > { %v8710_v41 = vmax.f32 %v16957_v0, 0.0 }
 0xbc5   : > { %v8708_v63 = vmax.f32 %v16941_v3, 0.0 }
 0xbc7   : > { %v8739_v51 = vadd.f32 %v8708_v63, %v8707_v15 }
 0xbc9   : > { %v8740_v52 = vadd.f32 %v8739_v51, %v8709_v39 }
 0xbcb   : > { %v8741_v42 = vadd.f32 %v8740_v52, %v8710_v41 }
 0xbcf   : > { %v12804_v53 = vpop.f32.mrb[96].mxu1 }
 0xbd0   : > { %v8525_v17 = vpop.f32.mrb[97].mxu1  ;;  %v16975_v62 = vadd.f32 %v12804_v53, %v16938_v25 }
 0xbd1   : > { %v12805_v14 = vpop.f32.mrb[98].mxu1  ;;  %v16960_v4 = vadd.f32 %v16938_v25, %v8525_v17 }
 0xbd2   : > { %v8528_v13 = vpop.f32.mrb[99].mxu1  ;;  %v8713_v44 = vmax.f32 %v16975_v62, 0.0  ;;  %v16981_v35 = vadd.f32 %v12805_v14, %v16938_v25 }
 0xbd3   : > { %v8711_v60 = vmax.f32 %v16960_v4, 0.0  ;;  %v16967_v31 = vadd.f32 %v16938_v25, %v8528_v13 }
 0xbd4   : > { %v8714_v8 = vmax.f32 %v16981_v35, 0.0 }
 0xbd5   : > { %v8742_v48 = vadd.f32 %v8741_v42, %v8711_v60  ;;  %v8712_v9 = vmax.f32 %v16967_v31, 0.0 }
 0xbd7   : > { %v8743_v32 = vadd.f32 %v8742_v48, %v8712_v9 }
 0xbd9   : > { %v8744_v55 = vadd.f32 %v8743_v32, %v8713_v44 }
 0xbdb   : > { %v8745_v6 = vadd.f32 %v8744_v55, %v8714_v8 }
 0xbdf   : > { %v12808_v43 = vpop.f32.mrb[100].mxu1 }
 0xbe0   : > { %v8541_v36 = vpop.f32.mrb[101].mxu1  ;;  %v16999_v40 = vadd.f32 %v12808_v43, %v16938_v25 }
 0xbe1   : > { %v12809_v23 = vpop.f32.mrb[102].mxu1  ;;  %v16984_v49 = vadd.f32 %v16938_v25, %v8541_v36 }
 0xbe2   : > { %v8544_v38 = vpop.f32.mrb[103].mxu1  ;;  %v8717_v54 = vmax.f32 %v16999_v40, 0.0  ;;  %v17005_v56 = vadd.f32 %v12809_v23, %v16938_v25 }
 0xbe3   : > { %v8715_v21 = vmax.f32 %v16984_v49, 0.0  ;;  %v16991_v37 = vadd.f32 %v16938_v25, %v8544_v38 }
 0xbe4   : > { %v8718_v45 = vmax.f32 %v17005_v56, 0.0 }
 0xbe5   : > { %v8746_v61 = vadd.f32 %v8745_v6, %v8715_v21  ;;  %v8716_v20 = vmax.f32 %v16991_v37, 0.0 }
 0xbe7   : > { %v8747_v27 = vadd.f32 %v8746_v61, %v8716_v20 }
 0xbe9   : > { %v8748_v12 = vadd.f32 %v8747_v27, %v8717_v54 }
 0xbeb   : > { %v8749_v5 = vadd.f32 %v8748_v12, %v8718_v45 }
 0xbef   : > { %v12812_v57 = vpop.f32.mrb[104].mxu1 }
 0xbf0   : > { %v8557_v11 = vpop.f32.mrb[105].mxu1  ;;  %v17023_v59 = vadd.f32 %v12812_v57, %v16938_v25 }
 0xbf1   : > { %v12813_v22 = vpop.f32.mrb[106].mxu1  ;;  %v17008_v47 = vadd.f32 %v16938_v25, %v8557_v11 }
 0xbf2   : > { %v8560_v34 = vpop.f32.mrb[107].mxu1  ;;  %v17541_v16 = vmax.f32 %v17023_v59, 0.0  ;;  %v17029_v50 = vadd.f32 %v12813_v22, %v16938_v25 }
 0xbf3   : > { %v8719_v18 = vmax.f32 %v17008_v47, 0.0  ;;  %v17015_v2 = vadd.f32 %v16938_v25, %v8560_v34 }
 0xbf4   : > { %v17540_v17 = vmax.f32 %v17029_v50, 0.0 }
 0xbf5   : > { %v8750_v58 = vadd.f32 %v8749_v5, %v8719_v18  ;;  %v17542_v7 = vmax.f32 %v17015_v2, 0.0 }
 0xbf7   : > { %v8751_v30 = vadd.f32 %v8750_v58, %v17542_v7 }
 0xbf9   : > { %v8752_v53 = vadd.f32 %v8751_v30, %v17541_v16 }
 0xbfb   : > { %v8753_v51 = vadd.f32 %v8752_v53, %v17540_v17 }
 0xbff   : > { %v12816_v46 = vpop.f32.mrb[108].mxu1 }
 0xc00   : > { %v8573_v29 = vpop.f32.mrb[109].mxu1  ;;  %v17047_v43 = vadd.f32 %v12816_v46, %v16938_v25 }
 0xc01   : > { %v12817_v28 = vpop.f32.mrb[110].mxu1  ;;  %v17032_v24 = vadd.f32 %v16938_v25, %v8573_v29 }
 0xc02   : > { %v8576_v33 = vpop.f32.mrb[111].mxu1  ;;  %v17535_v38 = vmax.f32 %v17047_v43, 0.0  ;;  %v17053_v32 = vadd.f32 %v12817_v28, %v16938_v25 }
 0xc03   : > { %v17539_v14 = vmax.f32 %v17032_v24, 0.0  ;;  %v17039_v13 = vadd.f32 %v16938_v25, %v8576_v33  ;;  %v17763_v49 = vmax.f32 %v17032_v24, 0.0 }
 0xc04   : > { %v17534_v11 = vmax.f32 %v17053_v32, 0.0 }
 0xc05   : > { %v8754_v52 = vadd.f32 %v8753_v51, %v17539_v14  ;;  %v17538_v42 = vmax.f32 %v17039_v13, 0.0  ;;  %v8873_v14 = vld [vmem:[#allocation24 + $0x8] sm:$0xff] }
 0xc07   : > { %v8755_v36 = vadd.f32 %v8754_v52, %v17538_v42  ;;  %v8872_v42 = vld [vmem:[#allocation24] sm:$0xff] }
 0xc08   : > { %v13159_v16 = vpack.c.bf16 %v8873_v14, %v8872_v42 }
 0xc09   : > { %v8756_v57 = vadd.f32 %v8755_v36, %v17535_v38 }
 0xc0b   : > { %v8757_v27 = vadd.f32 %v8756_v57, %v17534_v11 }
 0xc0f   : > { %v12820_v48 = vpop.f32.mrb[112].mxu1 }
 0xc10   : > { %v8589_v23 = vpop.f32.mrb[113].mxu1  ;;  %v17071_v58 = vadd.f32 %v12820_v48, %v16938_v25 }
 0xc11   : > { %v17056_v55 = vadd.f32 %v16938_v25, %v8589_v23  ;;  %v12821_v6 = vpop.f32.mrb[114].mxu1 }
 0xc12   : > { %v8592_v61 = vpop.f32.mrb[115].mxu1  ;;  %v17527_v29 = vmax.f32 %v17071_v58, 0.0  ;;  %v17077_v30 = vadd.f32 %v12821_v6, %v16938_v25 }
 0xc13   : > { %v17531_v22 = vmax.f32 %v17056_v55, 0.0  ;;  %v17063_v34 = vadd.f32 %v16938_v25, %v8592_v61  ;;  %v17767_v47 = vmax.f32 %v17056_v55, 0.0 }
 0xc14   : > { %v17528_v48 = vmax.f32 %v17077_v30, 0.0  ;;  %v17770_v24 = vmax.f32 %v17077_v30, 0.0 }
 0xc15   : > { %v8758_v12 = vadd.f32 %v8757_v27, %v17531_v22  ;;  %v17530_v5 = vmax.f32 %v17063_v34, 0.0 }
 0xc17   : > { %v8759_v46 = vadd.f32 %v8758_v12, %v17530_v5 }
 0xc19   : > { %v8760_v53 = vadd.f32 %v8759_v46, %v17527_v29 }
 0xc1b   : > { %v8761_v6 = vadd.f32 %v8760_v53, %v17528_v48 }
 0xc1f   : > { %v12824_v28 = vpop.f32.mrb[116].mxu1 }
 0xc20   : > { %v8605_v33 = vpop.f32.mrb[117].mxu1  ;;  %v17095_v12 = vadd.f32 %v12824_v28, %v16938_v25 }
 0xc21   : > { %v17082_v51 = vadd.f32 %v16938_v25, %v8605_v33  ;;  %v12825_v52 = vpop.f32.mrb[118].mxu1 }
 0xc22   : > { %v8608_v36 = vpop.f32.mrb[119].mxu1  ;;  %v17533_v33 = vmax.f32 %v17095_v12, 0.0  ;;  %v17101_v29 = vadd.f32 %v12825_v52, %v16938_v25 }
 0xc23   : > { %v17529_v23 = vmax.f32 %v17082_v51, 0.0  ;;  %v17087_v61 = vadd.f32 %v16938_v25, %v8608_v36 }
 0xc24   : > { %v17774_v30 = vmax.f32 %v17101_v29, 0.0 }
 0xc25   : > { %v8762_v57 = vadd.f32 %v8761_v6, %v17529_v23  ;;  %v17532_v27 = vmax.f32 %v17087_v61, 0.0  ;;  %v17536_v6 = vmax.f32 %v17101_v29, 0.0  ;;  %v17772_v55 = vmax.f32 %v17087_v61, 0.0 }
 0xc27   : > { %v8763_v46 = vadd.f32 %v8762_v57, %v17532_v27 }
 0xc29   : > { %v8764_v36 = vadd.f32 %v8763_v46, %v17533_v33 }
 0xc2b   : > { %v8765_v52 = vadd.f32 %v8764_v36, %v17536_v6 }
 0xc2f   : > { %v12828_v53 = vpop.f32.mrb[120].mxu1 }
 0xc30   : > { %v8621_v48 = vpop.f32.mrb[121].mxu1  ;;  %v17110_v22 = vadd.f32 %v12828_v53, %v16938_v25 }
 0xc31   : > { %v17107_v23 = vadd.f32 %v16938_v25, %v8621_v48  ;;  %v12829_v28 = vpop.f32.mrb[122].mxu1 }
 0xc32   : > { %v8624_v5 = vpop.f32.mrb[123].mxu1  ;;  %v17121_v33 = vadd.f32 %v12829_v28, %v16938_v25  ;;  %v8737_v11 = vmax.f32 %v17110_v22, 0.0  ;;  %v9327_v22 = vld [vmem:[%s17759_s25 + $0x78] sm:$0xff] }
 0xc33   : > { %v17537_v57 = vmax.f32 %v17107_v23, 0.0  ;;  %v17116_v27 = vadd.f32 %v16938_v25, %v8624_v5 }
 0xc34   : > { %v17543_v38 = vmax.f32 %v17121_v33, 0.0  ;;  %v17776_v29 = vmax.f32 %v17121_v33, 0.0  ;;  %v9999_v33 = vld [vmem:[#allocation13] ss:$0 sm:$0xff] }
 0xc35   : > { %v8766_v46 = vadd.f32 %v8765_v52, %v17537_v57  ;;  %v8736_v48 = vmax.f32 %v17116_v27, 0.0  ;;  %v9325_v27 = vld [vmem:[%s17759_s25 + $0x68] sm:$0xff] }
 0xc37   : > { %v8767_v53 = vadd.f32 %v8766_v46, %v8736_v48  ;;  %v8874_v46 = vld [vmem:[#allocation24 + $0x10] sm:$0xff] }
 0xc39   : > { %v8768_v36 = vadd.f32 %v8767_v53, %v8737_v11  ;;  %v8875_v53 = vld [vmem:[#allocation24 + $0x18] sm:$0xff] }
 0xc3b   : > { %v8769_v5 = vadd.f32 %v8768_v36, %v17543_v38  ;;  %v13162_v36 = vpack.c.bf16 %v8875_v53, %v8874_v46  ;;  %v9005_v46 = vld [vmem:[#allocation27 + $0x28] sm:$0xff] }
 0xc3d   : > { %v8770_v6 = vrot.slane %v8769_v5, 4 }
 0xc3f   : > { %v8771_v52 = vadd.f32 %v8770_v6, %v8769_v5  ;;  %v8876_v6 = vld [vmem:[#allocation24 + $0x20] sm:$0xff] }
 0xc41   : > { %v8772_v57 = vrot.slane %v8771_v52, 2 }
 0xc43   : > { %v8773_v25 = vadd.f32 %v8772_v57, %v8771_v52  ;;  %v10394_v57 = vld [vmem:[#allocation22] ss:$0 sm:$0xff] }
 0xc45   : > { %v8774_v28 = vrot.slane %v8773_v25, 1 }
 0xc47   : > { %v8775_v17 = vadd.f32 %v8774_v28, %v8773_v25  ;;  %v9003_v25 = vld [vmem:[#allocation27 + $0x18] sm:$0xff] }
 0xc49   : > { %v8777_v7 = vmul.f32 0.00390625, %v8775_v17  ;;  %v9001_v17 = vld [vmem:[#allocation27 + $0x8] sm:$0xff] }
 0xc4b   : > { %12863 = vmatmul.mubr.f32.vlgmr.msra.gmra.mrb[236].mxu0 %v8777_v7 }
 0xc4c   : > { %13160 = vmatpush3.bf16.msra.mxu0 %v13159_v16  ;;  %12875 = vmatprep.mubr.msk.f32.mxu0 %vm14978_vm5, %v14979_v26  ;;  %v9000_v16 = vld [vmem:[#allocation27] sm:$0xff] }
 0xc4d   : > { %13161 = vmatprep.subr.bf16.mxu0 %v14977_v19  ;;  %v13164_v42 = vpack.c.bf16 %v9001_v17, %v9000_v16  ;;  %v9002_v19 = vld [vmem:[#allocation27 + $0x10] sm:$0xff]  ;;  %v9011_v16 = vld [vmem:[#allocation27 + $0x58] sm:$0xff] }
 0xc4e   : > { %v13168_v28 = vpack.c.bf16 %v9003_v25, %v9002_v19  ;;  %v9013_v19 = vld [vmem:[#allocation27 + $0x68] sm:$0xff] }
 0xc4f   : > { %13165 = vmatprep.subr.bf16.mxu1 %v13164_v42 }
 0xc50   : > { %13163 = vmatpush3.bf16.msra.mxu0 %v13162_v36  ;;  %13167 = vmatpush3.bf16.msra.mxu1 %v13164_v42  ;;  %v9006_v36 = vld [vmem:[#allocation27 + $0x30] sm:$0xff]  ;;  %v9012_v42 = vld [vmem:[#allocation27 + $0x60] sm:$0xff] }
 0xc51   : > { %12873 = vmatprep.subr.mxu0 %v14979_v26  ;;  %13169 = vmatprep.subr.bf16.mxu1 %v13168_v28  ;;  %v9004_v26 = vld [vmem:[#allocation27 + $0x20] sm:$0xff]  ;;  %v13188_v25 = vpack.c.bf16 %v9013_v19, %v9012_v42  ;;  %v9319_v42 = vld [vmem:[%s17759_s25 + $0x38] sm:$0xff] }
 0xc52   : > { %v13172_v53 = vpack.c.bf16 %v9005_v46, %v9004_v26  ;;  %v9015_v26 = vld [vmem:[#allocation27 + $0x78] sm:$0xff] }
 0xc54   : > { %12874 = vmatpush3.msra.mxu0 %v8876_v6  ;;  %13171 = vmatpush3.bf16.msra.mxu1 %v13168_v28  ;;  %v9007_v6 = vld [vmem:[#allocation27 + $0x38] sm:$0xff]  ;;  %v9014_v28 = vld [vmem:[#allocation27 + $0x70] sm:$0xff] }
 0xc55   : > { %13173 = vmatprep.subr.bf16.mxu1 %v13172_v53  ;;  %v13192_v46 = vpack.c.bf16 %v9015_v26, %v9014_v28  ;;  %v9321_v28 = vld [vmem:[%s17759_s25 + $0x48] sm:$0xff] }
 0xc58   : > { %13175 = vmatpush3.bf16.msra.mxu1 %v13172_v53  ;;  %v9312_v53 = vld [vmem:[%s17759_s25] sm:$0xff] }
 0xd1e   : > { %v8867_v5 = vpop.f32.mrb[236].mxu0 }
 0xd1f   : > { %v8868_v52 = vadd.f32 %v10394_v57, %v8867_v5  ;;  %v12864_v14 = vpop.f32.mrb[237].mxu0  ;;  %v13176_v57 = vpack.c.bf16 %v9007_v6, %v9006_v36  ;;  %v9008_v5 = vld [vmem:[#allocation27 + $0x40] sm:$0xff]  ;;  %v9314_v6 = vld [vmem:[%s17759_s25 + $0x10] sm:$0xff] }
 0xd20   : > { %v9313_v36 = vld [vmem:[%s17759_s25 + $0x8] sm:$0xff] }
 0xd21   : > { %v8871_v7 = vmax.f32 %v8868_v52, 0.0  ;;  %13177 = vmatprep.subr.bf16.mxu1 %v13176_v57  ;;  %v9009_v52 = vld [vmem:[#allocation27 + $0x48] sm:$0xff] }
 0xd22   : > { %13179 = vmatpush3.bf16.msra.mxu1 %v13176_v57  ;;  %v13180_v14 = vpack.c.bf16 %v9009_v52, %v9008_v5  ;;  %v13196_v57 = vpack.c.bf16 %v9313_v36, %v9312_v53  ;;  %v9315_v5 = vld [vmem:[%s17759_s25 + $0x18] sm:$0xff] }
 0xd23   : > { %12876 = vmatmul.mubr.msk.f32.vlgmr.msra.gmra.mrb[238].mxu0 %vm8884_vm6, %v8871_v7  ;;  %v9010_v7 = vld [vmem:[#allocation27 + $0x50] sm:$0xff]  ;;  %v13200_v52 = vpack.c.bf16 %v9315_v5, %v9314_v6  ;;  %v10395_v6 = vld [vmem:[#allocation25] ss:$0 sm:$0xff] }
 0xd24   : > { %13181 = vmatprep.subr.bf16.mxu1 %v13180_v14  ;;  %v13184_v17 = vpack.c.bf16 %v9011_v16, %v9010_v7  ;;  %v9317_v7 = vld [vmem:[%s17759_s25 + $0x28] sm:$0xff]  ;;  %13197 = vmatprep.subr.bf16.mxu0 %v13196_v57  ;;  %v9323_v53 = vld [vmem:[%s17759_s25 + $0x58] sm:$0xff] }
 0xd25   : > { %13199 = vmatpush3.bf16.msra.mxu0 %v13196_v57 }
 0xd26   : > { %13183 = vmatpush3.bf16.msra.mxu1 %v13180_v14  ;;  %v9316_v14 = vld [vmem:[%s17759_s25 + $0x20] sm:$0xff]  ;;  %13201 = vmatprep.subr.bf16.mxu0 %v13200_v52 }
 0xd27   : > { %13185 = vmatprep.subr.bf16.mxu1 %v13184_v17  ;;  %v13204_v16 = vpack.c.bf16 %v9317_v7, %v9316_v14 }
 0xd29   : > { %13203 = vmatpush3.bf16.msra.mxu0 %v13200_v52 }
 0xd2a   : > { %13187 = vmatpush3.bf16.msra.mxu1 %v13184_v17  ;;  %v9318_v17 = vld [vmem:[%s17759_s25 + $0x30] sm:$0xff]  ;;  %13205 = vmatprep.subr.bf16.mxu0 %v13204_v16 }
 0xd2b   : > { %13189 = vmatprep.subr.bf16.mxu1 %v13188_v25  ;;  %v13208_v19 = vpack.c.bf16 %v9319_v42, %v9318_v17  ;;  %v8964_v17 = vlaneseq }
 0xd2d   : > { %13207 = vmatpush3.bf16.msra.mxu0 %v13204_v16  ;;  %v8965_v42 = vshrl.u32 %v8964_v17, 7 }
 0xd2e   : > { %13191 = vmatpush3.bf16.msra.mxu1 %v13188_v25  ;;  %v9320_v25 = vld [vmem:[%s17759_s25 + $0x40] sm:$0xff]  ;;  %13209 = vmatprep.subr.bf16.mxu0 %v13208_v19 }
 0xd2f   : > { %13193 = vmatprep.subr.bf16.mxu1 %v13192_v46  ;;  %v13212_v26 = vpack.c.bf16 %v9321_v28, %v9320_v25  ;;  %v8966_v25 = vsub.s32 0, %v8965_v42 }
 0xd31   : > { %13211 = vmatpush3.bf16.msra.mxu0 %v13208_v19 }
 0xd32   : > { %13195 = vmatpush3.bf16.msra.mxu1 %v13192_v46  ;;  %v9322_v46 = vld [vmem:[%s17759_s25 + $0x50] sm:$0xff]  ;;  %13213 = vmatprep.subr.bf16.mxu0 %v13212_v26 }
 0xd33   : > { %v13216_v36 = vpack.c.bf16 %v9323_v53, %v9322_v46 }
 0xd35   : > { %13215 = vmatpush3.bf16.msra.mxu0 %v13212_v26 }
 0xd36   : > { %13217 = vmatprep.subr.bf16.mxu0 %v13216_v36 }
 0xd39   : > { %13219 = vmatpush3.bf16.msra.mxu0 %v13216_v36 }
 0xdf6   : > { %v8954_v57 = vpop.f32.mrb[238].mxu0 }
 0xdf7   : > { %v8955_v5 = vadd.f32 %v10395_v6, %v8954_v57  ;;  %v12877_v52 = vpop.f32.mrb[239].mxu0 }
 0xdf8   : > { %v10398_v52 = vld [vmem:[#allocation28] ss:$0 sm:$0xff] }
 0xdf9   : > { %v10397_v14 = vmul.f32 -1.442695, %v8955_v5  ;;  %v17282_v17 = vadd.f32 %v10398_v52, %v9999_v33 }
 0xdfb   : > { %14370 = vpow2.f32 %v10397_v14 }
 0xe05   : > { %v14371_v7 = vpop.eup %14370 }
 0xe06   : > { %v8961_v16 = vadd.f32 1.0, %v14371_v7 }
 0xe08   : > { %14372 = vrcp.f32 %v8961_v16 }
 0xe12   : > { %v14373_v28 = vpop.eup %14372 }
 0xe13   : > { %v17172_v38 = vrot.slane %v14373_v28, %v8966_v25 }
 0xe15   : > { %v8968_v19 = vmul.f32 %v17172_v38, %v8707_v15  ;;  %v8969_v26 = vmul.f32 %v17172_v38, %v8708_v63  ;;  %v8970_v46 = vmul.f32 %v17172_v38, %v8709_v39  ;;  %v8971_v53 = vmul.f32 %v17172_v38, %v8710_v41 }
 0xe16   : > { %v8972_v10 = vmul.f32 %v17172_v38, %v8711_v60  ;;  %v8973_v3 = vmul.f32 %v17172_v38, %v8712_v9  ;;  %v8974_v63 = vmul.f32 %v17172_v38, %v8713_v44  ;;  %v8975_v1 = vmul.f32 %v17172_v38, %v8714_v8 }
 0xe17   : > { %12910 = vmatprep.mubr.f32.mxu1 %v8968_v19  ;;  %v8976_v15 = vmul.f32 %v17172_v38, %v8715_v21  ;;  %v8977_v39 = vmul.f32 %v17172_v38, %v8716_v20  ;;  %v8978_v0 = vmul.f32 %v17172_v38, %v8717_v54  ;;  %v8979_v4 = vmul.f32 %v17172_v38, %v8718_v45 }
 0xe18   : > { %12911 = vmatmul.mubr.f32.vlgmr.msra.gmra.mrb[32].mxu1 %v8969_v26  ;;  %v8980_v41 = vmul.f32 %v17172_v38, %v8719_v18  ;;  %v17760_v60 = vmax.f32 %v17015_v2, 0.0  ;;  %v17761_v9 = vmax.f32 %v17023_v59, 0.0  ;;  %v17762_v44 = vmax.f32 %v17029_v50, 0.0 }
 0xe19   : > { %12913 = vmatprep.mubr.f32.mxu1 %v8970_v46  ;;  %v8984_v8 = vmul.f32 %v17172_v38, %v17763_v49  ;;  %v17764_v21 = vmax.f32 %v17039_v13, 0.0  ;;  %v17765_v20 = vmax.f32 %v17047_v43, 0.0  ;;  %v17766_v54 = vmax.f32 %v17053_v32, 0.0 }
 0xe1a   : > { %v8981_v31 = vmul.f32 %v17172_v38, %v17760_v60  ;;  %v8982_v62 = vmul.f32 %v17172_v38, %v17761_v9  ;;  %v8983_v35 = vmul.f32 %v17172_v38, %v17762_v44  ;;  %v8988_v45 = vmul.f32 %v17172_v38, %v17767_v47 }
 0xe1b   : > { %v8985_v37 = vmul.f32 %v17172_v38, %v17764_v21  ;;  %v8986_v40 = vmul.f32 %v17172_v38, %v17765_v20  ;;  %v8987_v56 = vmul.f32 %v17172_v38, %v17766_v54  ;;  %v17768_v18 = vmax.f32 %v17063_v34, 0.0 }
 0xe1c   : > { %12914 = vmatmul.mubr.f32.gmra.mrb[34].mxu1 %v8971_v53  ;;  %v17769_v59 = vmax.f32 %v17071_v58, 0.0  ;;  %v8991_v13 = vmul.f32 %v17172_v38, %v17770_v24  ;;  %v17771_v43 = vmax.f32 %v17082_v51, 0.0  ;;  %v8993_v34 = vmul.f32 %v17172_v38, %v17772_v55 }
 0xe1d   : > { %12916 = vmatprep.mubr.f32.mxu1 %v8972_v10  ;;  %v8989_v2 = vmul.f32 %v17172_v38, %v17768_v18  ;;  %v17773_v58 = vmax.f32 %v17095_v12, 0.0  ;;  %v8995_v6 = vmul.f32 %v17172_v38, %v17774_v30  ;;  %v17775_v51 = vmax.f32 %v17107_v23, 0.0  ;;  %v9324_v23 = vld [vmem:[%s17759_s25 + $0x60] sm:$0xff] }
 0xe1e   : > { %v8990_v50 = vmul.f32 %v17172_v38, %v17769_v59  ;;  %v8992_v32 = vmul.f32 %v17172_v38, %v17771_v43  ;;  %v8997_v61 = vmul.f32 %v17172_v38, %v8736_v48  ;;  %v8998_v12 = vmul.f32 %v17172_v38, %v8737_v11  ;;  %v9326_v11 = vld [vmem:[%s17759_s25 + $0x70] sm:$0xff] }
 0xe1f   : > { %v8994_v36 = vmul.f32 %v17172_v38, %v17773_v58  ;;  %v8996_v57 = vmul.f32 %v17172_v38, %v17775_v51  ;;  %v8999_v5 = vmul.f32 %v17172_v38, %v17776_v29  ;;  %v13220_v48 = vpack.c.bf16 %v9325_v27, %v9324_v23 }
 0xe20   : > { %12917 = vmatmul.mubr.f32.gmra.mrb[36].mxu1 %v8973_v3  ;;  %v13224_v38 = vpack.c.bf16 %v9327_v22, %v9326_v11 }
 0xe21   : > { %12919 = vmatprep.mubr.f32.mxu1 %v8974_v63  ;;  %13221 = vmatprep.subr.bf16.mxu0 %v13220_v48 }
 0xe22   : > { %13223 = vmatpush3.bf16.msra.mxu0 %v13220_v48 }
 0xe23   : > { %13225 = vmatprep.subr.bf16.mxu0 %v13224_v38 }
 0xe24   : > { %12920 = vmatmul.mubr.f32.gmra.mrb[38].mxu1 %v8975_v1 }
 0xe25   : > { %12922 = vmatprep.mubr.f32.mxu1 %v8976_v15 }
 0xe26   : > { %13227 = vmatpush3.bf16.msra.mxu0 %v13224_v38 }
 0xe28   : > { %12923 = vmatmul.mubr.f32.gmra.mrb[40].mxu1 %v8977_v39 }
 0xe29   : > { %12925 = vmatprep.mubr.f32.mxu1 %v8978_v0 }
 0xe2c   : > { %12926 = vmatmul.mubr.f32.gmra.mrb[42].mxu1 %v8979_v4 }
 0xe2d   : > { %12928 = vmatprep.mubr.f32.mxu1 %v8980_v41 }
 0xe30   : > { %12929 = vmatmul.mubr.f32.gmra.mrb[44].mxu1 %v8981_v31 }
 0xe31   : > { %12931 = vmatprep.mubr.f32.mxu1 %v8982_v62 }
 0xe34   : > { %12932 = vmatmul.mubr.f32.gmra.mrb[46].mxu1 %v8983_v35 }
 0xe35   : > { %12934 = vmatprep.mubr.f32.mxu1 %v8984_v8 }
 0xe38   : > { %12935 = vmatmul.mubr.f32.gmra.mrb[48].mxu1 %v8985_v37 }
 0xe39   : > { %12937 = vmatprep.mubr.f32.mxu1 %v8986_v40 }
 0xe3c   : > { %12938 = vmatmul.mubr.f32.gmra.mrb[50].mxu1 %v8987_v56 }
 0xe3d   : > { %12940 = vmatprep.mubr.f32.mxu1 %v8988_v45 }
 0xe40   : > { %12941 = vmatmul.mubr.f32.gmra.mrb[52].mxu1 %v8989_v2 }
 0xe41   : > { %12943 = vmatprep.mubr.f32.mxu1 %v8990_v50 }
 0xe44   : > { %12944 = vmatmul.mubr.f32.gmra.mrb[54].mxu1 %v8991_v13 }
 0xe45   : > { %12946 = vmatprep.mubr.f32.mxu1 %v8992_v32 }
 0xe48   : > { %12947 = vmatmul.mubr.f32.gmra.mrb[56].mxu1 %v8993_v34 }
 0xe49   : > { %12949 = vmatprep.mubr.f32.mxu1 %v8994_v36 }
 0xe4c   : > { %12950 = vmatmul.mubr.f32.gmra.mrb[58].mxu1 %v8995_v6 }
 0xe4d   : > { %12952 = vmatprep.mubr.f32.mxu1 %v8996_v57 }
 0xe50   : > { %12953 = vmatmul.mubr.f32.gmra.mrb[60].mxu1 %v8997_v61 }
 0xe51   : > { %12955 = vmatprep.mubr.f32.mxu1 %v8998_v12 }
 0xe54   : > { %12956 = vmatmul.mubr.f32.gmra.mrb[62].mxu1 %v8999_v5 }
 0xeeb   : > { %v12912_v14 = vpop.f32.mrb[32].mxu1 }
 0xeec   : > { %v13244_v7 = vadd.f32 %v12912_v14, %v9999_v33  ;;  %v9089_v16 = vpop.f32.mrb[33].mxu1 }
 0xeed   : > { %v13246_v42 = vadd.f32 %v9999_v33, %v9089_v16 }
 0xeee   : > { %v13245_v25 = vadd.f32 %v13244_v7, %v10398_v52 }
 0xeef   : > { %v13247_v28 = vadd.f32 %v13246_v42, %v10398_v52  ;;  %v12915_v19 = vpop.f32.mrb[34].mxu1 }
 0xef0   : > { %v9099_v26 = vpop.f32.mrb[35].mxu1  ;;  %v9281_v10 = vmax.f32 %v13245_v25, 0.0  ;;  %v13249_v3 = vadd.f32 %v17282_v17, %v12915_v19 }
 0xef1   : > { %v9280_v46 = vmax.f32 %v13247_v28, 0.0  ;;  %v13251_v53 = vadd.f32 %v17282_v17, %v9099_v26 }
 0xef2   : > { %v9283_v0 = vmax.f32 %v13249_v3, 0.0 }
 0xef3   : > { %v9282_v63 = vmax.f32 %v13251_v53, 0.0  ;;  %v12918_v1 = vpop.f32.mrb[36].mxu1  ;;  %12990 = vmatprep.mubr.f32.mxu0 %v9280_v46 }
 0xef4   : > { %v9109_v15 = vpop.f32.mrb[37].mxu1  ;;  %12991 = vmatmul.mubr.f32.vlgmr.msra.gmra.mrb[240].mxu0 %v9281_v10  ;;  %v13253_v4 = vadd.f32 %v17282_v17, %v12918_v1 }
 0xef5   : > { %v13255_v39 = vadd.f32 %v17282_v17, %v9109_v15  ;;  %12993 = vmatprep.mubr.f32.mxu0 %v9282_v63 }
 0xef6   : > { %v9285_v62 = vmax.f32 %v13253_v4, 0.0 }
 0xef7   : > { %v9284_v41 = vmax.f32 %v13255_v39, 0.0  ;;  %v12921_v60 = vpop.f32.mrb[38].mxu1 }
 0xef8   : > { %v9119_v31 = vpop.f32.mrb[39].mxu1  ;;  %12994 = vmatmul.mubr.f32.gmra.mrb[242].mxu0 %v9283_v0  ;;  %v13257_v44 = vadd.f32 %v17282_v17, %v12921_v60 }
 0xef9   : > { %v13259_v9 = vadd.f32 %v17282_v17, %v9119_v31  ;;  %12996 = vmatprep.mubr.f32.mxu0 %v9284_v41 }
 0xefa   : > { %v9287_v37 = vmax.f32 %v13257_v44, 0.0 }
 0xefb   : > { %v9286_v35 = vmax.f32 %v13259_v9, 0.0  ;;  %v12924_v49 = vpop.f32.mrb[40].mxu1 }
 0xefc   : > { %v9129_v8 = vpop.f32.mrb[41].mxu1  ;;  %12997 = vmatmul.mubr.f32.gmra.mrb[244].mxu0 %v9285_v62  ;;  %v13261_v20 = vadd.f32 %v17282_v17, %v12924_v49 }
 0xefd   : > { %v13263_v21 = vadd.f32 %v17282_v17, %v9129_v8  ;;  %12999 = vmatprep.mubr.f32.mxu0 %v9286_v35 }
 0xefe   : > { %v9289_v45 = vmax.f32 %v13261_v20, 0.0 }
 0xeff   : > { %v9288_v40 = vmax.f32 %v13263_v21, 0.0  ;;  %v12927_v54 = vpop.f32.mrb[42].mxu1 }
 0xf00   : > { %v9139_v56 = vpop.f32.mrb[43].mxu1  ;;  %13000 = vmatmul.mubr.f32.gmra.mrb[246].mxu0 %v9287_v37  ;;  %v13265_v18 = vadd.f32 %v17282_v17, %v12927_v54 }
 0xf01   : > { %v13267_v47 = vadd.f32 %v17282_v17, %v9139_v56  ;;  %13002 = vmatprep.mubr.f32.mxu0 %v9288_v40 }
 0xf02   : > { %v9291_v13 = vmax.f32 %v13265_v18, 0.0  ;;  %v17314_v18 = vld [vmem:[#allocation30] ss:$0 sm:$0xff] }
 0xf03   : > { %v9290_v2 = vmax.f32 %v13267_v47, 0.0  ;;  %v12930_v59 = vpop.f32.mrb[44].mxu1 }
 0xf04   : > { %v9149_v50 = vpop.f32.mrb[45].mxu1  ;;  %13003 = vmatmul.mubr.f32.gmra.mrb[248].mxu0 %v9289_v45  ;;  %v13269_v43 = vadd.f32 %v17282_v17, %v12930_v59 }
 0xf05   : > { %v13271_v24 = vadd.f32 %v17282_v17, %v9149_v50  ;;  %13005 = vmatprep.mubr.f32.mxu0 %v9290_v2 }
 0xf06   : > { %v9293_v36 = vmax.f32 %v13269_v43, 0.0 }
 0xf07   : > { %v9292_v32 = vmax.f32 %v13271_v24, 0.0  ;;  %v12933_v55 = vpop.f32.mrb[46].mxu1 }
 0xf08   : > { %v9159_v34 = vpop.f32.mrb[47].mxu1  ;;  %13006 = vmatmul.mubr.f32.gmra.mrb[250].mxu0 %v9291_v13  ;;  %v13273_v30 = vadd.f32 %v17282_v17, %v12933_v55 }
 0xf09   : > { %v13275_v58 = vadd.f32 %v17282_v17, %v9159_v34  ;;  %13008 = vmatprep.mubr.f32.mxu0 %v9292_v32 }
 0xf0a   : > { %v9295_v12 = vmax.f32 %v13273_v30, 0.0 }
 0xf0b   : > { %v9294_v6 = vmax.f32 %v13275_v58, 0.0  ;;  %v12936_v51 = vpop.f32.mrb[48].mxu1 }
 0xf0c   : > { %v9169_v57 = vpop.f32.mrb[49].mxu1  ;;  %13009 = vmatmul.mubr.f32.gmra.mrb[252].mxu0 %v9293_v36  ;;  %v13277_v29 = vadd.f32 %v17282_v17, %v12936_v51 }
 0xf0d   : > { %v13279_v61 = vadd.f32 %v17282_v17, %v9169_v57  ;;  %13011 = vmatprep.mubr.f32.mxu0 %v9294_v6 }
 0xf0e   : > { %v9297_v11 = vmax.f32 %v13277_v29, 0.0 }
 0xf0f   : > { %v9296_v5 = vmax.f32 %v13279_v61, 0.0  ;;  %v12939_v23 = vpop.f32.mrb[50].mxu1 }
 0xf10   : > { %v9179_v27 = vpop.f32.mrb[51].mxu1  ;;  %13012 = vmatmul.mubr.f32.gmra.mrb[254].mxu0 %v9295_v12  ;;  %v13281_v22 = vadd.f32 %v17282_v17, %v12939_v23 }
 0xf11   : > { %v13283_v48 = vadd.f32 %v17282_v17, %v9179_v27  ;;  %13014 = vmatprep.mubr.f32.mxu0 %v9296_v5 }
 0xf12   : > { %v9299_v7 = vmax.f32 %v13281_v22, 0.0 }
 0xf13   : > { %v9298_v38 = vmax.f32 %v13283_v48, 0.0  ;;  %v12942_v33 = vpop.f32.mrb[52].mxu1 }
 0xf14   : > { %v9189_v52 = vpop.f32.mrb[53].mxu1  ;;  %13015 = vmatmul.mubr.f32.gmra.mrb[0].mxu0 %v9297_v11  ;;  %v13285_v16 = vadd.f32 %v17282_v17, %v12942_v33 }
 0xf15   : > { %v13287_v14 = vadd.f32 %v17282_v17, %v9189_v52  ;;  %13017 = vmatprep.mubr.f32.mxu0 %v9298_v38 }
 0xf16   : > { %v9301_v26 = vmax.f32 %v13285_v16, 0.0 }
 0xf17   : > { %v9300_v42 = vmax.f32 %v13287_v14, 0.0  ;;  %v12945_v25 = vpop.f32.mrb[54].mxu1 }
 0xf18   : > { %v9199_v28 = vpop.f32.mrb[55].mxu1  ;;  %13018 = vmatmul.mubr.f32.gmra.mrb[2].mxu0 %v9299_v7  ;;  %v13289_v46 = vadd.f32 %v17282_v17, %v12945_v25 }
 0xf19   : > { %v13291_v19 = vadd.f32 %v17282_v17, %v9199_v28  ;;  %13020 = vmatprep.mubr.f32.mxu0 %v9300_v42 }
 0xf1a   : > { %v9303_v1 = vmax.f32 %v13289_v46, 0.0 }
 0xf1b   : > { %v9302_v53 = vmax.f32 %v13291_v19, 0.0  ;;  %v12948_v10 = vpop.f32.mrb[56].mxu1 }
 0xf1c   : > { %v9209_v3 = vpop.f32.mrb[57].mxu1  ;;  %13021 = vmatmul.mubr.f32.gmra.mrb[4].mxu0 %v9301_v26  ;;  %v13293_v15 = vadd.f32 %v17282_v17, %v12948_v10 }
 0xf1d   : > { %v13295_v63 = vadd.f32 %v17282_v17, %v9209_v3  ;;  %13023 = vmatprep.mubr.f32.mxu0 %v9302_v53 }
 0xf1e   : > { %v9305_v60 = vmax.f32 %v13293_v15, 0.0 }
 0xf1f   : > { %v9304_v39 = vmax.f32 %v13295_v63, 0.0  ;;  %v12951_v0 = vpop.f32.mrb[58].mxu1 }
 0xf20   : > { %v9219_v4 = vpop.f32.mrb[59].mxu1  ;;  %13024 = vmatmul.mubr.f32.gmra.mrb[6].mxu0 %v9303_v1  ;;  %v13297_v31 = vadd.f32 %v17282_v17, %v12951_v0 }
 0xf21   : > { %v13299_v41 = vadd.f32 %v17282_v17, %v9219_v4  ;;  %13026 = vmatprep.mubr.f32.mxu0 %v9304_v39 }
 0xf22   : > { %v9307_v49 = vmax.f32 %v13297_v31, 0.0 }
 0xf23   : > { %v9306_v9 = vmax.f32 %v13299_v41, 0.0  ;;  %v12954_v62 = vpop.f32.mrb[60].mxu1 }
 0xf24   : > { %v9229_v44 = vpop.f32.mrb[61].mxu1  ;;  %13027 = vmatmul.mubr.f32.gmra.mrb[8].mxu0 %v9305_v60  ;;  %v13301_v8 = vadd.f32 %v17282_v17, %v12954_v62 }
 0xf25   : > { %v13303_v35 = vadd.f32 %v17282_v17, %v9229_v44  ;;  %13029 = vmatprep.mubr.f32.mxu0 %v9306_v9 }
 0xf26   : > { %v9309_v54 = vmax.f32 %v13301_v8, 0.0 }
 0xf27   : > { %v9308_v21 = vmax.f32 %v13303_v35, 0.0  ;;  %v12957_v37 = vpop.f32.mrb[62].mxu1 }
 0xf28   : > { %v9239_v20 = vpop.f32.mrb[63].mxu1  ;;  %13030 = vmatmul.mubr.f32.gmra.mrb[10].mxu0 %v9307_v49  ;;  %v13305_v56 = vadd.f32 %v17282_v17, %v12957_v37 }
 0xf29   : > { %v13307_v40 = vadd.f32 %v17282_v17, %v9239_v20  ;;  %13032 = vmatprep.mubr.f32.mxu0 %v9308_v21 }
 0xf2a   : > { %v9311_v45 = vmax.f32 %v13305_v56, 0.0 }
 0xf2b   : > { %v9310_v47 = vmax.f32 %v13307_v40, 0.0 }
 0xf2c   : > { %13033 = vmatmul.mubr.f32.gmra.mrb[12].mxu0 %v9309_v54 }
 0xf2d   : > { %13035 = vmatprep.mubr.f32.mxu0 %v9310_v47 }
 0xf30   : > { %13036 = vmatmul.mubr.f32.gmra.mrb[14].mxu0 %v9311_v45 }
 0xfc7   : > { %v12992_v2 = vpop.f32.mrb[240].mxu0 }
 0xfc8   : > { %v9407_v17 = vadd.f32 %v12992_v2, %v17314_v18  ;;  %v9401_v59 = vpop.f32.mrb[241].mxu0 }
 0xfc9   : > { %v9402_v50 = vadd.f32 %v17314_v18, %v9401_v59 }
 0xfca   : > { %9562 = vst.msk [vmem:[%s17321_s26 + $0x8] sm:$0xff] %vm9560_vm7, %v9407_v17 }
 0xfcb   : > { %9561 = vst.msk [vmem:[%s17321_s26] sm:$0xff] %vm9560_vm7, %v9402_v50  ;;  %v12995_v24 = vpop.f32.mrb[242].mxu0 }
 0xfcc   : > { %v9417_v13 = vadd.f32 %v12995_v24, %v17314_v18  ;;  %v9411_v43 = vpop.f32.mrb[243].mxu0 }
 0xfcd   : > { %v9412_v32 = vadd.f32 %v17314_v18, %v9411_v43 }
 0xfce   : > { %9564 = vst.msk [vmem:[%s17321_s26 + $0x18] sm:$0xff] %vm9560_vm7, %v9417_v13 }
 0xfcf   : > { %9563 = vst.msk [vmem:[%s17321_s26 + $0x10] sm:$0xff] %vm9560_vm7, %v9412_v32  ;;  %v12998_v55 = vpop.f32.mrb[244].mxu0 }
 0xfd0   : > { %v9427_v34 = vadd.f32 %v12998_v55, %v17314_v18  ;;  %v9421_v58 = vpop.f32.mrb[245].mxu0 }
 0xfd1   : > { %v9422_v36 = vadd.f32 %v17314_v18, %v9421_v58 }
 0xfd2   : > { %9566 = vst.msk [vmem:[%s17321_s26 + $0x28] sm:$0xff] %vm9560_vm7, %v9427_v34 }
 0xfd3   : > { %9565 = vst.msk [vmem:[%s17321_s26 + $0x20] sm:$0xff] %vm9560_vm7, %v9422_v36  ;;  %v13001_v30 = vpop.f32.mrb[246].mxu0 }
 0xfd4   : > { %v9437_v6 = vadd.f32 %v13001_v30, %v17314_v18  ;;  %v9431_v51 = vpop.f32.mrb[247].mxu0 }
 0xfd5   : > { %v9432_v57 = vadd.f32 %v17314_v18, %v9431_v51 }
 0xfd6   : > { %9568 = vst.msk [vmem:[%s17321_s26 + $0x38] sm:$0xff] %vm9560_vm7, %v9437_v6 }
 0xfd7   : > { %9567 = vst.msk [vmem:[%s17321_s26 + $0x30] sm:$0xff] %vm9560_vm7, %v9432_v57  ;;  %v13004_v61 = vpop.f32.mrb[248].mxu0 }
 0xfd8   : > { %v9447_v12 = vadd.f32 %v13004_v61, %v17314_v18  ;;  %v9441_v29 = vpop.f32.mrb[249].mxu0 }
 0xfd9   : > { %v9442_v5 = vadd.f32 %v17314_v18, %v9441_v29 }
 0xfda   : > { %9570 = vst.msk [vmem:[%s17321_s26 + $0x48] sm:$0xff] %vm9560_vm7, %v9447_v12 }
 0xfdb   : > { %9569 = vst.msk [vmem:[%s17321_s26 + $0x40] sm:$0xff] %vm9560_vm7, %v9442_v5  ;;  %v13007_v23 = vpop.f32.mrb[250].mxu0 }
 0xfdc   : > { %v9457_v27 = vadd.f32 %v13007_v23, %v17314_v18  ;;  %v9451_v48 = vpop.f32.mrb[251].mxu0 }
 0xfdd   : > { %v9452_v11 = vadd.f32 %v17314_v18, %v9451_v48 }
 0xfde   : > { %9572 = vst.msk [vmem:[%s17321_s26 + $0x58] sm:$0xff] %vm9560_vm7, %v9457_v27 }
 0xfdf   : > { %9571 = vst.msk [vmem:[%s17321_s26 + $0x50] sm:$0xff] %vm9560_vm7, %v9452_v11  ;;  %v13010_v22 = vpop.f32.mrb[252].mxu0 }
 0xfe0   : > { %v9467_v38 = vadd.f32 %v13010_v22, %v17314_v18  ;;  %v9461_v33 = vpop.f32.mrb[253].mxu0 }
 0xfe1   : > { %v9462_v52 = vadd.f32 %v17314_v18, %v9461_v33 }
 0xfe2   : > { %9574 = vst.msk [vmem:[%s17321_s26 + $0x68] sm:$0xff] %vm9560_vm7, %v9467_v38 }
 0xfe3   : > { %9573 = vst.msk [vmem:[%s17321_s26 + $0x60] sm:$0xff] %vm9560_vm7, %v9462_v52  ;;  %v13013_v14 = vpop.f32.mrb[254].mxu0 }
 0xfe4   : > { %v9477_v7 = vadd.f32 %v13013_v14, %v17314_v18  ;;  %v9471_v16 = vpop.f32.mrb[255].mxu0 }
 0xfe5   : > { %v9472_v42 = vadd.f32 %v17314_v18, %v9471_v16 }
 0xfe6   : > { %9576 = vst.msk [vmem:[%s17321_s26 + $0x78] sm:$0xff] %vm9560_vm7, %v9477_v7 }
 0xfe7   : > { %9575 = vst.msk [vmem:[%s17321_s26 + $0x70] sm:$0xff] %vm9560_vm7, %v9472_v42  ;;  %v13016_v25 = vpop.f32.mrb[0].mxu0 }
 0xfe8   : > { %v9487_v28 = vadd.f32 %v13016_v25, %v17314_v18  ;;  %v9481_v19 = vpop.f32.mrb[1].mxu0 }
 0xfe9   : > { %v9482_v26 = vadd.f32 %v17314_v18, %v9481_v19 }
 0xfea   : > { %9578 = vst.msk [vmem:[%s17321_s26 + $0x88] sm:$0xff] %vm9560_vm7, %v9487_v28 }
 0xfeb   : > { %9577 = vst.msk [vmem:[%s17321_s26 + $0x80] sm:$0xff] %vm9560_vm7, %v9482_v26  ;;  %v13019_v46 = vpop.f32.mrb[2].mxu0 }
 0xfec   : > { %v9497_v53 = vadd.f32 %v13019_v46, %v17314_v18  ;;  %v9491_v10 = vpop.f32.mrb[3].mxu0 }
 0xfed   : > { %v9492_v3 = vadd.f32 %v17314_v18, %v9491_v10 }
 0xfee   : > { %9580 = vst.msk [vmem:[%s17321_s26 + $0x98] sm:$0xff] %vm9560_vm7, %v9497_v53 }
 0xfef   : > { %9579 = vst.msk [vmem:[%s17321_s26 + $0x90] sm:$0xff] %vm9560_vm7, %v9492_v3  ;;  %v13022_v63 = vpop.f32.mrb[4].mxu0 }
 0xff0   : > { %v9507_v1 = vadd.f32 %v13022_v63, %v17314_v18  ;;  %v9501_v15 = vpop.f32.mrb[5].mxu0 }
 0xff1   : > { %v9502_v39 = vadd.f32 %v17314_v18, %v9501_v15 }
 0xff2   : > { %9582 = vst.msk [vmem:[%s17321_s26 + $0xa8] sm:$0xff] %vm9560_vm7, %v9507_v1 }
 0xff3   : > { %9581 = vst.msk [vmem:[%s17321_s26 + $0xa0] sm:$0xff] %vm9560_vm7, %v9502_v39  ;;  %v13025_v0 = vpop.f32.mrb[6].mxu0 }
 0xff4   : > { %v9517_v4 = vadd.f32 %v13025_v0, %v17314_v18  ;;  %v9511_v41 = vpop.f32.mrb[7].mxu0 }
 0xff5   : > { %v9512_v60 = vadd.f32 %v17314_v18, %v9511_v41 }
 0xff6   : > { %9584 = vst.msk [vmem:[%s17321_s26 + $0xb8] sm:$0xff] %vm9560_vm7, %v9517_v4 }
 0xff7   : > { %9583 = vst.msk [vmem:[%s17321_s26 + $0xb0] sm:$0xff] %vm9560_vm7, %v9512_v60  ;;  %v13028_v31 = vpop.f32.mrb[8].mxu0 }
 0xff8   : > { %v9527_v9 = vadd.f32 %v13028_v31, %v17314_v18  ;;  %v9521_v62 = vpop.f32.mrb[9].mxu0 }
 0xff9   : > { %v9522_v44 = vadd.f32 %v17314_v18, %v9521_v62 }
 0xffa   : > { %9586 = vst.msk [vmem:[%s17321_s26 + $0xc8] sm:$0xff] %vm9560_vm7, %v9527_v9 }
 0xffb   : > { %9585 = vst.msk [vmem:[%s17321_s26 + $0xc0] sm:$0xff] %vm9560_vm7, %v9522_v44  ;;  %v13031_v35 = vpop.f32.mrb[10].mxu0 }
 0xffc   : > { %v9537_v49 = vadd.f32 %v13031_v35, %v17314_v18  ;;  %v9531_v8 = vpop.f32.mrb[11].mxu0 }
 0xffd   : > { %v9532_v21 = vadd.f32 %v17314_v18, %v9531_v8 }
 0xffe   : > { %9588 = vst.msk [vmem:[%s17321_s26 + $0xd8] sm:$0xff] %vm9560_vm7, %v9537_v49 }
 0xfff   : > { %9587 = vst.msk [vmem:[%s17321_s26 + $0xd0] sm:$0xff] %vm9560_vm7, %v9532_v21  ;;  %v13034_v37 = vpop.f32.mrb[12].mxu0 }
0x1000   : > { %v9547_v20 = vadd.f32 %v13034_v37, %v17314_v18  ;;  %v9541_v40 = vpop.f32.mrb[13].mxu0 }
0x1001   : > { %v9542_v54 = vadd.f32 %v17314_v18, %v9541_v40 }
0x1002   : > { %9590 = vst.msk [vmem:[%s17321_s26 + $0xe8] sm:$0xff] %vm9560_vm7, %v9547_v20 }
0x1003   : > { %9589 = vst.msk [vmem:[%s17321_s26 + $0xe0] sm:$0xff] %vm9560_vm7, %v9542_v54  ;;  %v13037_v56 = vpop.f32.mrb[14].mxu0 }
0x1004   : > { %v9557_v47 = vadd.f32 %v13037_v56, %v17314_v18  ;;  %v9551_v45 = vpop.f32.mrb[15].mxu0 }
0x1005   : > { %v9552_v2 = vadd.f32 %v17314_v18, %v9551_v45 }
0x1006   : > { %9592 = vst.msk [vmem:[%s17321_s26 + $0xf8] sm:$0xff] %vm9560_vm7, %v9557_v47 }
0x1007   : > { %9591 = vst.msk [vmem:[%s17321_s26 + $0xf0] sm:$0xff] %vm9560_vm7, %v9552_v2 }
0x1008 PF: > { %s17778_s16 = sld [smem:[#allocation41_spill]] }
0x100e   : > { %s44_s5 = sadd.s32 1, %s17778_s16  }
0x100f   : > { %p41_p6 = scmp.ge.s32.totalorder %s44_s5, 4  }
0x1011   :  { %43 = sbr.rel (!%p41_p6) target bundleno = 25 (0x19), region = 242 }
0x1018   :  { %9614 = vsyncpa [#allocation3], 1 }
0x1019   :  { %9616 = vsyncpa [#allocation3 + $0x1], 1 }
0x101a   :  { %9617 = vsyncpa [#allocation5], 1 }
0x101b   :  { %9618 = vsyncpa [#allocation8], 1 }
0x101c   :  { %9619 = vsyncpa [#allocation11], 1 }
0x101d   :  { %9620 = vsyncpa [#allocation14], 1 }
0x101e   :  { %9621 = vsyncpa [#allocation17], 1 }
0x101f   :  { %9622 = vsyncpa [#allocation20], 1 }
0x1020   :  { %9623 = vsyncpa [#allocation23], 1 }
0x1021   :  { %9624 = vsyncpa [#allocation26], 1 }
0x1022   :  { %9625 = vsyncpa [#allocation29], 1 }

</bundles_post_ra>
